<compile_context>
chip_gen: v7x
topology: tpu7x:2x2x1
jax: 0.10.0
libtpu: 0.0.40
codegen_flags: <defaults>
</compile_context>

<pallas_src>
import functools
import numpy as np
import jax
import jax.numpy as jnp
from jax import lax
from jax.experimental import pallas as pl
from jax.experimental.pallas import tpu as pltpu

EPS = 1e-5


# ------------------------------ fused kernel ---------------------------------
def _dsconv_kernel(xf_ref, woff_ref, boff_ref, gow_ref, gob_ref, aoff_ref,
                   wk_ref, bk_ref, gw_ref, gb_ref, aout_ref,
                   rowi_ref, coli_ref,
                   out_ref,
                   patch_ref, dmat_ref,
                   *, K, C, H, W, Wp, dyn_base, extend_scope, spread,
                   band_lo, band_hi, cnt_off, cnt_out, mxu_dtype):
    HWp = H * Wp
    xf = xf_ref[0]                      # [C, H*Wp]  replicate-padded, flattened
    row = rowi_ref[...]                 # [1, H*Wp]  image row index (float)
    col = coli_ref[...]                 # [1, H*Wp]  image col index (<0 / >=W in pads)
    validf = jnp.where(jnp.logical_and(col >= 0.0, col <= float(W - 1)), 1.0, 0.0)

    def lroll(v, s):
        # shifted[..., j] = v[..., (j + s) mod N]   (static lane rotation, XLU)
        n = v.shape[-1]
        s = (-s) % n
        if s == 0:
            return v
        return pltpu.roll(v, shift=s, axis=v.ndim - 1)

    # ---- offset conv (3x3, zero pad) : im2col scratch + one MXU matmul ------
    t = 0
    for dy in (-1, 0, 1):
        rm = jnp.logical_and(row >= float(-dy), row <= float(H - 1 - dy))
        for dx in (-1, 0, 1):
            cm = jnp.logical_and(col >= float(-dx), col <= float(W - 1 - dx))
            m = jnp.where(jnp.logical_and(rm, cm), 1.0, 0.0)       # [1, HWp]
            patch_ref[t * C:(t + 1) * C, :] = m * lroll(xf, dy * Wp + dx)
            t += 1
    off_acc = jnp.dot(woff_ref[...], patch_ref[...],
                      preferred_element_type=jnp.float32)          # [2K, HWp]
    off_acc = off_acc + boff_ref[...]

    # GroupNorm(K, 2K) over valid columns only (masked single-pass stats)
    s1 = jnp.sum(off_acc * validf, axis=1, keepdims=True)          # [2K, 1]
    q1 = jnp.sum(off_acc * off_acc * validf, axis=1, keepdims=True)
    gs = jnp.dot(aoff_ref[...], s1, preferred_element_type=jnp.float32) / cnt_off
    gq = jnp.dot(aoff_ref[...], q1, preferred_element_type=jnp.float32) / cnt_off
    inv = lax.rsqrt(gq - gs * gs + EPS)
    off = jnp.tanh((off_acc - gs) * inv * gow_ref[...] + gob_ref[...])  # [2K, HWp]

    # ---- cumulative snake offsets outward from the kernel center ------------
    center = K // 2
    cum = [None] * K
    cum[center] = jnp.zeros((1, HWp), jnp.float32)
    for i in range(1, center + 1):
        cum[center + i] = cum[center + i - 1] + \
            off[dyn_base + center + i:dyn_base + center + i + 1, :]
        cum[center - i] = cum[center - i + 1] + \
            off[dyn_base + center - i:dyn_base + center - i + 1, :]

    # ---- deformable sampling: banded two-tap row interp + static column taps -
    for k in range(K):
        s_k = spread[k]
        s0 = int(np.floor(s_k))
        fr = float(s_k - s0)
        xk = lroll(xf, s0)                       # static column tap (replicate pad)
        if fr != 0.0:                            # fractional spread (even K only)
            xk = (1.0 - fr) * xk + fr * lroll(xf, s0 + 1)

        yk = jnp.clip(row + extend_scope * cum[k], 0.0, float(H - 1))  # [1, HWp]
        y0 = jnp.floor(yk)
        wy1 = yk - y0
        wy0 = 1.0 - wy1
        r = (y0 - row).astype(jnp.int32)         # banded relative row index

        dk = jnp.zeros((C, HWp), jnp.float32)
        for d in range(-band_lo, band_hi + 1):   # out-of-range rows get 0 weight
            wgt = (jnp.where(r == d, wy0, 0.0)
                   + jnp.where(r == d - 1, wy1, 0.0))                 # [1, HWp]
            dk = dk + wgt * lroll(xk, d * Wp)
        dmat_ref[k * C:(k + 1) * C, :] = dk.astype(mxu_dtype)

    # ---- snake conv: single [Co, K*C] x [K*C, HWp] MXU matmul ----------------
    out_acc = jnp.dot(wk_ref[...], dmat_ref[...],
                      preferred_element_type=jnp.float32)          # [Co, HWp]
    out_acc = out_acc + bk_ref[...]

    # GroupNorm(Co//4, Co) + ReLU over valid columns
    s2 = jnp.sum(out_acc * validf, axis=1, keepdims=True)
    q2 = jnp.sum(out_acc * out_acc * validf, axis=1, keepdims=True)
    gs2 = jnp.dot(aout_ref[...], s2, preferred_element_type=jnp.float32) / cnt_out
    gq2 = jnp.dot(aout_ref[...], q2, preferred_element_type=jnp.float32) / cnt_out
    inv2 = lax.rsqrt(gq2 - gs2 * gs2 + EPS)
    y = jnp.maximum((out_acc - gs2) * inv2 * gw_ref[...] + gb_ref[...], 0.0)
    out_ref[...] = y[None]


# --------------------------------- wrapper ------------------------------------
def dsconv_pro_forward(x, params, kernel_size=9, extend_scope=1.0, morph=0,
                       mxu_dtype=jnp.bfloat16):
    if morph not in (0, 1):
        raise ValueError("morph should be 0 or 1.")
    K = int(kernel_size)
    x = x.astype(jnp.float32)

    if morph == 0:
        xs = x
        w_off = params["w_off"]
        w_dsc = params["w_dsc_x"][:, :, :, 0]           # [Co, C, K]
        b_dsc = params["b_dsc_x"]
        dyn_base = 0
    else:
        # morph==1 == morph==0 on the spatially-transposed problem
        xs = jnp.transpose(x, (0, 1, 3, 2))
        w_off = jnp.transpose(params["w_off"], (0, 1, 3, 2))
        w_dsc = params["w_dsc_y"][:, :, 0, :]           # [Co, C, K]
        b_dsc = params["b_dsc_y"]
        dyn_base = K

    B, C, H, W = xs.shape
    Co = int(w_dsc.shape[0])
    center = K // 2
    spread = tuple(float(v) for v in np.linspace(-center, center, K))

    # replicate-pad the width axis so every column tap is a pure lane rotation;
    # extend the right pad so the flattened lane axis is a multiple of 128.
    pc = center + 1
    pr = center + 1
    extra = 0
    while (H * (W + pc + pr + extra)) % 128 != 0 and extra < 128:
        extra += 1
    if (H * (W + pc + pr + extra)) % 128 == 0:
        pr += extra
    Wp = W + pc + pr
    HWp = H * Wp

    xpad = jnp.pad(xs, ((0, 0), (0, 0), (0, 0), (pc, pr)), mode="edge")
    xf = xpad.reshape(B, C, HWp)

    # fold taps into single contraction dims (C*9 for offset conv, C*K for snake)
    w_off2 = jnp.transpose(w_off, (0, 2, 3, 1)).reshape(2 * K, 9 * C)
    w_off2 = w_off2.astype(jnp.float32)
    w_k2 = jnp.transpose(w_dsc, (0, 2, 1)).reshape(Co, K * C).astype(mxu_dtype)

    # tiny constants: flattened row/col indices + group-broadcast matrices
    rowi = jnp.asarray(np.repeat(np.arange(H, dtype=np.float32), Wp)[None, :])
    coli = jnp.asarray(np.tile(np.arange(Wp, dtype=np.float32) - pc, H)[None, :])
    g_off = np.arange(2 * K) // 2
    a_off = jnp.asarray((g_off[:, None] == g_off[None, :]).astype(np.float32))
    n_groups = max(Co // 4, 1)
    cpg = Co // n_groups
    g_out = np.arange(Co) // cpg
    a_out = jnp.asarray((g_out[:, None] == g_out[None, :]).astype(np.float32))

    # band half-width of the dynamic-row interpolation (tanh-bounded offsets)
    e = float(extend_scope) * center
    band_lo = int(np.ceil(e))
    band_hi = int(np.floor(e)) + 1

    kern = functools.partial(
        _dsconv_kernel, K=K, C=C, H=H, W=W, Wp=Wp, dyn_base=dyn_base,
        extend_scope=float(extend_scope), spread=spread,
        band_lo=band_lo, band_hi=band_hi,
        cnt_off=float(2 * H * W), cnt_out=float(cpg * H * W),
        mxu_dtype=mxu_dtype)

    out_flat = pl.pallas_call(
        kern,
        out_shape=jax.ShapeDtypeStruct((B, Co, HWp), jnp.float32),
        grid=(B,),
        in_specs=[
            pl.BlockSpec((1, C, HWp), lambda i: (i, 0, 0)),       # xf
            pl.BlockSpec((2 * K, 9 * C), lambda i: (0, 0)),       # offset conv w
            pl.BlockSpec((2 * K, 1), lambda i: (0, 0)),           # offset conv b
            pl.BlockSpec((2 * K, 1), lambda i: (0, 0)),           # gn_off gamma
            pl.BlockSpec((2 * K, 1), lambda i: (0, 0)),           # gn_off beta
            pl.BlockSpec((2 * K, 2 * K), lambda i: (0, 0)),       # group matrix
            pl.BlockSpec((Co, K * C), lambda i: (0, 0)),          # snake conv w
            pl.BlockSpec((Co, 1), lambda i: (0, 0)),              # snake conv b
            pl.BlockSpec((Co, 1), lambda i: (0, 0)),              # gn gamma
            pl.BlockSpec((Co, 1), lambda i: (0, 0)),              # gn beta
            pl.BlockSpec((Co, Co), lambda i: (0, 0)),             # group matrix
            pl.BlockSpec((1, HWp), lambda i: (0, 0)),             # row index
            pl.BlockSpec((1, HWp), lambda i: (0, 0)),             # col index
        ],
        out_specs=pl.BlockSpec((1, Co, HWp), lambda i: (i, 0, 0)),
        scratch_shapes=[
            pltpu.VMEM((9 * C, HWp), jnp.float32),                # im2col (offset)
            pltpu.VMEM((K * C, HWp), mxu_dtype),                  # im2col (snake)
        ],
        compiler_params=pltpu.CompilerParams(
            dimension_semantics=("parallel",)),
    )(xf, w_off2,
      params["b_off"].reshape(2 * K, 1).astype(jnp.float32),
      params["gn_off_w"].reshape(2 * K, 1).astype(jnp.float32),
      params["gn_off_b"].reshape(2 * K, 1).astype(jnp.float32),
      a_off, w_k2,
      b_dsc.reshape(Co, 1).astype(jnp.float32),
      params["gn_w"].reshape(Co, 1).astype(jnp.float32),
      params["gn_b"].reshape(Co, 1).astype(jnp.float32),
      a_out, rowi, coli)

    out = out_flat.reshape(B, Co, H, Wp)[:, :, :, pc:pc + W]
    if morph == 1:
        out = jnp.transpose(out, (0, 1, 3, 2))
    return out


# ------------------------- pure-JAX reference (check) -------------------------
def _group_norm_ref(x, groups, gamma, beta):
    B = x.shape[0]
    xg = x.reshape(B, groups, -1)
    m = xg.mean(-1, keepdims=True)
    v = ((xg - m) ** 2).mean(-1, keepdims=True)
    xn = ((xg - m) / jnp.sqrt(v + EPS)).reshape(x.shape)
    return xn * gamma[None, :, None, None] + beta[None, :, None, None]


def _bilinear_sample_ref(feat, ymap, xmap):
    B, C, H, W = feat.shape
    y = jnp.clip(ymap, 0.0, H - 1.0)
    x = jnp.clip(xmap, 0.0, W - 1.0)
    y0 = jnp.floor(y); x0 = jnp.floor(x)
    wy1 = y - y0; wx1 = x - x0
    wy0 = 1.0 - wy1; wx0 = 1.0 - wx1
    y0i = y0.astype(jnp.int32); x0i = x0.astype(jnp.int32)
    y1i = y0i + 1; x1i = x0i + 1
    vy1 = (y1i <= H - 1).astype(feat.dtype)
    vx1 = (x1i <= W - 1).astype(feat.dtype)
    y1c = jnp.clip(y1i, 0, H - 1); x1c = jnp.clip(x1i, 0, W - 1)

    def g(f, yi, xi):
        return f[:, yi, xi]
    gather = jax.vmap(g)
    return (gather(feat, y0i, x0i) * (wy0 * wx0)[:, None]
            + gather(feat, y0i, x1c) * (wy0 * wx1 * vx1)[:, None]
            + gather(feat, y1c, x0i) * (wy1 * wx0 * vy1)[:, None]
            + gather(feat, y1c, x1c) * (wy1 * wx1 * vy1 * vx1)[:, None])


def ref_offset_branch(x, params, K):
    off = lax.conv_general_dilated(x, params["w_off"], (1, 1), "SAME",
                                   dimension_numbers=("NCHW", "OIHW", "NCHW"))
    off = off + params["b_off"][None, :, None, None]
    off = _group_norm_ref(off, K, params["gn_off_w"], params["gn_off_b"])
    return jnp.tanh(off)


def ref_from_offset(x, off, params, K, morph, extend_scope):
    B, C, H, W = x.shape
    Co = params["w_dsc_x"].shape[0]
    center = K // 2
    spread = jnp.linspace(-center, center, K).astype(jnp.float32)

    def cumulate(o):
        cum = [None] * K
        cum[center] = jnp.zeros_like(o[:, 0])
        for i in range(1, center + 1):
            cum[center + i] = cum[center + i - 1] + o[:, center + i]
            cum[center - i] = cum[center - i + 1] + o[:, center - i]
        return jnp.stack(cum, axis=1)

    if morph == 0:
        cum = cumulate(off[:, :K])
        ynew = jnp.arange(H, dtype=jnp.float32)[None, None, :, None] + extend_scope * cum
        xnew = jnp.broadcast_to(jnp.arange(W, dtype=jnp.float32)[None, None, None, :]
                                + spread[None, :, None, None], (B, K, H, W))
        ymap = jnp.transpose(ynew, (0, 2, 1, 3)).reshape(B, K * H, W)
        xmap = jnp.transpose(xnew, (0, 2, 1, 3)).reshape(B, K * H, W)
        d = _bilinear_sample_ref(x, ymap, xmap).reshape(B, C, H, K, W)
        out = jnp.einsum("bchkw,ock->bohw", d, params["w_dsc_x"][:, :, :, 0])
        out = out + params["b_dsc_x"][None, :, None, None]
    else:
        cum = cumulate(off[:, K:2 * K])
        xnew = jnp.arange(W, dtype=jnp.float32)[None, None, None, :] + extend_scope * cum
        ynew = jnp.broadcast_to(jnp.arange(H, dtype=jnp.float32)[None, None, :, None]
                                + spread[None, :, None, None], (B, K, H, W))
        ymap = jnp.transpose(ynew, (0, 2, 3, 1)).reshape(B, H, W * K)
        xmap = jnp.transpose(xnew, (0, 2, 3, 1)).reshape(B, H, W * K)
        d = _bilinear_sample_ref(x, ymap, xmap).reshape(B, C, H, W, K)
        out = jnp.einsum("bchwk,ock->bohw", d, params["w_dsc_y"][:, :, 0, :])
        out = out + params["b_dsc_y"][None, :, None, None]
    out = _group_norm_ref(out, Co // 4, params["gn_w"], params["gn_b"])
    return jax.nn.relu(out)


# --------------------------------- params -------------------------------------
def init_params(key, in_channels, out_channels, K):
    ks = jax.random.split(key, 10)
    p = {}
    p["w_off"] = 0.1 * jax.random.normal(ks[0], (2 * K, in_channels, 3, 3), jnp.float32)
    p["b_off"] = 0.1 * jax.random.normal(ks[1], (2 * K,), jnp.float32)
    p["gn_off_w"] = 1.0 + 0.1 * jax.random.normal(ks[2], (2 * K,), jnp.float32)
    p["gn_off_b"] = 0.1 * jax.random.normal(ks[3], (2 * K,), jnp.float32)
    p["w_dsc_x"] = 0.1 * jax.random.normal(ks[4], (out_channels, in_channels, K, 1), jnp.float32)
    p["b_dsc_x"] = 0.1 * jax.random.normal(ks[5], (out_channels,), jnp.float32)
    p["w_dsc_y"] = 0.1 * jax.random.normal(ks[6], (out_channels, in_channels, 1, K), jnp.float32)
    p["b_dsc_y"] = 0.1 * jax.random.normal(ks[7], (out_channels,), jnp.float32)
    p["gn_w"] = 1.0 + 0.1 * jax.random.normal(ks[8], (out_channels,), jnp.float32)
    p["gn_b"] = 0.1 * jax.random.normal(ks[9], (out_channels,), jnp.float32)
    return p


if __name__ == "__main__":
    B, C_in, C_out, H, W, K = 2, 4, 4, 16, 16, 9
    extend_scope = 1.0
    key = jax.random.PRNGKey(0)
    kx, kp = jax.random.split(key)
    x = jax.random.normal(kx, (B, C_in, H, W), jnp.float32)
    params = init_params(kp, C_in, C_out, K)

    off_ref = ref_offset_branch(x, params, K)

    # strict f32 check against a faithful end-to-end pure-JAX reference, both morphs
    for morph in (0, 1):
        out = dsconv_pro_forward(x, params, kernel_size=K,
                                 extend_scope=extend_scope, morph=morph,
                                 mxu_dtype=jnp.float32)
        out = jax.block_until_ready(out)
        assert out.shape == (B, C_out, H, W)
        out_ref = ref_from_offset(x, off_ref, params, K, morph, extend_scope)
        np.testing.assert_allclose(np.asarray(out), np.asarray(out_ref),
                                   rtol=1e-3, atol=1e-3)

    # bf16 MXU-operand path (v6e/v7x speed path); looser tolerance for operand rounding
    out_bf = dsconv_pro_forward(x, params, kernel_size=K,
                                extend_scope=extend_scope, morph=0,
                                mxu_dtype=jnp.bfloat16)
    out_bf = jax.block_until_ready(out_bf)
    out_ref0 = ref_from_offset(x, off_ref, params, K, 0, extend_scope)
    np.testing.assert_allclose(np.asarray(out_bf), np.asarray(out_ref0),
                               rtol=2e-2, atol=2e-2)

    print("KERNEL_OK")
</pallas_src>

<mosaic_0001>
module attributes {stable_mosaic.version = 11 : i64} {
  func.func @_dsconv_kernel(%arg0: i32, %arg1: memref<1x4x512xf32, #tpu.memory_space<vmem>>, %arg2: memref<18x36xf32, #tpu.memory_space<vmem>>, %arg3: memref<18x1xf32, #tpu.memory_space<vmem>>, %arg4: memref<18x1xf32, #tpu.memory_space<vmem>>, %arg5: memref<18x1xf32, #tpu.memory_space<vmem>>, %arg6: memref<18x18xf32, #tpu.memory_space<vmem>>, %arg7: memref<4x36xf32, #tpu.memory_space<vmem>>, %arg8: memref<4x1xf32, #tpu.memory_space<vmem>>, %arg9: memref<4x1xf32, #tpu.memory_space<vmem>>, %arg10: memref<4x1xf32, #tpu.memory_space<vmem>>, %arg11: memref<4x4xf32, #tpu.memory_space<vmem>>, %arg12: memref<1x512xf32, #tpu.memory_space<vmem>>, %arg13: memref<1x512xf32, #tpu.memory_space<vmem>>, %arg14: memref<1x4x512xf32, #tpu.memory_space<vmem>>, %arg15: memref<36x512xf32, #tpu.memory_space<vmem>>, %arg16: memref<36x512xf32, #tpu.memory_space<vmem>>) attributes {dimension_semantics = [#tpu.dimension_semantics<parallel>], iteration_bounds = array<i64: 2>, scalar_prefetch = 0 : i64, scratch_operands = 2 : i64, tpu.core_type = #tpu.core_type<tc>, window_params = [{transform_indices = @transform_0, window_bounds = array<i64: 1, 4, 512>}, {pipeline_mode = #tpu.pipeline_mode<synchronous>, transform_indices = @transform_1, window_bounds = array<i64: 18, 36>}, {pipeline_mode = #tpu.pipeline_mode<synchronous>, transform_indices = @transform_2, window_bounds = array<i64: 18, 1>}, {pipeline_mode = #tpu.pipeline_mode<synchronous>, transform_indices = @transform_3, window_bounds = array<i64: 18, 1>}, {pipeline_mode = #tpu.pipeline_mode<synchronous>, transform_indices = @transform_4, window_bounds = array<i64: 18, 1>}, {pipeline_mode = #tpu.pipeline_mode<synchronous>, transform_indices = @transform_5, window_bounds = array<i64: 18, 18>}, {pipeline_mode = #tpu.pipeline_mode<synchronous>, transform_indices = @transform_6, window_bounds = array<i64: 4, 36>}, {pipeline_mode = #tpu.pipeline_mode<synchronous>, transform_indices = @transform_7, window_bounds = array<i64: 4, 1>}, {pipeline_mode = #tpu.pipeline_mode<synchronous>, transform_indices = @transform_8, window_bounds = array<i64: 4, 1>}, {pipeline_mode = #tpu.pipeline_mode<synchronous>, transform_indices = @transform_9, window_bounds = array<i64: 4, 1>}, {pipeline_mode = #tpu.pipeline_mode<synchronous>, transform_indices = @transform_10, window_bounds = array<i64: 4, 4>}, {pipeline_mode = #tpu.pipeline_mode<synchronous>, transform_indices = @transform_11, window_bounds = array<i64: 1, 512>}, {pipeline_mode = #tpu.pipeline_mode<synchronous>, transform_indices = @transform_12, window_bounds = array<i64: 1, 512>}, {transform_indices = @transform_13, window_bounds = array<i64: 1, 4, 512>}]} {
    %c0 = arith.constant 0 : index
    %c0_0 = arith.constant 0 : index
    %c0_1 = arith.constant 0 : index
    %0 = vector.load %arg1[%c0, %c0_0, %c0_1] : memref<1x4x512xf32, #tpu.memory_space<vmem>>, vector<1x4x512xf32>
    %1 = vector.shape_cast %0 : vector<1x4x512xf32> to vector<4x512xf32>
    %c0_2 = arith.constant 0 : index
    %c0_3 = arith.constant 0 : index
    %2 = vector.load %arg12[%c0_2, %c0_3] : memref<1x512xf32, #tpu.memory_space<vmem>>, vector<1x512xf32>
    %c0_4 = arith.constant 0 : index
    %c0_5 = arith.constant 0 : index
    %3 = vector.load %arg13[%c0_4, %c0_5] : memref<1x512xf32, #tpu.memory_space<vmem>>, vector<1x512xf32>
    %cst = arith.constant 0.000000e+00 : f32
    %4 = vector.broadcast %cst : f32 to vector<1x512xf32>
    %5 = arith.cmpf oge, %3, %4 : vector<1x512xf32>
    %cst_6 = arith.constant 1.500000e+01 : f32
    %6 = vector.broadcast %cst_6 : f32 to vector<1x512xf32>
    %7 = arith.cmpf ole, %3, %6 : vector<1x512xf32>
    %8 = arith.andi %5, %7 : vector<1x512xi1>
    %cst_7 = arith.constant 1.000000e+00 : f32
    %cst_8 = arith.constant 0.000000e+00 : f32
    %9 = vector.broadcast %cst_7 : f32 to vector<1x512xf32>
    %10 = vector.broadcast %cst_8 : f32 to vector<1x512xf32>
    %11 = arith.select %8, %9, %10 : vector<1x512xi1>, vector<1x512xf32>
    %cst_9 = arith.constant 1.000000e+00 : f32
    %12 = vector.broadcast %cst_9 : f32 to vector<1x512xf32>
    %13 = arith.cmpf oge, %2, %12 : vector<1x512xf32>
    %cst_10 = arith.constant 1.600000e+01 : f32
    %14 = vector.broadcast %cst_10 : f32 to vector<1x512xf32>
    %15 = arith.cmpf ole, %2, %14 : vector<1x512xf32>
    %16 = arith.andi %13, %15 : vector<1x512xi1>
    %cst_11 = arith.constant 1.000000e+00 : f32
    %17 = vector.broadcast %cst_11 : f32 to vector<1x512xf32>
    %18 = arith.cmpf oge, %3, %17 : vector<1x512xf32>
    %cst_12 = arith.constant 1.600000e+01 : f32
    %19 = vector.broadcast %cst_12 : f32 to vector<1x512xf32>
    %20 = arith.cmpf ole, %3, %19 : vector<1x512xf32>
    %21 = arith.andi %18, %20 : vector<1x512xi1>
    %22 = arith.andi %16, %21 : vector<1x512xi1>
    %cst_13 = arith.constant 1.000000e+00 : f32
    %cst_14 = arith.constant 0.000000e+00 : f32
    %23 = vector.broadcast %cst_13 : f32 to vector<1x512xf32>
    %24 = vector.broadcast %cst_14 : f32 to vector<1x512xf32>
    %25 = arith.select %22, %23, %24 : vector<1x512xi1>, vector<1x512xf32>
    %c33_i32 = arith.constant 33 : i32
    %26 = tpu.dynamic_rotate %1 by %c33_i32 dim 1 : vector<4x512xf32>, i32 -> vector<4x512xf32>
    %27 = vector.broadcast %25 : vector<1x512xf32> to vector<4x512xf32>
    %28 = arith.mulf %27, %26 : vector<4x512xf32>
    %c0_15 = arith.constant 0 : index
    %c0_16 = arith.constant 0 : index
    %29 = vector.load %arg15[%c0_15, %c0_16] : memref<36x512xf32, #tpu.memory_space<vmem>>, vector<4x512xf32>
    tpu.vector_store %arg15[%c0_15, %c0_16], %28 {strides = array<i32>} : memref<36x512xf32, #tpu.memory_space<vmem>>, vector<4x512xf32>,
    %cst_17 = arith.constant 0.000000e+00 : f32
    %30 = vector.broadcast %cst_17 : f32 to vector<1x512xf32>
    %31 = arith.cmpf oge, %3, %30 : vector<1x512xf32>
    %cst_18 = arith.constant 1.500000e+01 : f32
    %32 = vector.broadcast %cst_18 : f32 to vector<1x512xf32>
    %33 = arith.cmpf ole, %3, %32 : vector<1x512xf32>
    %34 = arith.andi %31, %33 : vector<1x512xi1>
    %35 = arith.andi %16, %34 : vector<1x512xi1>
    %cst_19 = arith.constant 1.000000e+00 : f32
    %cst_20 = arith.constant 0.000000e+00 : f32
    %36 = vector.broadcast %cst_19 : f32 to vector<1x512xf32>
    %37 = vector.broadcast %cst_20 : f32 to vector<1x512xf32>
    %38 = arith.select %35, %36, %37 : vector<1x512xi1>, vector<1x512xf32>
    %c32_i32 = arith.constant 32 : i32
    %39 = tpu.dynamic_rotate %1 by %c32_i32 dim 1 : vector<4x512xf32>, i32 -> vector<4x512xf32>
    %40 = vector.broadcast %38 : vector<1x512xf32> to vector<4x512xf32>
    %41 = arith.mulf %40, %39 : vector<4x512xf32>
    %c4 = arith.constant 4 : index
    %c0_21 = arith.constant 0 : index
    %42 = vector.load %arg15[%c4, %c0_21] : memref<36x512xf32, #tpu.memory_space<vmem>>, vector<4x512xf32>
    tpu.vector_store %arg15[%c4, %c0_21], %41 {strides = array<i32>} : memref<36x512xf32, #tpu.memory_space<vmem>>, vector<4x512xf32>,
    %cst_22 = arith.constant -1.000000e+00 : f32
    %43 = vector.broadcast %cst_22 : f32 to vector<1x512xf32>
    %44 = arith.cmpf oge, %3, %43 : vector<1x512xf32>
    %cst_23 = arith.constant 1.400000e+01 : f32
    %45 = vector.broadcast %cst_23 : f32 to vector<1x512xf32>
    %46 = arith.cmpf ole, %3, %45 : vector<1x512xf32>
    %47 = arith.andi %44, %46 : vector<1x512xi1>
    %48 = arith.andi %16, %47 : vector<1x512xi1>
    %cst_24 = arith.constant 1.000000e+00 : f32
    %cst_25 = arith.constant 0.000000e+00 : f32
    %49 = vector.broadcast %cst_24 : f32 to vector<1x512xf32>
    %50 = vector.broadcast %cst_25 : f32 to vector<1x512xf32>
    %51 = arith.select %48, %49, %50 : vector<1x512xi1>, vector<1x512xf32>
    %c31_i32 = arith.constant 31 : i32
    %52 = tpu.dynamic_rotate %1 by %c31_i32 dim 1 : vector<4x512xf32>, i32 -> vector<4x512xf32>
    %53 = vector.broadcast %51 : vector<1x512xf32> to vector<4x512xf32>
    %54 = arith.mulf %53, %52 : vector<4x512xf32>
    %c8 = arith.constant 8 : index
    %c0_26 = arith.constant 0 : index
    %55 = vector.load %arg15[%c8, %c0_26] : memref<36x512xf32, #tpu.memory_space<vmem>>, vector<4x512xf32>
    tpu.vector_store %arg15[%c8, %c0_26], %54 {strides = array<i32>} : memref<36x512xf32, #tpu.memory_space<vmem>>, vector<4x512xf32>,
    %cst_27 = arith.constant 0.000000e+00 : f32
    %56 = vector.broadcast %cst_27 : f32 to vector<1x512xf32>
    %57 = arith.cmpf oge, %2, %56 : vector<1x512xf32>
    %cst_28 = arith.constant 1.500000e+01 : f32
    %58 = vector.broadcast %cst_28 : f32 to vector<1x512xf32>
    %59 = arith.cmpf ole, %2, %58 : vector<1x512xf32>
    %60 = arith.andi %57, %59 : vector<1x512xi1>
    %cst_29 = arith.constant 1.000000e+00 : f32
    %61 = vector.broadcast %cst_29 : f32 to vector<1x512xf32>
    %62 = arith.cmpf oge, %3, %61 : vector<1x512xf32>
    %cst_30 = arith.constant 1.600000e+01 : f32
    %63 = vector.broadcast %cst_30 : f32 to vector<1x512xf32>
    %64 = arith.cmpf ole, %3, %63 : vector<1x512xf32>
    %65 = arith.andi %62, %64 : vector<1x512xi1>
    %66 = arith.andi %60, %65 : vector<1x512xi1>
    %cst_31 = arith.constant 1.000000e+00 : f32
    %cst_32 = arith.constant 0.000000e+00 : f32
    %67 = vector.broadcast %cst_31 : f32 to vector<1x512xf32>
    %68 = vector.broadcast %cst_32 : f32 to vector<1x512xf32>
    %69 = arith.select %66, %67, %68 : vector<1x512xi1>, vector<1x512xf32>
    %c1_i32 = arith.constant 1 : i32
    %70 = tpu.dynamic_rotate %1 by %c1_i32 dim 1 : vector<4x512xf32>, i32 -> vector<4x512xf32>
    %71 = vector.broadcast %69 : vector<1x512xf32> to vector<4x512xf32>
    %72 = arith.mulf %71, %70 : vector<4x512xf32>
    %c12 = arith.constant 12 : index
    %c0_33 = arith.constant 0 : index
    %73 = vector.load %arg15[%c12, %c0_33] : memref<36x512xf32, #tpu.memory_space<vmem>>, vector<4x512xf32>
    tpu.vector_store %arg15[%c12, %c0_33], %72 {strides = array<i32>} : memref<36x512xf32, #tpu.memory_space<vmem>>, vector<4x512xf32>,
    %cst_34 = arith.constant 0.000000e+00 : f32
    %74 = vector.broadcast %cst_34 : f32 to vector<1x512xf32>
    %75 = arith.cmpf oge, %3, %74 : vector<1x512xf32>
    %cst_35 = arith.constant 1.500000e+01 : f32
    %76 = vector.broadcast %cst_35 : f32 to vector<1x512xf32>
    %77 = arith.cmpf ole, %3, %76 : vector<1x512xf32>
    %78 = arith.andi %75, %77 : vector<1x512xi1>
    %79 = arith.andi %60, %78 : vector<1x512xi1>
    %cst_36 = arith.constant 1.000000e+00 : f32
    %cst_37 = arith.constant 0.000000e+00 : f32
    %80 = vector.broadcast %cst_36 : f32 to vector<1x512xf32>
    %81 = vector.broadcast %cst_37 : f32 to vector<1x512xf32>
    %82 = arith.select %79, %80, %81 : vector<1x512xi1>, vector<1x512xf32>
    %83 = vector.broadcast %82 : vector<1x512xf32> to vector<4x512xf32>
    %84 = arith.mulf %83, %1 : vector<4x512xf32>
    %c16 = arith.constant 16 : index
    %c0_38 = arith.constant 0 : index
    %85 = vector.load %arg15[%c16, %c0_38] : memref<36x512xf32, #tpu.memory_space<vmem>>, vector<4x512xf32>
    tpu.vector_store %arg15[%c16, %c0_38], %84 {strides = array<i32>} : memref<36x512xf32, #tpu.memory_space<vmem>>, vector<4x512xf32>,
    %cst_39 = arith.constant -1.000000e+00 : f32
    %86 = vector.broadcast %cst_39 : f32 to vector<1x512xf32>
    %87 = arith.cmpf oge, %3, %86 : vector<1x512xf32>
    %cst_40 = arith.constant 1.400000e+01 : f32
    %88 = vector.broadcast %cst_40 : f32 to vector<1x512xf32>
    %89 = arith.cmpf ole, %3, %88 : vector<1x512xf32>
    %90 = arith.andi %87, %89 : vector<1x512xi1>
    %91 = arith.andi %60, %90 : vector<1x512xi1>
    %cst_41 = arith.constant 1.000000e+00 : f32
    %cst_42 = arith.constant 0.000000e+00 : f32
    %92 = vector.broadcast %cst_41 : f32 to vector<1x512xf32>
    %93 = vector.broadcast %cst_42 : f32 to vector<1x512xf32>
    %94 = arith.select %91, %92, %93 : vector<1x512xi1>, vector<1x512xf32>
    %c511_i32 = arith.constant 511 : i32
    %95 = tpu.dynamic_rotate %1 by %c511_i32 dim 1 : vector<4x512xf32>, i32 -> vector<4x512xf32>
    %96 = vector.broadcast %94 : vector<1x512xf32> to vector<4x512xf32>
    %97 = arith.mulf %96, %95 : vector<4x512xf32>
    %c20 = arith.constant 20 : index
    %c0_43 = arith.constant 0 : index
    %98 = vector.load %arg15[%c20, %c0_43] : memref<36x512xf32, #tpu.memory_space<vmem>>, vector<4x512xf32>
    tpu.vector_store %arg15[%c20, %c0_43], %97 {strides = array<i32>} : memref<36x512xf32, #tpu.memory_space<vmem>>, vector<4x512xf32>,
    %cst_44 = arith.constant -1.000000e+00 : f32
    %99 = vector.broadcast %cst_44 : f32 to vector<1x512xf32>
    %100 = arith.cmpf oge, %2, %99 : vector<1x512xf32>
    %cst_45 = arith.constant 1.400000e+01 : f32
    %101 = vector.broadcast %cst_45 : f32 to vector<1x512xf32>
    %102 = arith.cmpf ole, %2, %101 : vector<1x512xf32>
    %103 = arith.andi %100, %102 : vector<1x512xi1>
    %cst_46 = arith.constant 1.000000e+00 : f32
    %104 = vector.broadcast %cst_46 : f32 to vector<1x512xf32>
    %105 = arith.cmpf oge, %3, %104 : vector<1x512xf32>
    %cst_47 = arith.constant 1.600000e+01 : f32
    %106 = vector.broadcast %cst_47 : f32 to vector<1x512xf32>
    %107 = arith.cmpf ole, %3, %106 : vector<1x512xf32>
    %108 = arith.andi %105, %107 : vector<1x512xi1>
    %109 = arith.andi %103, %108 : vector<1x512xi1>
    %cst_48 = arith.constant 1.000000e+00 : f32
    %cst_49 = arith.constant 0.000000e+00 : f32
    %110 = vector.broadcast %cst_48 : f32 to vector<1x512xf32>
    %111 = vector.broadcast %cst_49 : f32 to vector<1x512xf32>
    %112 = arith.select %109, %110, %111 : vector<1x512xi1>, vector<1x512xf32>
    %c481_i32 = arith.constant 481 : i32
    %113 = tpu.dynamic_rotate %1 by %c481_i32 dim 1 : vector<4x512xf32>, i32 -> vector<4x512xf32>
    %114 = vector.broadcast %112 : vector<1x512xf32> to vector<4x512xf32>
    %115 = arith.mulf %114, %113 : vector<4x512xf32>
    %c24 = arith.constant 24 : index
    %c0_50 = arith.constant 0 : index
    %116 = vector.load %arg15[%c24, %c0_50] : memref<36x512xf32, #tpu.memory_space<vmem>>, vector<4x512xf32>
    tpu.vector_store %arg15[%c24, %c0_50], %115 {strides = array<i32>} : memref<36x512xf32, #tpu.memory_space<vmem>>, vector<4x512xf32>,
    %cst_51 = arith.constant 0.000000e+00 : f32
    %117 = vector.broadcast %cst_51 : f32 to vector<1x512xf32>
    %118 = arith.cmpf oge, %3, %117 : vector<1x512xf32>
    %cst_52 = arith.constant 1.500000e+01 : f32
    %119 = vector.broadcast %cst_52 : f32 to vector<1x512xf32>
    %120 = arith.cmpf ole, %3, %119 : vector<1x512xf32>
    %121 = arith.andi %118, %120 : vector<1x512xi1>
    %122 = arith.andi %103, %121 : vector<1x512xi1>
    %cst_53 = arith.constant 1.000000e+00 : f32
    %cst_54 = arith.constant 0.000000e+00 : f32
    %123 = vector.broadcast %cst_53 : f32 to vector<1x512xf32>
    %124 = vector.broadcast %cst_54 : f32 to vector<1x512xf32>
    %125 = arith.select %122, %123, %124 : vector<1x512xi1>, vector<1x512xf32>
    %c480_i32 = arith.constant 480 : i32
    %126 = tpu.dynamic_rotate %1 by %c480_i32 dim 1 : vector<4x512xf32>, i32 -> vector<4x512xf32>
    %127 = vector.broadcast %125 : vector<1x512xf32> to vector<4x512xf32>
    %128 = arith.mulf %127, %126 : vector<4x512xf32>
    %c28 = arith.constant 28 : index
    %c0_55 = arith.constant 0 : index
    %129 = vector.load %arg15[%c28, %c0_55] : memref<36x512xf32, #tpu.memory_space<vmem>>, vector<4x512xf32>
    tpu.vector_store %arg15[%c28, %c0_55], %128 {strides = array<i32>} : memref<36x512xf32, #tpu.memory_space<vmem>>, vector<4x512xf32>,
    %cst_56 = arith.constant -1.000000e+00 : f32
    %130 = vector.broadcast %cst_56 : f32 to vector<1x512xf32>
    %131 = arith.cmpf oge, %3, %130 : vector<1x512xf32>
    %cst_57 = arith.constant 1.400000e+01 : f32
    %132 = vector.broadcast %cst_57 : f32 to vector<1x512xf32>
    %133 = arith.cmpf ole, %3, %132 : vector<1x512xf32>
    %134 = arith.andi %131, %133 : vector<1x512xi1>
    %135 = arith.andi %103, %134 : vector<1x512xi1>
    %cst_58 = arith.constant 1.000000e+00 : f32
    %cst_59 = arith.constant 0.000000e+00 : f32
    %136 = vector.broadcast %cst_58 : f32 to vector<1x512xf32>
    %137 = vector.broadcast %cst_59 : f32 to vector<1x512xf32>
    %138 = arith.select %135, %136, %137 : vector<1x512xi1>, vector<1x512xf32>
    %c479_i32 = arith.constant 479 : i32
    %139 = tpu.dynamic_rotate %1 by %c479_i32 dim 1 : vector<4x512xf32>, i32 -> vector<4x512xf32>
    %140 = vector.broadcast %138 : vector<1x512xf32> to vector<4x512xf32>
    %141 = arith.mulf %140, %139 : vector<4x512xf32>
    %c32 = arith.constant 32 : index
    %c0_60 = arith.constant 0 : index
    %142 = vector.load %arg15[%c32, %c0_60] : memref<36x512xf32, #tpu.memory_space<vmem>>, vector<4x512xf32>
    tpu.vector_store %arg15[%c32, %c0_60], %141 {strides = array<i32>} : memref<36x512xf32, #tpu.memory_space<vmem>>, vector<4x512xf32>,
    %c0_61 = arith.constant 0 : index
    %c0_62 = arith.constant 0 : index
    %143 = vector.load %arg2[%c0_61, %c0_62] : memref<18x36xf32, #tpu.memory_space<vmem>>, vector<18x36xf32>
    %c0_63 = arith.constant 0 : index
    %c0_64 = arith.constant 0 : index
    %144 = vector.load %arg15[%c0_63, %c0_64] : memref<36x512xf32, #tpu.memory_space<vmem>>, vector<36x512xf32>
    %cst_65 = arith.constant dense<0.000000e+00> : vector<18x512xf32>
    %145 = tpu.matmul %143, %144, %cst_65 {dimension_numbers = #tpu.dot_dimension_numbers<[1], [0], [0], [1], [0, 0, 1, 1], [], []>} : vector<18x36xf32>, vector<36x512xf32>, vector<18x512xf32> -> vector<18x512xf32>
    %c0_66 = arith.constant 0 : index
    %c0_67 = arith.constant 0 : index
    %146 = vector.load %arg3[%c0_66, %c0_67] : memref<18x1xf32, #tpu.memory_space<vmem>>, vector<18x1xf32>
    %147 = vector.broadcast %146 : vector<18x1xf32> to vector<18x512xf32>
    %148 = arith.addf %145, %147 : vector<18x512xf32>
    %149 = vector.broadcast %11 : vector<1x512xf32> to vector<18x512xf32>
    %150 = arith.mulf %148, %149 : vector<18x512xf32>
    %cst_68 = arith.constant dense<0.000000e+00> : vector<18xf32>
    %151 = vector.multi_reduction <add>, %150, %cst_68 [1] : vector<18x512xf32> to vector<18xf32>
    %152 = vector.shape_cast %151 : vector<18xf32> to vector<18x1xf32>
    %153 = arith.mulf %148, %148 : vector<18x512xf32>
    %154 = vector.broadcast %11 : vector<1x512xf32> to vector<18x512xf32>
    %155 = arith.mulf %153, %154 : vector<18x512xf32>
    %cst_69 = arith.constant dense<0.000000e+00> : vector<18xf32>
    %156 = vector.multi_reduction <add>, %155, %cst_69 [1] : vector<18x512xf32> to vector<18xf32>
    %157 = vector.shape_cast %156 : vector<18xf32> to vector<18x1xf32>
    %c0_70 = arith.constant 0 : index
    %c0_71 = arith.constant 0 : index
    %158 = vector.load %arg6[%c0_70, %c0_71] : memref<18x18xf32, #tpu.memory_space<vmem>>, vector<18x18xf32>
    %cst_72 = arith.constant dense<0.000000e+00> : vector<18x1xf32>
    %159 = tpu.matmul %158, %152, %cst_72 {dimension_numbers = #tpu.dot_dimension_numbers<[1], [0], [0], [1], [0, 0, 1, 1], [], []>} : vector<18x18xf32>, vector<18x1xf32>, vector<18x1xf32> -> vector<18x1xf32>
    %cst_73 = arith.constant 5.120000e+02 : f32
    %160 = vector.broadcast %cst_73 : f32 to vector<18x1xf32>
    %161 = arith.divf %159, %160 : vector<18x1xf32>
    %c0_74 = arith.constant 0 : index
    %c0_75 = arith.constant 0 : index
    %162 = vector.load %arg6[%c0_74, %c0_75] : memref<18x18xf32, #tpu.memory_space<vmem>>, vector<18x18xf32>
    %cst_76 = arith.constant dense<0.000000e+00> : vector<18x1xf32>
    %163 = tpu.matmul %162, %157, %cst_76 {dimension_numbers = #tpu.dot_dimension_numbers<[1], [0], [0], [1], [0, 0, 1, 1], [], []>} : vector<18x18xf32>, vector<18x1xf32>, vector<18x1xf32> -> vector<18x1xf32>
    %cst_77 = arith.constant 5.120000e+02 : f32
    %164 = vector.broadcast %cst_77 : f32 to vector<18x1xf32>
    %165 = arith.divf %163, %164 : vector<18x1xf32>
    %166 = arith.mulf %161, %161 : vector<18x1xf32>
    %167 = arith.subf %165, %166 : vector<18x1xf32>
    %cst_78 = arith.constant 9.99999974E-6 : f32
    %168 = vector.broadcast %cst_78 : f32 to vector<18x1xf32>
    %169 = arith.addf %167, %168 : vector<18x1xf32>
    %170 = math.rsqrt %169 : vector<18x1xf32>
    %171 = vector.broadcast %161 : vector<18x1xf32> to vector<18x512xf32>
    %172 = arith.subf %148, %171 : vector<18x512xf32>
    %173 = vector.broadcast %170 : vector<18x1xf32> to vector<18x512xf32>
    %174 = arith.mulf %172, %173 : vector<18x512xf32>
    %c0_79 = arith.constant 0 : index
    %c0_80 = arith.constant 0 : index
    %175 = vector.load %arg4[%c0_79, %c0_80] : memref<18x1xf32, #tpu.memory_space<vmem>>, vector<18x1xf32>
    %176 = vector.broadcast %175 : vector<18x1xf32> to vector<18x512xf32>
    %177 = arith.mulf %174, %176 : vector<18x512xf32>
    %c0_81 = arith.constant 0 : index
    %c0_82 = arith.constant 0 : index
    %178 = vector.load %arg5[%c0_81, %c0_82] : memref<18x1xf32, #tpu.memory_space<vmem>>, vector<18x1xf32>
    %179 = vector.broadcast %178 : vector<18x1xf32> to vector<18x512xf32>
    %180 = arith.addf %177, %179 : vector<18x512xf32>
    %181 = math.tanh %180 : vector<18x512xf32>
    %cst_83 = arith.constant 0.000000e+00 : f32
    %182 = vector.broadcast %cst_83 : f32 to vector<1x512xf32>
    %183 = vector.extract_strided_slice %181 {offsets = [5, 0], sizes = [1, 512], strides = [1, 1]} : vector<18x512xf32> to vector<1x512xf32>
    %184 = arith.addf %182, %183 : vector<1x512xf32>
    %185 = vector.extract_strided_slice %181 {offsets = [3, 0], sizes = [1, 512], strides = [1, 1]} : vector<18x512xf32> to vector<1x512xf32>
    %186 = arith.addf %182, %185 : vector<1x512xf32>
    %187 = vector.extract_strided_slice %181 {offsets = [6, 0], sizes = [1, 512], strides = [1, 1]} : vector<18x512xf32> to vector<1x512xf32>
    %188 = arith.addf %184, %187 : vector<1x512xf32>
    %189 = vector.extract_strided_slice %181 {offsets = [2, 0], sizes = [1, 512], strides = [1, 1]} : vector<18x512xf32> to vector<1x512xf32>
    %190 = arith.addf %186, %189 : vector<1x512xf32>
    %191 = vector.extract_strided_slice %181 {offsets = [7, 0], sizes = [1, 512], strides = [1, 1]} : vector<18x512xf32> to vector<1x512xf32>
    %192 = arith.addf %188, %191 : vector<1x512xf32>
    %193 = vector.extract_strided_slice %181 {offsets = [1, 0], sizes = [1, 512], strides = [1, 1]} : vector<18x512xf32> to vector<1x512xf32>
    %194 = arith.addf %190, %193 : vector<1x512xf32>
    %195 = vector.extract_strided_slice %181 {offsets = [8, 0], sizes = [1, 512], strides = [1, 1]} : vector<18x512xf32> to vector<1x512xf32>
    %196 = arith.addf %192, %195 : vector<1x512xf32>
    %197 = vector.extract_strided_slice %181 {offsets = [0, 0], sizes = [1, 512], strides = [1, 1]} : vector<18x512xf32> to vector<1x512xf32>
    %198 = arith.addf %194, %197 : vector<1x512xf32>
    %c4_i32 = arith.constant 4 : i32
    %199 = tpu.dynamic_rotate %1 by %c4_i32 dim 1 : vector<4x512xf32>, i32 -> vector<4x512xf32>
    %cst_84 = arith.constant 1.000000e+00 : f32
    %200 = vector.broadcast %cst_84 : f32 to vector<1x512xf32>
    %201 = arith.mulf %200, %198 : vector<1x512xf32>
    %202 = arith.addf %2, %201 : vector<1x512xf32>
    %cst_85 = arith.constant 0.000000e+00 : f32
    %cst_86 = arith.constant 1.500000e+01 : f32
    %203 = vector.broadcast %cst_85 : f32 to vector<1x512xf32>
    %204 = arith.maximumf %203, %202 : vector<1x512xf32>
    %205 = vector.broadcast %cst_86 : f32 to vector<1x512xf32>
    %206 = arith.minimumf %205, %204 : vector<1x512xf32>
    %207 = math.floor %206 : vector<1x512xf32>
    %208 = arith.subf %206, %207 : vector<1x512xf32>
    %cst_87 = arith.constant 1.000000e+00 : f32
    %209 = vector.broadcast %cst_87 : f32 to vector<1x512xf32>
    %210 = arith.subf %209, %208 : vector<1x512xf32>
    %211 = arith.subf %207, %2 : vector<1x512xf32>
    %212 = arith.fptosi %211 : vector<1x512xf32> to vector<1x512xi32>
    %cst_88 = arith.constant 0.000000e+00 : f32
    %213 = vector.broadcast %cst_88 : f32 to vector<4x512xf32>
    %c-4_i32 = arith.constant -4 : i32
    %214 = vector.broadcast %c-4_i32 : i32 to vector<1x512xi32>
    %215 = arith.cmpi eq, %212, %214 : vector<1x512xi32>
    %cst_89 = arith.constant 0.000000e+00 : f32
    %216 = vector.broadcast %cst_89 : f32 to vector<1x512xf32>
    %217 = arith.select %215, %210, %216 : vector<1x512xi1>, vector<1x512xf32>
    %c-5_i32 = arith.constant -5 : i32
    %218 = vector.broadcast %c-5_i32 : i32 to vector<1x512xi32>
    %219 = arith.cmpi eq, %212, %218 : vector<1x512xi32>
    %cst_90 = arith.constant 0.000000e+00 : f32
    %220 = vector.broadcast %cst_90 : f32 to vector<1x512xf32>
    %221 = arith.select %219, %208, %220 : vector<1x512xi1>, vector<1x512xf32>
    %222 = arith.addf %217, %221 : vector<1x512xf32>
    %c128_i32 = arith.constant 128 : i32
    %223 = tpu.dynamic_rotate %199 by %c128_i32 dim 1 : vector<4x512xf32>, i32 -> vector<4x512xf32>
    %224 = vector.broadcast %222 : vector<1x512xf32> to vector<4x512xf32>
    %225 = arith.mulf %224, %223 : vector<4x512xf32>
    %226 = arith.addf %213, %225 : vector<4x512xf32>
    %c-3_i32 = arith.constant -3 : i32
    %227 = vector.broadcast %c-3_i32 : i32 to vector<1x512xi32>
    %228 = arith.cmpi eq, %212, %227 : vector<1x512xi32>
    %cst_91 = arith.constant 0.000000e+00 : f32
    %229 = vector.broadcast %cst_91 : f32 to vector<1x512xf32>
    %230 = arith.select %228, %210, %229 : vector<1x512xi1>, vector<1x512xf32>
    %c-4_i32_92 = arith.constant -4 : i32
    %231 = vector.broadcast %c-4_i32_92 : i32 to vector<1x512xi32>
    %232 = arith.cmpi eq, %212, %231 : vector<1x512xi32>
    %cst_93 = arith.constant 0.000000e+00 : f32
    %233 = vector.broadcast %cst_93 : f32 to vector<1x512xf32>
    %234 = arith.select %232, %208, %233 : vector<1x512xi1>, vector<1x512xf32>
    %235 = arith.addf %230, %234 : vector<1x512xf32>
    %c96_i32 = arith.constant 96 : i32
    %236 = tpu.dynamic_rotate %199 by %c96_i32 dim 1 : vector<4x512xf32>, i32 -> vector<4x512xf32>
    %237 = vector.broadcast %235 : vector<1x512xf32> to vector<4x512xf32>
    %238 = arith.mulf %237, %236 : vector<4x512xf32>
    %239 = arith.addf %226, %238 : vector<4x512xf32>
    %c-2_i32 = arith.constant -2 : i32
    %240 = vector.broadcast %c-2_i32 : i32 to vector<1x512xi32>
    %241 = arith.cmpi eq, %212, %240 : vector<1x512xi32>
    %cst_94 = arith.constant 0.000000e+00 : f32
    %242 = vector.broadcast %cst_94 : f32 to vector<1x512xf32>
    %243 = arith.select %241, %210, %242 : vector<1x512xi1>, vector<1x512xf32>
    %c-3_i32_95 = arith.constant -3 : i32
    %244 = vector.broadcast %c-3_i32_95 : i32 to vector<1x512xi32>
    %245 = arith.cmpi eq, %212, %244 : vector<1x512xi32>
    %cst_96 = arith.constant 0.000000e+00 : f32
    %246 = vector.broadcast %cst_96 : f32 to vector<1x512xf32>
    %247 = arith.select %245, %208, %246 : vector<1x512xi1>, vector<1x512xf32>
    %248 = arith.addf %243, %247 : vector<1x512xf32>
    %c64_i32 = arith.constant 64 : i32
    %249 = tpu.dynamic_rotate %199 by %c64_i32 dim 1 : vector<4x512xf32>, i32 -> vector<4x512xf32>
    %250 = vector.broadcast %248 : vector<1x512xf32> to vector<4x512xf32>
    %251 = arith.mulf %250, %249 : vector<4x512xf32>
    %252 = arith.addf %239, %251 : vector<4x512xf32>
    %c-1_i32 = arith.constant -1 : i32
    %253 = vector.broadcast %c-1_i32 : i32 to vector<1x512xi32>
    %254 = arith.cmpi eq, %212, %253 : vector<1x512xi32>
    %cst_97 = arith.constant 0.000000e+00 : f32
    %255 = vector.broadcast %cst_97 : f32 to vector<1x512xf32>
    %256 = arith.select %254, %210, %255 : vector<1x512xi1>, vector<1x512xf32>
    %c-2_i32_98 = arith.constant -2 : i32
    %257 = vector.broadcast %c-2_i32_98 : i32 to vector<1x512xi32>
    %258 = arith.cmpi eq, %212, %257 : vector<1x512xi32>
    %cst_99 = arith.constant 0.000000e+00 : f32
    %259 = vector.broadcast %cst_99 : f32 to vector<1x512xf32>
    %260 = arith.select %258, %208, %259 : vector<1x512xi1>, vector<1x512xf32>
    %261 = arith.addf %256, %260 : vector<1x512xf32>
    %c32_i32_100 = arith.constant 32 : i32
    %262 = tpu.dynamic_rotate %199 by %c32_i32_100 dim 1 : vector<4x512xf32>, i32 -> vector<4x512xf32>
    %263 = vector.broadcast %261 : vector<1x512xf32> to vector<4x512xf32>
    %264 = arith.mulf %263, %262 : vector<4x512xf32>
    %265 = arith.addf %252, %264 : vector<4x512xf32>
    %c0_i32 = arith.constant 0 : i32
    %266 = vector.broadcast %c0_i32 : i32 to vector<1x512xi32>
    %267 = arith.cmpi eq, %212, %266 : vector<1x512xi32>
    %cst_101 = arith.constant 0.000000e+00 : f32
    %268 = vector.broadcast %cst_101 : f32 to vector<1x512xf32>
    %269 = arith.select %267, %210, %268 : vector<1x512xi1>, vector<1x512xf32>
    %c-1_i32_102 = arith.constant -1 : i32
    %270 = vector.broadcast %c-1_i32_102 : i32 to vector<1x512xi32>
    %271 = arith.cmpi eq, %212, %270 : vector<1x512xi32>
    %cst_103 = arith.constant 0.000000e+00 : f32
    %272 = vector.broadcast %cst_103 : f32 to vector<1x512xf32>
    %273 = arith.select %271, %208, %272 : vector<1x512xi1>, vector<1x512xf32>
    %274 = arith.addf %269, %273 : vector<1x512xf32>
    %275 = vector.broadcast %274 : vector<1x512xf32> to vector<4x512xf32>
    %276 = arith.mulf %275, %199 : vector<4x512xf32>
    %277 = arith.addf %265, %276 : vector<4x512xf32>
    %c1_i32_104 = arith.constant 1 : i32
    %278 = vector.broadcast %c1_i32_104 : i32 to vector<1x512xi32>
    %279 = arith.cmpi eq, %212, %278 : vector<1x512xi32>
    %cst_105 = arith.constant 0.000000e+00 : f32
    %280 = vector.broadcast %cst_105 : f32 to vector<1x512xf32>
    %281 = arith.select %279, %210, %280 : vector<1x512xi1>, vector<1x512xf32>
    %c0_i32_106 = arith.constant 0 : i32
    %282 = vector.broadcast %c0_i32_106 : i32 to vector<1x512xi32>
    %283 = arith.cmpi eq, %212, %282 : vector<1x512xi32>
    %cst_107 = arith.constant 0.000000e+00 : f32
    %284 = vector.broadcast %cst_107 : f32 to vector<1x512xf32>
    %285 = arith.select %283, %208, %284 : vector<1x512xi1>, vector<1x512xf32>
    %286 = arith.addf %281, %285 : vector<1x512xf32>
    %c480_i32_108 = arith.constant 480 : i32
    %287 = tpu.dynamic_rotate %199 by %c480_i32_108 dim 1 : vector<4x512xf32>, i32 -> vector<4x512xf32>
    %288 = vector.broadcast %286 : vector<1x512xf32> to vector<4x512xf32>
    %289 = arith.mulf %288, %287 : vector<4x512xf32>
    %290 = arith.addf %277, %289 : vector<4x512xf32>
    %c2_i32 = arith.constant 2 : i32
    %291 = vector.broadcast %c2_i32 : i32 to vector<1x512xi32>
    %292 = arith.cmpi eq, %212, %291 : vector<1x512xi32>
    %cst_109 = arith.constant 0.000000e+00 : f32
    %293 = vector.broadcast %cst_109 : f32 to vector<1x512xf32>
    %294 = arith.select %292, %210, %293 : vector<1x512xi1>, vector<1x512xf32>
    %c1_i32_110 = arith.constant 1 : i32
    %295 = vector.broadcast %c1_i32_110 : i32 to vector<1x512xi32>
    %296 = arith.cmpi eq, %212, %295 : vector<1x512xi32>
    %cst_111 = arith.constant 0.000000e+00 : f32
    %297 = vector.broadcast %cst_111 : f32 to vector<1x512xf32>
    %298 = arith.select %296, %208, %297 : vector<1x512xi1>, vector<1x512xf32>
    %299 = arith.addf %294, %298 : vector<1x512xf32>
    %c448_i32 = arith.constant 448 : i32
    %300 = tpu.dynamic_rotate %199 by %c448_i32 dim 1 : vector<4x512xf32>, i32 -> vector<4x512xf32>
    %301 = vector.broadcast %299 : vector<1x512xf32> to vector<4x512xf32>
    %302 = arith.mulf %301, %300 : vector<4x512xf32>
    %303 = arith.addf %290, %302 : vector<4x512xf32>
    %c3_i32 = arith.constant 3 : i32
    %304 = vector.broadcast %c3_i32 : i32 to vector<1x512xi32>
    %305 = arith.cmpi eq, %212, %304 : vector<1x512xi32>
    %cst_112 = arith.constant 0.000000e+00 : f32
    %306 = vector.broadcast %cst_112 : f32 to vector<1x512xf32>
    %307 = arith.select %305, %210, %306 : vector<1x512xi1>, vector<1x512xf32>
    %c2_i32_113 = arith.constant 2 : i32
    %308 = vector.broadcast %c2_i32_113 : i32 to vector<1x512xi32>
    %309 = arith.cmpi eq, %212, %308 : vector<1x512xi32>
    %cst_114 = arith.constant 0.000000e+00 : f32
    %310 = vector.broadcast %cst_114 : f32 to vector<1x512xf32>
    %311 = arith.select %309, %208, %310 : vector<1x512xi1>, vector<1x512xf32>
    %312 = arith.addf %307, %311 : vector<1x512xf32>
    %c416_i32 = arith.constant 416 : i32
    %313 = tpu.dynamic_rotate %199 by %c416_i32 dim 1 : vector<4x512xf32>, i32 -> vector<4x512xf32>
    %314 = vector.broadcast %312 : vector<1x512xf32> to vector<4x512xf32>
    %315 = arith.mulf %314, %313 : vector<4x512xf32>
    %316 = arith.addf %303, %315 : vector<4x512xf32>
    %c4_i32_115 = arith.constant 4 : i32
    %317 = vector.broadcast %c4_i32_115 : i32 to vector<1x512xi32>
    %318 = arith.cmpi eq, %212, %317 : vector<1x512xi32>
    %cst_116 = arith.constant 0.000000e+00 : f32
    %319 = vector.broadcast %cst_116 : f32 to vector<1x512xf32>
    %320 = arith.select %318, %210, %319 : vector<1x512xi1>, vector<1x512xf32>
    %c3_i32_117 = arith.constant 3 : i32
    %321 = vector.broadcast %c3_i32_117 : i32 to vector<1x512xi32>
    %322 = arith.cmpi eq, %212, %321 : vector<1x512xi32>
    %cst_118 = arith.constant 0.000000e+00 : f32
    %323 = vector.broadcast %cst_118 : f32 to vector<1x512xf32>
    %324 = arith.select %322, %208, %323 : vector<1x512xi1>, vector<1x512xf32>
    %325 = arith.addf %320, %324 : vector<1x512xf32>
    %c384_i32 = arith.constant 384 : i32
    %326 = tpu.dynamic_rotate %199 by %c384_i32 dim 1 : vector<4x512xf32>, i32 -> vector<4x512xf32>
    %327 = vector.broadcast %325 : vector<1x512xf32> to vector<4x512xf32>
    %328 = arith.mulf %327, %326 : vector<4x512xf32>
    %329 = arith.addf %316, %328 : vector<4x512xf32>
    %c5_i32 = arith.constant 5 : i32
    %330 = vector.broadcast %c5_i32 : i32 to vector<1x512xi32>
    %331 = arith.cmpi eq, %212, %330 : vector<1x512xi32>
    %cst_119 = arith.constant 0.000000e+00 : f32
    %332 = vector.broadcast %cst_119 : f32 to vector<1x512xf32>
    %333 = arith.select %331, %210, %332 : vector<1x512xi1>, vector<1x512xf32>
    %c4_i32_120 = arith.constant 4 : i32
    %334 = vector.broadcast %c4_i32_120 : i32 to vector<1x512xi32>
    %335 = arith.cmpi eq, %212, %334 : vector<1x512xi32>
    %cst_121 = arith.constant 0.000000e+00 : f32
    %336 = vector.broadcast %cst_121 : f32 to vector<1x512xf32>
    %337 = arith.select %335, %208, %336 : vector<1x512xi1>, vector<1x512xf32>
    %338 = arith.addf %333, %337 : vector<1x512xf32>
    %c352_i32 = arith.constant 352 : i32
    %339 = tpu.dynamic_rotate %199 by %c352_i32 dim 1 : vector<4x512xf32>, i32 -> vector<4x512xf32>
    %340 = vector.broadcast %338 : vector<1x512xf32> to vector<4x512xf32>
    %341 = arith.mulf %340, %339 : vector<4x512xf32>
    %342 = arith.addf %329, %341 : vector<4x512xf32>
    %c0_122 = arith.constant 0 : index
    %c0_123 = arith.constant 0 : index
    %343 = vector.load %arg16[%c0_122, %c0_123] : memref<36x512xf32, #tpu.memory_space<vmem>>, vector<4x512xf32>
    tpu.vector_store %arg16[%c0_122, %c0_123], %342 {strides = array<i32>} : memref<36x512xf32, #tpu.memory_space<vmem>>, vector<4x512xf32>,
    %c3_i32_124 = arith.constant 3 : i32
    %344 = tpu.dynamic_rotate %1 by %c3_i32_124 dim 1 : vector<4x512xf32>, i32 -> vector<4x512xf32>
    %cst_125 = arith.constant 1.000000e+00 : f32
    %345 = vector.broadcast %cst_125 : f32 to vector<1x512xf32>
    %346 = arith.mulf %345, %194 : vector<1x512xf32>
    %347 = arith.addf %2, %346 : vector<1x512xf32>
    %cst_126 = arith.constant 0.000000e+00 : f32
    %cst_127 = arith.constant 1.500000e+01 : f32
    %348 = vector.broadcast %cst_126 : f32 to vector<1x512xf32>
    %349 = arith.maximumf %348, %347 : vector<1x512xf32>
    %350 = vector.broadcast %cst_127 : f32 to vector<1x512xf32>
    %351 = arith.minimumf %350, %349 : vector<1x512xf32>
    %352 = math.floor %351 : vector<1x512xf32>
    %353 = arith.subf %351, %352 : vector<1x512xf32>
    %cst_128 = arith.constant 1.000000e+00 : f32
    %354 = vector.broadcast %cst_128 : f32 to vector<1x512xf32>
    %355 = arith.subf %354, %353 : vector<1x512xf32>
    %356 = arith.subf %352, %2 : vector<1x512xf32>
    %357 = arith.fptosi %356 : vector<1x512xf32> to vector<1x512xi32>
    %cst_129 = arith.constant 0.000000e+00 : f32
    %358 = vector.broadcast %cst_129 : f32 to vector<4x512xf32>
    %c-4_i32_130 = arith.constant -4 : i32
    %359 = vector.broadcast %c-4_i32_130 : i32 to vector<1x512xi32>
    %360 = arith.cmpi eq, %357, %359 : vector<1x512xi32>
    %cst_131 = arith.constant 0.000000e+00 : f32
    %361 = vector.broadcast %cst_131 : f32 to vector<1x512xf32>
    %362 = arith.select %360, %355, %361 : vector<1x512xi1>, vector<1x512xf32>
    %c-5_i32_132 = arith.constant -5 : i32
    %363 = vector.broadcast %c-5_i32_132 : i32 to vector<1x512xi32>
    %364 = arith.cmpi eq, %357, %363 : vector<1x512xi32>
    %cst_133 = arith.constant 0.000000e+00 : f32
    %365 = vector.broadcast %cst_133 : f32 to vector<1x512xf32>
    %366 = arith.select %364, %353, %365 : vector<1x512xi1>, vector<1x512xf32>
    %367 = arith.addf %362, %366 : vector<1x512xf32>
    %c128_i32_134 = arith.constant 128 : i32
    %368 = tpu.dynamic_rotate %344 by %c128_i32_134 dim 1 : vector<4x512xf32>, i32 -> vector<4x512xf32>
    %369 = vector.broadcast %367 : vector<1x512xf32> to vector<4x512xf32>
    %370 = arith.mulf %369, %368 : vector<4x512xf32>
    %371 = arith.addf %358, %370 : vector<4x512xf32>
    %c-3_i32_135 = arith.constant -3 : i32
    %372 = vector.broadcast %c-3_i32_135 : i32 to vector<1x512xi32>
    %373 = arith.cmpi eq, %357, %372 : vector<1x512xi32>
    %cst_136 = arith.constant 0.000000e+00 : f32
    %374 = vector.broadcast %cst_136 : f32 to vector<1x512xf32>
    %375 = arith.select %373, %355, %374 : vector<1x512xi1>, vector<1x512xf32>
    %c-4_i32_137 = arith.constant -4 : i32
    %376 = vector.broadcast %c-4_i32_137 : i32 to vector<1x512xi32>
    %377 = arith.cmpi eq, %357, %376 : vector<1x512xi32>
    %cst_138 = arith.constant 0.000000e+00 : f32
    %378 = vector.broadcast %cst_138 : f32 to vector<1x512xf32>
    %379 = arith.select %377, %353, %378 : vector<1x512xi1>, vector<1x512xf32>
    %380 = arith.addf %375, %379 : vector<1x512xf32>
    %c96_i32_139 = arith.constant 96 : i32
    %381 = tpu.dynamic_rotate %344 by %c96_i32_139 dim 1 : vector<4x512xf32>, i32 -> vector<4x512xf32>
    %382 = vector.broadcast %380 : vector<1x512xf32> to vector<4x512xf32>
    %383 = arith.mulf %382, %381 : vector<4x512xf32>
    %384 = arith.addf %371, %383 : vector<4x512xf32>
    %c-2_i32_140 = arith.constant -2 : i32
    %385 = vector.broadcast %c-2_i32_140 : i32 to vector<1x512xi32>
    %386 = arith.cmpi eq, %357, %385 : vector<1x512xi32>
    %cst_141 = arith.constant 0.000000e+00 : f32
    %387 = vector.broadcast %cst_141 : f32 to vector<1x512xf32>
    %388 = arith.select %386, %355, %387 : vector<1x512xi1>, vector<1x512xf32>
    %c-3_i32_142 = arith.constant -3 : i32
    %389 = vector.broadcast %c-3_i32_142 : i32 to vector<1x512xi32>
    %390 = arith.cmpi eq, %357, %389 : vector<1x512xi32>
    %cst_143 = arith.constant 0.000000e+00 : f32
    %391 = vector.broadcast %cst_143 : f32 to vector<1x512xf32>
    %392 = arith.select %390, %353, %391 : vector<1x512xi1>, vector<1x512xf32>
    %393 = arith.addf %388, %392 : vector<1x512xf32>
    %c64_i32_144 = arith.constant 64 : i32
    %394 = tpu.dynamic_rotate %344 by %c64_i32_144 dim 1 : vector<4x512xf32>, i32 -> vector<4x512xf32>
    %395 = vector.broadcast %393 : vector<1x512xf32> to vector<4x512xf32>
    %396 = arith.mulf %395, %394 : vector<4x512xf32>
    %397 = arith.addf %384, %396 : vector<4x512xf32>
    %c-1_i32_145 = arith.constant -1 : i32
    %398 = vector.broadcast %c-1_i32_145 : i32 to vector<1x512xi32>
    %399 = arith.cmpi eq, %357, %398 : vector<1x512xi32>
    %cst_146 = arith.constant 0.000000e+00 : f32
    %400 = vector.broadcast %cst_146 : f32 to vector<1x512xf32>
    %401 = arith.select %399, %355, %400 : vector<1x512xi1>, vector<1x512xf32>
    %c-2_i32_147 = arith.constant -2 : i32
    %402 = vector.broadcast %c-2_i32_147 : i32 to vector<1x512xi32>
    %403 = arith.cmpi eq, %357, %402 : vector<1x512xi32>
    %cst_148 = arith.constant 0.000000e+00 : f32
    %404 = vector.broadcast %cst_148 : f32 to vector<1x512xf32>
    %405 = arith.select %403, %353, %404 : vector<1x512xi1>, vector<1x512xf32>
    %406 = arith.addf %401, %405 : vector<1x512xf32>
    %c32_i32_149 = arith.constant 32 : i32
    %407 = tpu.dynamic_rotate %344 by %c32_i32_149 dim 1 : vector<4x512xf32>, i32 -> vector<4x512xf32>
    %408 = vector.broadcast %406 : vector<1x512xf32> to vector<4x512xf32>
    %409 = arith.mulf %408, %407 : vector<4x512xf32>
    %410 = arith.addf %397, %409 : vector<4x512xf32>
    %c0_i32_150 = arith.constant 0 : i32
    %411 = vector.broadcast %c0_i32_150 : i32 to vector<1x512xi32>
    %412 = arith.cmpi eq, %357, %411 : vector<1x512xi32>
    %cst_151 = arith.constant 0.000000e+00 : f32
    %413 = vector.broadcast %cst_151 : f32 to vector<1x512xf32>
    %414 = arith.select %412, %355, %413 : vector<1x512xi1>, vector<1x512xf32>
    %c-1_i32_152 = arith.constant -1 : i32
    %415 = vector.broadcast %c-1_i32_152 : i32 to vector<1x512xi32>
    %416 = arith.cmpi eq, %357, %415 : vector<1x512xi32>
    %cst_153 = arith.constant 0.000000e+00 : f32
    %417 = vector.broadcast %cst_153 : f32 to vector<1x512xf32>
    %418 = arith.select %416, %353, %417 : vector<1x512xi1>, vector<1x512xf32>
    %419 = arith.addf %414, %418 : vector<1x512xf32>
    %420 = vector.broadcast %419 : vector<1x512xf32> to vector<4x512xf32>
    %421 = arith.mulf %420, %344 : vector<4x512xf32>
    %422 = arith.addf %410, %421 : vector<4x512xf32>
    %c1_i32_154 = arith.constant 1 : i32
    %423 = vector.broadcast %c1_i32_154 : i32 to vector<1x512xi32>
    %424 = arith.cmpi eq, %357, %423 : vector<1x512xi32>
    %cst_155 = arith.constant 0.000000e+00 : f32
    %425 = vector.broadcast %cst_155 : f32 to vector<1x512xf32>
    %426 = arith.select %424, %355, %425 : vector<1x512xi1>, vector<1x512xf32>
    %c0_i32_156 = arith.constant 0 : i32
    %427 = vector.broadcast %c0_i32_156 : i32 to vector<1x512xi32>
    %428 = arith.cmpi eq, %357, %427 : vector<1x512xi32>
    %cst_157 = arith.constant 0.000000e+00 : f32
    %429 = vector.broadcast %cst_157 : f32 to vector<1x512xf32>
    %430 = arith.select %428, %353, %429 : vector<1x512xi1>, vector<1x512xf32>
    %431 = arith.addf %426, %430 : vector<1x512xf32>
    %c480_i32_158 = arith.constant 480 : i32
    %432 = tpu.dynamic_rotate %344 by %c480_i32_158 dim 1 : vector<4x512xf32>, i32 -> vector<4x512xf32>
    %433 = vector.broadcast %431 : vector<1x512xf32> to vector<4x512xf32>
    %434 = arith.mulf %433, %432 : vector<4x512xf32>
    %435 = arith.addf %422, %434 : vector<4x512xf32>
    %c2_i32_159 = arith.constant 2 : i32
    %436 = vector.broadcast %c2_i32_159 : i32 to vector<1x512xi32>
    %437 = arith.cmpi eq, %357, %436 : vector<1x512xi32>
    %cst_160 = arith.constant 0.000000e+00 : f32
    %438 = vector.broadcast %cst_160 : f32 to vector<1x512xf32>
    %439 = arith.select %437, %355, %438 : vector<1x512xi1>, vector<1x512xf32>
    %c1_i32_161 = arith.constant 1 : i32
    %440 = vector.broadcast %c1_i32_161 : i32 to vector<1x512xi32>
    %441 = arith.cmpi eq, %357, %440 : vector<1x512xi32>
    %cst_162 = arith.constant 0.000000e+00 : f32
    %442 = vector.broadcast %cst_162 : f32 to vector<1x512xf32>
    %443 = arith.select %441, %353, %442 : vector<1x512xi1>, vector<1x512xf32>
    %444 = arith.addf %439, %443 : vector<1x512xf32>
    %c448_i32_163 = arith.constant 448 : i32
    %445 = tpu.dynamic_rotate %344 by %c448_i32_163 dim 1 : vector<4x512xf32>, i32 -> vector<4x512xf32>
    %446 = vector.broadcast %444 : vector<1x512xf32> to vector<4x512xf32>
    %447 = arith.mulf %446, %445 : vector<4x512xf32>
    %448 = arith.addf %435, %447 : vector<4x512xf32>
    %c3_i32_164 = arith.constant 3 : i32
    %449 = vector.broadcast %c3_i32_164 : i32 to vector<1x512xi32>
    %450 = arith.cmpi eq, %357, %449 : vector<1x512xi32>
    %cst_165 = arith.constant 0.000000e+00 : f32
    %451 = vector.broadcast %cst_165 : f32 to vector<1x512xf32>
    %452 = arith.select %450, %355, %451 : vector<1x512xi1>, vector<1x512xf32>
    %c2_i32_166 = arith.constant 2 : i32
    %453 = vector.broadcast %c2_i32_166 : i32 to vector<1x512xi32>
    %454 = arith.cmpi eq, %357, %453 : vector<1x512xi32>
    %cst_167 = arith.constant 0.000000e+00 : f32
    %455 = vector.broadcast %cst_167 : f32 to vector<1x512xf32>
    %456 = arith.select %454, %353, %455 : vector<1x512xi1>, vector<1x512xf32>
    %457 = arith.addf %452, %456 : vector<1x512xf32>
    %c416_i32_168 = arith.constant 416 : i32
    %458 = tpu.dynamic_rotate %344 by %c416_i32_168 dim 1 : vector<4x512xf32>, i32 -> vector<4x512xf32>
    %459 = vector.broadcast %457 : vector<1x512xf32> to vector<4x512xf32>
    %460 = arith.mulf %459, %458 : vector<4x512xf32>
    %461 = arith.addf %448, %460 : vector<4x512xf32>
    %c4_i32_169 = arith.constant 4 : i32
    %462 = vector.broadcast %c4_i32_169 : i32 to vector<1x512xi32>
    %463 = arith.cmpi eq, %357, %462 : vector<1x512xi32>
    %cst_170 = arith.constant 0.000000e+00 : f32
    %464 = vector.broadcast %cst_170 : f32 to vector<1x512xf32>
    %465 = arith.select %463, %355, %464 : vector<1x512xi1>, vector<1x512xf32>
    %c3_i32_171 = arith.constant 3 : i32
    %466 = vector.broadcast %c3_i32_171 : i32 to vector<1x512xi32>
    %467 = arith.cmpi eq, %357, %466 : vector<1x512xi32>
    %cst_172 = arith.constant 0.000000e+00 : f32
    %468 = vector.broadcast %cst_172 : f32 to vector<1x512xf32>
    %469 = arith.select %467, %353, %468 : vector<1x512xi1>, vector<1x512xf32>
    %470 = arith.addf %465, %469 : vector<1x512xf32>
    %c384_i32_173 = arith.constant 384 : i32
    %471 = tpu.dynamic_rotate %344 by %c384_i32_173 dim 1 : vector<4x512xf32>, i32 -> vector<4x512xf32>
    %472 = vector.broadcast %470 : vector<1x512xf32> to vector<4x512xf32>
    %473 = arith.mulf %472, %471 : vector<4x512xf32>
    %474 = arith.addf %461, %473 : vector<4x512xf32>
    %c5_i32_174 = arith.constant 5 : i32
    %475 = vector.broadcast %c5_i32_174 : i32 to vector<1x512xi32>
    %476 = arith.cmpi eq, %357, %475 : vector<1x512xi32>
    %cst_175 = arith.constant 0.000000e+00 : f32
    %477 = vector.broadcast %cst_175 : f32 to vector<1x512xf32>
    %478 = arith.select %476, %355, %477 : vector<1x512xi1>, vector<1x512xf32>
    %c4_i32_176 = arith.constant 4 : i32
    %479 = vector.broadcast %c4_i32_176 : i32 to vector<1x512xi32>
    %480 = arith.cmpi eq, %357, %479 : vector<1x512xi32>
    %cst_177 = arith.constant 0.000000e+00 : f32
    %481 = vector.broadcast %cst_177 : f32 to vector<1x512xf32>
    %482 = arith.select %480, %353, %481 : vector<1x512xi1>, vector<1x512xf32>
    %483 = arith.addf %478, %482 : vector<1x512xf32>
    %c352_i32_178 = arith.constant 352 : i32
    %484 = tpu.dynamic_rotate %344 by %c352_i32_178 dim 1 : vector<4x512xf32>, i32 -> vector<4x512xf32>
    %485 = vector.broadcast %483 : vector<1x512xf32> to vector<4x512xf32>
    %486 = arith.mulf %485, %484 : vector<4x512xf32>
    %487 = arith.addf %474, %486 : vector<4x512xf32>
    %c4_179 = arith.constant 4 : index
    %c0_180 = arith.constant 0 : index
    %488 = vector.load %arg16[%c4_179, %c0_180] : memref<36x512xf32, #tpu.memory_space<vmem>>, vector<4x512xf32>
    tpu.vector_store %arg16[%c4_179, %c0_180], %487 {strides = array<i32>} : memref<36x512xf32, #tpu.memory_space<vmem>>, vector<4x512xf32>,
    %c2_i32_181 = arith.constant 2 : i32
    %489 = tpu.dynamic_rotate %1 by %c2_i32_181 dim 1 : vector<4x512xf32>, i32 -> vector<4x512xf32>
    %cst_182 = arith.constant 1.000000e+00 : f32
    %490 = vector.broadcast %cst_182 : f32 to vector<1x512xf32>
    %491 = arith.mulf %490, %190 : vector<1x512xf32>
    %492 = arith.addf %2, %491 : vector<1x512xf32>
    %cst_183 = arith.constant 0.000000e+00 : f32
    %cst_184 = arith.constant 1.500000e+01 : f32
    %493 = vector.broadcast %cst_183 : f32 to vector<1x512xf32>
    %494 = arith.maximumf %493, %492 : vector<1x512xf32>
    %495 = vector.broadcast %cst_184 : f32 to vector<1x512xf32>
    %496 = arith.minimumf %495, %494 : vector<1x512xf32>
    %497 = math.floor %496 : vector<1x512xf32>
    %498 = arith.subf %496, %497 : vector<1x512xf32>
    %cst_185 = arith.constant 1.000000e+00 : f32
    %499 = vector.broadcast %cst_185 : f32 to vector<1x512xf32>
    %500 = arith.subf %499, %498 : vector<1x512xf32>
    %501 = arith.subf %497, %2 : vector<1x512xf32>
    %502 = arith.fptosi %501 : vector<1x512xf32> to vector<1x512xi32>
    %cst_186 = arith.constant 0.000000e+00 : f32
    %503 = vector.broadcast %cst_186 : f32 to vector<4x512xf32>
    %c-4_i32_187 = arith.constant -4 : i32
    %504 = vector.broadcast %c-4_i32_187 : i32 to vector<1x512xi32>
    %505 = arith.cmpi eq, %502, %504 : vector<1x512xi32>
    %cst_188 = arith.constant 0.000000e+00 : f32
    %506 = vector.broadcast %cst_188 : f32 to vector<1x512xf32>
    %507 = arith.select %505, %500, %506 : vector<1x512xi1>, vector<1x512xf32>
    %c-5_i32_189 = arith.constant -5 : i32
    %508 = vector.broadcast %c-5_i32_189 : i32 to vector<1x512xi32>
    %509 = arith.cmpi eq, %502, %508 : vector<1x512xi32>
    %cst_190 = arith.constant 0.000000e+00 : f32
    %510 = vector.broadcast %cst_190 : f32 to vector<1x512xf32>
    %511 = arith.select %509, %498, %510 : vector<1x512xi1>, vector<1x512xf32>
    %512 = arith.addf %507, %511 : vector<1x512xf32>
    %c128_i32_191 = arith.constant 128 : i32
    %513 = tpu.dynamic_rotate %489 by %c128_i32_191 dim 1 : vector<4x512xf32>, i32 -> vector<4x512xf32>
    %514 = vector.broadcast %512 : vector<1x512xf32> to vector<4x512xf32>
    %515 = arith.mulf %514, %513 : vector<4x512xf32>
    %516 = arith.addf %503, %515 : vector<4x512xf32>
    %c-3_i32_192 = arith.constant -3 : i32
    %517 = vector.broadcast %c-3_i32_192 : i32 to vector<1x512xi32>
    %518 = arith.cmpi eq, %502, %517 : vector<1x512xi32>
    %cst_193 = arith.constant 0.000000e+00 : f32
    %519 = vector.broadcast %cst_193 : f32 to vector<1x512xf32>
    %520 = arith.select %518, %500, %519 : vector<1x512xi1>, vector<1x512xf32>
    %c-4_i32_194 = arith.constant -4 : i32
    %521 = vector.broadcast %c-4_i32_194 : i32 to vector<1x512xi32>
    %522 = arith.cmpi eq, %502, %521 : vector<1x512xi32>
    %cst_195 = arith.constant 0.000000e+00 : f32
    %523 = vector.broadcast %cst_195 : f32 to vector<1x512xf32>
    %524 = arith.select %522, %498, %523 : vector<1x512xi1>, vector<1x512xf32>
    %525 = arith.addf %520, %524 : vector<1x512xf32>
    %c96_i32_196 = arith.constant 96 : i32
    %526 = tpu.dynamic_rotate %489 by %c96_i32_196 dim 1 : vector<4x512xf32>, i32 -> vector<4x512xf32>
    %527 = vector.broadcast %525 : vector<1x512xf32> to vector<4x512xf32>
    %528 = arith.mulf %527, %526 : vector<4x512xf32>
    %529 = arith.addf %516, %528 : vector<4x512xf32>
    %c-2_i32_197 = arith.constant -2 : i32
    %530 = vector.broadcast %c-2_i32_197 : i32 to vector<1x512xi32>
    %531 = arith.cmpi eq, %502, %530 : vector<1x512xi32>
    %cst_198 = arith.constant 0.000000e+00 : f32
    %532 = vector.broadcast %cst_198 : f32 to vector<1x512xf32>
    %533 = arith.select %531, %500, %532 : vector<1x512xi1>, vector<1x512xf32>
    %c-3_i32_199 = arith.constant -3 : i32
    %534 = vector.broadcast %c-3_i32_199 : i32 to vector<1x512xi32>
    %535 = arith.cmpi eq, %502, %534 : vector<1x512xi32>
    %cst_200 = arith.constant 0.000000e+00 : f32
    %536 = vector.broadcast %cst_200 : f32 to vector<1x512xf32>
    %537 = arith.select %535, %498, %536 : vector<1x512xi1>, vector<1x512xf32>
    %538 = arith.addf %533, %537 : vector<1x512xf32>
    %c64_i32_201 = arith.constant 64 : i32
    %539 = tpu.dynamic_rotate %489 by %c64_i32_201 dim 1 : vector<4x512xf32>, i32 -> vector<4x512xf32>
    %540 = vector.broadcast %538 : vector<1x512xf32> to vector<4x512xf32>
    %541 = arith.mulf %540, %539 : vector<4x512xf32>
    %542 = arith.addf %529, %541 : vector<4x512xf32>
    %c-1_i32_202 = arith.constant -1 : i32
    %543 = vector.broadcast %c-1_i32_202 : i32 to vector<1x512xi32>
    %544 = arith.cmpi eq, %502, %543 : vector<1x512xi32>
    %cst_203 = arith.constant 0.000000e+00 : f32
    %545 = vector.broadcast %cst_203 : f32 to vector<1x512xf32>
    %546 = arith.select %544, %500, %545 : vector<1x512xi1>, vector<1x512xf32>
    %c-2_i32_204 = arith.constant -2 : i32
    %547 = vector.broadcast %c-2_i32_204 : i32 to vector<1x512xi32>
    %548 = arith.cmpi eq, %502, %547 : vector<1x512xi32>
    %cst_205 = arith.constant 0.000000e+00 : f32
    %549 = vector.broadcast %cst_205 : f32 to vector<1x512xf32>
    %550 = arith.select %548, %498, %549 : vector<1x512xi1>, vector<1x512xf32>
    %551 = arith.addf %546, %550 : vector<1x512xf32>
    %c32_i32_206 = arith.constant 32 : i32
    %552 = tpu.dynamic_rotate %489 by %c32_i32_206 dim 1 : vector<4x512xf32>, i32 -> vector<4x512xf32>
    %553 = vector.broadcast %551 : vector<1x512xf32> to vector<4x512xf32>
    %554 = arith.mulf %553, %552 : vector<4x512xf32>
    %555 = arith.addf %542, %554 : vector<4x512xf32>
    %c0_i32_207 = arith.constant 0 : i32
    %556 = vector.broadcast %c0_i32_207 : i32 to vector<1x512xi32>
    %557 = arith.cmpi eq, %502, %556 : vector<1x512xi32>
    %cst_208 = arith.constant 0.000000e+00 : f32
    %558 = vector.broadcast %cst_208 : f32 to vector<1x512xf32>
    %559 = arith.select %557, %500, %558 : vector<1x512xi1>, vector<1x512xf32>
    %c-1_i32_209 = arith.constant -1 : i32
    %560 = vector.broadcast %c-1_i32_209 : i32 to vector<1x512xi32>
    %561 = arith.cmpi eq, %502, %560 : vector<1x512xi32>
    %cst_210 = arith.constant 0.000000e+00 : f32
    %562 = vector.broadcast %cst_210 : f32 to vector<1x512xf32>
    %563 = arith.select %561, %498, %562 : vector<1x512xi1>, vector<1x512xf32>
    %564 = arith.addf %559, %563 : vector<1x512xf32>
    %565 = vector.broadcast %564 : vector<1x512xf32> to vector<4x512xf32>
    %566 = arith.mulf %565, %489 : vector<4x512xf32>
    %567 = arith.addf %555, %566 : vector<4x512xf32>
    %c1_i32_211 = arith.constant 1 : i32
    %568 = vector.broadcast %c1_i32_211 : i32 to vector<1x512xi32>
    %569 = arith.cmpi eq, %502, %568 : vector<1x512xi32>
    %cst_212 = arith.constant 0.000000e+00 : f32
    %570 = vector.broadcast %cst_212 : f32 to vector<1x512xf32>
    %571 = arith.select %569, %500, %570 : vector<1x512xi1>, vector<1x512xf32>
    %c0_i32_213 = arith.constant 0 : i32
    %572 = vector.broadcast %c0_i32_213 : i32 to vector<1x512xi32>
    %573 = arith.cmpi eq, %502, %572 : vector<1x512xi32>
    %cst_214 = arith.constant 0.000000e+00 : f32
    %574 = vector.broadcast %cst_214 : f32 to vector<1x512xf32>
    %575 = arith.select %573, %498, %574 : vector<1x512xi1>, vector<1x512xf32>
    %576 = arith.addf %571, %575 : vector<1x512xf32>
    %c480_i32_215 = arith.constant 480 : i32
    %577 = tpu.dynamic_rotate %489 by %c480_i32_215 dim 1 : vector<4x512xf32>, i32 -> vector<4x512xf32>
    %578 = vector.broadcast %576 : vector<1x512xf32> to vector<4x512xf32>
    %579 = arith.mulf %578, %577 : vector<4x512xf32>
    %580 = arith.addf %567, %579 : vector<4x512xf32>
    %c2_i32_216 = arith.constant 2 : i32
    %581 = vector.broadcast %c2_i32_216 : i32 to vector<1x512xi32>
    %582 = arith.cmpi eq, %502, %581 : vector<1x512xi32>
    %cst_217 = arith.constant 0.000000e+00 : f32
    %583 = vector.broadcast %cst_217 : f32 to vector<1x512xf32>
    %584 = arith.select %582, %500, %583 : vector<1x512xi1>, vector<1x512xf32>
    %c1_i32_218 = arith.constant 1 : i32
    %585 = vector.broadcast %c1_i32_218 : i32 to vector<1x512xi32>
    %586 = arith.cmpi eq, %502, %585 : vector<1x512xi32>
    %cst_219 = arith.constant 0.000000e+00 : f32
    %587 = vector.broadcast %cst_219 : f32 to vector<1x512xf32>
    %588 = arith.select %586, %498, %587 : vector<1x512xi1>, vector<1x512xf32>
    %589 = arith.addf %584, %588 : vector<1x512xf32>
    %c448_i32_220 = arith.constant 448 : i32
    %590 = tpu.dynamic_rotate %489 by %c448_i32_220 dim 1 : vector<4x512xf32>, i32 -> vector<4x512xf32>
    %591 = vector.broadcast %589 : vector<1x512xf32> to vector<4x512xf32>
    %592 = arith.mulf %591, %590 : vector<4x512xf32>
    %593 = arith.addf %580, %592 : vector<4x512xf32>
    %c3_i32_221 = arith.constant 3 : i32
    %594 = vector.broadcast %c3_i32_221 : i32 to vector<1x512xi32>
    %595 = arith.cmpi eq, %502, %594 : vector<1x512xi32>
    %cst_222 = arith.constant 0.000000e+00 : f32
    %596 = vector.broadcast %cst_222 : f32 to vector<1x512xf32>
    %597 = arith.select %595, %500, %596 : vector<1x512xi1>, vector<1x512xf32>
    %c2_i32_223 = arith.constant 2 : i32
    %598 = vector.broadcast %c2_i32_223 : i32 to vector<1x512xi32>
    %599 = arith.cmpi eq, %502, %598 : vector<1x512xi32>
    %cst_224 = arith.constant 0.000000e+00 : f32
    %600 = vector.broadcast %cst_224 : f32 to vector<1x512xf32>
    %601 = arith.select %599, %498, %600 : vector<1x512xi1>, vector<1x512xf32>
    %602 = arith.addf %597, %601 : vector<1x512xf32>
    %c416_i32_225 = arith.constant 416 : i32
    %603 = tpu.dynamic_rotate %489 by %c416_i32_225 dim 1 : vector<4x512xf32>, i32 -> vector<4x512xf32>
    %604 = vector.broadcast %602 : vector<1x512xf32> to vector<4x512xf32>
    %605 = arith.mulf %604, %603 : vector<4x512xf32>
    %606 = arith.addf %593, %605 : vector<4x512xf32>
    %c4_i32_226 = arith.constant 4 : i32
    %607 = vector.broadcast %c4_i32_226 : i32 to vector<1x512xi32>
    %608 = arith.cmpi eq, %502, %607 : vector<1x512xi32>
    %cst_227 = arith.constant 0.000000e+00 : f32
    %609 = vector.broadcast %cst_227 : f32 to vector<1x512xf32>
    %610 = arith.select %608, %500, %609 : vector<1x512xi1>, vector<1x512xf32>
    %c3_i32_228 = arith.constant 3 : i32
    %611 = vector.broadcast %c3_i32_228 : i32 to vector<1x512xi32>
    %612 = arith.cmpi eq, %502, %611 : vector<1x512xi32>
    %cst_229 = arith.constant 0.000000e+00 : f32
    %613 = vector.broadcast %cst_229 : f32 to vector<1x512xf32>
    %614 = arith.select %612, %498, %613 : vector<1x512xi1>, vector<1x512xf32>
    %615 = arith.addf %610, %614 : vector<1x512xf32>
    %c384_i32_230 = arith.constant 384 : i32
    %616 = tpu.dynamic_rotate %489 by %c384_i32_230 dim 1 : vector<4x512xf32>, i32 -> vector<4x512xf32>
    %617 = vector.broadcast %615 : vector<1x512xf32> to vector<4x512xf32>
    %618 = arith.mulf %617, %616 : vector<4x512xf32>
    %619 = arith.addf %606, %618 : vector<4x512xf32>
    %c5_i32_231 = arith.constant 5 : i32
    %620 = vector.broadcast %c5_i32_231 : i32 to vector<1x512xi32>
    %621 = arith.cmpi eq, %502, %620 : vector<1x512xi32>
    %cst_232 = arith.constant 0.000000e+00 : f32
    %622 = vector.broadcast %cst_232 : f32 to vector<1x512xf32>
    %623 = arith.select %621, %500, %622 : vector<1x512xi1>, vector<1x512xf32>
    %c4_i32_233 = arith.constant 4 : i32
    %624 = vector.broadcast %c4_i32_233 : i32 to vector<1x512xi32>
    %625 = arith.cmpi eq, %502, %624 : vector<1x512xi32>
    %cst_234 = arith.constant 0.000000e+00 : f32
    %626 = vector.broadcast %cst_234 : f32 to vector<1x512xf32>
    %627 = arith.select %625, %498, %626 : vector<1x512xi1>, vector<1x512xf32>
    %628 = arith.addf %623, %627 : vector<1x512xf32>
    %c352_i32_235 = arith.constant 352 : i32
    %629 = tpu.dynamic_rotate %489 by %c352_i32_235 dim 1 : vector<4x512xf32>, i32 -> vector<4x512xf32>
    %630 = vector.broadcast %628 : vector<1x512xf32> to vector<4x512xf32>
    %631 = arith.mulf %630, %629 : vector<4x512xf32>
    %632 = arith.addf %619, %631 : vector<4x512xf32>
    %c8_236 = arith.constant 8 : index
    %c0_237 = arith.constant 0 : index
    %633 = vector.load %arg16[%c8_236, %c0_237] : memref<36x512xf32, #tpu.memory_space<vmem>>, vector<4x512xf32>
    tpu.vector_store %arg16[%c8_236, %c0_237], %632 {strides = array<i32>} : memref<36x512xf32, #tpu.memory_space<vmem>>, vector<4x512xf32>,
    %c1_i32_238 = arith.constant 1 : i32
    %634 = tpu.dynamic_rotate %1 by %c1_i32_238 dim 1 : vector<4x512xf32>, i32 -> vector<4x512xf32>
    %cst_239 = arith.constant 1.000000e+00 : f32
    %635 = vector.broadcast %cst_239 : f32 to vector<1x512xf32>
    %636 = arith.mulf %635, %186 : vector<1x512xf32>
    %637 = arith.addf %2, %636 : vector<1x512xf32>
    %cst_240 = arith.constant 0.000000e+00 : f32
    %cst_241 = arith.constant 1.500000e+01 : f32
    %638 = vector.broadcast %cst_240 : f32 to vector<1x512xf32>
    %639 = arith.maximumf %638, %637 : vector<1x512xf32>
    %640 = vector.broadcast %cst_241 : f32 to vector<1x512xf32>
    %641 = arith.minimumf %640, %639 : vector<1x512xf32>
    %642 = math.floor %641 : vector<1x512xf32>
    %643 = arith.subf %641, %642 : vector<1x512xf32>
    %cst_242 = arith.constant 1.000000e+00 : f32
    %644 = vector.broadcast %cst_242 : f32 to vector<1x512xf32>
    %645 = arith.subf %644, %643 : vector<1x512xf32>
    %646 = arith.subf %642, %2 : vector<1x512xf32>
    %647 = arith.fptosi %646 : vector<1x512xf32> to vector<1x512xi32>
    %cst_243 = arith.constant 0.000000e+00 : f32
    %648 = vector.broadcast %cst_243 : f32 to vector<4x512xf32>
    %c-4_i32_244 = arith.constant -4 : i32
    %649 = vector.broadcast %c-4_i32_244 : i32 to vector<1x512xi32>
    %650 = arith.cmpi eq, %647, %649 : vector<1x512xi32>
    %cst_245 = arith.constant 0.000000e+00 : f32
    %651 = vector.broadcast %cst_245 : f32 to vector<1x512xf32>
    %652 = arith.select %650, %645, %651 : vector<1x512xi1>, vector<1x512xf32>
    %c-5_i32_246 = arith.constant -5 : i32
    %653 = vector.broadcast %c-5_i32_246 : i32 to vector<1x512xi32>
    %654 = arith.cmpi eq, %647, %653 : vector<1x512xi32>
    %cst_247 = arith.constant 0.000000e+00 : f32
    %655 = vector.broadcast %cst_247 : f32 to vector<1x512xf32>
    %656 = arith.select %654, %643, %655 : vector<1x512xi1>, vector<1x512xf32>
    %657 = arith.addf %652, %656 : vector<1x512xf32>
    %c128_i32_248 = arith.constant 128 : i32
    %658 = tpu.dynamic_rotate %634 by %c128_i32_248 dim 1 : vector<4x512xf32>, i32 -> vector<4x512xf32>
    %659 = vector.broadcast %657 : vector<1x512xf32> to vector<4x512xf32>
    %660 = arith.mulf %659, %658 : vector<4x512xf32>
    %661 = arith.addf %648, %660 : vector<4x512xf32>
    %c-3_i32_249 = arith.constant -3 : i32
    %662 = vector.broadcast %c-3_i32_249 : i32 to vector<1x512xi32>
    %663 = arith.cmpi eq, %647, %662 : vector<1x512xi32>
    %cst_250 = arith.constant 0.000000e+00 : f32
    %664 = vector.broadcast %cst_250 : f32 to vector<1x512xf32>
    %665 = arith.select %663, %645, %664 : vector<1x512xi1>, vector<1x512xf32>
    %c-4_i32_251 = arith.constant -4 : i32
    %666 = vector.broadcast %c-4_i32_251 : i32 to vector<1x512xi32>
    %667 = arith.cmpi eq, %647, %666 : vector<1x512xi32>
    %cst_252 = arith.constant 0.000000e+00 : f32
    %668 = vector.broadcast %cst_252 : f32 to vector<1x512xf32>
    %669 = arith.select %667, %643, %668 : vector<1x512xi1>, vector<1x512xf32>
    %670 = arith.addf %665, %669 : vector<1x512xf32>
    %c96_i32_253 = arith.constant 96 : i32
    %671 = tpu.dynamic_rotate %634 by %c96_i32_253 dim 1 : vector<4x512xf32>, i32 -> vector<4x512xf32>
    %672 = vector.broadcast %670 : vector<1x512xf32> to vector<4x512xf32>
    %673 = arith.mulf %672, %671 : vector<4x512xf32>
    %674 = arith.addf %661, %673 : vector<4x512xf32>
    %c-2_i32_254 = arith.constant -2 : i32
    %675 = vector.broadcast %c-2_i32_254 : i32 to vector<1x512xi32>
    %676 = arith.cmpi eq, %647, %675 : vector<1x512xi32>
    %cst_255 = arith.constant 0.000000e+00 : f32
    %677 = vector.broadcast %cst_255 : f32 to vector<1x512xf32>
    %678 = arith.select %676, %645, %677 : vector<1x512xi1>, vector<1x512xf32>
    %c-3_i32_256 = arith.constant -3 : i32
    %679 = vector.broadcast %c-3_i32_256 : i32 to vector<1x512xi32>
    %680 = arith.cmpi eq, %647, %679 : vector<1x512xi32>
    %cst_257 = arith.constant 0.000000e+00 : f32
    %681 = vector.broadcast %cst_257 : f32 to vector<1x512xf32>
    %682 = arith.select %680, %643, %681 : vector<1x512xi1>, vector<1x512xf32>
    %683 = arith.addf %678, %682 : vector<1x512xf32>
    %c64_i32_258 = arith.constant 64 : i32
    %684 = tpu.dynamic_rotate %634 by %c64_i32_258 dim 1 : vector<4x512xf32>, i32 -> vector<4x512xf32>
    %685 = vector.broadcast %683 : vector<1x512xf32> to vector<4x512xf32>
    %686 = arith.mulf %685, %684 : vector<4x512xf32>
    %687 = arith.addf %674, %686 : vector<4x512xf32>
    %c-1_i32_259 = arith.constant -1 : i32
    %688 = vector.broadcast %c-1_i32_259 : i32 to vector<1x512xi32>
    %689 = arith.cmpi eq, %647, %688 : vector<1x512xi32>
    %cst_260 = arith.constant 0.000000e+00 : f32
    %690 = vector.broadcast %cst_260 : f32 to vector<1x512xf32>
    %691 = arith.select %689, %645, %690 : vector<1x512xi1>, vector<1x512xf32>
    %c-2_i32_261 = arith.constant -2 : i32
    %692 = vector.broadcast %c-2_i32_261 : i32 to vector<1x512xi32>
    %693 = arith.cmpi eq, %647, %692 : vector<1x512xi32>
    %cst_262 = arith.constant 0.000000e+00 : f32
    %694 = vector.broadcast %cst_262 : f32 to vector<1x512xf32>
    %695 = arith.select %693, %643, %694 : vector<1x512xi1>, vector<1x512xf32>
    %696 = arith.addf %691, %695 : vector<1x512xf32>
    %c32_i32_263 = arith.constant 32 : i32
    %697 = tpu.dynamic_rotate %634 by %c32_i32_263 dim 1 : vector<4x512xf32>, i32 -> vector<4x512xf32>
    %698 = vector.broadcast %696 : vector<1x512xf32> to vector<4x512xf32>
    %699 = arith.mulf %698, %697 : vector<4x512xf32>
    %700 = arith.addf %687, %699 : vector<4x512xf32>
    %c0_i32_264 = arith.constant 0 : i32
    %701 = vector.broadcast %c0_i32_264 : i32 to vector<1x512xi32>
    %702 = arith.cmpi eq, %647, %701 : vector<1x512xi32>
    %cst_265 = arith.constant 0.000000e+00 : f32
    %703 = vector.broadcast %cst_265 : f32 to vector<1x512xf32>
    %704 = arith.select %702, %645, %703 : vector<1x512xi1>, vector<1x512xf32>
    %c-1_i32_266 = arith.constant -1 : i32
    %705 = vector.broadcast %c-1_i32_266 : i32 to vector<1x512xi32>
    %706 = arith.cmpi eq, %647, %705 : vector<1x512xi32>
    %cst_267 = arith.constant 0.000000e+00 : f32
    %707 = vector.broadcast %cst_267 : f32 to vector<1x512xf32>
    %708 = arith.select %706, %643, %707 : vector<1x512xi1>, vector<1x512xf32>
    %709 = arith.addf %704, %708 : vector<1x512xf32>
    %710 = vector.broadcast %709 : vector<1x512xf32> to vector<4x512xf32>
    %711 = arith.mulf %710, %634 : vector<4x512xf32>
    %712 = arith.addf %700, %711 : vector<4x512xf32>
    %c1_i32_268 = arith.constant 1 : i32
    %713 = vector.broadcast %c1_i32_268 : i32 to vector<1x512xi32>
    %714 = arith.cmpi eq, %647, %713 : vector<1x512xi32>
    %cst_269 = arith.constant 0.000000e+00 : f32
    %715 = vector.broadcast %cst_269 : f32 to vector<1x512xf32>
    %716 = arith.select %714, %645, %715 : vector<1x512xi1>, vector<1x512xf32>
    %c0_i32_270 = arith.constant 0 : i32
    %717 = vector.broadcast %c0_i32_270 : i32 to vector<1x512xi32>
    %718 = arith.cmpi eq, %647, %717 : vector<1x512xi32>
    %cst_271 = arith.constant 0.000000e+00 : f32
    %719 = vector.broadcast %cst_271 : f32 to vector<1x512xf32>
    %720 = arith.select %718, %643, %719 : vector<1x512xi1>, vector<1x512xf32>
    %721 = arith.addf %716, %720 : vector<1x512xf32>
    %c480_i32_272 = arith.constant 480 : i32
    %722 = tpu.dynamic_rotate %634 by %c480_i32_272 dim 1 : vector<4x512xf32>, i32 -> vector<4x512xf32>
    %723 = vector.broadcast %721 : vector<1x512xf32> to vector<4x512xf32>
    %724 = arith.mulf %723, %722 : vector<4x512xf32>
    %725 = arith.addf %712, %724 : vector<4x512xf32>
    %c2_i32_273 = arith.constant 2 : i32
    %726 = vector.broadcast %c2_i32_273 : i32 to vector<1x512xi32>
    %727 = arith.cmpi eq, %647, %726 : vector<1x512xi32>
    %cst_274 = arith.constant 0.000000e+00 : f32
    %728 = vector.broadcast %cst_274 : f32 to vector<1x512xf32>
    %729 = arith.select %727, %645, %728 : vector<1x512xi1>, vector<1x512xf32>
    %c1_i32_275 = arith.constant 1 : i32
    %730 = vector.broadcast %c1_i32_275 : i32 to vector<1x512xi32>
    %731 = arith.cmpi eq, %647, %730 : vector<1x512xi32>
    %cst_276 = arith.constant 0.000000e+00 : f32
    %732 = vector.broadcast %cst_276 : f32 to vector<1x512xf32>
    %733 = arith.select %731, %643, %732 : vector<1x512xi1>, vector<1x512xf32>
    %734 = arith.addf %729, %733 : vector<1x512xf32>
    %c448_i32_277 = arith.constant 448 : i32
    %735 = tpu.dynamic_rotate %634 by %c448_i32_277 dim 1 : vector<4x512xf32>, i32 -> vector<4x512xf32>
    %736 = vector.broadcast %734 : vector<1x512xf32> to vector<4x512xf32>
    %737 = arith.mulf %736, %735 : vector<4x512xf32>
    %738 = arith.addf %725, %737 : vector<4x512xf32>
    %c3_i32_278 = arith.constant 3 : i32
    %739 = vector.broadcast %c3_i32_278 : i32 to vector<1x512xi32>
    %740 = arith.cmpi eq, %647, %739 : vector<1x512xi32>
    %cst_279 = arith.constant 0.000000e+00 : f32
    %741 = vector.broadcast %cst_279 : f32 to vector<1x512xf32>
    %742 = arith.select %740, %645, %741 : vector<1x512xi1>, vector<1x512xf32>
    %c2_i32_280 = arith.constant 2 : i32
    %743 = vector.broadcast %c2_i32_280 : i32 to vector<1x512xi32>
    %744 = arith.cmpi eq, %647, %743 : vector<1x512xi32>
    %cst_281 = arith.constant 0.000000e+00 : f32
    %745 = vector.broadcast %cst_281 : f32 to vector<1x512xf32>
    %746 = arith.select %744, %643, %745 : vector<1x512xi1>, vector<1x512xf32>
    %747 = arith.addf %742, %746 : vector<1x512xf32>
    %c416_i32_282 = arith.constant 416 : i32
    %748 = tpu.dynamic_rotate %634 by %c416_i32_282 dim 1 : vector<4x512xf32>, i32 -> vector<4x512xf32>
    %749 = vector.broadcast %747 : vector<1x512xf32> to vector<4x512xf32>
    %750 = arith.mulf %749, %748 : vector<4x512xf32>
    %751 = arith.addf %738, %750 : vector<4x512xf32>
    %c4_i32_283 = arith.constant 4 : i32
    %752 = vector.broadcast %c4_i32_283 : i32 to vector<1x512xi32>
    %753 = arith.cmpi eq, %647, %752 : vector<1x512xi32>
    %cst_284 = arith.constant 0.000000e+00 : f32
    %754 = vector.broadcast %cst_284 : f32 to vector<1x512xf32>
    %755 = arith.select %753, %645, %754 : vector<1x512xi1>, vector<1x512xf32>
    %c3_i32_285 = arith.constant 3 : i32
    %756 = vector.broadcast %c3_i32_285 : i32 to vector<1x512xi32>
    %757 = arith.cmpi eq, %647, %756 : vector<1x512xi32>
    %cst_286 = arith.constant 0.000000e+00 : f32
    %758 = vector.broadcast %cst_286 : f32 to vector<1x512xf32>
    %759 = arith.select %757, %643, %758 : vector<1x512xi1>, vector<1x512xf32>
    %760 = arith.addf %755, %759 : vector<1x512xf32>
    %c384_i32_287 = arith.constant 384 : i32
    %761 = tpu.dynamic_rotate %634 by %c384_i32_287 dim 1 : vector<4x512xf32>, i32 -> vector<4x512xf32>
    %762 = vector.broadcast %760 : vector<1x512xf32> to vector<4x512xf32>
    %763 = arith.mulf %762, %761 : vector<4x512xf32>
    %764 = arith.addf %751, %763 : vector<4x512xf32>
    %c5_i32_288 = arith.constant 5 : i32
    %765 = vector.broadcast %c5_i32_288 : i32 to vector<1x512xi32>
    %766 = arith.cmpi eq, %647, %765 : vector<1x512xi32>
    %cst_289 = arith.constant 0.000000e+00 : f32
    %767 = vector.broadcast %cst_289 : f32 to vector<1x512xf32>
    %768 = arith.select %766, %645, %767 : vector<1x512xi1>, vector<1x512xf32>
    %c4_i32_290 = arith.constant 4 : i32
    %769 = vector.broadcast %c4_i32_290 : i32 to vector<1x512xi32>
    %770 = arith.cmpi eq, %647, %769 : vector<1x512xi32>
    %cst_291 = arith.constant 0.000000e+00 : f32
    %771 = vector.broadcast %cst_291 : f32 to vector<1x512xf32>
    %772 = arith.select %770, %643, %771 : vector<1x512xi1>, vector<1x512xf32>
    %773 = arith.addf %768, %772 : vector<1x512xf32>
    %c352_i32_292 = arith.constant 352 : i32
    %774 = tpu.dynamic_rotate %634 by %c352_i32_292 dim 1 : vector<4x512xf32>, i32 -> vector<4x512xf32>
    %775 = vector.broadcast %773 : vector<1x512xf32> to vector<4x512xf32>
    %776 = arith.mulf %775, %774 : vector<4x512xf32>
    %777 = arith.addf %764, %776 : vector<4x512xf32>
    %c12_293 = arith.constant 12 : index
    %c0_294 = arith.constant 0 : index
    %778 = vector.load %arg16[%c12_293, %c0_294] : memref<36x512xf32, #tpu.memory_space<vmem>>, vector<4x512xf32>
    tpu.vector_store %arg16[%c12_293, %c0_294], %777 {strides = array<i32>} : memref<36x512xf32, #tpu.memory_space<vmem>>, vector<4x512xf32>,
    %cst_295 = arith.constant 1.000000e+00 : f32
    %779 = vector.broadcast %cst_295 : f32 to vector<1x512xf32>
    %780 = arith.mulf %779, %182 : vector<1x512xf32>
    %781 = arith.addf %2, %780 : vector<1x512xf32>
    %cst_296 = arith.constant 0.000000e+00 : f32
    %cst_297 = arith.constant 1.500000e+01 : f32
    %782 = vector.broadcast %cst_296 : f32 to vector<1x512xf32>
    %783 = arith.maximumf %782, %781 : vector<1x512xf32>
    %784 = vector.broadcast %cst_297 : f32 to vector<1x512xf32>
    %785 = arith.minimumf %784, %783 : vector<1x512xf32>
    %786 = math.floor %785 : vector<1x512xf32>
    %787 = arith.subf %785, %786 : vector<1x512xf32>
    %cst_298 = arith.constant 1.000000e+00 : f32
    %788 = vector.broadcast %cst_298 : f32 to vector<1x512xf32>
    %789 = arith.subf %788, %787 : vector<1x512xf32>
    %790 = arith.subf %786, %2 : vector<1x512xf32>
    %791 = arith.fptosi %790 : vector<1x512xf32> to vector<1x512xi32>
    %cst_299 = arith.constant 0.000000e+00 : f32
    %792 = vector.broadcast %cst_299 : f32 to vector<4x512xf32>
    %c-4_i32_300 = arith.constant -4 : i32
    %793 = vector.broadcast %c-4_i32_300 : i32 to vector<1x512xi32>
    %794 = arith.cmpi eq, %791, %793 : vector<1x512xi32>
    %cst_301 = arith.constant 0.000000e+00 : f32
    %795 = vector.broadcast %cst_301 : f32 to vector<1x512xf32>
    %796 = arith.select %794, %789, %795 : vector<1x512xi1>, vector<1x512xf32>
    %c-5_i32_302 = arith.constant -5 : i32
    %797 = vector.broadcast %c-5_i32_302 : i32 to vector<1x512xi32>
    %798 = arith.cmpi eq, %791, %797 : vector<1x512xi32>
    %cst_303 = arith.constant 0.000000e+00 : f32
    %799 = vector.broadcast %cst_303 : f32 to vector<1x512xf32>
    %800 = arith.select %798, %787, %799 : vector<1x512xi1>, vector<1x512xf32>
    %801 = arith.addf %796, %800 : vector<1x512xf32>
    %c128_i32_304 = arith.constant 128 : i32
    %802 = tpu.dynamic_rotate %1 by %c128_i32_304 dim 1 : vector<4x512xf32>, i32 -> vector<4x512xf32>
    %803 = vector.broadcast %801 : vector<1x512xf32> to vector<4x512xf32>
    %804 = arith.mulf %803, %802 : vector<4x512xf32>
    %805 = arith.addf %792, %804 : vector<4x512xf32>
    %c-3_i32_305 = arith.constant -3 : i32
    %806 = vector.broadcast %c-3_i32_305 : i32 to vector<1x512xi32>
    %807 = arith.cmpi eq, %791, %806 : vector<1x512xi32>
    %cst_306 = arith.constant 0.000000e+00 : f32
    %808 = vector.broadcast %cst_306 : f32 to vector<1x512xf32>
    %809 = arith.select %807, %789, %808 : vector<1x512xi1>, vector<1x512xf32>
    %c-4_i32_307 = arith.constant -4 : i32
    %810 = vector.broadcast %c-4_i32_307 : i32 to vector<1x512xi32>
    %811 = arith.cmpi eq, %791, %810 : vector<1x512xi32>
    %cst_308 = arith.constant 0.000000e+00 : f32
    %812 = vector.broadcast %cst_308 : f32 to vector<1x512xf32>
    %813 = arith.select %811, %787, %812 : vector<1x512xi1>, vector<1x512xf32>
    %814 = arith.addf %809, %813 : vector<1x512xf32>
    %c96_i32_309 = arith.constant 96 : i32
    %815 = tpu.dynamic_rotate %1 by %c96_i32_309 dim 1 : vector<4x512xf32>, i32 -> vector<4x512xf32>
    %816 = vector.broadcast %814 : vector<1x512xf32> to vector<4x512xf32>
    %817 = arith.mulf %816, %815 : vector<4x512xf32>
    %818 = arith.addf %805, %817 : vector<4x512xf32>
    %c-2_i32_310 = arith.constant -2 : i32
    %819 = vector.broadcast %c-2_i32_310 : i32 to vector<1x512xi32>
    %820 = arith.cmpi eq, %791, %819 : vector<1x512xi32>
    %cst_311 = arith.constant 0.000000e+00 : f32
    %821 = vector.broadcast %cst_311 : f32 to vector<1x512xf32>
    %822 = arith.select %820, %789, %821 : vector<1x512xi1>, vector<1x512xf32>
    %c-3_i32_312 = arith.constant -3 : i32
    %823 = vector.broadcast %c-3_i32_312 : i32 to vector<1x512xi32>
    %824 = arith.cmpi eq, %791, %823 : vector<1x512xi32>
    %cst_313 = arith.constant 0.000000e+00 : f32
    %825 = vector.broadcast %cst_313 : f32 to vector<1x512xf32>
    %826 = arith.select %824, %787, %825 : vector<1x512xi1>, vector<1x512xf32>
    %827 = arith.addf %822, %826 : vector<1x512xf32>
    %c64_i32_314 = arith.constant 64 : i32
    %828 = tpu.dynamic_rotate %1 by %c64_i32_314 dim 1 : vector<4x512xf32>, i32 -> vector<4x512xf32>
    %829 = vector.broadcast %827 : vector<1x512xf32> to vector<4x512xf32>
    %830 = arith.mulf %829, %828 : vector<4x512xf32>
    %831 = arith.addf %818, %830 : vector<4x512xf32>
    %c-1_i32_315 = arith.constant -1 : i32
    %832 = vector.broadcast %c-1_i32_315 : i32 to vector<1x512xi32>
    %833 = arith.cmpi eq, %791, %832 : vector<1x512xi32>
    %cst_316 = arith.constant 0.000000e+00 : f32
    %834 = vector.broadcast %cst_316 : f32 to vector<1x512xf32>
    %835 = arith.select %833, %789, %834 : vector<1x512xi1>, vector<1x512xf32>
    %c-2_i32_317 = arith.constant -2 : i32
    %836 = vector.broadcast %c-2_i32_317 : i32 to vector<1x512xi32>
    %837 = arith.cmpi eq, %791, %836 : vector<1x512xi32>
    %cst_318 = arith.constant 0.000000e+00 : f32
    %838 = vector.broadcast %cst_318 : f32 to vector<1x512xf32>
    %839 = arith.select %837, %787, %838 : vector<1x512xi1>, vector<1x512xf32>
    %840 = arith.addf %835, %839 : vector<1x512xf32>
    %c32_i32_319 = arith.constant 32 : i32
    %841 = tpu.dynamic_rotate %1 by %c32_i32_319 dim 1 : vector<4x512xf32>, i32 -> vector<4x512xf32>
    %842 = vector.broadcast %840 : vector<1x512xf32> to vector<4x512xf32>
    %843 = arith.mulf %842, %841 : vector<4x512xf32>
    %844 = arith.addf %831, %843 : vector<4x512xf32>
    %c0_i32_320 = arith.constant 0 : i32
    %845 = vector.broadcast %c0_i32_320 : i32 to vector<1x512xi32>
    %846 = arith.cmpi eq, %791, %845 : vector<1x512xi32>
    %cst_321 = arith.constant 0.000000e+00 : f32
    %847 = vector.broadcast %cst_321 : f32 to vector<1x512xf32>
    %848 = arith.select %846, %789, %847 : vector<1x512xi1>, vector<1x512xf32>
    %c-1_i32_322 = arith.constant -1 : i32
    %849 = vector.broadcast %c-1_i32_322 : i32 to vector<1x512xi32>
    %850 = arith.cmpi eq, %791, %849 : vector<1x512xi32>
    %cst_323 = arith.constant 0.000000e+00 : f32
    %851 = vector.broadcast %cst_323 : f32 to vector<1x512xf32>
    %852 = arith.select %850, %787, %851 : vector<1x512xi1>, vector<1x512xf32>
    %853 = arith.addf %848, %852 : vector<1x512xf32>
    %854 = vector.broadcast %853 : vector<1x512xf32> to vector<4x512xf32>
    %855 = arith.mulf %854, %1 : vector<4x512xf32>
    %856 = arith.addf %844, %855 : vector<4x512xf32>
    %c1_i32_324 = arith.constant 1 : i32
    %857 = vector.broadcast %c1_i32_324 : i32 to vector<1x512xi32>
    %858 = arith.cmpi eq, %791, %857 : vector<1x512xi32>
    %cst_325 = arith.constant 0.000000e+00 : f32
    %859 = vector.broadcast %cst_325 : f32 to vector<1x512xf32>
    %860 = arith.select %858, %789, %859 : vector<1x512xi1>, vector<1x512xf32>
    %c0_i32_326 = arith.constant 0 : i32
    %861 = vector.broadcast %c0_i32_326 : i32 to vector<1x512xi32>
    %862 = arith.cmpi eq, %791, %861 : vector<1x512xi32>
    %cst_327 = arith.constant 0.000000e+00 : f32
    %863 = vector.broadcast %cst_327 : f32 to vector<1x512xf32>
    %864 = arith.select %862, %787, %863 : vector<1x512xi1>, vector<1x512xf32>
    %865 = arith.addf %860, %864 : vector<1x512xf32>
    %c480_i32_328 = arith.constant 480 : i32
    %866 = tpu.dynamic_rotate %1 by %c480_i32_328 dim 1 : vector<4x512xf32>, i32 -> vector<4x512xf32>
    %867 = vector.broadcast %865 : vector<1x512xf32> to vector<4x512xf32>
    %868 = arith.mulf %867, %866 : vector<4x512xf32>
    %869 = arith.addf %856, %868 : vector<4x512xf32>
    %c2_i32_329 = arith.constant 2 : i32
    %870 = vector.broadcast %c2_i32_329 : i32 to vector<1x512xi32>
    %871 = arith.cmpi eq, %791, %870 : vector<1x512xi32>
    %cst_330 = arith.constant 0.000000e+00 : f32
    %872 = vector.broadcast %cst_330 : f32 to vector<1x512xf32>
    %873 = arith.select %871, %789, %872 : vector<1x512xi1>, vector<1x512xf32>
    %c1_i32_331 = arith.constant 1 : i32
    %874 = vector.broadcast %c1_i32_331 : i32 to vector<1x512xi32>
    %875 = arith.cmpi eq, %791, %874 : vector<1x512xi32>
    %cst_332 = arith.constant 0.000000e+00 : f32
    %876 = vector.broadcast %cst_332 : f32 to vector<1x512xf32>
    %877 = arith.select %875, %787, %876 : vector<1x512xi1>, vector<1x512xf32>
    %878 = arith.addf %873, %877 : vector<1x512xf32>
    %c448_i32_333 = arith.constant 448 : i32
    %879 = tpu.dynamic_rotate %1 by %c448_i32_333 dim 1 : vector<4x512xf32>, i32 -> vector<4x512xf32>
    %880 = vector.broadcast %878 : vector<1x512xf32> to vector<4x512xf32>
    %881 = arith.mulf %880, %879 : vector<4x512xf32>
    %882 = arith.addf %869, %881 : vector<4x512xf32>
    %c3_i32_334 = arith.constant 3 : i32
    %883 = vector.broadcast %c3_i32_334 : i32 to vector<1x512xi32>
    %884 = arith.cmpi eq, %791, %883 : vector<1x512xi32>
    %cst_335 = arith.constant 0.000000e+00 : f32
    %885 = vector.broadcast %cst_335 : f32 to vector<1x512xf32>
    %886 = arith.select %884, %789, %885 : vector<1x512xi1>, vector<1x512xf32>
    %c2_i32_336 = arith.constant 2 : i32
    %887 = vector.broadcast %c2_i32_336 : i32 to vector<1x512xi32>
    %888 = arith.cmpi eq, %791, %887 : vector<1x512xi32>
    %cst_337 = arith.constant 0.000000e+00 : f32
    %889 = vector.broadcast %cst_337 : f32 to vector<1x512xf32>
    %890 = arith.select %888, %787, %889 : vector<1x512xi1>, vector<1x512xf32>
    %891 = arith.addf %886, %890 : vector<1x512xf32>
    %c416_i32_338 = arith.constant 416 : i32
    %892 = tpu.dynamic_rotate %1 by %c416_i32_338 dim 1 : vector<4x512xf32>, i32 -> vector<4x512xf32>
    %893 = vector.broadcast %891 : vector<1x512xf32> to vector<4x512xf32>
    %894 = arith.mulf %893, %892 : vector<4x512xf32>
    %895 = arith.addf %882, %894 : vector<4x512xf32>
    %c4_i32_339 = arith.constant 4 : i32
    %896 = vector.broadcast %c4_i32_339 : i32 to vector<1x512xi32>
    %897 = arith.cmpi eq, %791, %896 : vector<1x512xi32>
    %cst_340 = arith.constant 0.000000e+00 : f32
    %898 = vector.broadcast %cst_340 : f32 to vector<1x512xf32>
    %899 = arith.select %897, %789, %898 : vector<1x512xi1>, vector<1x512xf32>
    %c3_i32_341 = arith.constant 3 : i32
    %900 = vector.broadcast %c3_i32_341 : i32 to vector<1x512xi32>
    %901 = arith.cmpi eq, %791, %900 : vector<1x512xi32>
    %cst_342 = arith.constant 0.000000e+00 : f32
    %902 = vector.broadcast %cst_342 : f32 to vector<1x512xf32>
    %903 = arith.select %901, %787, %902 : vector<1x512xi1>, vector<1x512xf32>
    %904 = arith.addf %899, %903 : vector<1x512xf32>
    %c384_i32_343 = arith.constant 384 : i32
    %905 = tpu.dynamic_rotate %1 by %c384_i32_343 dim 1 : vector<4x512xf32>, i32 -> vector<4x512xf32>
    %906 = vector.broadcast %904 : vector<1x512xf32> to vector<4x512xf32>
    %907 = arith.mulf %906, %905 : vector<4x512xf32>
    %908 = arith.addf %895, %907 : vector<4x512xf32>
    %c5_i32_344 = arith.constant 5 : i32
    %909 = vector.broadcast %c5_i32_344 : i32 to vector<1x512xi32>
    %910 = arith.cmpi eq, %791, %909 : vector<1x512xi32>
    %cst_345 = arith.constant 0.000000e+00 : f32
    %911 = vector.broadcast %cst_345 : f32 to vector<1x512xf32>
    %912 = arith.select %910, %789, %911 : vector<1x512xi1>, vector<1x512xf32>
    %c4_i32_346 = arith.constant 4 : i32
    %913 = vector.broadcast %c4_i32_346 : i32 to vector<1x512xi32>
    %914 = arith.cmpi eq, %791, %913 : vector<1x512xi32>
    %cst_347 = arith.constant 0.000000e+00 : f32
    %915 = vector.broadcast %cst_347 : f32 to vector<1x512xf32>
    %916 = arith.select %914, %787, %915 : vector<1x512xi1>, vector<1x512xf32>
    %917 = arith.addf %912, %916 : vector<1x512xf32>
    %c352_i32_348 = arith.constant 352 : i32
    %918 = tpu.dynamic_rotate %1 by %c352_i32_348 dim 1 : vector<4x512xf32>, i32 -> vector<4x512xf32>
    %919 = vector.broadcast %917 : vector<1x512xf32> to vector<4x512xf32>
    %920 = arith.mulf %919, %918 : vector<4x512xf32>
    %921 = arith.addf %908, %920 : vector<4x512xf32>
    %c16_349 = arith.constant 16 : index
    %c0_350 = arith.constant 0 : index
    %922 = vector.load %arg16[%c16_349, %c0_350] : memref<36x512xf32, #tpu.memory_space<vmem>>, vector<4x512xf32>
    tpu.vector_store %arg16[%c16_349, %c0_350], %921 {strides = array<i32>} : memref<36x512xf32, #tpu.memory_space<vmem>>, vector<4x512xf32>,
    %c511_i32_351 = arith.constant 511 : i32
    %923 = tpu.dynamic_rotate %1 by %c511_i32_351 dim 1 : vector<4x512xf32>, i32 -> vector<4x512xf32>
    %cst_352 = arith.constant 1.000000e+00 : f32
    %924 = vector.broadcast %cst_352 : f32 to vector<1x512xf32>
    %925 = arith.mulf %924, %184 : vector<1x512xf32>
    %926 = arith.addf %2, %925 : vector<1x512xf32>
    %cst_353 = arith.constant 0.000000e+00 : f32
    %cst_354 = arith.constant 1.500000e+01 : f32
    %927 = vector.broadcast %cst_353 : f32 to vector<1x512xf32>
    %928 = arith.maximumf %927, %926 : vector<1x512xf32>
    %929 = vector.broadcast %cst_354 : f32 to vector<1x512xf32>
    %930 = arith.minimumf %929, %928 : vector<1x512xf32>
    %931 = math.floor %930 : vector<1x512xf32>
    %932 = arith.subf %930, %931 : vector<1x512xf32>
    %cst_355 = arith.constant 1.000000e+00 : f32
    %933 = vector.broadcast %cst_355 : f32 to vector<1x512xf32>
    %934 = arith.subf %933, %932 : vector<1x512xf32>
    %935 = arith.subf %931, %2 : vector<1x512xf32>
    %936 = arith.fptosi %935 : vector<1x512xf32> to vector<1x512xi32>
    %cst_356 = arith.constant 0.000000e+00 : f32
    %937 = vector.broadcast %cst_356 : f32 to vector<4x512xf32>
    %c-4_i32_357 = arith.constant -4 : i32
    %938 = vector.broadcast %c-4_i32_357 : i32 to vector<1x512xi32>
    %939 = arith.cmpi eq, %936, %938 : vector<1x512xi32>
    %cst_358 = arith.constant 0.000000e+00 : f32
    %940 = vector.broadcast %cst_358 : f32 to vector<1x512xf32>
    %941 = arith.select %939, %934, %940 : vector<1x512xi1>, vector<1x512xf32>
    %c-5_i32_359 = arith.constant -5 : i32
    %942 = vector.broadcast %c-5_i32_359 : i32 to vector<1x512xi32>
    %943 = arith.cmpi eq, %936, %942 : vector<1x512xi32>
    %cst_360 = arith.constant 0.000000e+00 : f32
    %944 = vector.broadcast %cst_360 : f32 to vector<1x512xf32>
    %945 = arith.select %943, %932, %944 : vector<1x512xi1>, vector<1x512xf32>
    %946 = arith.addf %941, %945 : vector<1x512xf32>
    %c128_i32_361 = arith.constant 128 : i32
    %947 = tpu.dynamic_rotate %923 by %c128_i32_361 dim 1 : vector<4x512xf32>, i32 -> vector<4x512xf32>
    %948 = vector.broadcast %946 : vector<1x512xf32> to vector<4x512xf32>
    %949 = arith.mulf %948, %947 : vector<4x512xf32>
    %950 = arith.addf %937, %949 : vector<4x512xf32>
    %c-3_i32_362 = arith.constant -3 : i32
    %951 = vector.broadcast %c-3_i32_362 : i32 to vector<1x512xi32>
    %952 = arith.cmpi eq, %936, %951 : vector<1x512xi32>
    %cst_363 = arith.constant 0.000000e+00 : f32
    %953 = vector.broadcast %cst_363 : f32 to vector<1x512xf32>
    %954 = arith.select %952, %934, %953 : vector<1x512xi1>, vector<1x512xf32>
    %c-4_i32_364 = arith.constant -4 : i32
    %955 = vector.broadcast %c-4_i32_364 : i32 to vector<1x512xi32>
    %956 = arith.cmpi eq, %936, %955 : vector<1x512xi32>
    %cst_365 = arith.constant 0.000000e+00 : f32
    %957 = vector.broadcast %cst_365 : f32 to vector<1x512xf32>
    %958 = arith.select %956, %932, %957 : vector<1x512xi1>, vector<1x512xf32>
    %959 = arith.addf %954, %958 : vector<1x512xf32>
    %c96_i32_366 = arith.constant 96 : i32
    %960 = tpu.dynamic_rotate %923 by %c96_i32_366 dim 1 : vector<4x512xf32>, i32 -> vector<4x512xf32>
    %961 = vector.broadcast %959 : vector<1x512xf32> to vector<4x512xf32>
    %962 = arith.mulf %961, %960 : vector<4x512xf32>
    %963 = arith.addf %950, %962 : vector<4x512xf32>
    %c-2_i32_367 = arith.constant -2 : i32
    %964 = vector.broadcast %c-2_i32_367 : i32 to vector<1x512xi32>
    %965 = arith.cmpi eq, %936, %964 : vector<1x512xi32>
    %cst_368 = arith.constant 0.000000e+00 : f32
    %966 = vector.broadcast %cst_368 : f32 to vector<1x512xf32>
    %967 = arith.select %965, %934, %966 : vector<1x512xi1>, vector<1x512xf32>
    %c-3_i32_369 = arith.constant -3 : i32
    %968 = vector.broadcast %c-3_i32_369 : i32 to vector<1x512xi32>
    %969 = arith.cmpi eq, %936, %968 : vector<1x512xi32>
    %cst_370 = arith.constant 0.000000e+00 : f32
    %970 = vector.broadcast %cst_370 : f32 to vector<1x512xf32>
    %971 = arith.select %969, %932, %970 : vector<1x512xi1>, vector<1x512xf32>
    %972 = arith.addf %967, %971 : vector<1x512xf32>
    %c64_i32_371 = arith.constant 64 : i32
    %973 = tpu.dynamic_rotate %923 by %c64_i32_371 dim 1 : vector<4x512xf32>, i32 -> vector<4x512xf32>
    %974 = vector.broadcast %972 : vector<1x512xf32> to vector<4x512xf32>
    %975 = arith.mulf %974, %973 : vector<4x512xf32>
    %976 = arith.addf %963, %975 : vector<4x512xf32>
    %c-1_i32_372 = arith.constant -1 : i32
    %977 = vector.broadcast %c-1_i32_372 : i32 to vector<1x512xi32>
    %978 = arith.cmpi eq, %936, %977 : vector<1x512xi32>
    %cst_373 = arith.constant 0.000000e+00 : f32
    %979 = vector.broadcast %cst_373 : f32 to vector<1x512xf32>
    %980 = arith.select %978, %934, %979 : vector<1x512xi1>, vector<1x512xf32>
    %c-2_i32_374 = arith.constant -2 : i32
    %981 = vector.broadcast %c-2_i32_374 : i32 to vector<1x512xi32>
    %982 = arith.cmpi eq, %936, %981 : vector<1x512xi32>
    %cst_375 = arith.constant 0.000000e+00 : f32
    %983 = vector.broadcast %cst_375 : f32 to vector<1x512xf32>
    %984 = arith.select %982, %932, %983 : vector<1x512xi1>, vector<1x512xf32>
    %985 = arith.addf %980, %984 : vector<1x512xf32>
    %c32_i32_376 = arith.constant 32 : i32
    %986 = tpu.dynamic_rotate %923 by %c32_i32_376 dim 1 : vector<4x512xf32>, i32 -> vector<4x512xf32>
    %987 = vector.broadcast %985 : vector<1x512xf32> to vector<4x512xf32>
    %988 = arith.mulf %987, %986 : vector<4x512xf32>
    %989 = arith.addf %976, %988 : vector<4x512xf32>
    %c0_i32_377 = arith.constant 0 : i32
    %990 = vector.broadcast %c0_i32_377 : i32 to vector<1x512xi32>
    %991 = arith.cmpi eq, %936, %990 : vector<1x512xi32>
    %cst_378 = arith.constant 0.000000e+00 : f32
    %992 = vector.broadcast %cst_378 : f32 to vector<1x512xf32>
    %993 = arith.select %991, %934, %992 : vector<1x512xi1>, vector<1x512xf32>
    %c-1_i32_379 = arith.constant -1 : i32
    %994 = vector.broadcast %c-1_i32_379 : i32 to vector<1x512xi32>
    %995 = arith.cmpi eq, %936, %994 : vector<1x512xi32>
    %cst_380 = arith.constant 0.000000e+00 : f32
    %996 = vector.broadcast %cst_380 : f32 to vector<1x512xf32>
    %997 = arith.select %995, %932, %996 : vector<1x512xi1>, vector<1x512xf32>
    %998 = arith.addf %993, %997 : vector<1x512xf32>
    %999 = vector.broadcast %998 : vector<1x512xf32> to vector<4x512xf32>
    %1000 = arith.mulf %999, %923 : vector<4x512xf32>
    %1001 = arith.addf %989, %1000 : vector<4x512xf32>
    %c1_i32_381 = arith.constant 1 : i32
    %1002 = vector.broadcast %c1_i32_381 : i32 to vector<1x512xi32>
    %1003 = arith.cmpi eq, %936, %1002 : vector<1x512xi32>
    %cst_382 = arith.constant 0.000000e+00 : f32
    %1004 = vector.broadcast %cst_382 : f32 to vector<1x512xf32>
    %1005 = arith.select %1003, %934, %1004 : vector<1x512xi1>, vector<1x512xf32>
    %c0_i32_383 = arith.constant 0 : i32
    %1006 = vector.broadcast %c0_i32_383 : i32 to vector<1x512xi32>
    %1007 = arith.cmpi eq, %936, %1006 : vector<1x512xi32>
    %cst_384 = arith.constant 0.000000e+00 : f32
    %1008 = vector.broadcast %cst_384 : f32 to vector<1x512xf32>
    %1009 = arith.select %1007, %932, %1008 : vector<1x512xi1>, vector<1x512xf32>
    %1010 = arith.addf %1005, %1009 : vector<1x512xf32>
    %c480_i32_385 = arith.constant 480 : i32
    %1011 = tpu.dynamic_rotate %923 by %c480_i32_385 dim 1 : vector<4x512xf32>, i32 -> vector<4x512xf32>
    %1012 = vector.broadcast %1010 : vector<1x512xf32> to vector<4x512xf32>
    %1013 = arith.mulf %1012, %1011 : vector<4x512xf32>
    %1014 = arith.addf %1001, %1013 : vector<4x512xf32>
    %c2_i32_386 = arith.constant 2 : i32
    %1015 = vector.broadcast %c2_i32_386 : i32 to vector<1x512xi32>
    %1016 = arith.cmpi eq, %936, %1015 : vector<1x512xi32>
    %cst_387 = arith.constant 0.000000e+00 : f32
    %1017 = vector.broadcast %cst_387 : f32 to vector<1x512xf32>
    %1018 = arith.select %1016, %934, %1017 : vector<1x512xi1>, vector<1x512xf32>
    %c1_i32_388 = arith.constant 1 : i32
    %1019 = vector.broadcast %c1_i32_388 : i32 to vector<1x512xi32>
    %1020 = arith.cmpi eq, %936, %1019 : vector<1x512xi32>
    %cst_389 = arith.constant 0.000000e+00 : f32
    %1021 = vector.broadcast %cst_389 : f32 to vector<1x512xf32>
    %1022 = arith.select %1020, %932, %1021 : vector<1x512xi1>, vector<1x512xf32>
    %1023 = arith.addf %1018, %1022 : vector<1x512xf32>
    %c448_i32_390 = arith.constant 448 : i32
    %1024 = tpu.dynamic_rotate %923 by %c448_i32_390 dim 1 : vector<4x512xf32>, i32 -> vector<4x512xf32>
    %1025 = vector.broadcast %1023 : vector<1x512xf32> to vector<4x512xf32>
    %1026 = arith.mulf %1025, %1024 : vector<4x512xf32>
    %1027 = arith.addf %1014, %1026 : vector<4x512xf32>
    %c3_i32_391 = arith.constant 3 : i32
    %1028 = vector.broadcast %c3_i32_391 : i32 to vector<1x512xi32>
    %1029 = arith.cmpi eq, %936, %1028 : vector<1x512xi32>
    %cst_392 = arith.constant 0.000000e+00 : f32
    %1030 = vector.broadcast %cst_392 : f32 to vector<1x512xf32>
    %1031 = arith.select %1029, %934, %1030 : vector<1x512xi1>, vector<1x512xf32>
    %c2_i32_393 = arith.constant 2 : i32
    %1032 = vector.broadcast %c2_i32_393 : i32 to vector<1x512xi32>
    %1033 = arith.cmpi eq, %936, %1032 : vector<1x512xi32>
    %cst_394 = arith.constant 0.000000e+00 : f32
    %1034 = vector.broadcast %cst_394 : f32 to vector<1x512xf32>
    %1035 = arith.select %1033, %932, %1034 : vector<1x512xi1>, vector<1x512xf32>
    %1036 = arith.addf %1031, %1035 : vector<1x512xf32>
    %c416_i32_395 = arith.constant 416 : i32
    %1037 = tpu.dynamic_rotate %923 by %c416_i32_395 dim 1 : vector<4x512xf32>, i32 -> vector<4x512xf32>
    %1038 = vector.broadcast %1036 : vector<1x512xf32> to vector<4x512xf32>
    %1039 = arith.mulf %1038, %1037 : vector<4x512xf32>
    %1040 = arith.addf %1027, %1039 : vector<4x512xf32>
    %c4_i32_396 = arith.constant 4 : i32
    %1041 = vector.broadcast %c4_i32_396 : i32 to vector<1x512xi32>
    %1042 = arith.cmpi eq, %936, %1041 : vector<1x512xi32>
    %cst_397 = arith.constant 0.000000e+00 : f32
    %1043 = vector.broadcast %cst_397 : f32 to vector<1x512xf32>
    %1044 = arith.select %1042, %934, %1043 : vector<1x512xi1>, vector<1x512xf32>
    %c3_i32_398 = arith.constant 3 : i32
    %1045 = vector.broadcast %c3_i32_398 : i32 to vector<1x512xi32>
    %1046 = arith.cmpi eq, %936, %1045 : vector<1x512xi32>
    %cst_399 = arith.constant 0.000000e+00 : f32
    %1047 = vector.broadcast %cst_399 : f32 to vector<1x512xf32>
    %1048 = arith.select %1046, %932, %1047 : vector<1x512xi1>, vector<1x512xf32>
    %1049 = arith.addf %1044, %1048 : vector<1x512xf32>
    %c384_i32_400 = arith.constant 384 : i32
    %1050 = tpu.dynamic_rotate %923 by %c384_i32_400 dim 1 : vector<4x512xf32>, i32 -> vector<4x512xf32>
    %1051 = vector.broadcast %1049 : vector<1x512xf32> to vector<4x512xf32>
    %1052 = arith.mulf %1051, %1050 : vector<4x512xf32>
    %1053 = arith.addf %1040, %1052 : vector<4x512xf32>
    %c5_i32_401 = arith.constant 5 : i32
    %1054 = vector.broadcast %c5_i32_401 : i32 to vector<1x512xi32>
    %1055 = arith.cmpi eq, %936, %1054 : vector<1x512xi32>
    %cst_402 = arith.constant 0.000000e+00 : f32
    %1056 = vector.broadcast %cst_402 : f32 to vector<1x512xf32>
    %1057 = arith.select %1055, %934, %1056 : vector<1x512xi1>, vector<1x512xf32>
    %c4_i32_403 = arith.constant 4 : i32
    %1058 = vector.broadcast %c4_i32_403 : i32 to vector<1x512xi32>
    %1059 = arith.cmpi eq, %936, %1058 : vector<1x512xi32>
    %cst_404 = arith.constant 0.000000e+00 : f32
    %1060 = vector.broadcast %cst_404 : f32 to vector<1x512xf32>
    %1061 = arith.select %1059, %932, %1060 : vector<1x512xi1>, vector<1x512xf32>
    %1062 = arith.addf %1057, %1061 : vector<1x512xf32>
    %c352_i32_405 = arith.constant 352 : i32
    %1063 = tpu.dynamic_rotate %923 by %c352_i32_405 dim 1 : vector<4x512xf32>, i32 -> vector<4x512xf32>
    %1064 = vector.broadcast %1062 : vector<1x512xf32> to vector<4x512xf32>
    %1065 = arith.mulf %1064, %1063 : vector<4x512xf32>
    %1066 = arith.addf %1053, %1065 : vector<4x512xf32>
    %c20_406 = arith.constant 20 : index
    %c0_407 = arith.constant 0 : index
    %1067 = vector.load %arg16[%c20_406, %c0_407] : memref<36x512xf32, #tpu.memory_space<vmem>>, vector<4x512xf32>
    tpu.vector_store %arg16[%c20_406, %c0_407], %1066 {strides = array<i32>} : memref<36x512xf32, #tpu.memory_space<vmem>>, vector<4x512xf32>,
    %c510_i32 = arith.constant 510 : i32
    %1068 = tpu.dynamic_rotate %1 by %c510_i32 dim 1 : vector<4x512xf32>, i32 -> vector<4x512xf32>
    %cst_408 = arith.constant 1.000000e+00 : f32
    %1069 = vector.broadcast %cst_408 : f32 to vector<1x512xf32>
    %1070 = arith.mulf %1069, %188 : vector<1x512xf32>
    %1071 = arith.addf %2, %1070 : vector<1x512xf32>
    %cst_409 = arith.constant 0.000000e+00 : f32
    %cst_410 = arith.constant 1.500000e+01 : f32
    %1072 = vector.broadcast %cst_409 : f32 to vector<1x512xf32>
    %1073 = arith.maximumf %1072, %1071 : vector<1x512xf32>
    %1074 = vector.broadcast %cst_410 : f32 to vector<1x512xf32>
    %1075 = arith.minimumf %1074, %1073 : vector<1x512xf32>
    %1076 = math.floor %1075 : vector<1x512xf32>
    %1077 = arith.subf %1075, %1076 : vector<1x512xf32>
    %cst_411 = arith.constant 1.000000e+00 : f32
    %1078 = vector.broadcast %cst_411 : f32 to vector<1x512xf32>
    %1079 = arith.subf %1078, %1077 : vector<1x512xf32>
    %1080 = arith.subf %1076, %2 : vector<1x512xf32>
    %1081 = arith.fptosi %1080 : vector<1x512xf32> to vector<1x512xi32>
    %cst_412 = arith.constant 0.000000e+00 : f32
    %1082 = vector.broadcast %cst_412 : f32 to vector<4x512xf32>
    %c-4_i32_413 = arith.constant -4 : i32
    %1083 = vector.broadcast %c-4_i32_413 : i32 to vector<1x512xi32>
    %1084 = arith.cmpi eq, %1081, %1083 : vector<1x512xi32>
    %cst_414 = arith.constant 0.000000e+00 : f32
    %1085 = vector.broadcast %cst_414 : f32 to vector<1x512xf32>
    %1086 = arith.select %1084, %1079, %1085 : vector<1x512xi1>, vector<1x512xf32>
    %c-5_i32_415 = arith.constant -5 : i32
    %1087 = vector.broadcast %c-5_i32_415 : i32 to vector<1x512xi32>
    %1088 = arith.cmpi eq, %1081, %1087 : vector<1x512xi32>
    %cst_416 = arith.constant 0.000000e+00 : f32
    %1089 = vector.broadcast %cst_416 : f32 to vector<1x512xf32>
    %1090 = arith.select %1088, %1077, %1089 : vector<1x512xi1>, vector<1x512xf32>
    %1091 = arith.addf %1086, %1090 : vector<1x512xf32>
    %c128_i32_417 = arith.constant 128 : i32
    %1092 = tpu.dynamic_rotate %1068 by %c128_i32_417 dim 1 : vector<4x512xf32>, i32 -> vector<4x512xf32>
    %1093 = vector.broadcast %1091 : vector<1x512xf32> to vector<4x512xf32>
    %1094 = arith.mulf %1093, %1092 : vector<4x512xf32>
    %1095 = arith.addf %1082, %1094 : vector<4x512xf32>
    %c-3_i32_418 = arith.constant -3 : i32
    %1096 = vector.broadcast %c-3_i32_418 : i32 to vector<1x512xi32>
    %1097 = arith.cmpi eq, %1081, %1096 : vector<1x512xi32>
    %cst_419 = arith.constant 0.000000e+00 : f32
    %1098 = vector.broadcast %cst_419 : f32 to vector<1x512xf32>
    %1099 = arith.select %1097, %1079, %1098 : vector<1x512xi1>, vector<1x512xf32>
    %c-4_i32_420 = arith.constant -4 : i32
    %1100 = vector.broadcast %c-4_i32_420 : i32 to vector<1x512xi32>
    %1101 = arith.cmpi eq, %1081, %1100 : vector<1x512xi32>
    %cst_421 = arith.constant 0.000000e+00 : f32
    %1102 = vector.broadcast %cst_421 : f32 to vector<1x512xf32>
    %1103 = arith.select %1101, %1077, %1102 : vector<1x512xi1>, vector<1x512xf32>
    %1104 = arith.addf %1099, %1103 : vector<1x512xf32>
    %c96_i32_422 = arith.constant 96 : i32
    %1105 = tpu.dynamic_rotate %1068 by %c96_i32_422 dim 1 : vector<4x512xf32>, i32 -> vector<4x512xf32>
    %1106 = vector.broadcast %1104 : vector<1x512xf32> to vector<4x512xf32>
    %1107 = arith.mulf %1106, %1105 : vector<4x512xf32>
    %1108 = arith.addf %1095, %1107 : vector<4x512xf32>
    %c-2_i32_423 = arith.constant -2 : i32
    %1109 = vector.broadcast %c-2_i32_423 : i32 to vector<1x512xi32>
    %1110 = arith.cmpi eq, %1081, %1109 : vector<1x512xi32>
    %cst_424 = arith.constant 0.000000e+00 : f32
    %1111 = vector.broadcast %cst_424 : f32 to vector<1x512xf32>
    %1112 = arith.select %1110, %1079, %1111 : vector<1x512xi1>, vector<1x512xf32>
    %c-3_i32_425 = arith.constant -3 : i32
    %1113 = vector.broadcast %c-3_i32_425 : i32 to vector<1x512xi32>
    %1114 = arith.cmpi eq, %1081, %1113 : vector<1x512xi32>
    %cst_426 = arith.constant 0.000000e+00 : f32
    %1115 = vector.broadcast %cst_426 : f32 to vector<1x512xf32>
    %1116 = arith.select %1114, %1077, %1115 : vector<1x512xi1>, vector<1x512xf32>
    %1117 = arith.addf %1112, %1116 : vector<1x512xf32>
    %c64_i32_427 = arith.constant 64 : i32
    %1118 = tpu.dynamic_rotate %1068 by %c64_i32_427 dim 1 : vector<4x512xf32>, i32 -> vector<4x512xf32>
    %1119 = vector.broadcast %1117 : vector<1x512xf32> to vector<4x512xf32>
    %1120 = arith.mulf %1119, %1118 : vector<4x512xf32>
    %1121 = arith.addf %1108, %1120 : vector<4x512xf32>
    %c-1_i32_428 = arith.constant -1 : i32
    %1122 = vector.broadcast %c-1_i32_428 : i32 to vector<1x512xi32>
    %1123 = arith.cmpi eq, %1081, %1122 : vector<1x512xi32>
    %cst_429 = arith.constant 0.000000e+00 : f32
    %1124 = vector.broadcast %cst_429 : f32 to vector<1x512xf32>
    %1125 = arith.select %1123, %1079, %1124 : vector<1x512xi1>, vector<1x512xf32>
    %c-2_i32_430 = arith.constant -2 : i32
    %1126 = vector.broadcast %c-2_i32_430 : i32 to vector<1x512xi32>
    %1127 = arith.cmpi eq, %1081, %1126 : vector<1x512xi32>
    %cst_431 = arith.constant 0.000000e+00 : f32
    %1128 = vector.broadcast %cst_431 : f32 to vector<1x512xf32>
    %1129 = arith.select %1127, %1077, %1128 : vector<1x512xi1>, vector<1x512xf32>
    %1130 = arith.addf %1125, %1129 : vector<1x512xf32>
    %c32_i32_432 = arith.constant 32 : i32
    %1131 = tpu.dynamic_rotate %1068 by %c32_i32_432 dim 1 : vector<4x512xf32>, i32 -> vector<4x512xf32>
    %1132 = vector.broadcast %1130 : vector<1x512xf32> to vector<4x512xf32>
    %1133 = arith.mulf %1132, %1131 : vector<4x512xf32>
    %1134 = arith.addf %1121, %1133 : vector<4x512xf32>
    %c0_i32_433 = arith.constant 0 : i32
    %1135 = vector.broadcast %c0_i32_433 : i32 to vector<1x512xi32>
    %1136 = arith.cmpi eq, %1081, %1135 : vector<1x512xi32>
    %cst_434 = arith.constant 0.000000e+00 : f32
    %1137 = vector.broadcast %cst_434 : f32 to vector<1x512xf32>
    %1138 = arith.select %1136, %1079, %1137 : vector<1x512xi1>, vector<1x512xf32>
    %c-1_i32_435 = arith.constant -1 : i32
    %1139 = vector.broadcast %c-1_i32_435 : i32 to vector<1x512xi32>
    %1140 = arith.cmpi eq, %1081, %1139 : vector<1x512xi32>
    %cst_436 = arith.constant 0.000000e+00 : f32
    %1141 = vector.broadcast %cst_436 : f32 to vector<1x512xf32>
    %1142 = arith.select %1140, %1077, %1141 : vector<1x512xi1>, vector<1x512xf32>
    %1143 = arith.addf %1138, %1142 : vector<1x512xf32>
    %1144 = vector.broadcast %1143 : vector<1x512xf32> to vector<4x512xf32>
    %1145 = arith.mulf %1144, %1068 : vector<4x512xf32>
    %1146 = arith.addf %1134, %1145 : vector<4x512xf32>
    %c1_i32_437 = arith.constant 1 : i32
    %1147 = vector.broadcast %c1_i32_437 : i32 to vector<1x512xi32>
    %1148 = arith.cmpi eq, %1081, %1147 : vector<1x512xi32>
    %cst_438 = arith.constant 0.000000e+00 : f32
    %1149 = vector.broadcast %cst_438 : f32 to vector<1x512xf32>
    %1150 = arith.select %1148, %1079, %1149 : vector<1x512xi1>, vector<1x512xf32>
    %c0_i32_439 = arith.constant 0 : i32
    %1151 = vector.broadcast %c0_i32_439 : i32 to vector<1x512xi32>
    %1152 = arith.cmpi eq, %1081, %1151 : vector<1x512xi32>
    %cst_440 = arith.constant 0.000000e+00 : f32
    %1153 = vector.broadcast %cst_440 : f32 to vector<1x512xf32>
    %1154 = arith.select %1152, %1077, %1153 : vector<1x512xi1>, vector<1x512xf32>
    %1155 = arith.addf %1150, %1154 : vector<1x512xf32>
    %c480_i32_441 = arith.constant 480 : i32
    %1156 = tpu.dynamic_rotate %1068 by %c480_i32_441 dim 1 : vector<4x512xf32>, i32 -> vector<4x512xf32>
    %1157 = vector.broadcast %1155 : vector<1x512xf32> to vector<4x512xf32>
    %1158 = arith.mulf %1157, %1156 : vector<4x512xf32>
    %1159 = arith.addf %1146, %1158 : vector<4x512xf32>
    %c2_i32_442 = arith.constant 2 : i32
    %1160 = vector.broadcast %c2_i32_442 : i32 to vector<1x512xi32>
    %1161 = arith.cmpi eq, %1081, %1160 : vector<1x512xi32>
    %cst_443 = arith.constant 0.000000e+00 : f32
    %1162 = vector.broadcast %cst_443 : f32 to vector<1x512xf32>
    %1163 = arith.select %1161, %1079, %1162 : vector<1x512xi1>, vector<1x512xf32>
    %c1_i32_444 = arith.constant 1 : i32
    %1164 = vector.broadcast %c1_i32_444 : i32 to vector<1x512xi32>
    %1165 = arith.cmpi eq, %1081, %1164 : vector<1x512xi32>
    %cst_445 = arith.constant 0.000000e+00 : f32
    %1166 = vector.broadcast %cst_445 : f32 to vector<1x512xf32>
    %1167 = arith.select %1165, %1077, %1166 : vector<1x512xi1>, vector<1x512xf32>
    %1168 = arith.addf %1163, %1167 : vector<1x512xf32>
    %c448_i32_446 = arith.constant 448 : i32
    %1169 = tpu.dynamic_rotate %1068 by %c448_i32_446 dim 1 : vector<4x512xf32>, i32 -> vector<4x512xf32>
    %1170 = vector.broadcast %1168 : vector<1x512xf32> to vector<4x512xf32>
    %1171 = arith.mulf %1170, %1169 : vector<4x512xf32>
    %1172 = arith.addf %1159, %1171 : vector<4x512xf32>
    %c3_i32_447 = arith.constant 3 : i32
    %1173 = vector.broadcast %c3_i32_447 : i32 to vector<1x512xi32>
    %1174 = arith.cmpi eq, %1081, %1173 : vector<1x512xi32>
    %cst_448 = arith.constant 0.000000e+00 : f32
    %1175 = vector.broadcast %cst_448 : f32 to vector<1x512xf32>
    %1176 = arith.select %1174, %1079, %1175 : vector<1x512xi1>, vector<1x512xf32>
    %c2_i32_449 = arith.constant 2 : i32
    %1177 = vector.broadcast %c2_i32_449 : i32 to vector<1x512xi32>
    %1178 = arith.cmpi eq, %1081, %1177 : vector<1x512xi32>
    %cst_450 = arith.constant 0.000000e+00 : f32
    %1179 = vector.broadcast %cst_450 : f32 to vector<1x512xf32>
    %1180 = arith.select %1178, %1077, %1179 : vector<1x512xi1>, vector<1x512xf32>
    %1181 = arith.addf %1176, %1180 : vector<1x512xf32>
    %c416_i32_451 = arith.constant 416 : i32
    %1182 = tpu.dynamic_rotate %1068 by %c416_i32_451 dim 1 : vector<4x512xf32>, i32 -> vector<4x512xf32>
    %1183 = vector.broadcast %1181 : vector<1x512xf32> to vector<4x512xf32>
    %1184 = arith.mulf %1183, %1182 : vector<4x512xf32>
    %1185 = arith.addf %1172, %1184 : vector<4x512xf32>
    %c4_i32_452 = arith.constant 4 : i32
    %1186 = vector.broadcast %c4_i32_452 : i32 to vector<1x512xi32>
    %1187 = arith.cmpi eq, %1081, %1186 : vector<1x512xi32>
    %cst_453 = arith.constant 0.000000e+00 : f32
    %1188 = vector.broadcast %cst_453 : f32 to vector<1x512xf32>
    %1189 = arith.select %1187, %1079, %1188 : vector<1x512xi1>, vector<1x512xf32>
    %c3_i32_454 = arith.constant 3 : i32
    %1190 = vector.broadcast %c3_i32_454 : i32 to vector<1x512xi32>
    %1191 = arith.cmpi eq, %1081, %1190 : vector<1x512xi32>
    %cst_455 = arith.constant 0.000000e+00 : f32
    %1192 = vector.broadcast %cst_455 : f32 to vector<1x512xf32>
    %1193 = arith.select %1191, %1077, %1192 : vector<1x512xi1>, vector<1x512xf32>
    %1194 = arith.addf %1189, %1193 : vector<1x512xf32>
    %c384_i32_456 = arith.constant 384 : i32
    %1195 = tpu.dynamic_rotate %1068 by %c384_i32_456 dim 1 : vector<4x512xf32>, i32 -> vector<4x512xf32>
    %1196 = vector.broadcast %1194 : vector<1x512xf32> to vector<4x512xf32>
    %1197 = arith.mulf %1196, %1195 : vector<4x512xf32>
    %1198 = arith.addf %1185, %1197 : vector<4x512xf32>
    %c5_i32_457 = arith.constant 5 : i32
    %1199 = vector.broadcast %c5_i32_457 : i32 to vector<1x512xi32>
    %1200 = arith.cmpi eq, %1081, %1199 : vector<1x512xi32>
    %cst_458 = arith.constant 0.000000e+00 : f32
    %1201 = vector.broadcast %cst_458 : f32 to vector<1x512xf32>
    %1202 = arith.select %1200, %1079, %1201 : vector<1x512xi1>, vector<1x512xf32>
    %c4_i32_459 = arith.constant 4 : i32
    %1203 = vector.broadcast %c4_i32_459 : i32 to vector<1x512xi32>
    %1204 = arith.cmpi eq, %1081, %1203 : vector<1x512xi32>
    %cst_460 = arith.constant 0.000000e+00 : f32
    %1205 = vector.broadcast %cst_460 : f32 to vector<1x512xf32>
    %1206 = arith.select %1204, %1077, %1205 : vector<1x512xi1>, vector<1x512xf32>
    %1207 = arith.addf %1202, %1206 : vector<1x512xf32>
    %c352_i32_461 = arith.constant 352 : i32
    %1208 = tpu.dynamic_rotate %1068 by %c352_i32_461 dim 1 : vector<4x512xf32>, i32 -> vector<4x512xf32>
    %1209 = vector.broadcast %1207 : vector<1x512xf32> to vector<4x512xf32>
    %1210 = arith.mulf %1209, %1208 : vector<4x512xf32>
    %1211 = arith.addf %1198, %1210 : vector<4x512xf32>
    %c24_462 = arith.constant 24 : index
    %c0_463 = arith.constant 0 : index
    %1212 = vector.load %arg16[%c24_462, %c0_463] : memref<36x512xf32, #tpu.memory_space<vmem>>, vector<4x512xf32>
    tpu.vector_store %arg16[%c24_462, %c0_463], %1211 {strides = array<i32>} : memref<36x512xf32, #tpu.memory_space<vmem>>, vector<4x512xf32>,
    %c509_i32 = arith.constant 509 : i32
    %1213 = tpu.dynamic_rotate %1 by %c509_i32 dim 1 : vector<4x512xf32>, i32 -> vector<4x512xf32>
    %cst_464 = arith.constant 1.000000e+00 : f32
    %1214 = vector.broadcast %cst_464 : f32 to vector<1x512xf32>
    %1215 = arith.mulf %1214, %192 : vector<1x512xf32>
    %1216 = arith.addf %2, %1215 : vector<1x512xf32>
    %cst_465 = arith.constant 0.000000e+00 : f32
    %cst_466 = arith.constant 1.500000e+01 : f32
    %1217 = vector.broadcast %cst_465 : f32 to vector<1x512xf32>
    %1218 = arith.maximumf %1217, %1216 : vector<1x512xf32>
    %1219 = vector.broadcast %cst_466 : f32 to vector<1x512xf32>
    %1220 = arith.minimumf %1219, %1218 : vector<1x512xf32>
    %1221 = math.floor %1220 : vector<1x512xf32>
    %1222 = arith.subf %1220, %1221 : vector<1x512xf32>
    %cst_467 = arith.constant 1.000000e+00 : f32
    %1223 = vector.broadcast %cst_467 : f32 to vector<1x512xf32>
    %1224 = arith.subf %1223, %1222 : vector<1x512xf32>
    %1225 = arith.subf %1221, %2 : vector<1x512xf32>
    %1226 = arith.fptosi %1225 : vector<1x512xf32> to vector<1x512xi32>
    %cst_468 = arith.constant 0.000000e+00 : f32
    %1227 = vector.broadcast %cst_468 : f32 to vector<4x512xf32>
    %c-4_i32_469 = arith.constant -4 : i32
    %1228 = vector.broadcast %c-4_i32_469 : i32 to vector<1x512xi32>
    %1229 = arith.cmpi eq, %1226, %1228 : vector<1x512xi32>
    %cst_470 = arith.constant 0.000000e+00 : f32
    %1230 = vector.broadcast %cst_470 : f32 to vector<1x512xf32>
    %1231 = arith.select %1229, %1224, %1230 : vector<1x512xi1>, vector<1x512xf32>
    %c-5_i32_471 = arith.constant -5 : i32
    %1232 = vector.broadcast %c-5_i32_471 : i32 to vector<1x512xi32>
    %1233 = arith.cmpi eq, %1226, %1232 : vector<1x512xi32>
    %cst_472 = arith.constant 0.000000e+00 : f32
    %1234 = vector.broadcast %cst_472 : f32 to vector<1x512xf32>
    %1235 = arith.select %1233, %1222, %1234 : vector<1x512xi1>, vector<1x512xf32>
    %1236 = arith.addf %1231, %1235 : vector<1x512xf32>
    %c128_i32_473 = arith.constant 128 : i32
    %1237 = tpu.dynamic_rotate %1213 by %c128_i32_473 dim 1 : vector<4x512xf32>, i32 -> vector<4x512xf32>
    %1238 = vector.broadcast %1236 : vector<1x512xf32> to vector<4x512xf32>
    %1239 = arith.mulf %1238, %1237 : vector<4x512xf32>
    %1240 = arith.addf %1227, %1239 : vector<4x512xf32>
    %c-3_i32_474 = arith.constant -3 : i32
    %1241 = vector.broadcast %c-3_i32_474 : i32 to vector<1x512xi32>
    %1242 = arith.cmpi eq, %1226, %1241 : vector<1x512xi32>
    %cst_475 = arith.constant 0.000000e+00 : f32
    %1243 = vector.broadcast %cst_475 : f32 to vector<1x512xf32>
    %1244 = arith.select %1242, %1224, %1243 : vector<1x512xi1>, vector<1x512xf32>
    %c-4_i32_476 = arith.constant -4 : i32
    %1245 = vector.broadcast %c-4_i32_476 : i32 to vector<1x512xi32>
    %1246 = arith.cmpi eq, %1226, %1245 : vector<1x512xi32>
    %cst_477 = arith.constant 0.000000e+00 : f32
    %1247 = vector.broadcast %cst_477 : f32 to vector<1x512xf32>
    %1248 = arith.select %1246, %1222, %1247 : vector<1x512xi1>, vector<1x512xf32>
    %1249 = arith.addf %1244, %1248 : vector<1x512xf32>
    %c96_i32_478 = arith.constant 96 : i32
    %1250 = tpu.dynamic_rotate %1213 by %c96_i32_478 dim 1 : vector<4x512xf32>, i32 -> vector<4x512xf32>
    %1251 = vector.broadcast %1249 : vector<1x512xf32> to vector<4x512xf32>
    %1252 = arith.mulf %1251, %1250 : vector<4x512xf32>
    %1253 = arith.addf %1240, %1252 : vector<4x512xf32>
    %c-2_i32_479 = arith.constant -2 : i32
    %1254 = vector.broadcast %c-2_i32_479 : i32 to vector<1x512xi32>
    %1255 = arith.cmpi eq, %1226, %1254 : vector<1x512xi32>
    %cst_480 = arith.constant 0.000000e+00 : f32
    %1256 = vector.broadcast %cst_480 : f32 to vector<1x512xf32>
    %1257 = arith.select %1255, %1224, %1256 : vector<1x512xi1>, vector<1x512xf32>
    %c-3_i32_481 = arith.constant -3 : i32
    %1258 = vector.broadcast %c-3_i32_481 : i32 to vector<1x512xi32>
    %1259 = arith.cmpi eq, %1226, %1258 : vector<1x512xi32>
    %cst_482 = arith.constant 0.000000e+00 : f32
    %1260 = vector.broadcast %cst_482 : f32 to vector<1x512xf32>
    %1261 = arith.select %1259, %1222, %1260 : vector<1x512xi1>, vector<1x512xf32>
    %1262 = arith.addf %1257, %1261 : vector<1x512xf32>
    %c64_i32_483 = arith.constant 64 : i32
    %1263 = tpu.dynamic_rotate %1213 by %c64_i32_483 dim 1 : vector<4x512xf32>, i32 -> vector<4x512xf32>
    %1264 = vector.broadcast %1262 : vector<1x512xf32> to vector<4x512xf32>
    %1265 = arith.mulf %1264, %1263 : vector<4x512xf32>
    %1266 = arith.addf %1253, %1265 : vector<4x512xf32>
    %c-1_i32_484 = arith.constant -1 : i32
    %1267 = vector.broadcast %c-1_i32_484 : i32 to vector<1x512xi32>
    %1268 = arith.cmpi eq, %1226, %1267 : vector<1x512xi32>
    %cst_485 = arith.constant 0.000000e+00 : f32
    %1269 = vector.broadcast %cst_485 : f32 to vector<1x512xf32>
    %1270 = arith.select %1268, %1224, %1269 : vector<1x512xi1>, vector<1x512xf32>
    %c-2_i32_486 = arith.constant -2 : i32
    %1271 = vector.broadcast %c-2_i32_486 : i32 to vector<1x512xi32>
    %1272 = arith.cmpi eq, %1226, %1271 : vector<1x512xi32>
    %cst_487 = arith.constant 0.000000e+00 : f32
    %1273 = vector.broadcast %cst_487 : f32 to vector<1x512xf32>
    %1274 = arith.select %1272, %1222, %1273 : vector<1x512xi1>, vector<1x512xf32>
    %1275 = arith.addf %1270, %1274 : vector<1x512xf32>
    %c32_i32_488 = arith.constant 32 : i32
    %1276 = tpu.dynamic_rotate %1213 by %c32_i32_488 dim 1 : vector<4x512xf32>, i32 -> vector<4x512xf32>
    %1277 = vector.broadcast %1275 : vector<1x512xf32> to vector<4x512xf32>
    %1278 = arith.mulf %1277, %1276 : vector<4x512xf32>
    %1279 = arith.addf %1266, %1278 : vector<4x512xf32>
    %c0_i32_489 = arith.constant 0 : i32
    %1280 = vector.broadcast %c0_i32_489 : i32 to vector<1x512xi32>
    %1281 = arith.cmpi eq, %1226, %1280 : vector<1x512xi32>
    %cst_490 = arith.constant 0.000000e+00 : f32
    %1282 = vector.broadcast %cst_490 : f32 to vector<1x512xf32>
    %1283 = arith.select %1281, %1224, %1282 : vector<1x512xi1>, vector<1x512xf32>
    %c-1_i32_491 = arith.constant -1 : i32
    %1284 = vector.broadcast %c-1_i32_491 : i32 to vector<1x512xi32>
    %1285 = arith.cmpi eq, %1226, %1284 : vector<1x512xi32>
    %cst_492 = arith.constant 0.000000e+00 : f32
    %1286 = vector.broadcast %cst_492 : f32 to vector<1x512xf32>
    %1287 = arith.select %1285, %1222, %1286 : vector<1x512xi1>, vector<1x512xf32>
    %1288 = arith.addf %1283, %1287 : vector<1x512xf32>
    %1289 = vector.broadcast %1288 : vector<1x512xf32> to vector<4x512xf32>
    %1290 = arith.mulf %1289, %1213 : vector<4x512xf32>
    %1291 = arith.addf %1279, %1290 : vector<4x512xf32>
    %c1_i32_493 = arith.constant 1 : i32
    %1292 = vector.broadcast %c1_i32_493 : i32 to vector<1x512xi32>
    %1293 = arith.cmpi eq, %1226, %1292 : vector<1x512xi32>
    %cst_494 = arith.constant 0.000000e+00 : f32
    %1294 = vector.broadcast %cst_494 : f32 to vector<1x512xf32>
    %1295 = arith.select %1293, %1224, %1294 : vector<1x512xi1>, vector<1x512xf32>
    %c0_i32_495 = arith.constant 0 : i32
    %1296 = vector.broadcast %c0_i32_495 : i32 to vector<1x512xi32>
    %1297 = arith.cmpi eq, %1226, %1296 : vector<1x512xi32>
    %cst_496 = arith.constant 0.000000e+00 : f32
    %1298 = vector.broadcast %cst_496 : f32 to vector<1x512xf32>
    %1299 = arith.select %1297, %1222, %1298 : vector<1x512xi1>, vector<1x512xf32>
    %1300 = arith.addf %1295, %1299 : vector<1x512xf32>
    %c480_i32_497 = arith.constant 480 : i32
    %1301 = tpu.dynamic_rotate %1213 by %c480_i32_497 dim 1 : vector<4x512xf32>, i32 -> vector<4x512xf32>
    %1302 = vector.broadcast %1300 : vector<1x512xf32> to vector<4x512xf32>
    %1303 = arith.mulf %1302, %1301 : vector<4x512xf32>
    %1304 = arith.addf %1291, %1303 : vector<4x512xf32>
    %c2_i32_498 = arith.constant 2 : i32
    %1305 = vector.broadcast %c2_i32_498 : i32 to vector<1x512xi32>
    %1306 = arith.cmpi eq, %1226, %1305 : vector<1x512xi32>
    %cst_499 = arith.constant 0.000000e+00 : f32
    %1307 = vector.broadcast %cst_499 : f32 to vector<1x512xf32>
    %1308 = arith.select %1306, %1224, %1307 : vector<1x512xi1>, vector<1x512xf32>
    %c1_i32_500 = arith.constant 1 : i32
    %1309 = vector.broadcast %c1_i32_500 : i32 to vector<1x512xi32>
    %1310 = arith.cmpi eq, %1226, %1309 : vector<1x512xi32>
    %cst_501 = arith.constant 0.000000e+00 : f32
    %1311 = vector.broadcast %cst_501 : f32 to vector<1x512xf32>
    %1312 = arith.select %1310, %1222, %1311 : vector<1x512xi1>, vector<1x512xf32>
    %1313 = arith.addf %1308, %1312 : vector<1x512xf32>
    %c448_i32_502 = arith.constant 448 : i32
    %1314 = tpu.dynamic_rotate %1213 by %c448_i32_502 dim 1 : vector<4x512xf32>, i32 -> vector<4x512xf32>
    %1315 = vector.broadcast %1313 : vector<1x512xf32> to vector<4x512xf32>
    %1316 = arith.mulf %1315, %1314 : vector<4x512xf32>
    %1317 = arith.addf %1304, %1316 : vector<4x512xf32>
    %c3_i32_503 = arith.constant 3 : i32
    %1318 = vector.broadcast %c3_i32_503 : i32 to vector<1x512xi32>
    %1319 = arith.cmpi eq, %1226, %1318 : vector<1x512xi32>
    %cst_504 = arith.constant 0.000000e+00 : f32
    %1320 = vector.broadcast %cst_504 : f32 to vector<1x512xf32>
    %1321 = arith.select %1319, %1224, %1320 : vector<1x512xi1>, vector<1x512xf32>
    %c2_i32_505 = arith.constant 2 : i32
    %1322 = vector.broadcast %c2_i32_505 : i32 to vector<1x512xi32>
    %1323 = arith.cmpi eq, %1226, %1322 : vector<1x512xi32>
    %cst_506 = arith.constant 0.000000e+00 : f32
    %1324 = vector.broadcast %cst_506 : f32 to vector<1x512xf32>
    %1325 = arith.select %1323, %1222, %1324 : vector<1x512xi1>, vector<1x512xf32>
    %1326 = arith.addf %1321, %1325 : vector<1x512xf32>
    %c416_i32_507 = arith.constant 416 : i32
    %1327 = tpu.dynamic_rotate %1213 by %c416_i32_507 dim 1 : vector<4x512xf32>, i32 -> vector<4x512xf32>
    %1328 = vector.broadcast %1326 : vector<1x512xf32> to vector<4x512xf32>
    %1329 = arith.mulf %1328, %1327 : vector<4x512xf32>
    %1330 = arith.addf %1317, %1329 : vector<4x512xf32>
    %c4_i32_508 = arith.constant 4 : i32
    %1331 = vector.broadcast %c4_i32_508 : i32 to vector<1x512xi32>
    %1332 = arith.cmpi eq, %1226, %1331 : vector<1x512xi32>
    %cst_509 = arith.constant 0.000000e+00 : f32
    %1333 = vector.broadcast %cst_509 : f32 to vector<1x512xf32>
    %1334 = arith.select %1332, %1224, %1333 : vector<1x512xi1>, vector<1x512xf32>
    %c3_i32_510 = arith.constant 3 : i32
    %1335 = vector.broadcast %c3_i32_510 : i32 to vector<1x512xi32>
    %1336 = arith.cmpi eq, %1226, %1335 : vector<1x512xi32>
    %cst_511 = arith.constant 0.000000e+00 : f32
    %1337 = vector.broadcast %cst_511 : f32 to vector<1x512xf32>
    %1338 = arith.select %1336, %1222, %1337 : vector<1x512xi1>, vector<1x512xf32>
    %1339 = arith.addf %1334, %1338 : vector<1x512xf32>
    %c384_i32_512 = arith.constant 384 : i32
    %1340 = tpu.dynamic_rotate %1213 by %c384_i32_512 dim 1 : vector<4x512xf32>, i32 -> vector<4x512xf32>
    %1341 = vector.broadcast %1339 : vector<1x512xf32> to vector<4x512xf32>
    %1342 = arith.mulf %1341, %1340 : vector<4x512xf32>
    %1343 = arith.addf %1330, %1342 : vector<4x512xf32>
    %c5_i32_513 = arith.constant 5 : i32
    %1344 = vector.broadcast %c5_i32_513 : i32 to vector<1x512xi32>
    %1345 = arith.cmpi eq, %1226, %1344 : vector<1x512xi32>
    %cst_514 = arith.constant 0.000000e+00 : f32
    %1346 = vector.broadcast %cst_514 : f32 to vector<1x512xf32>
    %1347 = arith.select %1345, %1224, %1346 : vector<1x512xi1>, vector<1x512xf32>
    %c4_i32_515 = arith.constant 4 : i32
    %1348 = vector.broadcast %c4_i32_515 : i32 to vector<1x512xi32>
    %1349 = arith.cmpi eq, %1226, %1348 : vector<1x512xi32>
    %cst_516 = arith.constant 0.000000e+00 : f32
    %1350 = vector.broadcast %cst_516 : f32 to vector<1x512xf32>
    %1351 = arith.select %1349, %1222, %1350 : vector<1x512xi1>, vector<1x512xf32>
    %1352 = arith.addf %1347, %1351 : vector<1x512xf32>
    %c352_i32_517 = arith.constant 352 : i32
    %1353 = tpu.dynamic_rotate %1213 by %c352_i32_517 dim 1 : vector<4x512xf32>, i32 -> vector<4x512xf32>
    %1354 = vector.broadcast %1352 : vector<1x512xf32> to vector<4x512xf32>
    %1355 = arith.mulf %1354, %1353 : vector<4x512xf32>
    %1356 = arith.addf %1343, %1355 : vector<4x512xf32>
    %c28_518 = arith.constant 28 : index
    %c0_519 = arith.constant 0 : index
    %1357 = vector.load %arg16[%c28_518, %c0_519] : memref<36x512xf32, #tpu.memory_space<vmem>>, vector<4x512xf32>
    tpu.vector_store %arg16[%c28_518, %c0_519], %1356 {strides = array<i32>} : memref<36x512xf32, #tpu.memory_space<vmem>>, vector<4x512xf32>,
    %c508_i32 = arith.constant 508 : i32
    %1358 = tpu.dynamic_rotate %1 by %c508_i32 dim 1 : vector<4x512xf32>, i32 -> vector<4x512xf32>
    %cst_520 = arith.constant 1.000000e+00 : f32
    %1359 = vector.broadcast %cst_520 : f32 to vector<1x512xf32>
    %1360 = arith.mulf %1359, %196 : vector<1x512xf32>
    %1361 = arith.addf %2, %1360 : vector<1x512xf32>
    %cst_521 = arith.constant 0.000000e+00 : f32
    %cst_522 = arith.constant 1.500000e+01 : f32
    %1362 = vector.broadcast %cst_521 : f32 to vector<1x512xf32>
    %1363 = arith.maximumf %1362, %1361 : vector<1x512xf32>
    %1364 = vector.broadcast %cst_522 : f32 to vector<1x512xf32>
    %1365 = arith.minimumf %1364, %1363 : vector<1x512xf32>
    %1366 = math.floor %1365 : vector<1x512xf32>
    %1367 = arith.subf %1365, %1366 : vector<1x512xf32>
    %cst_523 = arith.constant 1.000000e+00 : f32
    %1368 = vector.broadcast %cst_523 : f32 to vector<1x512xf32>
    %1369 = arith.subf %1368, %1367 : vector<1x512xf32>
    %1370 = arith.subf %1366, %2 : vector<1x512xf32>
    %1371 = arith.fptosi %1370 : vector<1x512xf32> to vector<1x512xi32>
    %cst_524 = arith.constant 0.000000e+00 : f32
    %1372 = vector.broadcast %cst_524 : f32 to vector<4x512xf32>
    %c-4_i32_525 = arith.constant -4 : i32
    %1373 = vector.broadcast %c-4_i32_525 : i32 to vector<1x512xi32>
    %1374 = arith.cmpi eq, %1371, %1373 : vector<1x512xi32>
    %cst_526 = arith.constant 0.000000e+00 : f32
    %1375 = vector.broadcast %cst_526 : f32 to vector<1x512xf32>
    %1376 = arith.select %1374, %1369, %1375 : vector<1x512xi1>, vector<1x512xf32>
    %c-5_i32_527 = arith.constant -5 : i32
    %1377 = vector.broadcast %c-5_i32_527 : i32 to vector<1x512xi32>
    %1378 = arith.cmpi eq, %1371, %1377 : vector<1x512xi32>
    %cst_528 = arith.constant 0.000000e+00 : f32
    %1379 = vector.broadcast %cst_528 : f32 to vector<1x512xf32>
    %1380 = arith.select %1378, %1367, %1379 : vector<1x512xi1>, vector<1x512xf32>
    %1381 = arith.addf %1376, %1380 : vector<1x512xf32>
    %c128_i32_529 = arith.constant 128 : i32
    %1382 = tpu.dynamic_rotate %1358 by %c128_i32_529 dim 1 : vector<4x512xf32>, i32 -> vector<4x512xf32>
    %1383 = vector.broadcast %1381 : vector<1x512xf32> to vector<4x512xf32>
    %1384 = arith.mulf %1383, %1382 : vector<4x512xf32>
    %1385 = arith.addf %1372, %1384 : vector<4x512xf32>
    %c-3_i32_530 = arith.constant -3 : i32
    %1386 = vector.broadcast %c-3_i32_530 : i32 to vector<1x512xi32>
    %1387 = arith.cmpi eq, %1371, %1386 : vector<1x512xi32>
    %cst_531 = arith.constant 0.000000e+00 : f32
    %1388 = vector.broadcast %cst_531 : f32 to vector<1x512xf32>
    %1389 = arith.select %1387, %1369, %1388 : vector<1x512xi1>, vector<1x512xf32>
    %c-4_i32_532 = arith.constant -4 : i32
    %1390 = vector.broadcast %c-4_i32_532 : i32 to vector<1x512xi32>
    %1391 = arith.cmpi eq, %1371, %1390 : vector<1x512xi32>
    %cst_533 = arith.constant 0.000000e+00 : f32
    %1392 = vector.broadcast %cst_533 : f32 to vector<1x512xf32>
    %1393 = arith.select %1391, %1367, %1392 : vector<1x512xi1>, vector<1x512xf32>
    %1394 = arith.addf %1389, %1393 : vector<1x512xf32>
    %c96_i32_534 = arith.constant 96 : i32
    %1395 = tpu.dynamic_rotate %1358 by %c96_i32_534 dim 1 : vector<4x512xf32>, i32 -> vector<4x512xf32>
    %1396 = vector.broadcast %1394 : vector<1x512xf32> to vector<4x512xf32>
    %1397 = arith.mulf %1396, %1395 : vector<4x512xf32>
    %1398 = arith.addf %1385, %1397 : vector<4x512xf32>
    %c-2_i32_535 = arith.constant -2 : i32
    %1399 = vector.broadcast %c-2_i32_535 : i32 to vector<1x512xi32>
    %1400 = arith.cmpi eq, %1371, %1399 : vector<1x512xi32>
    %cst_536 = arith.constant 0.000000e+00 : f32
    %1401 = vector.broadcast %cst_536 : f32 to vector<1x512xf32>
    %1402 = arith.select %1400, %1369, %1401 : vector<1x512xi1>, vector<1x512xf32>
    %c-3_i32_537 = arith.constant -3 : i32
    %1403 = vector.broadcast %c-3_i32_537 : i32 to vector<1x512xi32>
    %1404 = arith.cmpi eq, %1371, %1403 : vector<1x512xi32>
    %cst_538 = arith.constant 0.000000e+00 : f32
    %1405 = vector.broadcast %cst_538 : f32 to vector<1x512xf32>
    %1406 = arith.select %1404, %1367, %1405 : vector<1x512xi1>, vector<1x512xf32>
    %1407 = arith.addf %1402, %1406 : vector<1x512xf32>
    %c64_i32_539 = arith.constant 64 : i32
    %1408 = tpu.dynamic_rotate %1358 by %c64_i32_539 dim 1 : vector<4x512xf32>, i32 -> vector<4x512xf32>
    %1409 = vector.broadcast %1407 : vector<1x512xf32> to vector<4x512xf32>
    %1410 = arith.mulf %1409, %1408 : vector<4x512xf32>
    %1411 = arith.addf %1398, %1410 : vector<4x512xf32>
    %c-1_i32_540 = arith.constant -1 : i32
    %1412 = vector.broadcast %c-1_i32_540 : i32 to vector<1x512xi32>
    %1413 = arith.cmpi eq, %1371, %1412 : vector<1x512xi32>
    %cst_541 = arith.constant 0.000000e+00 : f32
    %1414 = vector.broadcast %cst_541 : f32 to vector<1x512xf32>
    %1415 = arith.select %1413, %1369, %1414 : vector<1x512xi1>, vector<1x512xf32>
    %c-2_i32_542 = arith.constant -2 : i32
    %1416 = vector.broadcast %c-2_i32_542 : i32 to vector<1x512xi32>
    %1417 = arith.cmpi eq, %1371, %1416 : vector<1x512xi32>
    %cst_543 = arith.constant 0.000000e+00 : f32
    %1418 = vector.broadcast %cst_543 : f32 to vector<1x512xf32>
    %1419 = arith.select %1417, %1367, %1418 : vector<1x512xi1>, vector<1x512xf32>
    %1420 = arith.addf %1415, %1419 : vector<1x512xf32>
    %c32_i32_544 = arith.constant 32 : i32
    %1421 = tpu.dynamic_rotate %1358 by %c32_i32_544 dim 1 : vector<4x512xf32>, i32 -> vector<4x512xf32>
    %1422 = vector.broadcast %1420 : vector<1x512xf32> to vector<4x512xf32>
    %1423 = arith.mulf %1422, %1421 : vector<4x512xf32>
    %1424 = arith.addf %1411, %1423 : vector<4x512xf32>
    %c0_i32_545 = arith.constant 0 : i32
    %1425 = vector.broadcast %c0_i32_545 : i32 to vector<1x512xi32>
    %1426 = arith.cmpi eq, %1371, %1425 : vector<1x512xi32>
    %cst_546 = arith.constant 0.000000e+00 : f32
    %1427 = vector.broadcast %cst_546 : f32 to vector<1x512xf32>
    %1428 = arith.select %1426, %1369, %1427 : vector<1x512xi1>, vector<1x512xf32>
    %c-1_i32_547 = arith.constant -1 : i32
    %1429 = vector.broadcast %c-1_i32_547 : i32 to vector<1x512xi32>
    %1430 = arith.cmpi eq, %1371, %1429 : vector<1x512xi32>
    %cst_548 = arith.constant 0.000000e+00 : f32
    %1431 = vector.broadcast %cst_548 : f32 to vector<1x512xf32>
    %1432 = arith.select %1430, %1367, %1431 : vector<1x512xi1>, vector<1x512xf32>
    %1433 = arith.addf %1428, %1432 : vector<1x512xf32>
    %1434 = vector.broadcast %1433 : vector<1x512xf32> to vector<4x512xf32>
    %1435 = arith.mulf %1434, %1358 : vector<4x512xf32>
    %1436 = arith.addf %1424, %1435 : vector<4x512xf32>
    %c1_i32_549 = arith.constant 1 : i32
    %1437 = vector.broadcast %c1_i32_549 : i32 to vector<1x512xi32>
    %1438 = arith.cmpi eq, %1371, %1437 : vector<1x512xi32>
    %cst_550 = arith.constant 0.000000e+00 : f32
    %1439 = vector.broadcast %cst_550 : f32 to vector<1x512xf32>
    %1440 = arith.select %1438, %1369, %1439 : vector<1x512xi1>, vector<1x512xf32>
    %c0_i32_551 = arith.constant 0 : i32
    %1441 = vector.broadcast %c0_i32_551 : i32 to vector<1x512xi32>
    %1442 = arith.cmpi eq, %1371, %1441 : vector<1x512xi32>
    %cst_552 = arith.constant 0.000000e+00 : f32
    %1443 = vector.broadcast %cst_552 : f32 to vector<1x512xf32>
    %1444 = arith.select %1442, %1367, %1443 : vector<1x512xi1>, vector<1x512xf32>
    %1445 = arith.addf %1440, %1444 : vector<1x512xf32>
    %c480_i32_553 = arith.constant 480 : i32
    %1446 = tpu.dynamic_rotate %1358 by %c480_i32_553 dim 1 : vector<4x512xf32>, i32 -> vector<4x512xf32>
    %1447 = vector.broadcast %1445 : vector<1x512xf32> to vector<4x512xf32>
    %1448 = arith.mulf %1447, %1446 : vector<4x512xf32>
    %1449 = arith.addf %1436, %1448 : vector<4x512xf32>
    %c2_i32_554 = arith.constant 2 : i32
    %1450 = vector.broadcast %c2_i32_554 : i32 to vector<1x512xi32>
    %1451 = arith.cmpi eq, %1371, %1450 : vector<1x512xi32>
    %cst_555 = arith.constant 0.000000e+00 : f32
    %1452 = vector.broadcast %cst_555 : f32 to vector<1x512xf32>
    %1453 = arith.select %1451, %1369, %1452 : vector<1x512xi1>, vector<1x512xf32>
    %c1_i32_556 = arith.constant 1 : i32
    %1454 = vector.broadcast %c1_i32_556 : i32 to vector<1x512xi32>
    %1455 = arith.cmpi eq, %1371, %1454 : vector<1x512xi32>
    %cst_557 = arith.constant 0.000000e+00 : f32
    %1456 = vector.broadcast %cst_557 : f32 to vector<1x512xf32>
    %1457 = arith.select %1455, %1367, %1456 : vector<1x512xi1>, vector<1x512xf32>
    %1458 = arith.addf %1453, %1457 : vector<1x512xf32>
    %c448_i32_558 = arith.constant 448 : i32
    %1459 = tpu.dynamic_rotate %1358 by %c448_i32_558 dim 1 : vector<4x512xf32>, i32 -> vector<4x512xf32>
    %1460 = vector.broadcast %1458 : vector<1x512xf32> to vector<4x512xf32>
    %1461 = arith.mulf %1460, %1459 : vector<4x512xf32>
    %1462 = arith.addf %1449, %1461 : vector<4x512xf32>
    %c3_i32_559 = arith.constant 3 : i32
    %1463 = vector.broadcast %c3_i32_559 : i32 to vector<1x512xi32>
    %1464 = arith.cmpi eq, %1371, %1463 : vector<1x512xi32>
    %cst_560 = arith.constant 0.000000e+00 : f32
    %1465 = vector.broadcast %cst_560 : f32 to vector<1x512xf32>
    %1466 = arith.select %1464, %1369, %1465 : vector<1x512xi1>, vector<1x512xf32>
    %c2_i32_561 = arith.constant 2 : i32
    %1467 = vector.broadcast %c2_i32_561 : i32 to vector<1x512xi32>
    %1468 = arith.cmpi eq, %1371, %1467 : vector<1x512xi32>
    %cst_562 = arith.constant 0.000000e+00 : f32
    %1469 = vector.broadcast %cst_562 : f32 to vector<1x512xf32>
    %1470 = arith.select %1468, %1367, %1469 : vector<1x512xi1>, vector<1x512xf32>
    %1471 = arith.addf %1466, %1470 : vector<1x512xf32>
    %c416_i32_563 = arith.constant 416 : i32
    %1472 = tpu.dynamic_rotate %1358 by %c416_i32_563 dim 1 : vector<4x512xf32>, i32 -> vector<4x512xf32>
    %1473 = vector.broadcast %1471 : vector<1x512xf32> to vector<4x512xf32>
    %1474 = arith.mulf %1473, %1472 : vector<4x512xf32>
    %1475 = arith.addf %1462, %1474 : vector<4x512xf32>
    %c4_i32_564 = arith.constant 4 : i32
    %1476 = vector.broadcast %c4_i32_564 : i32 to vector<1x512xi32>
    %1477 = arith.cmpi eq, %1371, %1476 : vector<1x512xi32>
    %cst_565 = arith.constant 0.000000e+00 : f32
    %1478 = vector.broadcast %cst_565 : f32 to vector<1x512xf32>
    %1479 = arith.select %1477, %1369, %1478 : vector<1x512xi1>, vector<1x512xf32>
    %c3_i32_566 = arith.constant 3 : i32
    %1480 = vector.broadcast %c3_i32_566 : i32 to vector<1x512xi32>
    %1481 = arith.cmpi eq, %1371, %1480 : vector<1x512xi32>
    %cst_567 = arith.constant 0.000000e+00 : f32
    %1482 = vector.broadcast %cst_567 : f32 to vector<1x512xf32>
    %1483 = arith.select %1481, %1367, %1482 : vector<1x512xi1>, vector<1x512xf32>
    %1484 = arith.addf %1479, %1483 : vector<1x512xf32>
    %c384_i32_568 = arith.constant 384 : i32
    %1485 = tpu.dynamic_rotate %1358 by %c384_i32_568 dim 1 : vector<4x512xf32>, i32 -> vector<4x512xf32>
    %1486 = vector.broadcast %1484 : vector<1x512xf32> to vector<4x512xf32>
    %1487 = arith.mulf %1486, %1485 : vector<4x512xf32>
    %1488 = arith.addf %1475, %1487 : vector<4x512xf32>
    %c5_i32_569 = arith.constant 5 : i32
    %1489 = vector.broadcast %c5_i32_569 : i32 to vector<1x512xi32>
    %1490 = arith.cmpi eq, %1371, %1489 : vector<1x512xi32>
    %cst_570 = arith.constant 0.000000e+00 : f32
    %1491 = vector.broadcast %cst_570 : f32 to vector<1x512xf32>
    %1492 = arith.select %1490, %1369, %1491 : vector<1x512xi1>, vector<1x512xf32>
    %c4_i32_571 = arith.constant 4 : i32
    %1493 = vector.broadcast %c4_i32_571 : i32 to vector<1x512xi32>
    %1494 = arith.cmpi eq, %1371, %1493 : vector<1x512xi32>
    %cst_572 = arith.constant 0.000000e+00 : f32
    %1495 = vector.broadcast %cst_572 : f32 to vector<1x512xf32>
    %1496 = arith.select %1494, %1367, %1495 : vector<1x512xi1>, vector<1x512xf32>
    %1497 = arith.addf %1492, %1496 : vector<1x512xf32>
    %c352_i32_573 = arith.constant 352 : i32
    %1498 = tpu.dynamic_rotate %1358 by %c352_i32_573 dim 1 : vector<4x512xf32>, i32 -> vector<4x512xf32>
    %1499 = vector.broadcast %1497 : vector<1x512xf32> to vector<4x512xf32>
    %1500 = arith.mulf %1499, %1498 : vector<4x512xf32>
    %1501 = arith.addf %1488, %1500 : vector<4x512xf32>
    %c32_574 = arith.constant 32 : index
    %c0_575 = arith.constant 0 : index
    %1502 = vector.load %arg16[%c32_574, %c0_575] : memref<36x512xf32, #tpu.memory_space<vmem>>, vector<4x512xf32>
    tpu.vector_store %arg16[%c32_574, %c0_575], %1501 {strides = array<i32>} : memref<36x512xf32, #tpu.memory_space<vmem>>, vector<4x512xf32>,
    %c0_576 = arith.constant 0 : index
    %c0_577 = arith.constant 0 : index
    %1503 = vector.load %arg7[%c0_576, %c0_577] : memref<4x36xf32, #tpu.memory_space<vmem>>, vector<4x36xf32>
    %c0_578 = arith.constant 0 : index
    %c0_579 = arith.constant 0 : index
    %1504 = vector.load %arg16[%c0_578, %c0_579] : memref<36x512xf32, #tpu.memory_space<vmem>>, vector<36x512xf32>
    %cst_580 = arith.constant dense<0.000000e+00> : vector<4x512xf32>
    %1505 = tpu.matmul %1503, %1504, %cst_580 {dimension_numbers = #tpu.dot_dimension_numbers<[1], [0], [0], [1], [0, 0, 1, 1], [], []>} : vector<4x36xf32>, vector<36x512xf32>, vector<4x512xf32> -> vector<4x512xf32>
    %c0_581 = arith.constant 0 : index
    %c0_582 = arith.constant 0 : index
    %1506 = vector.load %arg8[%c0_581, %c0_582] : memref<4x1xf32, #tpu.memory_space<vmem>>, vector<4x1xf32>
    %1507 = vector.broadcast %1506 : vector<4x1xf32> to vector<4x512xf32>
    %1508 = arith.addf %1505, %1507 : vector<4x512xf32>
    %1509 = vector.broadcast %11 : vector<1x512xf32> to vector<4x512xf32>
    %1510 = arith.mulf %1508, %1509 : vector<4x512xf32>
    %cst_583 = arith.constant dense<0.000000e+00> : vector<4xf32>
    %1511 = vector.multi_reduction <add>, %1510, %cst_583 [1] : vector<4x512xf32> to vector<4xf32>
    %1512 = vector.shape_cast %1511 : vector<4xf32> to vector<4x1xf32>
    %1513 = arith.mulf %1508, %1508 : vector<4x512xf32>
    %1514 = vector.broadcast %11 : vector<1x512xf32> to vector<4x512xf32>
    %1515 = arith.mulf %1513, %1514 : vector<4x512xf32>
    %cst_584 = arith.constant dense<0.000000e+00> : vector<4xf32>
    %1516 = vector.multi_reduction <add>, %1515, %cst_584 [1] : vector<4x512xf32> to vector<4xf32>
    %1517 = vector.shape_cast %1516 : vector<4xf32> to vector<4x1xf32>
    %c0_585 = arith.constant 0 : index
    %c0_586 = arith.constant 0 : index
    %1518 = vector.load %arg11[%c0_585, %c0_586] : memref<4x4xf32, #tpu.memory_space<vmem>>, vector<4x4xf32>
    %cst_587 = arith.constant dense<0.000000e+00> : vector<4x1xf32>
    %1519 = tpu.matmul %1518, %1512, %cst_587 {dimension_numbers = #tpu.dot_dimension_numbers<[1], [0], [0], [1], [0, 0, 1, 1], [], []>} : vector<4x4xf32>, vector<4x1xf32>, vector<4x1xf32> -> vector<4x1xf32>
    %cst_588 = arith.constant 1.024000e+03 : f32
    %1520 = vector.broadcast %cst_588 : f32 to vector<4x1xf32>
    %1521 = arith.divf %1519, %1520 : vector<4x1xf32>
    %c0_589 = arith.constant 0 : index
    %c0_590 = arith.constant 0 : index
    %1522 = vector.load %arg11[%c0_589, %c0_590] : memref<4x4xf32, #tpu.memory_space<vmem>>, vector<4x4xf32>
    %cst_591 = arith.constant dense<0.000000e+00> : vector<4x1xf32>
    %1523 = tpu.matmul %1522, %1517, %cst_591 {dimension_numbers = #tpu.dot_dimension_numbers<[1], [0], [0], [1], [0, 0, 1, 1], [], []>} : vector<4x4xf32>, vector<4x1xf32>, vector<4x1xf32> -> vector<4x1xf32>
    %cst_592 = arith.constant 1.024000e+03 : f32
    %1524 = vector.broadcast %cst_592 : f32 to vector<4x1xf32>
    %1525 = arith.divf %1523, %1524 : vector<4x1xf32>
    %1526 = arith.mulf %1521, %1521 : vector<4x1xf32>
    %1527 = arith.subf %1525, %1526 : vector<4x1xf32>
    %cst_593 = arith.constant 9.99999974E-6 : f32
    %1528 = vector.broadcast %cst_593 : f32 to vector<4x1xf32>
    %1529 = arith.addf %1527, %1528 : vector<4x1xf32>
    %1530 = math.rsqrt %1529 : vector<4x1xf32>
    %1531 = vector.broadcast %1521 : vector<4x1xf32> to vector<4x512xf32>
    %1532 = arith.subf %1508, %1531 : vector<4x512xf32>
    %1533 = vector.broadcast %1530 : vector<4x1xf32> to vector<4x512xf32>
    %1534 = arith.mulf %1532, %1533 : vector<4x512xf32>
    %c0_594 = arith.constant 0 : index
    %c0_595 = arith.constant 0 : index
    %1535 = vector.load %arg9[%c0_594, %c0_595] : memref<4x1xf32, #tpu.memory_space<vmem>>, vector<4x1xf32>
    %1536 = vector.broadcast %1535 : vector<4x1xf32> to vector<4x512xf32>
    %1537 = arith.mulf %1534, %1536 : vector<4x512xf32>
    %c0_596 = arith.constant 0 : index
    %c0_597 = arith.constant 0 : index
    %1538 = vector.load %arg10[%c0_596, %c0_597] : memref<4x1xf32, #tpu.memory_space<vmem>>, vector<4x1xf32>
    %1539 = vector.broadcast %1538 : vector<4x1xf32> to vector<4x512xf32>
    %1540 = arith.addf %1537, %1539 : vector<4x512xf32>
    %cst_598 = arith.constant 0.000000e+00 : f32
    %1541 = vector.broadcast %cst_598 : f32 to vector<4x512xf32>
    %1542 = arith.maximumf %1540, %1541 : vector<4x512xf32>
    %1543 = vector.shape_cast %1542 : vector<4x512xf32> to vector<1x4x512xf32>
    %c0_599 = arith.constant 0 : index
    %c0_600 = arith.constant 0 : index
    %c0_601 = arith.constant 0 : index
    %1544 = vector.load %arg14[%c0_599, %c0_600, %c0_601] : memref<1x4x512xf32, #tpu.memory_space<vmem>>, vector<1x4x512xf32>
    tpu.vector_store %arg14[%c0_599, %c0_600, %c0_601], %1543 {strides = array<i32>} : memref<1x4x512xf32, #tpu.memory_space<vmem>>, vector<1x4x512xf32>,
    return
  }
  func.func @transform_0(%arg0: i32) -> (i32, i32, i32) {
    %c0_i32 = arith.constant 0 : i32
    %c0_i32_0 = arith.constant 0 : i32
    %c0_i32_1 = arith.constant 0 : i32
    return %arg0, %c0_i32, %c0_i32_0 : i32, i32, i32
  }
  func.func @transform_1(%arg0: i32) -> (i32, i32) {
    %c0_i32 = arith.constant 0 : i32
    %c0_i32_0 = arith.constant 0 : i32
    %c0_i32_1 = arith.constant 0 : i32
    return %c0_i32, %c0_i32_0 : i32, i32
  }
  func.func @transform_2(%arg0: i32) -> (i32, i32) {
    %c0_i32 = arith.constant 0 : i32
    %c0_i32_0 = arith.constant 0 : i32
    %c0_i32_1 = arith.constant 0 : i32
    return %c0_i32, %c0_i32_0 : i32, i32
  }
  func.func @transform_3(%arg0: i32) -> (i32, i32) {
    %c0_i32 = arith.constant 0 : i32
    %c0_i32_0 = arith.constant 0 : i32
    %c0_i32_1 = arith.constant 0 : i32
    return %c0_i32, %c0_i32_0 : i32, i32
  }
  func.func @transform_4(%arg0: i32) -> (i32, i32) {
    %c0_i32 = arith.constant 0 : i32
    %c0_i32_0 = arith.constant 0 : i32
    %c0_i32_1 = arith.constant 0 : i32
    return %c0_i32, %c0_i32_0 : i32, i32
  }
  func.func @transform_5(%arg0: i32) -> (i32, i32) {
    %c0_i32 = arith.constant 0 : i32
    %c0_i32_0 = arith.constant 0 : i32
    %c0_i32_1 = arith.constant 0 : i32
    return %c0_i32, %c0_i32_0 : i32, i32
  }
  func.func @transform_6(%arg0: i32) -> (i32, i32) {
    %c0_i32 = arith.constant 0 : i32
    %c0_i32_0 = arith.constant 0 : i32
    %c0_i32_1 = arith.constant 0 : i32
    return %c0_i32, %c0_i32_0 : i32, i32
  }
  func.func @transform_7(%arg0: i32) -> (i32, i32) {
    %c0_i32 = arith.constant 0 : i32
    %c0_i32_0 = arith.constant 0 : i32
    %c0_i32_1 = arith.constant 0 : i32
    return %c0_i32, %c0_i32_0 : i32, i32
  }
  func.func @transform_8(%arg0: i32) -> (i32, i32) {
    %c0_i32 = arith.constant 0 : i32
    %c0_i32_0 = arith.constant 0 : i32
    %c0_i32_1 = arith.constant 0 : i32
    return %c0_i32, %c0_i32_0 : i32, i32
  }
  func.func @transform_9(%arg0: i32) -> (i32, i32) {
    %c0_i32 = arith.constant 0 : i32
    %c0_i32_0 = arith.constant 0 : i32
    %c0_i32_1 = arith.constant 0 : i32
    return %c0_i32, %c0_i32_0 : i32, i32
  }
  func.func @transform_10(%arg0: i32) -> (i32, i32) {
    %c0_i32 = arith.constant 0 : i32
    %c0_i32_0 = arith.constant 0 : i32
    %c0_i32_1 = arith.constant 0 : i32
    return %c0_i32, %c0_i32_0 : i32, i32
  }
  func.func @transform_11(%arg0: i32) -> (i32, i32) {
    %c0_i32 = arith.constant 0 : i32
    %c0_i32_0 = arith.constant 0 : i32
    %c0_i32_1 = arith.constant 0 : i32
    return %c0_i32, %c0_i32_0 : i32, i32
  }
  func.func @transform_12(%arg0: i32) -> (i32, i32) {
    %c0_i32 = arith.constant 0 : i32
    %c0_i32_0 = arith.constant 0 : i32
    %c0_i32_1 = arith.constant 0 : i32
    return %c0_i32, %c0_i32_0 : i32, i32
  }
  func.func @transform_13(%arg0: i32) -> (i32, i32, i32) {
    %c0_i32 = arith.constant 0 : i32
    %c0_i32_0 = arith.constant 0 : i32
    %c0_i32_1 = arith.constant 0 : i32
    return %arg0, %c0_i32, %c0_i32_0 : i32, i32, i32
  }
}

</mosaic_0001>

<bundles_post_ra>
// kernel: tpu_custom_call.1
= control target key start
LH: loop header
LB: loop body
LE: loop exit
PB: predicated region body
PF: predicated region fallthrough
CT: control target
= control target key end

     0   :  { %s9864_s0 = inlined_call_operand.vmem [shape: f32[2,4,512], index: 0, kind: input, shape index: {}]   ;;  %s9865_s1 = inlined_call_operand.vmem [shape: f32[18,36], index: 1, kind: input, shape index: {}]   ;;  %s9866_s2 = inlined_call_operand.vmem [shape: f32[18,1], index: 2, kind: input, shape index: {}]   ;;  %s9867_s3 = inlined_call_operand.vmem [shape: f32[18,1], index: 3, kind: input, shape index: {}]   ;;  %s9868_s4 = inlined_call_operand.vmem [shape: f32[18,1], index: 4, kind: input, shape index: {}]   ;;  %s9869_s5 = inlined_call_operand.vmem [shape: f32[18,18], index: 5, kind: input, shape index: {}]   ;;  %s9870_s6 = inlined_call_operand.vmem [shape: f32[4,36], index: 6, kind: input, shape index: {}]   ;;  %s9871_s7 = inlined_call_operand.vmem [shape: f32[4,1], index: 7, kind: input, shape index: {}]   ;;  %s9872_s8 = inlined_call_operand.vmem [shape: f32[4,1], index: 8, kind: input, shape index: {}]   ;;  %s9873_s9 = inlined_call_operand.vmem [shape: f32[4,1], index: 9, kind: input, shape index: {}]   ;;  %s9874_s10 = inlined_call_operand.vmem [shape: f32[4,4], index: 10, kind: input, shape index: {}]   ;;  %s9875_s11 = inlined_call_operand.vmem [shape: f32[1,512], index: 11, kind: input, shape index: {}]   ;;  %s9876_s12 = inlined_call_operand.vmem [shape: f32[1,512], index: 12, kind: input, shape index: {}]   ;;  %s9877_s13 = inlined_call_operand.hbm [shape: f32[2,4,512], index: 13, kind: output, shape index: {}]  }
   0x1   :  { %10152 = sst [smem:[#allocation163_spill]] %s9864_s0 }
   0x2   :  { %18 = vsyncpa [#allocation5], 0 }
   0x3   :  { %20 = vsyncpa [#allocation5 + $0x1], 0  ;;  %s6230_s25 = smov 0   ;;  %s6232_s26 = smov 0  }
   0x4   :  { %s6234_s27 = smov 0   ;;  %s6236_s28 = smov 0  }
   0x5 LB: > { %s6251_s29 = sadd.s32 4294967295, %s6137_s28   ;;  %s5829_s30 = sadd.s32 4294967294, %s6137_s28   ;;  %s6137_s28 = sphi %s6236_s28, %s10671_s28   ;;  %s6133_s27 = sphi %s6234_s27, %s10670_s27   ;;  %s6129_s26 = sphi %s6232_s26, %s10669_s26   ;;  %s6125_s25 = sphi %s6230_s25, %s10668_s25  }
   0x6   : > { %s6255_s14 = sadd.s32 1, %s6137_s28   ;;  %s311_s15 = sadd.s32 1, %s6133_s27 }
   0x7   : > { %s308_s16 = ssub.s32 %s6137_s28, %s6255_s14  ;;  %p321_p0 = scmp.ne.s32.totalorder %s6133_s27, %s6129_s26 }
   0x8   : > { %p309_p1 = scmp.eq.s32.totalorder %s308_s16, 0  ;;  %p322_p2 = scmp.eq.s32.totalorder %s6251_s29, 1 }
   0x9   : > { %p327_p3 = scmp.ne.s32.totalorder %s6129_s26, %s6125_s25  ;;  %p328_p4 = scmp.eq.s32.totalorder %s5829_s30, 1 }
   0xa   : > { %s6266_s17 = scalar_select %p309_p1, %s6133_s27, %s311_s15  }
   0xb   : > { %p6268_p5 = por %p322_p2, %p321_p0  ;;  %p6272_p6 = por %p328_p4, %p327_p3 }
   0xc   : > { %10153 = sst [smem:[#allocation7_spill]] %s6266_s17  ;;  %p5832_p7 = scmp.ge.s32.totalorder %s6137_s28, 1 }
   0xd   : > { %p390_p8 = scmp.lt.s32.totalorder %s6137_s28, 3 }
   0xf   : > { %p391_p9 = pnand %p5832_p7, %p390_p8 }
  0x11   : > { %394 = sbr.rel (%p391_p9) target bundleno = 2147 (0x863), region = 72 }
  0x18   : > { %p434_p10 = scmp.lt.s32.totalorder %s6251_s29, 1  ;;  %v442_v0 = vld [vmem:[%s9876_s12] sm:$0xf]  ;;  %v9884_v1 = vmov 0.0   ;;  %v469_v2 = vlaneseq  ;;  %s10156_s0 = sld [smem:[#allocation163_spill]]  ;;  %v925_v27 = vld [vmem:[%s9866_s2 + $0x8] sm:$0xff] }
  0x19   : > { %1029 = vmatprep.mubr.f32.mxu0 %v9884_v1  ;;  %1112 = vmatprep.mubr.f32.mxu1 %v9884_v1  ;;  %vm450_vm0 = vcmp.ge.f32.partialorder %v442_v0, 1.0  ;;  %vm451_vm1 = vcmp.le.f32.partialorder %v442_v0, 16.0  ;;  %v6293_v3 = vld [vmem:[%s9875_s11] sm:$0xf]  ;;  %vm443_vm2 = vcmp.ge.f32.partialorder %v442_v0, 0.0  ;;  %vm444_vm3 = vcmp.le.f32.partialorder %v442_v0, 15.0 }
  0x1a   : > { %s435_s22 = scalar_select %p434_p10, %s6251_s29, 1  ;;  %vm608_vm4 = vcmp.ge.f32.partialorder %v6293_v3, 0.0  ;;  %v6308_v6 = vshrl.u32 %v469_v2, 7  ;;  %vm6310_vm5 = vmand %vm450_vm0, %vm451_vm1  ;;  %vm609_vm7 = vcmp.le.f32.partialorder %v6293_v3, 15.0  ;;  %vm561_vm10 = vcmp.ge.f32.partialorder %v442_v0, -1.0  ;;  %v924_v26 = vld [vmem:[%s9866_s2] sm:$0xff] }
  0x1b   : > { %s6140_s20 = smov 1   ;;  %s9878_s21 = smov 32   ;;  %vm6317_vm6 = vmand %vm443_vm2, %vm444_vm3  ;;  %vm562_vm11 = vcmp.le.f32.partialorder %v442_v0, 14.0  ;;  %v6148_v28 = vmov 0   ;;  %v926_v29 = vld [vmem:[%s9866_s2 + $0x10] sm:$0x3] }
  0x1c   : > { %s5869_s23 = sshll.u32 %s435_s22, 4  ;;  %10158 = vst [vmem:[#allocation9_spill] sm:$0xff] %v6308_v6  ;;  %vm6322_vm8 = vmand %vm608_vm4, %vm609_vm7  ;;  %v6339_v12 = vsub.s32 0, %v6308_v6  ;;  %v6346_v13 = vsub.s32 1, %v6308_v6  ;;  %v6349_v14 = vsub.s32 2, %v6308_v6  ;;  %v6352_v15 = vsub.s32 3, %v6308_v6  ;;  %6042 = vset.pattern.permute.xlu0 %v6148_v28  ;;  %6043 = vset.pattern.permute.xlu1 %v6148_v28 }
  0x1d   : > { %vm611_vm9 = vmand %vm6322_vm8, %vm6310_vm5  ;;  %s6142_s17 = smov 33   ;;  %s6143_s22 = smov 31   ;;  %v3286_v30 = vmax.f32 %v6293_v3, 0.0  ;;  %vm447_vm15 = vcmp.ge.f32.partialorder %v6293_v3, 1.0  ;;  %vm448_vm0 = vcmp.le.f32.partialorder %v6293_v3, 16.0  ;;  %v6444_v41 = vand.u32 127, %v469_v2 }
  0x1e   : > { %s6288_s15 = scalar_lea.vmem %s10156_s0, %s5869_s23  ;;  %10166 = vst [vmem:[#allocation11_spill] sm:$0xff] %v6339_v12  ;;  %vm667_vm12 = vmand %vm6322_vm8, %vm6317_vm6  ;;  %s6144_s23 = smov 127   ;;  %v6459_v44 = vsel %vm611_vm9, 1.0, %v9884_v1 }
  0x1f   : > { %v6296_v4 = vld [vmem:[%s6288_s15] sm:$0xff]  ;;  %v6315_v8 = vld [vmem:[%s6288_s15 + $0x8] sm:$0xff]  ;;  %v668_v16 = vsel %vm667_vm12, 1.0, %v9884_v1  ;;  %vm6356_vm13 = vmand %vm561_vm10, %vm562_vm11  ;;  %s6145_s24 = smov 96   ;;  %s6146_s30 = smov 97   ;;  %v3287_v31 = vmin.f32 %v3286_v30, 15.0  ;;  %v634_v51 = vrot.slane %v6459_v44, %v6346_v13  ;;  %v630_v58 = vrot.slane %v6459_v44, %v6339_v12 }
  0x20   : > { %613 = vrot.lane.b32.xlu1 %v6296_v4, %s6140_s20  ;;  %507 = vrot.lane.b32.xlu0 %v6296_v4, %s9878_s21  ;;  %v6305_v5 = vcombine.high %v6296_v4, %v6296_v4  ;;  %v6336_v11 = vcombine.high %v6315_v8, %v6315_v8  ;;  %v673_v17 = vrot.slane %v668_v16, %v6339_v12  ;;  %vm698_vm14 = vmand %vm6322_vm8, %vm6356_vm13  ;;  %s6147_s16 = smov 95   ;;  %vm621_vm11 = vcmp.lt.s32.totalorder %v6444_v41, 1 }
  0x21   : > { %v677_v19 = vrot.slane %v668_v16, %v6346_v13  ;;  %v681_v20 = vrot.slane %v668_v16, %v6349_v14  ;;  %v685_v21 = vrot.slane %v668_v16, %v6352_v15  ;;  %v3288_v32 = vfloor.f32 %v3287_v31  ;;  %vm6429_vm3 = vmand %vm447_vm15, %vm448_vm0 }
  0x22   : > { %10157 = vst [vmem:[#allocation8_spill] sm:$0xff] %v6305_v5  ;;  %10165 = vst [vmem:[#allocation10_spill] sm:$0xff] %v6336_v11  ;;  %v690_v22 = vmul.f32 %v673_v17, %v6296_v4  ;;  %vm515_vm12 = vcmp.lt.s32.totalorder %v6444_v41, 32  ;;  %vm471_vm0 = vcmp.lt.s32.totalorder %v6444_v41, 33 }
  0x23   : > { %v692_v23 = vmul.f32 %v681_v20, %v6315_v8  ;;  %v693_v24 = vmul.f32 %v685_v21, %v6336_v11  ;;  %v691_v25 = vmul.f32 %v677_v19, %v6305_v5  ;;  %v3291_v33 = vsub.f32 %v3288_v32, %v6293_v3  ;;  %vm505_vm4 = vmand %vm6429_vm3, %vm6317_vm6 }
  0x24   : > { %615 = vrot.lane.b32.xlu1 %v6305_v5, %s6140_s20  ;;  %509 = vrot.lane.b32.xlu0 %v6305_v5, %s9878_s21  ;;  %694 = vst [vmem:[#allocation2 + $0x40] sm:$0xf] %v690_v22  ;;  %v6418_v35 = vsub.f32 %v3287_v31, %v3288_v32  ;;  %v6451_v43 = vsel %vm505_vm4, 1.0, %v9884_v1  ;;  %vm453_vm9 = vmand %vm6429_vm3, %vm6310_vm5 }
  0x25   : > { %696 = vst [vmem:[#allocation2 + $0x50] sm:$0xf] %v692_v23  ;;  %697 = vst [vmem:[#allocation2 + $0x58] sm:$0xf] %v693_v24  ;;  %v5973_v34 = vtrunc.f32 %v3291_v33  ;;  %v528_v49 = vrot.slane %v6451_v43, %v6346_v13  ;;  %v524_v57 = vrot.slane %v6451_v43, %v6339_v12  ;;  %v6507_v63 = vsel %vm453_vm9, 1.0, %v9884_v1 }
  0x26   : > { %695 = vst [vmem:[#allocation2 + $0x48] sm:$0xf] %v691_v25  ;;  %v6425_v37 = vsub.f32 1.0, %v6418_v35  ;;  %vm564_vm15 = vmand %vm6429_vm3, %vm6356_vm13  ;;  %v484_v23 = vrot.slane %v6507_v63, %v6346_v13  ;;  %vm574_vm3 = vcmp.lt.s32.totalorder %v6444_v41, 31  ;;  %v6549_v33 = vsel %vm698_vm14, 1.0, %v9884_v1 }
  0x27   : > { %v6420_v36 = vcvt.f32.s32 %v5973_v34  ;;  %v6533_v25 = vsel %vm564_vm15, 1.0, %v9884_v1  ;;  %v532_v34 = vrot.slane %v6451_v43, %v6349_v14  ;;  %v536_v38 = vrot.slane %v6451_v43, %v6352_v15 }
  0x28   : > { %619 = vrot.lane.b32.xlu1 %v6336_v11, %s6140_s20  ;;  %513 = vrot.lane.b32.xlu0 %v6336_v11, %s9878_s21  ;;  %v587_v32 = vrot.slane %v6533_v25, %v6346_v13  ;;  %vm754_vm9 = vcmp.ge.f32.partialorder %v6293_v3, -1.0  ;;  %vm755_vm15 = vcmp.le.f32.partialorder %v6293_v3, 14.0  ;;  %v721_v3 = vrot.slane %v6549_v33, %v6346_v13 }
  0x29   : > { %vm9881_vm1 = vcmp.eq.s32.totalorder %v6420_v36, 4294967294  ;;  %vm3405_vm2 = vcmp.eq.s32.totalorder %v6420_v36, 4294967295  ;;  %vm9880_vm7 = vcmp.eq.s32.totalorder %v6420_v36, 2  ;;  %vm3537_vm10 = vcmp.eq.s32.totalorder %v6420_v36, 3 }
  0x2a   : > { %v3406_v39 = vsel %vm3405_vm2, %v6425_v37, 0.0  ;;  %v3407_v40 = vsel %vm9881_vm1, %v6418_v35, 0.0  ;;  %v3538_v47 = vsel %vm3537_vm10, %v6425_v37, 0.0  ;;  %v3539_v48 = vsel %vm9880_vm7, %v6418_v35, 0.0 }
  0x2b   : > { %v6446_v42 = vadd.f32 %v3407_v40, %v3406_v39  ;;  %v6477_v53 = vadd.f32 %v3539_v48, %v3538_v47  ;;  %vm3293_vm8 = vcmp.eq.s32.totalorder %v6420_v36, 4294967292  ;;  %vm9882_vm14 = vcmp.eq.s32.totalorder %v6420_v36, 4294967293 }
  0x2c   : > { %463 = vrot.lane.b32.xlu1 %v6305_v5, %s6142_s17  ;;  %461 = vrot.lane.b32.xlu0 %v6296_v4, %s6142_s17  ;;  %vm9883_vm4 = vcmp.eq.s32.totalorder %v6420_v36, 1  ;;  %vm3438_vm7 = vcmp.eq.s32.totalorder %v6420_v36, 0  ;;  %vm708_vm1 = vcmp.lt.s32.totalorder %v6444_v41, 127 }
  0x2d   : > { %v3417_v50 = vrot.slane %v6446_v42, %v6346_v13  ;;  %v3557_v61 = vrot.slane %v6477_v53, %v6352_v15  ;;  %v3425_v10 = vrot.slane %v6446_v42, %v6352_v15  ;;  %v3553_v47 = vrot.slane %v6477_v53, %v6349_v14 }
  0x30   : > { %568 = vrot.lane.b32.xlu1 %v6305_v5, %s6143_s22  ;;  %566 = vrot.lane.b32.xlu0 %v6296_v4, %s6143_s22 }
  0x34   : > { %511 = vrot.lane.b32.xlu1 %v6315_v8, %s9878_s21  ;;  %467 = vrot.lane.b32.xlu0 %v6336_v11, %s6142_s17  ;;  %s6155_s21 = smov 126  }
  0x38   : > { %617 = vrot.lane.b32.xlu1 %v6315_v8, %s6140_s20  ;;  %572 = vrot.lane.b32.xlu0 %v6336_v11, %s6143_s22  ;;  %s6152_s20 = smov 4  }
  0x3c   : > { %704 = vrot.lane.b32.xlu1 %v6315_v8, %s6144_s23  ;;  %702 = vrot.lane.b32.xlu0 %v6305_v5, %s6144_s23 }
  0x40   : > { %807 = vrot.lane.b32.xlu1 %v6315_v8, %s6145_s24  ;;  %805 = vrot.lane.b32.xlu0 %v6305_v5, %s6145_s24 }
  0x44   : > { %570 = vrot.lane.b32.xlu1 %v6315_v8, %s6143_s22  ;;  %465 = vrot.lane.b32.xlu0 %v6315_v8, %s6142_s17  ;;  %s6153_s17 = smov 2   ;;  %s10223_s22 = smov 32  }
  0x48   : > { %803 = vrot.lane.b32.xlu1 %v6296_v4, %s6145_s24  ;;  %700 = vrot.lane.b32.xlu0 %v6296_v4, %s6144_s23 }
  0x4c   : > { %763 = vrot.lane.b32.xlu1 %v6315_v8, %s6146_s30  ;;  %761 = vrot.lane.b32.xlu0 %v6305_v5, %s6146_s30 }
  0x50   : > { %759 = vrot.lane.b32.xlu1 %v6296_v4, %s6146_s30  ;;  %706 = vrot.lane.b32.xlu0 %v6336_v11, %s6144_s23 }
  0x54   : > { %765 = vrot.lane.b32.xlu1 %v6336_v11, %s6146_s30  ;;  %809 = vrot.lane.b32.xlu0 %v6336_v11, %s6145_s24  ;;  %s6150_s30 = smov 3  }
  0x58   : > { %863 = vrot.lane.b32.xlu1 %v6315_v8, %s6147_s16  ;;  %861 = vrot.lane.b32.xlu0 %v6305_v5, %s6147_s16 }
  0x5c   : > { %865 = vrot.lane.b32.xlu1 %v6336_v11, %s6147_s16  ;;  %859 = vrot.lane.b32.xlu0 %v6296_v4, %s6147_s16  ;;  %s6156_s16 = smov 124  }
  0x60   : > { %929 = vperm.xlu0 %6042, %v924_v26   ;;  %934 = vperm.xlu1 %6043, %v925_v27  }
  0x64   : > { %939 = vperm.xlu1 %6043, %v926_v29  }
  0x92   : > { %v614_v45 = vpop.permute.xlu1 %613  ;;  %v508_v46 = vpop.permute.xlu0 %507 }
  0x96   : > { %v6475_v52 = vpop.permute.xlu1 %615  ;;  %v6479_v54 = vpop.permute.xlu0 %509 }
  0x97   : > { %v6488_v55 = vsel %vm621_vm11, %v614_v45, %v6475_v52  ;;  %v6493_v56 = vsel %vm515_vm12, %v508_v46, %v6479_v54 }
  0x98   : > { %10171 = vst [vmem:[#allocation12_spill] sm:$0xff] %v6488_v55  ;;  %v542_v59 = vmul.f32 %v528_v49, %v6493_v56  ;;  %v6501_v60 = vmul.f32 %v3417_v50, %v6493_v56  ;;  %v648_v62 = vmul.f32 %v634_v51, %v6488_v55  ;;  %v480_v49 = vrot.slane %v6507_v63, %v6339_v12 }
  0x99   : > { %v638_v50 = vrot.slane %v6459_v44, %v6349_v14  ;;  %v642_v51 = vrot.slane %v6459_v44, %v6352_v15  ;;  %v3472_v44 = vsel %vm9883_vm4, %v6425_v37, 0.0  ;;  %vm3603_vm4 = vcmp.eq.s32.totalorder %v6420_v36, 5 }
  0x9a   : > { %10172 = vst [vmem:[#allocation13_spill] sm:$0xff] %v6501_v60  ;;  %v550_v0 = vrot.slane %v542_v59, 4  ;;  %v6509_v2 = vpop.permute.xlu1 %619  ;;  %v514_v16 = vpop.permute.xlu0 %513  ;;  %v656_v17 = vrot.slane %v648_v62, 4  ;;  %v3329_v62 = vsel %vm3293_vm8, %v6418_v35, 0.0 }
  0x9b   : > { %v6518_v19 = vsel %vm621_vm11, %v6509_v2, %v614_v45  ;;  %v6522_v20 = vsel %vm515_vm12, %v514_v16, %v508_v46  ;;  %v3421_v45 = vrot.slane %v6446_v42, %v6349_v14  ;;  %v3549_v46 = vrot.slane %v6477_v53, %v6346_v13 }
  0x9c   : > { %10173 = vst [vmem:[#allocation14_spill] sm:$0xff] %v6518_v19  ;;  %10174 = vst [vmem:[#allocation15_spill] sm:$0xff] %v6522_v20  ;;  %v541_v21 = vmul.f32 %v524_v57, %v6522_v20  ;;  %v6527_v22 = vmul.f32 %v3557_v61, %v6522_v20  ;;  %v647_v24 = vmul.f32 %v630_v58, %v6518_v19  ;;  %v3328_v61 = vsel %vm9882_vm14, %v6425_v37, 0.0 }
  0x9d   : > { %558 = vst [vmem:[#allocation2 + $0x8] sm:$0xf0] %v550_v0  ;;  %664 = vst [vmem:[#allocation2 + $0x28] sm:$0xf0] %v656_v17  ;;  %v583_v57 = vrot.slane %v6533_v25, %v6339_v12 }
  0x9e   : > { %10175 = vst [vmem:[#allocation16_spill] sm:$0xff] %v6527_v22  ;;  %v549_v26 = vrot.slane %v541_v21, 4  ;;  %v6535_v27 = vpop.permute.xlu1 %463  ;;  %v655_v28 = vrot.slane %v647_v24, 4  ;;  %v462_v29 = vpop.permute.xlu0 %461  ;;  %vm6606_vm14 = vmand %vm754_vm9, %vm755_vm15  ;;  %vm3570_vm15 = vcmp.eq.s32.totalorder %v6420_v36, 4 }
  0x9f   : > { %v474_v30 = vsel %vm471_vm0, %v462_v29, %v6535_v27  ;;  %vm801_vm9 = vmand %vm6606_vm14, %vm6317_vm6 }
  0xa0   : > { %557 = vst [vmem:[#allocation2] sm:$0xf0] %v549_v26  ;;  %663 = vst [vmem:[#allocation2 + $0x20] sm:$0xf0] %v655_v28  ;;  %v498_v31 = vmul.f32 %v484_v23, %v474_v30 }
  0xa2   : > { %502 = vst [vmem:[#allocation2 + $0x8] sm:$0xf] %v498_v31  ;;  %v6555_v39 = vpop.permute.xlu1 %568  ;;  %v567_v40 = vpop.permute.xlu0 %566 }
  0xa3   : > { %v577_v43 = vsel %vm574_vm3, %v567_v40, %v6555_v39 }
  0xa4   : > { %v601_v48 = vmul.f32 %v587_v32, %v577_v43 }
  0xa6   : > { %605 = vst [vmem:[#allocation2 + $0x28] sm:$0xf] %v601_v48  ;;  %v512_v58 = vpop.permute.xlu1 %511  ;;  %v6582_v59 = vpop.permute.xlu0 %467 }
  0xa7   : > { %v516_v0 = vsel %vm515_vm12, %v512_v58, %v514_v16  ;;  %v517_v17 = vsel %vm515_vm12, %v6479_v54, %v512_v58  ;;  %v475_v21 = vsel %vm471_vm0, %v6582_v59, %v462_v29  ;;  %v3473_v16 = vsel %vm3438_vm7, %v6418_v35, 0.0 }
  0xa8   : > { %v543_v24 = vmul.f32 %v532_v34, %v517_v17  ;;  %v544_v26 = vmul.f32 %v536_v38, %v516_v0  ;;  %v6613_v28 = vmul.f32 %v3421_v45, %v517_v17  ;;  %v6615_v54 = vmul.f32 %v3425_v10, %v516_v0 }
  0xa9   : > { %v6617_v30 = vmul.f32 %v3549_v46, %v517_v17  ;;  %v6619_v29 = vmul.f32 %v3553_v47, %v516_v0  ;;  %v497_v31 = vmul.f32 %v480_v49, %v475_v21  ;;  %v6627_v34 = vadd.f32 %v3329_v62, %v3328_v61 }
  0xaa   : > { %10178 = vst [vmem:[#allocation17_spill] sm:$0xff] %v6613_v28  ;;  %10179 = vst [vmem:[#allocation18_spill] sm:$0xff] %v6615_v54  ;;  %v551_v32 = vrot.slane %v543_v24, 4  ;;  %v552_v43 = vrot.slane %v544_v26, 4  ;;  %v618_v48 = vpop.permute.xlu1 %617  ;;  %v573_v58 = vpop.permute.xlu0 %572  ;;  %v6642_v46 = vadd.f32 %v3473_v16, %v3472_v44  ;;  %v3604_v17 = vsel %vm3603_vm4, %v6425_v37, 0.0 }
  0xab   : > { %10180 = vst [vmem:[#allocation19_spill] sm:$0xff] %v6617_v30  ;;  %10181 = vst [vmem:[#allocation20_spill] sm:$0xff] %v6619_v29  ;;  %v6633_v38 = vsel %vm621_vm11, %v618_v48, %v6509_v2  ;;  %v6638_v45 = vsel %vm621_vm11, %v6475_v52, %v618_v48  ;;  %v578_v10 = vsel %vm574_vm3, %v573_v58, %v567_v40  ;;  %v905_v2 = vld [vmem:[#allocation2 + $0x8] sm:$0xff]  ;;  %v6653_v52 = vsel %vm801_vm9, 1.0, %v9884_v1 }
  0xac   : > { %501 = vst [vmem:[#allocation2] sm:$0xf] %v497_v31  ;;  %10182 = vst [vmem:[#allocation21_spill] sm:$0xff] %v6633_v38  ;;  %v649_v47 = vmul.f32 %v638_v50, %v6638_v45  ;;  %v650_v49 = vmul.f32 %v642_v51, %v6633_v38  ;;  %v600_v61 = vmul.f32 %v583_v57, %v578_v10  ;;  %vm811_vm11 = vcmp.lt.s32.totalorder %v6444_v41, 96 }
  0xad   : > { %10183 = vst [vmem:[#allocation22_spill] sm:$0xff] %v6638_v45  ;;  %559 = vst [vmem:[#allocation2 + $0x10] sm:$0xf0] %v551_v32  ;;  %v909_v62 = vld [vmem:[#allocation2 + $0x28] sm:$0xff]  ;;  %v3605_v21 = vsel %vm3570_vm15, %v6418_v35, 0.0  ;;  %v824_v24 = vrot.slane %v6653_v52, %v6346_v13  ;;  %v3343_v26 = vrot.slane %v6627_v34, %v6349_v14  ;;  %v3483_v31 = vrot.slane %v6642_v46, %v6346_v13 }
  0xae   : > { %560 = vst [vmem:[#allocation2 + $0x18] sm:$0xf0] %v552_v43  ;;  %v657_v40 = vrot.slane %v649_v47, 4  ;;  %v658_v44 = vrot.slane %v650_v49, 4  ;;  %604 = vst [vmem:[#allocation2 + $0x20] sm:$0xf] %v600_v61  ;;  %v6655_v0 = vpop.permute.xlu1 %704  ;;  %v703_v50 = vpop.permute.xlu0 %702  ;;  %v5927_v51 = vpack.c.bf16 %v909_v62, %v905_v2  ;;  %v6676_v48 = vadd.f32 %v3605_v21, %v3604_v17 }
  0xaf   : > { %v6660_v57 = vsel %vm708_vm1, %v703_v50, %v6655_v0  ;;  %v591_v47 = vrot.slane %v6533_v25, %v6349_v14  ;;  %v595_v49 = vrot.slane %v6533_v25, %v6352_v15  ;;  %v488_v61 = vrot.slane %v6507_v63, %v6349_v14  ;;  %vm757_vm4 = vmand %vm6606_vm14, %vm6310_vm5 }
  0xb0   : > { %10184 = vst [vmem:[#allocation23_spill] sm:$0xff] %v6660_v57  ;;  %665 = vst [vmem:[#allocation2 + $0x30] sm:$0xf0] %v657_v40  ;;  %v735_v16 = vmul.f32 %v721_v3, %v6660_v57  ;;  %5928 = vmatprep.subr.bf16.mxu0 %v5927_v51  ;;  %v820_v25 = vrot.slane %v6653_v52, %v6339_v12  ;;  %v10188_v30 = vmov 0.0   ;;  %vm767_vm5 = vcmp.lt.s32.totalorder %v6444_v41, 97 }
  0xb1   : > { %666 = vst [vmem:[#allocation2 + $0x38] sm:$0xf0] %v658_v44  ;;  %v492_v44 = vrot.slane %v6507_v63, %v6352_v15  ;;  %v6722_v28 = vsel %vm757_vm4, 1.0, %v10188_v30  ;;  %vm1230_vm9 = vcmask 146432   ;;  %vm2016_vm4 = vcmp.lt.s32.totalorder %v6444_v41, 3 }
  0xb2   : > { %v743_v32 = vrot.slane %v735_v16, 4  ;;  %v6674_v43 = vpop.permute.xlu1 %807  ;;  %v806_v10 = vpop.permute.xlu0 %805 }
  0xb3   : > { %v6681_v3 = vsel %vm811_vm11, %v806_v10, %v6674_v43  ;;  %v904_v51 = vld [vmem:[#allocation2] sm:$0xff] }
  0xb4   : > { %10185 = vst [vmem:[#allocation24_spill] sm:$0xff] %v6681_v3  ;;  %751 = vst [vmem:[#allocation2 + $0x48] sm:$0xf0] %v743_v32  ;;  %v838_v2 = vmul.f32 %v824_v24, %v6681_v3  ;;  %v6691_v62 = vmul.f32 %v3343_v26, %v6681_v3  ;;  %v6694_v40 = vmul.f32 %v3483_v31, %v6681_v3 }
  0xb5   : > { %v908_v17 = vld [vmem:[#allocation2 + $0x20] sm:$0xff]  ;;  %v3339_v24 = vrot.slane %v6627_v34, %v6346_v13  ;;  %v3623_v26 = vrot.slane %v6676_v48, %v6352_v15 }
  0xb6   : > { %10186 = vst [vmem:[#allocation25_spill] sm:$0xff] %v6691_v62  ;;  %10187 = vst [vmem:[#allocation26_spill] sm:$0xff] %v6694_v40  ;;  %v846_v21 = vrot.slane %v838_v2, 4  ;;  %v571_v16 = vpop.permute.xlu1 %570  ;;  %v466_v1 = vpop.permute.xlu0 %465  ;;  %v5929_v32 = vpack.c.bf16 %v908_v17, %v904_v51 }
  0xb7   : > { %v575_v63 = vsel %vm574_vm3, %v571_v16, %v573_v58  ;;  %v576_v31 = vsel %vm574_vm3, %v6555_v39, %v571_v16  ;;  %v472_v2 = vsel %vm471_vm0, %v466_v1, %v6582_v59  ;;  %v473_v51 = vsel %vm471_vm0, %v6535_v27, %v466_v1  ;;  %vm857_vm0 = vmand %vm6606_vm14, %vm6356_vm13 }
  0xb8   : > { %854 = vst [vmem:[#allocation2 + $0x68] sm:$0xf0] %v846_v21  ;;  %v602_v7 = vmul.f32 %v591_v47, %v576_v31  ;;  %v603_v17 = vmul.f32 %v595_v49, %v575_v63  ;;  %v499_v29 = vmul.f32 %v488_v61, %v473_v51  ;;  %v500_v22 = vmul.f32 %v492_v44, %v472_v2 }
  0xb9   : > { %5930 = vmatpush1.bf16.msra.mxu0 %v5929_v32  ;;  %v717_v58 = vrot.slane %v6549_v33, %v6339_v12  ;;  %v776_v32 = vrot.slane %v6722_v28, %v6339_v12  ;;  %v784_v51 = vrot.slane %v6722_v28, %v6349_v14  ;;  %vm867_vm13 = vcmp.lt.s32.totalorder %v6444_v41, 95 }
  0xba   : > { %606 = vst [vmem:[#allocation2 + $0x30] sm:$0xf] %v602_v7  ;;  %607 = vst [vmem:[#allocation2 + $0x38] sm:$0xf] %v603_v17  ;;  %v804_v39 = vpop.permute.xlu1 %803  ;;  %v701_v59 = vpop.permute.xlu0 %700  ;;  %v788_v7 = vrot.slane %v6722_v28, %v6352_v15  ;;  %vm942_vm3 = vcmask 293888   ;;  %vm10076_vm14 = vmmov 0  }
  0xbb   : > { %503 = vst [vmem:[#allocation2 + $0x10] sm:$0xf] %v499_v29  ;;  %504 = vst [vmem:[#allocation2 + $0x18] sm:$0xf] %v500_v22  ;;  %v6726_v1 = vsel %vm811_vm11, %v804_v39, %v806_v10  ;;  %v6730_v27 = vsel %vm708_vm1, %v701_v59, %v703_v50  ;;  %v780_v22 = vrot.slane %v6722_v28, %v6346_v13 }
  0xbc   : > { %10189 = vst [vmem:[#allocation27_spill] sm:$0xff] %v6726_v1  ;;  %10190 = vst [vmem:[#allocation28_spill] sm:$0xff] %v6730_v27  ;;  %v837_v47 = vmul.f32 %v820_v25, %v6726_v1  ;;  %v6735_v49 = vmul.f32 %v3339_v24, %v6726_v1  ;;  %v6738_v29 = vmul.f32 %v3623_v26, %v6726_v1 }
  0xbd   : > { %v734_v10 = vmul.f32 %v717_v58, %v6730_v27  ;;  %v725_v24 = vrot.slane %v6549_v33, %v6349_v14  ;;  %v729_v26 = vrot.slane %v6549_v33, %v6352_v15  ;;  %v832_v33 = vrot.slane %v6653_v52, %v6352_v15 }
  0xbe   : > { %10191 = vst [vmem:[#allocation29_spill] sm:$0xff] %v6735_v49  ;;  %10192 = vst [vmem:[#allocation30_spill] sm:$0xff] %v6738_v29  ;;  %v845_v61 = vrot.slane %v837_v47, 4  ;;  %v764_v44 = vpop.permute.xlu1 %763  ;;  %v762_v21 = vpop.permute.xlu0 %761 }
  0xbf   : > { %v742_v50 = vrot.slane %v734_v10, 4  ;;  %v769_v16 = vsel %vm767_vm5, %v762_v21, %v764_v44  ;;  %v828_v10 = vrot.slane %v6653_v52, %v6349_v14 }
  0xc0   : > { %853 = vst [vmem:[#allocation2 + $0x60] sm:$0xf0] %v845_v61  ;;  %v794_v25 = vmul.f32 %v780_v22, %v769_v16  ;;  %v6769_v61 = vsel %vm857_vm0, 1.0, %v10188_v30  ;;  %vm2450_vm0 = vcmp.lt.s32.totalorder %v6444_v41, 2 }
  0xc1   : > { %750 = vst [vmem:[#allocation2 + $0x40] sm:$0xf0] %v742_v50  ;;  %v911_v31 = vld [vmem:[#allocation2 + $0x38] sm:$0xff]  ;;  %v910_v22 = vld [vmem:[#allocation2 + $0x30] sm:$0xff] }
  0xc2   : > { %v907_v63 = vld [vmem:[#allocation2 + $0x18] sm:$0xff]  ;;  %v906_v2 = vld [vmem:[#allocation2 + $0x10] sm:$0xff]  ;;  %798 = vst [vmem:[#allocation2 + $0x68] sm:$0xf] %v794_v25  ;;  %v760_v17 = vpop.permute.xlu1 %759  ;;  %v707_v58 = vpop.permute.xlu0 %706 }
  0xc3   : > { %v5935_v47 = vpack.c.bf16 %v911_v31, %v907_v63  ;;  %v770_v28 = vsel %vm767_vm5, %v760_v17, %v762_v21  ;;  %v6776_v50 = vsel %vm708_vm1, %v6655_v0, %v707_v58  ;;  %v6780_v16 = vsel %vm708_vm1, %v707_v58, %v701_v59 }
  0xc4   : > { %10193 = vst [vmem:[#allocation31_spill] sm:$0xff] %v6776_v50  ;;  %10194 = vst [vmem:[#allocation32_spill] sm:$0xff] %v6780_v16  ;;  %v5937_v52 = vpack.c.bf16 %v910_v22, %v906_v2  ;;  %v793_v25 = vmul.f32 %v776_v32, %v770_v28  ;;  %v736_v23 = vmul.f32 %v725_v24, %v6776_v50  ;;  %vm952_vm1 = vcmask 1043456  }
  0xc5   : > { %v737_v18 = vmul.f32 %v729_v26, %v6780_v16  ;;  %5936 = vmatprep.subr.bf16.mxu1 %v5935_v47  ;;  %v3347_v63 = vrot.slane %v6627_v34, %v6352_v15  ;;  %v3487_v21 = vrot.slane %v6642_v46, %v6349_v14  ;;  %v3491_v0 = vrot.slane %v6642_v46, %v6352_v15 }
  0xc6   : > { %5938 = vmatpush1.bf16.msra.mxu1 %v5937_v52  ;;  %v3615_v59 = vrot.slane %v6676_v48, %v6346_v13  ;;  %v3619_v32 = vrot.slane %v6676_v48, %v6349_v14  ;;  %797 = vst [vmem:[#allocation2 + $0x60] sm:$0xf] %v793_v25  ;;  %v744_v24 = vrot.slane %v736_v23, 4  ;;  %v766_v31 = vpop.permute.xlu1 %765  ;;  %v810_v2 = vpop.permute.xlu0 %809  ;;  %v880_v58 = vrot.slane %v6769_v61, %v6346_v13 }
  0xc7   : > { %v745_v26 = vrot.slane %v737_v18, 4  ;;  %v768_v47 = vsel %vm767_vm5, %v764_v44, %v766_v31  ;;  %v771_v22 = vsel %vm767_vm5, %v766_v31, %v760_v17  ;;  %v812_v28 = vsel %vm811_vm11, %v6674_v43, %v810_v2 }
  0xc8   : > { %v6806_v52 = vsel %vm811_vm11, %v810_v2, %v804_v39  ;;  %752 = vst [vmem:[#allocation2 + $0x50] sm:$0xf0] %v744_v24  ;;  %v795_v25 = vmul.f32 %v784_v51, %v768_v47  ;;  %v796_v23 = vmul.f32 %v788_v7, %v771_v22  ;;  %v839_v18 = vmul.f32 %v828_v10, %v812_v28 }
  0xc9   : > { %753 = vst [vmem:[#allocation2 + $0x58] sm:$0xf0] %v745_v26  ;;  %v840_v29 = vmul.f32 %v832_v33, %v6806_v52  ;;  %v6809_v54 = vmul.f32 %v3347_v63, %v812_v28  ;;  %v6811_v44 = vmul.f32 %v3487_v21, %v812_v28  ;;  %v6814_v17 = vmul.f32 %v3491_v0, %v6806_v52  ;;  %v917_v31 = vld [vmem:[#allocation2 + $0x68] sm:$0xff] }
  0xca   : > { %799 = vst [vmem:[#allocation2 + $0x70] sm:$0xf] %v795_v25  ;;  %800 = vst [vmem:[#allocation2 + $0x78] sm:$0xf] %v796_v23  ;;  %v847_v43 = vrot.slane %v839_v18, 4  ;;  %v6816_v2 = vmul.f32 %v3615_v59, %v812_v28  ;;  %v6819_v51 = vmul.f32 %v3619_v32, %v6806_v52  ;;  %v864_v7 = vpop.permute.xlu1 %863  ;;  %v862_v10 = vpop.permute.xlu0 %861  ;;  %v913_v33 = vld [vmem:[#allocation2 + $0x48] sm:$0xff]  ;;  %v884_v24 = vrot.slane %v6769_v61, %v6349_v14 }
  0xcb   : > { %10195 = vst [vmem:[#allocation33_spill] sm:$0xff] %v6809_v54  ;;  %10196 = vst [vmem:[#allocation34_spill] sm:$0xff] %v6811_v44  ;;  %v848_v39 = vrot.slane %v840_v29, 4  ;;  %v869_v63 = vsel %vm867_vm13, %v862_v10, %v864_v7  ;;  %v5931_v21 = vpack.c.bf16 %v917_v31, %v913_v33  ;;  %v876_v29 = vrot.slane %v6769_v61, %v6339_v12  ;;  %v912_v32 = vld [vmem:[#allocation2 + $0x40] sm:$0xff] }
  0xcc   : > { %10197 = vst [vmem:[#allocation35_spill] sm:$0xff] %v6814_v17  ;;  %10198 = vst [vmem:[#allocation36_spill] sm:$0xff] %v6816_v2  ;;  %v894_v0 = vmul.f32 %v880_v58, %v869_v63  ;;  %v888_v59 = vrot.slane %v6769_v61, %v6352_v15  ;;  %vm1593_vm5 = vcmp.lt.s32.totalorder %v6444_v41, 4 }
  0xcd   : > { %10199 = vst [vmem:[#allocation37_spill] sm:$0xff] %v6819_v51  ;;  %855 = vst [vmem:[#allocation2 + $0x70] sm:$0xf0] %v847_v43  ;;  %5932 = vmatprep.subr.bf16.mxu0 %v5931_v21  ;;  %v916_v26 = vld [vmem:[#allocation2 + $0x60] sm:$0xff] }
  0xce   : > { %856 = vst [vmem:[#allocation2 + $0x78] sm:$0xf0] %v848_v39  ;;  %898 = vst [vmem:[#allocation2 + $0x88] sm:$0xf] %v894_v0  ;;  %v866_v47 = vpop.permute.xlu1 %865  ;;  %v860_v22 = vpop.permute.xlu0 %859  ;;  %v5933_v28 = vpack.c.bf16 %v916_v26, %v912_v32  ;;  %v902_v32 = vld [vmem:[%s9865_s1 + $0x8] sm:$0xff] }
  0xcf   : > { %v868_v25 = vsel %vm867_vm13, %v864_v7, %v866_v47  ;;  %v870_v58 = vsel %vm867_vm13, %v860_v22, %v862_v10  ;;  %v871_v23 = vsel %vm867_vm13, %v866_v47, %v860_v22  ;;  %v914_v33 = vld [vmem:[#allocation2 + $0x50] sm:$0xff]  ;;  %v901_v10 = vld [vmem:[%s9865_s1] sm:$0xff]  ;;  %v446_v47 = vsel %vm6317_vm6, 1.0, %v10188_v30 }
  0xd0   : > { %v895_v18 = vmul.f32 %v884_v24, %v868_v25  ;;  %v893_v31 = vmul.f32 %v876_v29, %v870_v58  ;;  %v896_v43 = vmul.f32 %v888_v59, %v871_v23  ;;  %5934 = vmatpush1.bf16.msra.mxu0 %v5933_v28  ;;  %v915_v61 = vld [vmem:[#allocation2 + $0x58] sm:$0xff]  ;;  %v903_v26 = vld [vmem:[%s9865_s1 + $0x10] sm:$0x3]  ;;  %v6862_v28 = vrot.slane %v446_v47, %v6339_v12 }
  0xd1   : > { %v6865_v25 = vrot.slane %v446_v47, %v6346_v13  ;;  %vm1174_vm6 = vcmask 1041408   ;;  %vm4485_vm13 = vcmp.lt.s32.totalorder %v6444_v41, 125 }
  0xd2   : > { %899 = vst [vmem:[#allocation2 + $0x90] sm:$0xf] %v895_v18  ;;  %897 = vst [vmem:[#allocation2 + $0x80] sm:$0xf] %v893_v31  ;;  %v6868_v18 = vrot.slane %v446_v47, %v6349_v14 }
  0xd3   : > { %900 = vst [vmem:[#allocation2 + $0x98] sm:$0xf] %v896_v43  ;;  %10200 = vst [vmem:[#allocation38_spill] sm:$0xff] %v6862_v28 }
  0xd4   : > { %v918_v63 = vld [vmem:[#allocation2 + $0x70] sm:$0xff]  ;;  %10201 = vst [vmem:[#allocation39_spill] sm:$0xff] %v6865_v25  ;;  %10202 = vst [vmem:[#allocation40_spill] sm:$0xff] %v6868_v18 }
  0xd5   : > { %v919_v39 = vld [vmem:[#allocation2 + $0x78] sm:$0xff]  ;;  %v5941_v7 = vpack.c.bf16 %v918_v63, %v914_v33  ;;  %v921_v0 = vld [vmem:[#allocation2 + $0x88] sm:$0xf]  ;;  %v6877_v63 = vrot.slane %v446_v47, %v6352_v15 }
  0xd6   : > { %v5939_v21 = vpack.c.bf16 %v919_v39, %v915_v61  ;;  %5836 = vmatprep.subr.msk.mxu0 %vm952_vm1, %v921_v0 }
  0xd7   : > { %10206 = vst [vmem:[#allocation44_spill] sm:$0xff] %v6877_v63 }
  0xd8   : > { %5940 = vmatprep.subr.bf16.mxu1 %v5939_v21 }
  0xd9   : > { %5942 = vmatpush1.bf16.msra.mxu1 %v5941_v7  ;;  %v920_v24 = vld [vmem:[#allocation2 + $0x80] sm:$0xf]  ;;  %v922_v59 = vld [vmem:[#allocation2 + $0x90] sm:$0xf] }
  0xda   : > { %v923_v29 = vld [vmem:[#allocation2 + $0x98] sm:$0xf]  ;;  %5837 = vmatpush1.msk.msra.mxu0 %vm952_vm1, %v920_v24 }
  0xdb   : > { %5841 = vmatprep.subr.msk.mxu1 %vm952_vm1, %v923_v29  ;;  %5838 = vmatmul.mubr.msk.f32.vlgmr.msra.gmra.mrb[0].mxu0 %vm942_vm3, %v901_v10 }
  0xdc   : > { %1035 = vmatprep.mubr.f32.mxu0 %v10188_v30 }
  0xdd   : > { %5842 = vmatpush1.msk.msra.mxu1 %vm952_vm1, %v922_v59 }
  0xde   : > { %5843 = vmatmul.mubr.msk.f32.vlgmr.msra.gmra.mrb[0].mxu1 %vm942_vm3, %v901_v10 }
  0xdf   : > { %1118 = vmatprep.mubr.f32.mxu1 %v10188_v30  ;;  %5839 = vmatmul.mubr.msk.f32.gmra.mrb[2].mxu0 %vm942_vm3, %v902_v32  ;;  %v930_v22 = vpop.permute.xlu0 %929  ;;  %v935_v23 = vpop.permute.xlu1 %934 }
  0xe0   : > { %1041 = vmatprep.mubr.f32.mxu0 %v10188_v30 }
  0xe2   : > { %5844 = vmatmul.mubr.msk.f32.gmra.mrb[2].mxu1 %vm942_vm3, %v902_v32 }
  0xe3   : > { %1124 = vmatprep.mubr.f32.mxu1 %v10188_v30  ;;  %5840 = vmatmul.mubr.msk.f32.gmra.mrb[4].mxu0 %vm942_vm3, %v903_v26 }
  0xe4   : > { %5893 = vmatprep.mubr.msk.f32.mxu0 %vm10076_vm14, %v10188_v30 }
  0xe6   : > { %5845 = vmatmul.mubr.msk.f32.gmra.mrb[4].mxu1 %vm942_vm3, %v903_v26 }
  0xe7   : > { %5908 = vmatprep.mubr.msk.f32.mxu1 %vm10076_vm14, %v10188_v30 }
 0x1ae   : > { %v1031_v58 = vpop.f32.mrb[0].mxu0 }
 0x1af   : > { %v6870_v31 = vadd.f32 %v1031_v58, %v930_v22  ;;  %v1033_v43 = vpop.f32.mrb[1].mxu0 }
 0x1b0   : > { %v6872_v39 = vadd.f32 %v1033_v43, %v930_v22 }
 0x1b1   : > { %10203 = vst [vmem:[#allocation41_spill] sm:$0xff] %v6870_v31  ;;  %v1114_v61 = vpop.f32.mrb[0].mxu1  ;;  %v1152_v21 = vmul.f32 %v6862_v28, %v6870_v31  ;;  %v1184_v7 = vmul.f32 %v6870_v31, %v6870_v31 }
 0x1b2   : > { %10204 = vst [vmem:[#allocation42_spill] sm:$0xff] %v6872_v39  ;;  %v6874_v9 = vadd.f32 %v1114_v61, %v930_v22  ;;  %v1116_v33 = vpop.f32.mrb[1].mxu1  ;;  %v1153_v10 = vmul.f32 %v6865_v25, %v6872_v39  ;;  %v1185_v24 = vmul.f32 %v6872_v39, %v6872_v39  ;;  %v1037_v59 = vpop.f32.mrb[2].mxu0 }
 0x1b3   : > { %v6883_v0 = vadd.f32 %v1116_v33, %v930_v22  ;;  %v6893_v26 = vadd.f32 %v1037_v59, %v935_v23  ;;  %v1039_v47 = vpop.f32.mrb[3].mxu0  ;;  %v1196_v22 = vmul.f32 %v1184_v7, %v6862_v28  ;;  %v940_v33 = vpop.permute.xlu1 %939 }
 0x1b4   : > { %10205 = vst [vmem:[#allocation43_spill] sm:$0xff] %v6874_v9  ;;  %v1186_v29 = vmul.f32 %v6874_v9, %v6874_v9  ;;  %v1154_v32 = vmul.f32 %v6868_v18, %v6874_v9  ;;  %v6896_v43 = vadd.f32 %v1039_v47, %v935_v23  ;;  %v1164_v2 = vadd.f32 %v1153_v10, %v1152_v21 }
 0x1b5   : > { %10207 = vst [vmem:[#allocation45_spill] sm:$0xff] %v6883_v0  ;;  %10208 = vst [vmem:[#allocation46_spill] sm:$0xff] %v6893_v26  ;;  %v1120_v58 = vpop.f32.mrb[2].mxu1  ;;  %v1197_v44 = vmul.f32 %v1185_v24, %v6865_v25  ;;  %v1187_v17 = vmul.f32 %v6883_v0, %v6883_v0  ;;  %v1188_v59 = vmul.f32 %v6893_v26, %v6893_v26 }
 0x1b6   : > { %10209 = vst [vmem:[#allocation47_spill] sm:$0xff] %v6896_v43  ;;  %v6898_v61 = vadd.f32 %v1120_v58, %v935_v23  ;;  %v1122_v51 = vpop.f32.mrb[3].mxu1  ;;  %v1155_v40 = vmul.f32 %v6877_v63, %v6883_v0  ;;  %v1156_v7 = vmul.f32 %v6862_v28, %v6893_v26  ;;  %v1189_v47 = vmul.f32 %v6896_v43, %v6896_v43  ;;  %v1043_v21 = vpop.f32.mrb[4].mxu0 }
 0x1b7   : > { %v6911_v58 = vadd.f32 %v1122_v51, %v935_v23  ;;  %v1198_v10 = vmul.f32 %v1186_v29, %v6868_v18  ;;  %v1157_v24 = vmul.f32 %v6865_v25, %v6896_v43  ;;  %v1044_v9 = vadd.f32 %v1043_v21, %v940_v33  ;;  %v1045_v39 = vpop.f32.mrb[5].mxu0 }
 0x1b8   : > { %10210 = vst [vmem:[#allocation48_spill] sm:$0xff] %v6898_v61  ;;  %v1158_v60 = vmul.f32 %v6868_v18, %v6898_v61  ;;  %v1165_v31 = vadd.f32 %v1164_v2, %v1154_v32  ;;  %v1200_v26 = vmul.f32 %v1188_v59, %v6862_v28  ;;  %v1190_v54 = vmul.f32 %v6898_v61, %v6898_v61 }
 0x1b9   : > { %10211 = vst [vmem:[#allocation49_spill] sm:$0xff] %v6911_v58  ;;  %v1126_v0 = vpop.f32.mrb[4].mxu1  ;;  %v1046_v51 = vadd.f32 %v1045_v39, %v940_v33  ;;  %v1160_v29 = vmul.f32 %v6862_v28, %v1044_v9  ;;  %v1192_v49 = vmul.f32 %v1044_v9, %v1044_v9  ;;  %v1201_v3 = vmul.f32 %v1189_v47, %v6865_v25 }
 0x1ba   : > { %v1127_v23 = vadd.f32 %v1126_v0, %v940_v33  ;;  %v1128_v62 = vpop.f32.mrb[5].mxu1  ;;  %v1166_v43 = vadd.f32 %v1165_v31, %v1155_v40  ;;  %v1191_v2 = vmul.f32 %v6911_v58, %v6911_v58  ;;  %v1169_v31 = vadd.f32 %v1157_v24, %v1156_v7 }
 0x1bb   : > { %v1129_v1 = vadd.f32 %v1128_v62, %v940_v33  ;;  %v1161_v21 = vmul.f32 %v6865_v25, %v1046_v51  ;;  %v1193_v6 = vmul.f32 %v1046_v51, %v1046_v51  ;;  %v1175_v32 = vsel %vm1174_vm6, %v1160_v29, 0.0 }
 0x1bc   : > { %v1194_v20 = vmul.f32 %v1127_v23, %v1127_v23  ;;  %v1204_v39 = vmul.f32 %v1192_v49, %v6862_v28  ;;  %v1162_v0 = vmul.f32 %v6868_v18, %v1127_v23  ;;  %1167 = vadd.xlane.f32.xlu0 %v1166_v43  ;;  %v1159_v59 = vmul.f32 %v6877_v63, %v6911_v58 }
 0x1bd   : > { %v1176_v9 = vsel %vm1174_vm6, %v1161_v21, 0.0  ;;  %v1205_v62 = vmul.f32 %v1193_v6, %v6865_v25  ;;  %v1195_v40 = vmul.f32 %v1129_v1, %v1129_v1  ;;  %v1163_v33 = vmul.f32 %v6877_v63, %v1129_v1 }
 0x1be   : > { %v1208_v47 = vadd.f32 %v1197_v44, %v1196_v22  ;;  %v1202_v51 = vmul.f32 %v1190_v54, %v6868_v18  ;;  %v1206_v29 = vmul.f32 %v1194_v20, %v6868_v18  ;;  %v1170_v49 = vadd.f32 %v1169_v31, %v1158_v60 }
 0x1bf   : > { %v1213_v28 = vadd.f32 %v1201_v3, %v1200_v26  ;;  %v1177_v23 = vadd.f32 %v1176_v9, %v1175_v32  ;;  %v1199_v43 = vmul.f32 %v1187_v17, %v6877_v63  ;;  %v1178_v6 = vsel %vm1174_vm6, %v1162_v0, 0.0  ;;  %v1474_v9 = vld [vmem:[%s9868_s4 + $0x8] sm:$0xff] }
 0x1c0   : > { %v1209_v21 = vadd.f32 %v1208_v47, %v1198_v10  ;;  %v1218_v7 = vsel %vm1174_vm6, %v1204_v39, 0.0  ;;  %v1171_v24 = vadd.f32 %v1170_v49, %v1159_v59  ;;  %v1207_v25 = vmul.f32 %v1195_v40, %v6877_v63 }
 0x1c1   : > { %v1179_v1 = vadd.f32 %v1178_v6, %v1177_v23  ;;  %v1219_v44 = vsel %vm1174_vm6, %v1205_v62, 0.0  ;;  %v1214_v54 = vadd.f32 %v1213_v28, %v1202_v51  ;;  %v1180_v20 = vsel %vm1174_vm6, %v1163_v33, 0.0  ;;  %v1454_v62 = vld [vmem:[%s9867_s3 + $0x8] sm:$0xff] }
 0x1c2   : > { %v1210_v22 = vadd.f32 %v1209_v21, %v1199_v43  ;;  %v1220_v60 = vadd.f32 %v1219_v44, %v1218_v7  ;;  %1172 = vadd.xlane.f32.xlu1 %v1171_v24  ;;  %v1221_v17 = vsel %vm1174_vm6, %v1206_v29, 0.0  ;;  %v1203_v26 = vmul.f32 %v1191_v2, %v6877_v63  ;;  %v6957_v2 = vld [vmem:[%s6288_s15] sm:$0xff]  ;;  %v1228_v21 = vld [vmem:[%s9869_s5 + $0x8] sm:$0xff] }
 0x1c3   : > { %v1181_v3 = vadd.f32 %v1180_v20, %v1179_v1  ;;  %v1223_v32 = vsel %vm1174_vm6, %v1207_v25, 0.0  ;;  %v6149_v28 = vmov 0.0|0.0   ;;  %v1453_v25 = vld [vmem:[%s9867_s3] sm:$0xff] }
 0x1c4   : > { %1211 = vadd.xlane.f32.xlu0 %v1210_v22  ;;  %v1222_v10 = vadd.f32 %v1221_v17, %v1220_v60  ;;  %v1215_v39 = vadd.f32 %v1214_v54, %v1203_v26  ;;  %5943 = vmatprep.subr.bf16.mxu0 %v6149_v28  ;;  %v1227_v29 = vld [vmem:[%s9869_s5] sm:$0xff] }
 0x1c5   : > { %5946 = vmatprep.subr.bf16.mxu1 %v6149_v28 }
 0x1c6   : > { %v1224_v0 = vadd.f32 %v1223_v32, %v1222_v10  ;;  %1182 = vadd.xlane.f32.xlu1 %v1181_v3 }
 0x1c8   : > { %1216 = vadd.xlane.f32.xlu0 %v1215_v39 }
 0x1cc   : > { %1225 = vadd.xlane.f32.xlu0 %v1224_v0 }
 0x1d7   : > { %2008 = vrot.lane.b32.xlu1 %v6296_v4, %s6150_s30  ;;  %v6965_v4 = vld [vmem:[%s6288_s15 + $0x8] sm:$0xff] }
 0x1db   : > { %2010 = vrot.lane.b32.xlu1 %v6305_v5, %s6150_s30 }
 0x1df   : > { %2012 = vrot.lane.b32.xlu1 %v6315_v8, %s6150_s30  ;;  %v1473_v8 = vld [vmem:[%s9868_s4] sm:$0xff] }
 0x1e2   : > { %2014 = vrot.lane.b32.xlu0 %v6336_v11, %s6150_s30  ;;  %s6154_s30 = smov 125  }
 0x1e3   : > { %1585 = vrot.lane.b32.xlu1 %v6957_v2, %s6152_s20 }
 0x1e6   : > { %1457 = vperm.xlu0 %6042, %v1453_v25  }
 0x1e7   : > { %1591 = vrot.lane.b32.xlu1 %v6336_v11, %s6152_s20 }
 0x1ea   : > { %1587 = vrot.lane.b32.xlu0 %v6305_v5, %s6152_s20 }
 0x1eb   : > { %2444 = vrot.lane.b32.xlu1 %v6305_v5, %s6153_s17 }
 0x1ee   : > { %2442 = vrot.lane.b32.xlu0 %v6957_v2, %s6153_s17 }
 0x1ef   : > { %1589 = vrot.lane.b32.xlu1 %v6965_v4, %s6152_s20 }
 0x1f2   : > { %2448 = vrot.lane.b32.xlu0 %v6336_v11, %s6153_s17 }
 0x1f3   : > { %1477 = vperm.xlu1 %6043, %v1473_v8  }
 0x1f6   : > { %2446 = vrot.lane.b32.xlu0 %v6965_v4, %s6153_s17  ;;  %s6157_s17 = smov 64  }
 0x1f7   : > { %4479 = vrot.lane.b32.xlu1 %v6305_v5, %s6154_s30 }
 0x1fa   : > { %4477 = vrot.lane.b32.xlu0 %v6957_v2, %s6154_s30 }
 0x1fb   : > { %4483 = vrot.lane.b32.xlu1 %v6336_v11, %s6154_s30 }
 0x1fe   : > { %4481 = vrot.lane.b32.xlu0 %v6965_v4, %s6154_s30  ;;  %s5870_s30 = sshll.u32 %s6251_s29, 8 }
 0x1ff   : > { %4058 = vrot.lane.b32.xlu1 %v6305_v5, %s6155_s21 }
 0x202   : > { %4056 = vrot.lane.b32.xlu0 %v6957_v2, %s6155_s21 }
 0x203   : > { %4062 = vrot.lane.b32.xlu1 %v6336_v11, %s6155_s21 }
 0x206   : > { %4060 = vrot.lane.b32.xlu0 %v6965_v4, %s6155_s21 }
 0x207   : > { %4912 = vrot.lane.b32.xlu1 %v6305_v5, %s6156_s16 }
 0x20a   : > { %4910 = vrot.lane.b32.xlu0 %v6957_v2, %s6156_s16 }
 0x20b   : > { %4916 = vrot.lane.b32.xlu1 %v6336_v11, %s6156_s16 }
 0x20e   : > { %4914 = vrot.lane.b32.xlu0 %v6965_v4, %s6156_s16 }
 0x20f   : > { %1482 = vperm.xlu1 %6043, %v1474_v9  }
 0x212   : > { %1462 = vperm.xlu0 %6042, %v1454_v62  }
 0x249   : > { %v1168_v40 = vpop.xlane.xlu0 %1167 }
 0x24f   : > { %v1173_v31 = vpop.xlane.xlu1 %1172 }
 0x250   : > { %v5944_v33 = vpack.c.bf16 %v1173_v31, %v1168_v40 }
 0x251   : > { %v1212_v59 = vpop.xlane.xlu0 %1211 }
 0x252   : > { %5945 = vmatpush3.bf16.msra.mxu0 %v5944_v33 }
 0x253   : > { %v1183_v47 = vpop.xlane.xlu1 %1182  ;;  %5891 = vmatprep.subr.mxu0 %v10188_v30 }
 0x255   : > { %v1217_v51 = vpop.xlane.xlu0 %1216 }
 0x256   : > { %v5947_v49 = vpack.c.bf16 %v1217_v51, %v1212_v59  ;;  %5892 = vmatpush3.msk.msra.mxu0 %vm1174_vm6, %v1183_v47 }
 0x257   : > { %5894 = vmatmul.mubr.msk.f32.vlgmr.msra.gmra.mrb[6].mxu0 %vm1230_vm9, %v1227_v29  ;;  %v2009_v23 = vpop.permute.xlu1 %2008 }
 0x258   : > { %5948 = vmatpush3.bf16.msra.mxu1 %v5947_v49  ;;  %5896 = vmatprep.mubr.msk.f32.mxu0 %vm10076_vm14, %v10188_v30 }
 0x259   : > { %v1226_v43 = vpop.xlane.xlu0 %1225  ;;  %5906 = vmatprep.subr.mxu1 %v10188_v30 }
 0x25b   : > { %5897 = vmatmul.mubr.msk.f32.gmra.mrb[8].mxu0 %vm1230_vm9, %v1228_v21  ;;  %v2011_v6 = vpop.permute.xlu1 %2010 }
 0x25c   : > { %5907 = vmatpush3.msk.msra.mxu1 %vm1174_vm6, %v1226_v43  ;;  %v7009_v24 = vsel %vm2016_vm4, %v2009_v23, %v2011_v6  ;;  %5899 = vmatprep.mubr.msk.f32.mxu0 %vm10076_vm14, %v10188_v30  ;;  %vm4064_vm6 = vcmp.lt.s32.totalorder %v6444_v41, 126 }
 0x25d   : > { %5909 = vmatmul.mubr.msk.f32.vlgmr.msra.gmra.mrb[6].mxu1 %vm1230_vm9, %v1227_v29  ;;  %v2015_v7 = vpop.permute.xlu0 %2014  ;;  %10212 = vst [vmem:[#allocation50_spill] sm:$0xff] %v7009_v24  ;;  %2099 = vrot.lane.b32.xlu1 %v7009_v24, %s6145_s24 }
 0x25e   : > { %v7015_v1 = vsel %vm2016_vm4, %v2015_v7, %v2009_v23  ;;  %5911 = vmatprep.mubr.msk.f32.mxu1 %vm10076_vm14, %v10188_v30 }
 0x25f   : > { %10213 = vst [vmem:[#allocation51_spill] sm:$0xff] %v7015_v1  ;;  %2097 = vrot.lane.b32.xlu0 %v7015_v1, %s6145_s24  ;;  %v2013_v44 = vpop.permute.xlu1 %2012 }
 0x260   : > { %v7032_v22 = vsel %vm2016_vm4, %v2013_v44, %v2015_v7  ;;  %v7076_v8 = vsel %vm2016_vm4, %v2011_v6, %v2013_v44  ;;  %vm1727_vm4 = vcmp.lt.s32.totalorder %v6444_v41, 64 }
 0x261   : > { %5912 = vmatmul.mubr.msk.f32.gmra.mrb[8].mxu1 %vm1230_vm9, %v1228_v21  ;;  %2942 = vrot.lane.b32.xlu1 %v6488_v55, %s6145_s24  ;;  %10214 = vst [vmem:[#allocation52_spill] sm:$0xff] %v7032_v22  ;;  %10220 = vst [vmem:[#allocation58_spill] sm:$0xff] %v7076_v8 }
 0x262   : > { %5914 = vmatprep.mubr.msk.f32.mxu1 %vm10076_vm14, %v10188_v30 }
 0x263   : > { %2940 = vrot.lane.b32.xlu0 %v6518_v19, %s6145_s24  ;;  %v1586_v54 = vpop.permute.xlu1 %1585 }
 0x265   : > { %v7034_v20 = vpop.permute.xlu0 %1457  ;;  %2946 = vrot.lane.b32.xlu1 %v6633_v38, %s6145_s24 }
 0x266   : > { %10215 = vst [vmem:[#allocation53_spill] sm:$0xff] %v7034_v20 }
 0x267   : > { %2103 = vrot.lane.b32.xlu0 %v7032_v22, %s6145_s24  ;;  %v1592_v60 = vpop.permute.xlu1 %1591 }
 0x268   : > { %v7043_v17 = vsel %vm1593_vm5, %v1592_v60, %v1586_v54 }
 0x269   : > { %v1588_v3 = vpop.permute.xlu0 %1587  ;;  %10216 = vst [vmem:[#allocation54_spill] sm:$0xff] %v7043_v17 }
 0x26a   : > { %v7047_v26 = vsel %vm1593_vm5, %v1586_v54, %v1588_v3 }
 0x26b   : > { %10217 = vst [vmem:[#allocation55_spill] sm:$0xff] %v7047_v26  ;;  %1674 = vrot.lane.b32.xlu0 %v7043_v17, %s6145_s24  ;;  %1676 = vrot.lane.b32.xlu1 %v7047_v26, %s6145_s24  ;;  %v2445_v32 = vpop.permute.xlu1 %2444 }
 0x26d   : > { %v2443_v10 = vpop.permute.xlu0 %2442 }
 0x26e   : > { %v7060_v39 = vsel %vm2450_vm0, %v2443_v10, %v2445_v32 }
 0x26f   : > { %2142 = vrot.lane.b32.xlu0 %v7015_v1, %s6157_s17  ;;  %2144 = vrot.lane.b32.xlu1 %v7009_v24, %s6157_s17  ;;  %10218 = vst [vmem:[#allocation56_spill] sm:$0xff] %v7060_v39  ;;  %v1590_v25 = vpop.permute.xlu1 %1589 }
 0x270   : > { %v7080_v9 = vsel %vm1593_vm5, %v1590_v25, %v1592_v60  ;;  %v7135_v49 = vsel %vm1593_vm5, %v1588_v3, %v1590_v25  ;;  %vm4918_vm5 = vcmp.lt.s32.totalorder %v6444_v41, 124 }
 0x271   : > { %v2449_v0 = vpop.permute.xlu0 %2448  ;;  %10221 = vst [vmem:[#allocation59_spill] sm:$0xff] %v7080_v9 }
 0x272   : > { %v7064_v28 = vsel %vm2450_vm0, %v2449_v0, %v2443_v10 }
 0x273   : > { %10219 = vst [vmem:[#allocation57_spill] sm:$0xff] %v7064_v28  ;;  %2533 = vrot.lane.b32.xlu1 %v7060_v39, %s6145_s24  ;;  %2531 = vrot.lane.b32.xlu0 %v7064_v28, %s6145_s24  ;;  %v7110_v31 = vpop.permute.xlu1 %1477 }
 0x274   : > { %10224 = vst [vmem:[#allocation61_spill] sm:$0xff] %v7110_v31 }
 0x275   : > { %v2447_v62 = vpop.permute.xlu0 %2446 }
 0x276   : > { %v7088_v40 = vsel %vm2450_vm0, %v2447_v62, %v2449_v0  ;;  %v7147_v23 = vsel %vm2450_vm0, %v2445_v32, %v2447_v62  ;;  %vm3295_vm0 = vcmp.eq.s32.totalorder %v6420_v36, 4294967291 }
 0x277   : > { %2987 = vrot.lane.b32.xlu1 %v6488_v55, %s6157_s17  ;;  %2985 = vrot.lane.b32.xlu0 %v6518_v19, %s6157_s17  ;;  %10222 = vst [vmem:[#allocation60_spill] sm:$0xff] %v7088_v40  ;;  %v4480_v59 = vpop.permute.xlu1 %4479  ;;  %10227 = vst [vmem:[#allocation64_spill] sm:$0xff] %v7147_v23 }
 0x279   : > { %v4478_v33 = vpop.permute.xlu0 %4477 }
 0x27a   : > { %v7123_v51 = vsel %vm4485_vm13, %v4478_v33, %v4480_v59 }
 0x27b   : > { %2101 = vrot.lane.b32.xlu1 %v7076_v8, %s6145_s24  ;;  %1680 = vrot.lane.b32.xlu0 %v7080_v9, %s6145_s24  ;;  %10225 = vst [vmem:[#allocation62_spill] sm:$0xff] %v7123_v51  ;;  %v4484_v43 = vpop.permute.xlu1 %4483 }
 0x27c   : > { %v7159_v21 = vsel %vm4485_vm13, %v4484_v43, %v4478_v33 }
 0x27d   : > { %v4482_v47 = vpop.permute.xlu0 %4481  ;;  %10228 = vst [vmem:[#allocation65_spill] sm:$0xff] %v7159_v21 }
 0x27e   : > { %v7127_v29 = vsel %vm4485_vm13, %v4480_v59, %v4482_v47  ;;  %v7233_v63 = vsel %vm4485_vm13, %v4482_v47, %v4484_v43 }
 0x27f   : > { %2148 = vrot.lane.b32.xlu0 %v7032_v22, %s6157_s17  ;;  %2537 = vrot.lane.b32.xlu1 %v7088_v40, %s6145_s24  ;;  %10226 = vst [vmem:[#allocation63_spill] sm:$0xff] %v7127_v29  ;;  %v4059_v6 = vpop.permute.xlu1 %4058  ;;  %10234 = vst [vmem:[#allocation71_spill] sm:$0xff] %v7233_v63 }
 0x281   : > { %v4057_v7 = vpop.permute.xlu0 %4056 }
 0x282   : > { %v7184_v60 = vsel %vm4064_vm6, %v4057_v7, %v4059_v6 }
 0x283   : > { %2944 = vrot.lane.b32.xlu0 %v6638_v45, %s6145_s24  ;;  %2991 = vrot.lane.b32.xlu1 %v6633_v38, %s6157_s17  ;;  %v7174_v44 = vpop.permute.xlu1 %4062  ;;  %10229 = vst [vmem:[#allocation66_spill] sm:$0xff] %v7184_v60 }
 0x284   : > { %v7238_v18 = vsel %vm4064_vm6, %v7174_v44, %v4057_v7 }
 0x285   : > { %v7176_v54 = vpop.permute.xlu0 %4060  ;;  %10235 = vst [vmem:[#allocation72_spill] sm:$0xff] %v7238_v18 }
 0x286   : > { %v7189_v3 = vsel %vm4064_vm6, %v4059_v6, %v7176_v54 }
 0x287   : > { %1719 = vrot.lane.b32.xlu0 %v7043_v17, %s6157_s17  ;;  %1721 = vrot.lane.b32.xlu1 %v7047_v26, %s6157_s17  ;;  %10230 = vst [vmem:[#allocation67_spill] sm:$0xff] %v7189_v3  ;;  %v7195_v10 = vpop.permute.xlu1 %4912 }
 0x289   : > { %v7197_v32 = vpop.permute.xlu0 %4910 }
 0x28b   : > { %2187 = vrot.lane.b32.xlu0 %v7015_v1, %s10223_s22  ;;  %2189 = vrot.lane.b32.xlu1 %v7009_v24, %s10223_s22  ;;  %v7203_v0 = vpop.permute.xlu1 %4916 }
 0x28d   : > { %v7205_v25 = vpop.permute.xlu0 %4914 }
 0x28f   : > { %2576 = vrot.lane.b32.xlu0 %v7064_v28, %s6157_s17  ;;  %2578 = vrot.lane.b32.xlu1 %v7060_v39, %s6157_s17  ;;  %v7215_v62 = vpop.permute.xlu1 %1482 }
 0x290   : > { %10231 = vst [vmem:[#allocation68_spill] sm:$0xff] %v7215_v62 }
 0x291   : > { %v7217_v33 = vpop.permute.xlu0 %1462 }
 0x292   : > { %10232 = vst [vmem:[#allocation69_spill] sm:$0xff] %v7217_v33 }
 0x293   : > { %3030 = vrot.lane.b32.xlu0 %v6518_v19, %s10223_s22  ;;  %3032 = vrot.lane.b32.xlu1 %v6488_v55, %s10223_s22 }
 0x297   : > { %3711 = vrot.lane.b32.xlu0 %v6730_v27, %s6145_s24  ;;  %3713 = vrot.lane.b32.xlu1 %v6660_v57, %s6145_s24 }
 0x29b   : > { %4565 = vrot.lane.b32.xlu0 %v7123_v51, %s6145_s24  ;;  %4567 = vrot.lane.b32.xlu1 %v7127_v29, %s6145_s24 }
 0x29f   : > { %1678 = vrot.lane.b32.xlu0 %v7135_v49, %s6145_s24  ;;  %1725 = vrot.lane.b32.xlu1 %v7080_v9, %s6157_s17 }
 0x2a3   : > { %2146 = vrot.lane.b32.xlu0 %v7076_v8, %s6157_s17  ;;  %2193 = vrot.lane.b32.xlu1 %v7032_v22, %s10223_s22 }
 0x2a7   : > { %2535 = vrot.lane.b32.xlu0 %v7147_v23, %s6145_s24  ;;  %2582 = vrot.lane.b32.xlu1 %v7088_v40, %s6157_s17 }
 0x2ab   : > { %2989 = vrot.lane.b32.xlu0 %v6638_v45, %s6157_s17  ;;  %3036 = vrot.lane.b32.xlu1 %v6633_v38, %s10223_s22 }
 0x2af   : > { %3717 = vrot.lane.b32.xlu0 %v6780_v16, %s6145_s24  ;;  %4571 = vrot.lane.b32.xlu1 %v7159_v21, %s6145_s24 }
 0x2b3   : > { %1765 = vrot.lane.b32.xlu0 %v7043_v17, %s10223_s22  ;;  %1767 = vrot.lane.b32.xlu1 %v7047_v26, %s10223_s22 }
 0x2b7   : > { %2621 = vrot.lane.b32.xlu0 %v7064_v28, %s10223_s22  ;;  %2623 = vrot.lane.b32.xlu1 %v7060_v39, %s10223_s22 }
 0x2bb   : > { %3756 = vrot.lane.b32.xlu0 %v6730_v27, %s6157_s17  ;;  %3758 = vrot.lane.b32.xlu1 %v6660_v57, %s6157_s17 }
 0x2bf   : > { %4144 = vrot.lane.b32.xlu0 %v7184_v60, %s6145_s24  ;;  %4146 = vrot.lane.b32.xlu1 %v7189_v3, %s6145_s24 }
 0x2c3   : > { %4610 = vrot.lane.b32.xlu0 %v7123_v51, %s6157_s17  ;;  %4612 = vrot.lane.b32.xlu1 %v7127_v29, %s6157_s17 }
 0x2c7   : > { %1723 = vrot.lane.b32.xlu0 %v7135_v49, %s6157_s17  ;;  %1771 = vrot.lane.b32.xlu1 %v7080_v9, %s10223_s22 }
 0x2cb   : > { %2191 = vrot.lane.b32.xlu0 %v7076_v8, %s10223_s22  ;;  %2580 = vrot.lane.b32.xlu1 %v7147_v23, %s6157_s17 }
 0x2cf   : > { %2627 = vrot.lane.b32.xlu0 %v7088_v40, %s10223_s22  ;;  %3034 = vrot.lane.b32.xlu1 %v6638_v45, %s10223_s22  ;;  %v7223_v59 = vpop.permute.xlu1 %2099 }
 0x2d1   : > { %v7225_v6 = vpop.permute.xlu0 %2097 }
 0x2d2   : > { %10233 = vst [vmem:[#allocation70_spill] sm:$0xff] %v7225_v6 }
 0x2d3   : > { %3715 = vrot.lane.b32.xlu0 %v6776_v50, %s6145_s24  ;;  %3762 = vrot.lane.b32.xlu1 %v6780_v16, %s6157_s17  ;;  %v7240_v38 = vpop.permute.xlu1 %2942 }
 0x2d4   : > { %10236 = vst [vmem:[#allocation73_spill] sm:$0xff] %v7240_v38 }
 0x2d5   : > { %v7242_v45 = vpop.permute.xlu0 %2940 }
 0x2d6   : > { %10237 = vst [vmem:[#allocation74_spill] sm:$0xff] %v7242_v45 }
 0x2d7   : > { %4569 = vrot.lane.b32.xlu1 %v7233_v63, %s6145_s24  ;;  %4150 = vrot.lane.b32.xlu0 %v7238_v18, %s6145_s24  ;;  %v7248_v55 = vpop.permute.xlu1 %2946 }
 0x2d8   : > { %10238 = vst [vmem:[#allocation75_spill] sm:$0xff] %v7248_v55 }
 0x2d9   : > { %v7250_v19 = vpop.permute.xlu0 %2103 }
 0x2da   : > { %10239 = vst [vmem:[#allocation76_spill] sm:$0xff] %v7250_v19 }
 0x2dd   : > { %v7252_v47 = vpop.permute.xlu1 %1676  ;;  %v7254_v43 = vpop.permute.xlu0 %1674 }
 0x2de   : > { %10240 = vst [vmem:[#allocation77_spill] sm:$0xff] %v7252_v47  ;;  %10241 = vst [vmem:[#allocation78_spill] sm:$0xff] %v7254_v43 }
 0x2e1   : > { %v7256_v7 = vpop.permute.xlu1 %2144  ;;  %v7258_v22 = vpop.permute.xlu0 %2142 }
 0x2e2   : > { %10242 = vst [vmem:[#allocation79_spill] sm:$0xff] %v7256_v7  ;;  %10243 = vst [vmem:[#allocation80_spill] sm:$0xff] %v7258_v22 }
 0x2e5   : > { %v7260_v8 = vpop.permute.xlu1 %2533  ;;  %v7262_v24 = vpop.permute.xlu0 %2531 }
 0x2e6   : > { %10244 = vst [vmem:[#allocation81_spill] sm:$0xff] %v7260_v8  ;;  %10245 = vst [vmem:[#allocation82_spill] sm:$0xff] %v7262_v24 }
 0x2e9   : > { %v7264_v1 = vpop.permute.xlu1 %2987  ;;  %v7266_v30 = vpop.permute.xlu0 %2985 }
 0x2ea   : > { %10246 = vst [vmem:[#allocation83_spill] sm:$0xff] %v7264_v1  ;;  %10247 = vst [vmem:[#allocation84_spill] sm:$0xff] %v7266_v30 }
 0x2ed   : > { %v7268_v39 = vpop.permute.xlu1 %2101  ;;  %v7270_v28 = vpop.permute.xlu0 %1680 }
 0x2ee   : > { %10248 = vst [vmem:[#allocation85_spill] sm:$0xff] %v7268_v39  ;;  %10249 = vst [vmem:[#allocation86_spill] sm:$0xff] %v7270_v28 }
 0x2f1   : > { %v7272_v40 = vpop.permute.xlu1 %2537  ;;  %v7274_v26 = vpop.permute.xlu0 %2148 }
 0x2f2   : > { %10250 = vst [vmem:[#allocation87_spill] sm:$0xff] %v7272_v40  ;;  %10251 = vst [vmem:[#allocation88_spill] sm:$0xff] %v7274_v26 }
 0x2f5   : > { %v7276_v17 = vpop.permute.xlu1 %2991  ;;  %v7278_v9 = vpop.permute.xlu0 %2944 }
 0x2f6   : > { %10252 = vst [vmem:[#allocation89_spill] sm:$0xff] %v7276_v17  ;;  %10253 = vst [vmem:[#allocation90_spill] sm:$0xff] %v7278_v9 }
 0x2f9   : > { %v7281_v62 = vpop.permute.xlu1 %1721  ;;  %v1720_v33 = vpop.permute.xlu0 %1719 }
 0x2fa   : > { %v7286_v30 = vsel %vm1727_vm4, %v1720_v33, %v7281_v62 }
 0x2fb   : > { %10254 = vst [vmem:[#allocation91_spill] sm:$0xff] %v7286_v30 }
 0x2fd   : > { %v7288_v31 = vpop.permute.xlu1 %2189  ;;  %v2188_v58 = vpop.permute.xlu0 %2187 }
 0x2fe   : > { %v7293_v61 = vsel %vm515_vm12, %v2188_v58, %v7288_v31 }
 0x2ff   : > { %10255 = vst [vmem:[#allocation92_spill] sm:$0xff] %v7293_v61 }
 0x301   : > { %v7295_v20 = vpop.permute.xlu1 %2578  ;;  %v2577_v9 = vpop.permute.xlu0 %2576 }
 0x302   : > { %v7300_v39 = vsel %vm1727_vm4, %v2577_v9, %v7295_v20 }
 0x303   : > { %10256 = vst [vmem:[#allocation93_spill] sm:$0xff] %v7300_v39 }
 0x305   : > { %v7302_v24 = vpop.permute.xlu1 %3032  ;;  %v3031_v8 = vpop.permute.xlu0 %3030 }
 0x306   : > { %v7307_v30 = vsel %vm515_vm12, %v3031_v8, %v7302_v24 }
 0x307   : > { %10257 = vst [vmem:[#allocation94_spill] sm:$0xff] %v7307_v30 }
 0x309   : > { %v7309_v22 = vpop.permute.xlu1 %3713  ;;  %v3712_v7 = vpop.permute.xlu0 %3711 }
 0x30a   : > { %v7314_v61 = vsel %vm811_vm11, %v3712_v7, %v7309_v22 }
 0x30b   : > { %10258 = vst [vmem:[#allocation95_spill] sm:$0xff] %v7314_v61 }
 0x30d   : > { %v7316_v43 = vpop.permute.xlu1 %4567  ;;  %v4566_v47 = vpop.permute.xlu0 %4565 }
 0x30e   : > { %10259 = vst [vmem:[#allocation96_spill] sm:$0xff] %v7316_v43  ;;  %v7321_v39 = vsel %vm811_vm11, %v4566_v47, %v7316_v43 }
 0x30f   : > { %10260 = vst [vmem:[#allocation97_spill] sm:$0xff] %v7321_v39 }
 0x311   : > { %v1726_v19 = vpop.permute.xlu1 %1725  ;;  %v7323_v55 = vpop.permute.xlu0 %1678 }
 0x312   : > { %10261 = vst [vmem:[#allocation98_spill] sm:$0xff] %v7323_v55  ;;  %v7327_v30 = vsel %vm1727_vm4, %v1726_v19, %v1720_v33  ;;  %v7333_v61 = vsel %vm811_vm11, %v7323_v55, %v7270_v28 }
 0x313   : > { %10262 = vst [vmem:[#allocation99_spill] sm:$0xff] %v7327_v30  ;;  %10263 = vst [vmem:[#allocation100_spill] sm:$0xff] %v7333_v61 }
 0x315   : > { %v2194_v45 = vpop.permute.xlu1 %2193  ;;  %v7335_v38 = vpop.permute.xlu0 %2146 }
 0x316   : > { %10264 = vst [vmem:[#allocation101_spill] sm:$0xff] %v7335_v38  ;;  %v7339_v43 = vsel %vm515_vm12, %v2194_v45, %v2188_v58  ;;  %v7345_v39 = vsel %vm1727_vm4, %v7335_v38, %v7274_v26 }
 0x317   : > { %10265 = vst [vmem:[#allocation102_spill] sm:$0xff] %v7339_v43  ;;  %10266 = vst [vmem:[#allocation103_spill] sm:$0xff] %v7345_v39 }
 0x319   : > { %v2583_v33 = vpop.permute.xlu1 %2582  ;;  %v7347_v30 = vpop.permute.xlu0 %2535 }
 0x31a   : > { %10267 = vst [vmem:[#allocation104_spill] sm:$0xff] %v7347_v30  ;;  %v7351_v55 = vsel %vm1727_vm4, %v2583_v33, %v2577_v9  ;;  %v7357_v61 = vsel %vm811_vm11, %v7347_v30, %v7272_v40 }
 0x31b   : > { %10268 = vst [vmem:[#allocation105_spill] sm:$0xff] %v7351_v55  ;;  %10269 = vst [vmem:[#allocation106_spill] sm:$0xff] %v7357_v61 }
 0x31d   : > { %v3037_v58 = vpop.permute.xlu1 %3036  ;;  %v2990_v43 = vpop.permute.xlu0 %2989 }
 0x31e   : > { %v7361_v28 = vsel %vm515_vm12, %v3037_v58, %v3031_v8  ;;  %v7366_v26 = vsel %vm1727_vm4, %v2990_v43, %v7276_v17  ;;  %v7371_v9 = vsel %vm1727_vm4, %v7264_v1, %v2990_v43 }
 0x31f   : > { %10270 = vst [vmem:[#allocation107_spill] sm:$0xff] %v7361_v28  ;;  %10271 = vst [vmem:[#allocation108_spill] sm:$0xff] %v7366_v26 }
 0x320   : > { %10272 = vst [vmem:[#allocation109_spill] sm:$0xff] %v7371_v9 }
 0x321   : > { %v7373_v39 = vpop.permute.xlu1 %4571  ;;  %v3718_v55 = vpop.permute.xlu0 %3717 }
 0x322   : > { %10273 = vst [vmem:[#allocation110_spill] sm:$0xff] %v7373_v39  ;;  %v7378_v61 = vsel %vm811_vm11, %v7373_v39, %v4566_v47  ;;  %v7382_v8 = vsel %vm811_vm11, %v3718_v55, %v3712_v7 }
 0x323   : > { %10274 = vst [vmem:[#allocation111_spill] sm:$0xff] %v7378_v61  ;;  %10275 = vst [vmem:[#allocation112_spill] sm:$0xff] %v7382_v8 }
 0x325   : > { %v7384_v28 = vpop.permute.xlu1 %1767  ;;  %v7386_v26 = vpop.permute.xlu0 %1765 }
 0x326   : > { %10276 = vst [vmem:[#allocation113_spill] sm:$0xff] %v7384_v28  ;;  %10277 = vst [vmem:[#allocation114_spill] sm:$0xff] %v7386_v26 }
 0x329   : > { %v7388_v17 = vpop.permute.xlu1 %2623  ;;  %v7390_v43 = vpop.permute.xlu0 %2621 }
 0x32a   : > { %10278 = vst [vmem:[#allocation115_spill] sm:$0xff] %v7388_v17  ;;  %10279 = vst [vmem:[#allocation116_spill] sm:$0xff] %v7390_v43  ;;  %v1309_v9 = vpop.f32.mrb[6].mxu0 }
 0x32b   : > { %v1323_v1 = vmul.f32 0.001953125, %v1309_v9  ;;  %v5895_v30 = vpop.f32.mrb[7].mxu0 }
 0x32d   : > { %v7392_v38 = vpop.permute.xlu1 %3758  ;;  %v7394_v40 = vpop.permute.xlu0 %3756  ;;  %1419 = vperm.xlu1 %6043, %v1323_v1   ;;  %v1409_v47 = vmul.f32 %v1323_v1, %v1323_v1 }
 0x32e   : > { %10280 = vst [vmem:[#allocation117_spill] sm:$0xff] %v7392_v38  ;;  %10281 = vst [vmem:[#allocation118_spill] sm:$0xff] %v7394_v40  ;;  %v1314_v61 = vpop.f32.mrb[8].mxu0 }
 0x32f   : > { %v1324_v7 = vmul.f32 0.001953125, %v1314_v61  ;;  %v5898_v39 = vpop.f32.mrb[9].mxu0 }
 0x330   : > { %v1394_v8 = vpop.f32.mrb[6].mxu1 }
 0x331   : > { %v1407_v28 = vmul.f32 0.001953125, %v1394_v8  ;;  %v7396_v6 = vpop.permute.xlu1 %4146  ;;  %v7398_v26 = vpop.permute.xlu0 %4144  ;;  %1424 = vperm.xlu0 %6042, %v1324_v7   ;;  %3364 = vrot.lane.b32.xlu1 %v6957_v2, %s6157_s17  ;;  %v1410_v30 = vmul.f32 %v1324_v7, %v1324_v7 }
 0x332   : > { %10282 = vst [vmem:[#allocation119_spill] sm:$0xff] %v7396_v6  ;;  %10283 = vst [vmem:[#allocation120_spill] sm:$0xff] %v7398_v26  ;;  %v5910_v17 = vpop.f32.mrb[7].mxu1 }
 0x333   : > { %v1411_v9 = vsub.f32 %v1407_v28, %v1409_v47 }
 0x334   : > { %v1399_v38 = vpop.f32.mrb[8].mxu1 }
 0x335   : > { %v1413_v40 = vadd.f32 1e-05, %v1411_v9  ;;  %v1408_v43 = vmul.f32 0.001953125, %v1399_v38  ;;  %v7402_v1 = vpop.permute.xlu1 %4612  ;;  %v7404_v61 = vpop.permute.xlu0 %4610  ;;  %3801 = vrot.lane.b32.xlu1 %v6730_v27, %s10223_s22 }
 0x336   : > { %10284 = vst [vmem:[#allocation121_spill] sm:$0xff] %v7402_v1  ;;  %v5913_v39 = vpop.f32.mrb[9].mxu1 }
 0x337   : > { %6046 = vrsqrt.f32 %v1413_v40  ;;  %v1412_v8 = vsub.f32 %v1408_v43, %v1410_v30 }
 0x339   : > { %v1414_v17 = vadd.f32 1e-05, %v1412_v8  ;;  %v7408_v26 = vpop.permute.xlu1 %1771  ;;  %v1724_v6 = vpop.permute.xlu0 %1723  ;;  %4189 = vrot.lane.b32.xlu1 %v7184_v60, %s6157_s17  ;;  %v3296_v8 = vsel %vm3295_vm0, %v6418_v35, 0.0 }
 0x33a   : > { %v7412_v28 = vsel %vm1727_vm4, %v1724_v6, %v1726_v19  ;;  %v7417_v38 = vsel %vm1727_vm4, %v7281_v62, %v1724_v6 }
 0x33b   : > { %6048 = vrsqrt.f32 %v1414_v17 }
 0x33d   : > { %v2581_v47 = vpop.permute.xlu1 %2580  ;;  %v2192_v40 = vpop.permute.xlu0 %2191 }
 0x33e   : > { %v7423_v43 = vsel %vm1727_vm4, %v2581_v47, %v2583_v33  ;;  %v7428_v19 = vsel %vm1727_vm4, %v7295_v20, %v2581_v47  ;;  %v7432_v7 = vsel %vm515_vm12, %v2192_v40, %v2194_v45  ;;  %v7437_v62 = vsel %vm515_vm12, %v7288_v31, %v2192_v40 }
 0x33f   : > { %10285 = vst [vmem:[#allocation122_spill] sm:$0xff] %v7423_v43  ;;  %10286 = vst [vmem:[#allocation123_spill] sm:$0xff] %v7428_v19  ;;  %v6158_v40 = vmov 1966171168   ;;  %v10309_v19 = vld [vmem:[#allocation29_spill] sm:$0xff] }
 0x340   : > { %10287 = vst [vmem:[#allocation124_spill] sm:$0xff] %v7432_v7  ;;  %10288 = vst [vmem:[#allocation125_spill] sm:$0xff] %v7437_v62  ;;  %v3571_v7 = vsel %vm3570_vm15, %v6425_v37, 0.0  ;;  %v3479_v62 = vrot.slane %v6642_v46, %v6339_v12 }
 0x341   : > { %v6047_v6 = vpop.eup %6046  ;;  %v3035_v30 = vpop.permute.xlu1 %3034 }
 0x342   : > { %v7439_v9 = vpop.permute.xlu0 %2627  ;;  %1437 = vperm.xlu0 %6042, %v6047_v6   ;;  %v7443_v33 = vsel %vm515_vm12, %v3035_v30, %v3037_v58  ;;  %v7448_v20 = vsel %vm515_vm12, %v7302_v24, %v3035_v30  ;;  %v7506_v24 = vsel %vm4918_vm5, %v7197_v32, %v7195_v10  ;;  %v1605_v6 = vunpack.c.l.s4 %v6158_v40 }
 0x343   : > { %10289 = vst [vmem:[#allocation126_spill] sm:$0xff] %v7439_v9  ;;  %10290 = vst [vmem:[#allocation127_spill] sm:$0xff] %v7443_v33  ;;  %v3335_v30 = vrot.slane %v6627_v34, %v6339_v12  ;;  %v3545_v34 = vrot.slane %v6477_v53, %v6339_v12 }
 0x344   : > { %10291 = vst [vmem:[#allocation128_spill] sm:$0xff] %v7448_v20  ;;  %10295 = vst [vmem:[#allocation132_spill] sm:$0xff] %v7506_v24  ;;  %v3572_v20 = vsel %vm3537_vm10, %v6418_v35, 0.0  ;;  %v1606_v40 = vunpack.c.0.s8 %v1605_v6  ;;  %v7596_v6 = vsel %vm3405_vm2, %v6418_v35, 0.0  ;;  %vm10338_vm2 = vcmp.eq.s32.totalorder %v6420_v36, 4294967294 }
 0x345   : > { %v6049_v45 = vpop.eup %6048  ;;  %vm10359_vm10 = vcmp.eq.s32.totalorder %v6420_v36, 2 }
 0x346   : > { %v3716_v39 = vpop.permute.xlu0 %3715  ;;  %4616 = vrot.lane.b32.xlu0 %v7159_v21, %s6157_s17  ;;  %1442 = vperm.xlu1 %6043, %v6049_v45  }
 0x347   : > { %v7454_v31 = vsel %vm811_vm11, %v3716_v39, %v3718_v55  ;;  %v7459_v58 = vsel %vm811_vm11, %v7309_v22, %v3716_v39  ;;  %v7489_v55 = vsel %vm4064_vm6, %v7176_v54, %v7174_v44  ;;  %v7522_v22 = vsel %vm4918_vm5, %v7195_v10, %v7205_v25  ;;  %v5352_v10 = vld [vmem:[%s9871_s7] sm:$0xf] }
 0x348   : > { %10292 = vst [vmem:[#allocation129_spill] sm:$0xff] %v7454_v31  ;;  %10293 = vst [vmem:[#allocation130_spill] sm:$0xff] %v7459_v58  ;;  %v7526_v44 = vsel %vm4918_vm5, %v7205_v25, %v7203_v0  ;;  %v7534_v54 = vsel %vm4918_vm5, %v7203_v0, %v7197_v32  ;;  %v7555_v32 = vpop.permute.xlu1 %3762  ;;  %v3294_v25 = vsel %vm3293_vm8, %v6425_v37, 0.0  ;;  %v10351_v31 = vld [vmem:[#allocation115_spill] sm:$0xff]  ;;  %vm10360_vm8 = vcmp.eq.s32.totalorder %v6420_v36, 1 }
 0x349   : > { %10294 = vst [vmem:[#allocation131_spill] sm:$0xff] %v7489_v55  ;;  %10296 = vst [vmem:[#allocation133_spill] sm:$0xff] %v7522_v22  ;;  %v3297_v47 = vadd.f32 %v3296_v8, %v3294_v25  ;;  %v3413_v25 = vrot.slane %v6446_v42, %v6339_v12 }
 0x34a   : > { %3366 = vrot.lane.b32.xlu0 %v6305_v5, %s6157_s17  ;;  %4655 = vrot.lane.b32.xlu1 %v7123_v51, %s10223_s22  ;;  %10297 = vst [vmem:[#allocation134_spill] sm:$0xff] %v7526_v44  ;;  %10298 = vst [vmem:[#allocation135_spill] sm:$0xff] %v7534_v54  ;;  %v7603_v46 = vpop.permute.xlu0 %4150 }
 0x34b   : > { %10299 = vst [vmem:[#allocation136_spill] sm:$0xff] %v7555_v32  ;;  %v3306_v45 = vrot.slane %v3297_v47, %v6346_v13  ;;  %v3302_v39 = vrot.slane %v3297_v47, %v6339_v12  ;;  %v3314_v33 = vrot.slane %v3297_v47, %v6352_v15  ;;  %10300 = vst [vmem:[#allocation137_spill] sm:$0xff] %v7603_v46 }
 0x34c   : > { %v7558_v0 = vpop.permute.xlu1 %4569 }
 0x34d   : > { %v3320_v42 = vmul.f32 %v6957_v2, %v3306_v45  ;;  %v3322_v53 = vmul.f32 %v6965_v4, %v3314_v33  ;;  %v7614_v33 = vadd.f32 %v3572_v20, %v3571_v7  ;;  %v10312_v7 = vld [vmem:[#allocation73_spill] sm:$0xff]  ;;  %v10313_v20 = vld [vmem:[#allocation74_spill] sm:$0xff] }
 0x34e   : > { %3803 = vrot.lane.b32.xlu0 %v6660_v57, %s10223_s22  ;;  %1769 = vrot.lane.b32.xlu1 %v7135_v49, %s10223_s22 }
 0x352   : > { %4191 = vrot.lane.b32.xlu0 %v7189_v3, %s6157_s17  ;;  %3370 = vrot.lane.b32.xlu1 %v6336_v11, %s6157_s17 }
 0x356   : > { %4657 = vrot.lane.b32.xlu0 %v7127_v29, %s10223_s22  ;;  %3807 = vrot.lane.b32.xlu1 %v6780_v16, %s10223_s22  ;;  %v10364_v16 = vld [vmem:[#allocation48_spill] sm:$0xff] }
 0x35a   : > { %2625 = vrot.lane.b32.xlu0 %v7147_v23, %s10223_s22  ;;  %4195 = vrot.lane.b32.xlu1 %v7238_v18, %s6157_s17  ;;  %v7625_v23 = vadd.f32 %v10309_v19, %v3320_v42  ;;  %v10321_v42 = vld [vmem:[#allocation76_spill] sm:$0xff] }
 0x35e   : > { %3760 = vrot.lane.b32.xlu0 %v6776_v50, %s6157_s17  ;;  %4661 = vrot.lane.b32.xlu1 %v7159_v21, %s10223_s22 }
 0x362   : > { %4236 = vrot.lane.b32.xlu1 %v7189_v3, %s10223_s22  ;;  %4148 = vrot.lane.b32.xlu0 %v7489_v55, %s6145_s24  ;;  %v10348_v3 = vld [vmem:[#allocation113_spill] sm:$0xff] }
 0x366   : > { %3805 = vrot.lane.b32.xlu1 %v6776_v50, %s10223_s22  ;;  %4614 = vrot.lane.b32.xlu0 %v7233_v63, %s6157_s17 }
 0x36a   : > { %4240 = vrot.lane.b32.xlu1 %v7238_v18, %s10223_s22  ;;  %4234 = vrot.lane.b32.xlu0 %v7184_v60, %s10223_s22 }
 0x36e   : > { %3368 = vrot.lane.b32.xlu0 %v6965_v4, %s6157_s17  ;;  %4998 = vrot.lane.b32.xlu1 %v7506_v24, %s6145_s24 }
 0x372   : > { %4193 = vrot.lane.b32.xlu0 %v7489_v55, %s6157_s17  ;;  %4238 = vrot.lane.b32.xlu1 %v7489_v55, %s10223_s22  ;;  %v10346_v55 = vld [vmem:[#allocation104_spill] sm:$0xff] }
 0x376   : > { %4659 = vrot.lane.b32.xlu0 %v7233_v63, %s10223_s22  ;;  %5043 = vrot.lane.b32.xlu1 %v7506_v24, %s6157_s17 }
 0x37a   : > { %5000 = vrot.lane.b32.xlu0 %v7522_v22, %s6145_s24  ;;  %5002 = vrot.lane.b32.xlu1 %v7526_v44, %s6145_s24 }
 0x37e   : > { %5004 = vrot.lane.b32.xlu0 %v7534_v54, %s6145_s24  ;;  %5088 = vrot.lane.b32.xlu1 %v7506_v24, %s10223_s22  ;;  %s431_s24 = sand.u32 1, %s6129_s26  }
 0x37f   : > { %s5833_s23 = sshll.u32 %s431_s24, 4  ;;  %s5756_s29 = scalar_lea.sflag [#allocation5], %s431_s24 }
 0x380   : > { %s433_s21 = scalar_lea.vmem [#allocation4], %s5833_s23  ;;  %s6159_s23 = smov [#allocation4]  }
 0x381   : > { %s5770_s16 = sshll.u32 %s433_s21, 4  ;;  %s6079_s0 = sshll.u32 %s6159_s23, 4  ;;  %s9822_s16 = int_to_ptr.vmem [resolvable:$true] %s5770_s16  ;;  %s6080_s0 = int_to_ptr.vmem [resolvable:$false] %s6079_s0 }
 0x382   : > { %5047 = vrot.lane.b32.xlu1 %v7526_v44, %s6157_s17  ;;  %5045 = vrot.lane.b32.xlu0 %v7522_v22, %s6157_s17  ;;  %s6081_s20 = scalar_lea.vmem %s6080_s0, 512  ;;  %p6082_p0 = scmp.lt.s32.totalorder %s9822_s16, %s6080_s0 }
 0x386   : > { %5092 = vrot.lane.b32.xlu1 %v7526_v44, %s10223_s22  ;;  %5049 = vrot.lane.b32.xlu0 %v7534_v54, %s6157_s17  ;;  %v3352_v44 = vmul.f32 %v3335_v30, %v6806_v52  ;;  %v7606_v52 = vmul.f32 %v3545_v34, %v6493_v56  ;;  %v10301_v30 = vld [vmem:[#allocation15_spill] sm:$0xff]  ;;  %s9820_s17 = scalar_lea.hbm %s9877_s13, %s5870_s30 }
 0x387   : > { %v7609_v45 = vmul.f32 %v3413_v25, %v10301_v30  ;;  %v10310_v25 = vld [vmem:[#allocation70_spill] sm:$0xff] }
 0x388   : > { %v7633_v34 = vsel %vm811_vm11, %v10310_v25, %v7223_v59  ;;  %v7657_v30 = vsel %vm811_vm11, %v10321_v42, %v10310_v25  ;;  %v10331_v25 = vld [vmem:[#allocation85_spill] sm:$0xff] }
 0x389   : > { %10311 = vst [vmem:[#allocation29_spill] sm:$0xff] %v7633_v34  ;;  %10322 = vst [vmem:[#allocation76_spill] sm:$0xff] %v7657_v30  ;;  %v7687_v30 = vsel %vm811_vm11, %v7223_v59, %v10331_v25  ;;  %v10335_v34 = vld [vmem:[#allocation87_spill] sm:$0xff]  ;;  %v3361_v59 = vsel %vm10338_vm2, %v6425_v37, 0.0 }
 0x38a   : > { %5090 = vrot.lane.b32.xlu0 %v7522_v22, %s10223_s22 }
 0x38e   : > { %5094 = vrot.lane.b32.xlu0 %v7534_v54, %s10223_s22  ;;  %v3319_v54 = vmul.f32 %v3302_v39, %v6336_v11  ;;  %v10302_v39 = vld [vmem:[#allocation9_spill] sm:$0xff]  ;;  %v10307_v11 = vld [vmem:[#allocation27_spill] sm:$0xff]  ;;  %s6075_s22 = scalar_lea.vmem %s9822_s16, 256 }
 0x38f   : > { %v7612_v4 = vsub.s32 %v1606_v40, %v10302_v39  ;;  %10304 = vst [vmem:[#allocation9_spill] sm:$0xff] %v7614_v33  ;;  %v7620_v63 = vmul.f32 %v3479_v62, %v10307_v11  ;;  %v7639_v40 = vsel %vm811_vm11, %v10313_v20, %v10312_v7  ;;  %v10315_v11 = vld [vmem:[#allocation25_spill] sm:$0xff]  ;;  %p6076_p11 = scmp.ne.s32.totalorder %s9822_s16, %s6075_s22  ;;  %p6083_p1 = scmp.lt.s32.totalorder %s6081_s20, %s6075_s22 }
 0x390   : > { %v7627_v56 = vadd.f32 %v3352_v44, %v3319_v54  ;;  %10314 = vst [vmem:[#allocation70_spill] sm:$0xff] %v7639_v40  ;;  %v10319_v44 = vld [vmem:[#allocation75_spill] sm:$0xff]  ;;  %v10323_v39 = vld [vmem:[#allocation77_spill] sm:$0xff]  ;;  %v10329_v40 = vld [vmem:[#allocation82_spill] sm:$0xff] }
 0x391   : > { %10303 = vst [vmem:[#allocation15_spill] sm:$0xff] %v7612_v4  ;;  %v7651_v54 = vsel %vm811_vm11, %v10319_v44, %v10313_v20  ;;  %v7681_v44 = vsel %vm811_vm11, %v10331_v25, %v10321_v42  ;;  %v10337_v42 = vld [vmem:[#allocation98_spill] sm:$0xff]  ;;  %p6077_p12 = pnand %p6076_p11, %p6268_p5  ;;  %p6084_p2 = por %p6083_p1, %p6082_p0 }
 0x392   : > { %5355 = vperm.xlu0 %6042, %v5352_v10   ;;  %v3310_v10 = vrot.slane %v3297_v47, %v6349_v14  ;;  %v3611_v47 = vrot.slane %v6676_v48, %v6339_v12  ;;  %v7601_v48 = vsel %vm3438_vm7, %v6425_v37, 0.0  ;;  %vm10339_vm7 = vcmp.eq.s32.totalorder %v6420_v36, 4294967293 }
 0x393   : > { %p6078_p13 = pneg %p6077_p12 }
 0x394   : > { %v3321_v22 = vmul.f32 %v3310_v10, %v6305_v5  ;;  %v10305_v10 = vld [vmem:[#allocation24_spill] sm:$0xff] }
 0x395   : > { %v7617_v24 = vmul.f32 %v3611_v47, %v10305_v10  ;;  %v10317_v47 = vld [vmem:[#allocation33_spill] sm:$0xff]  ;;  %v10324_v10 = vld [vmem:[#allocation78_spill] sm:$0xff]  ;;  %p6085_p3 = pnand %p6084_p2, %p6078_p13 }
 0x396   : > { %v7642_v62 = vadd.f32 %v10315_v11, %v3321_v22  ;;  %v7645_v19 = vadd.f32 %v10317_v47, %v3322_v53  ;;  %10320 = vst [vmem:[#allocation33_spill] sm:$0xff] %v7651_v54  ;;  %v7663_v22 = vsel %vm811_vm11, %v10324_v10, %v10323_v39  ;;  %v10325_v53 = vld [vmem:[#allocation79_spill] sm:$0xff]  ;;  %v10326_v11 = vld [vmem:[#allocation80_spill] sm:$0xff]  ;;  %v10328_v54 = vld [vmem:[#allocation81_spill] sm:$0xff] }
 0x397   : > { %10306 = vst [vmem:[#allocation24_spill] sm:$0xff] %v7617_v24  ;;  %v7669_v47 = vsel %vm1727_vm4, %v10326_v11, %v10325_v53  ;;  %v7675_v7 = vsel %vm811_vm11, %v10329_v40, %v10328_v54  ;;  %10332 = vst [vmem:[#allocation79_spill] sm:$0xff] %v7681_v44  ;;  %v10334_v11 = vld [vmem:[#allocation86_spill] sm:$0xff]  ;;  %v7705_v44 = vsel %vm811_vm11, %v10323_v39, %v10337_v42  ;;  %v10343_v39 = vld [vmem:[#allocation45_spill] sm:$0xff] }
 0x398   : > { %10316 = vst [vmem:[#allocation74_spill] sm:$0xff] %v7642_v62  ;;  %10318 = vst [vmem:[#allocation25_spill] sm:$0xff] %v7645_v19  ;;  %v7699_v62 = vsel %vm811_vm11, %v10335_v34, %v10329_v40  ;;  %v10341_v34 = vld [vmem:[#allocation42_spill] sm:$0xff]  ;;  %v10365_v24 = vld [vmem:[#allocation49_spill] sm:$0xff] }
 0x399   : > { %10327 = vst [vmem:[#allocation77_spill] sm:$0xff] %v7669_v47  ;;  %10330 = vst [vmem:[#allocation78_spill] sm:$0xff] %v7675_v7  ;;  %v7693_v47 = vsel %vm811_vm11, %v10334_v11, %v10324_v10  ;;  %v3362_v10 = vsel %vm10339_vm7, %v6418_v35, 0.0  ;;  %v10340_v11 = vld [vmem:[#allocation41_spill] sm:$0xff] }
 0x39a   : > { %10333 = vst [vmem:[#allocation81_spill] sm:$0xff] %v7687_v30  ;;  %10336 = vst [vmem:[#allocation82_spill] sm:$0xff] %v7699_v62  ;;  %v10342_v30 = vld [vmem:[#allocation43_spill] sm:$0xff]  ;;  %v10344_v7 = vld [vmem:[#allocation101_spill] sm:$0xff]  ;;  %v7753_v51 = vadd.f32 %v3362_v10, %v3361_v59 }
 0x39b   : > { %v7725_v62 = vsel %vm1727_vm4, %v10325_v53, %v10344_v7  ;;  %v10363_v59 = vld [vmem:[#allocation47_spill] sm:$0xff] }
 0x39c   : > { %10345 = vst [vmem:[#allocation85_spill] sm:$0xff] %v7725_v62  ;;  %10358 = vst [vmem:[#allocation43_spill] sm:$0xff] %v7753_v51 }
 0x3ac   : > { %v7564_v17 = vpop.permute.xlu1 %1419 }
 0x3ad   : > { %v1427_v25 = vsub.f32 %v10340_v11, %v7564_v17  ;;  %v1428_v40 = vsub.f32 %v10341_v34, %v7564_v17  ;;  %v1429_v19 = vsub.f32 %v10342_v30, %v7564_v17  ;;  %v1430_v42 = vsub.f32 %v10343_v39, %v7564_v17  ;;  %v10349_v34 = vld [vmem:[#allocation114_spill] sm:$0xff]  ;;  %v10352_v17 = vld [vmem:[#allocation116_spill] sm:$0xff] }
 0x3ae   : > { %v7731_v11 = vsel %vm811_vm11, %v10328_v54, %v10346_v55  ;;  %v7737_v30 = vsel %vm515_vm12, %v10349_v34, %v10348_v3  ;;  %v7743_v39 = vsel %vm515_vm12, %v10352_v17, %v10351_v31  ;;  %v10355_v54 = vld [vmem:[#allocation117_spill] sm:$0xff]  ;;  %v3505_v31 = vsel %vm10359_vm10, %v6425_v37, 0.0 }
 0x3af   : > { %10347 = vst [vmem:[#allocation86_spill] sm:$0xff] %v7731_v11  ;;  %10350 = vst [vmem:[#allocation87_spill] sm:$0xff] %v7737_v30  ;;  %v10356_v11 = vld [vmem:[#allocation118_spill] sm:$0xff]  ;;  %v10369_v30 = vld [vmem:[#allocation120_spill] sm:$0xff] }
 0x3b0   : > { %v7577_v8 = vpop.permute.xlu1 %3364  ;;  %v1425_v20 = vpop.permute.xlu0 %1424  ;;  %10353 = vst [vmem:[#allocation98_spill] sm:$0xff] %v7743_v39  ;;  %v7751_v29 = vsel %vm1727_vm4, %v10356_v11, %v10355_v54  ;;  %v3506_v39 = vsel %vm10360_vm8, %v6418_v35, 0.0  ;;  %v10362_v54 = vld [vmem:[#allocation46_spill] sm:$0xff]  ;;  %v10367_v35 = vld [vmem:[#allocation61_spill] sm:$0xff] }
 0x3b1   : > { %10357 = vst [vmem:[#allocation42_spill] sm:$0xff] %v7751_v29  ;;  %v1431_v58 = vsub.f32 %v10362_v54, %v1425_v20  ;;  %v1432_v10 = vsub.f32 %v10363_v59, %v1425_v20  ;;  %v1433_v60 = vsub.f32 %v10364_v16, %v1425_v20  ;;  %v1434_v37 = vsub.f32 %v10365_v24, %v1425_v20  ;;  %v10368_v59 = vld [vmem:[#allocation119_spill] sm:$0xff] }
 0x3b2   : > { %v7779_v16 = vsel %vm811_vm11, %v10369_v30, %v10368_v59  ;;  %v3384_v24 = vrot.slane %v7753_v51, %v6346_v13  ;;  %v7783_v20 = vadd.f32 %v3506_v39, %v3505_v31  ;;  %v7799_v39 = vadd.f32 %v7596_v6, %v7601_v48 }
 0x3b3   : > { %10370 = vst [vmem:[#allocation101_spill] sm:$0xff] %v7779_v16 }
 0x3b4   : > { %v7622_v43 = vpop.permute.xlu1 %3801  ;;  %10371 = vst [vmem:[#allocation104_spill] sm:$0xff] %v7783_v20  ;;  %10375 = vst [vmem:[#allocation116_spill] sm:$0xff] %v7799_v39 }
 0x3b5   : > { %10308 = vst [vmem:[#allocation27_spill] sm:$0xff] %v7622_v43 }
 0x3b8   : > { %v7745_v7 = vpop.permute.xlu1 %4189 }
 0x3b9   : > { %10354 = vst [vmem:[#allocation41_spill] sm:$0xff] %v7745_v7 }
 0x3c1   : > { %v1438_v53 = vpop.permute.xlu0 %1437 }
 0x3c2   : > { %v1445_v62 = vmul.f32 %v1438_v53, %v1427_v25  ;;  %v1446_v50 = vmul.f32 %v1438_v53, %v1428_v40  ;;  %v1447_v18 = vmul.f32 %v1438_v53, %v1429_v19  ;;  %v1448_v55 = vmul.f32 %v1438_v53, %v1430_v42  ;;  %v10361_v25 = vld [vmem:[#allocation53_spill] sm:$0xff] }
 0x3c4   : > { %v1465_v40 = vmul.f32 %v10361_v25, %v1445_v62  ;;  %v1466_v19 = vmul.f32 %v10361_v25, %v1446_v50  ;;  %v1467_v42 = vmul.f32 %v10361_v25, %v1447_v18  ;;  %v1468_v53 = vmul.f32 %v10361_v25, %v1448_v55 }
 0x3c5   : > { %v1443_v57 = vpop.permute.xlu1 %1442  ;;  %v7769_v29 = vpop.permute.xlu0 %4616 }
 0x3c6   : > { %10366 = vst [vmem:[#allocation45_spill] sm:$0xff] %v7769_v29  ;;  %v1485_v36 = vadd.f32 %v10367_v35, %v1465_v40  ;;  %v1486_v62 = vadd.f32 %v10367_v35, %v1466_v19  ;;  %v1487_v50 = vadd.f32 %v10367_v35, %v1467_v42  ;;  %v1488_v18 = vadd.f32 %v10367_v35, %v1468_v53  ;;  %v10372_v40 = vld [vmem:[#allocation69_spill] sm:$0xff] }
 0x3c7   : > { %v1449_v55 = vmul.f32 %v1443_v57, %v1431_v58  ;;  %v1450_v25 = vmul.f32 %v1443_v57, %v1432_v10  ;;  %v1451_v54 = vmul.f32 %v1443_v57, %v1433_v60  ;;  %v1452_v27 = vmul.f32 %v1443_v57, %v1434_v37  ;;  %v10376_v10 = vld [vmem:[#allocation68_spill] sm:$0xff] }
 0x3c8   : > { %6050 = vtanh.f32 %v1485_v36 }
 0x3c9   : > { %6052 = vtanh.f32 %v1486_v62  ;;  %v1469_v19 = vmul.f32 %v10372_v40, %v1449_v55  ;;  %v1470_v58 = vmul.f32 %v10372_v40, %v1450_v25  ;;  %v1471_v60 = vmul.f32 %v10372_v40, %v1451_v54  ;;  %v7788_v57 = vpop.permute.xlu1 %4655  ;;  %v7790_v42 = vpop.permute.xlu0 %3366 }
 0x3ca   : > { %10373 = vst [vmem:[#allocation113_spill] sm:$0xff] %v7788_v57  ;;  %10374 = vst [vmem:[#allocation114_spill] sm:$0xff] %v7790_v42  ;;  %6054 = vtanh.f32 %v1487_v50  ;;  %v1472_v53 = vmul.f32 %v10372_v40, %v1452_v27  ;;  %v3374_v31 = vsel %vm1727_vm4, %v7577_v8, %v7790_v42  ;;  %v7808_v27 = vsel %vm1727_vm4, %v7404_v61, %v7402_v1  ;;  %v10380_v40 = vld [vmem:[#allocation110_spill] sm:$0xff] }
 0x3cb   : > { %6056 = vtanh.f32 %v1488_v18  ;;  %v1489_v37 = vadd.f32 %v10376_v10, %v1469_v19  ;;  %v1490_v35 = vadd.f32 %v10376_v10, %v1470_v58  ;;  %v1491_v36 = vadd.f32 %v10376_v10, %v1471_v60  ;;  %10377 = vst [vmem:[#allocation118_spill] sm:$0xff] %v7808_v27  ;;  %v10382_v58 = vld [vmem:[#allocation96_spill] sm:$0xff]  ;;  %v10386_v60 = vld [vmem:[#allocation13_spill] sm:$0xff] }
 0x3cc   : > { %v7814_v62 = vsel %vm515_vm12, %v7408_v26, %v10349_v34  ;;  %v1492_v6 = vadd.f32 %v10376_v10, %v1472_v53  ;;  %v3398_v48 = vmul.f32 %v3384_v24, %v3374_v31  ;;  %v3512_v50 = vrot.slane %v7783_v20, %v6339_v12 }
 0x3cd   : > { %6058 = vtanh.f32 %v1489_v37  ;;  %v1770_v18 = vpop.permute.xlu1 %1769  ;;  %v3446_v55 = vrot.slane %v7799_v39, %v6339_v12  ;;  %v3578_v25 = vrot.slane %v7614_v33, %v6339_v12  ;;  %v7827_v34 = vsel %vm515_vm12, %v7439_v9, %v10352_v17 }
 0x3ce   : > { %10378 = vst [vmem:[#allocation53_spill] sm:$0xff] %v7827_v34  ;;  %v7833_v54 = vsel %vm1727_vm4, %v7555_v32, %v10356_v11  ;;  %6060 = vtanh.f32 %v1490_v35  ;;  %v3402_v24 = vadd.f32 %v3398_v48, %v7625_v23  ;;  %v7840_v19 = vsel %vm811_vm11, %v7558_v0, %v10380_v40  ;;  %v7854_v23 = vpop.permute.xlu0 %3803 }
 0x3cf   : > { %10379 = vst [vmem:[#allocation46_spill] sm:$0xff] %v7833_v54  ;;  %10381 = vst [vmem:[#allocation47_spill] sm:$0xff] %v7840_v19  ;;  %v7846_v17 = vsel %vm811_vm11, %v10382_v58, %v7558_v0  ;;  %v7852_v11 = vsel %vm811_vm11, %v7603_v46, %v10369_v30  ;;  %6062 = vtanh.f32 %v1491_v36  ;;  %v7867_v37 = vsel %vm1727_vm4, %v7769_v29, %v7404_v61 }
 0x3d0   : > { %10383 = vst [vmem:[#allocation48_spill] sm:$0xff] %v7846_v17  ;;  %10384 = vst [vmem:[#allocation49_spill] sm:$0xff] %v7852_v11  ;;  %6064 = vtanh.f32 %v1492_v6  ;;  %v7857_v53 = vadd.f32 %v10386_v60, %v3402_v24  ;;  %v7869_v30 = vmul.f32 %v3512_v50, %v3374_v31  ;;  %v7872_v35 = vmul.f32 %v6957_v2, %v3446_v55 }
 0x3d1   : > { %10385 = vst [vmem:[#allocation61_spill] sm:$0xff] %v7854_v23  ;;  %v7875_v36 = vmul.f32 %v3578_v25, %v6305_v5  ;;  %v7877_v6 = vpop.permute.xlu1 %3370  ;;  %v7884_v24 = vsel %vm515_vm12, %v1770_v18, %v7408_v26  ;;  %v7889_v61 = vsel %vm515_vm12, %v10348_v3, %v1770_v18  ;;  %v7895_v2 = vsel %vm515_vm12, %v7622_v43, %v7854_v23 }
 0x3d2   : > { %10387 = vst [vmem:[#allocation120_spill] sm:$0xff] %v7857_v53  ;;  %10388 = vst [vmem:[#allocation69_spill] sm:$0xff] %v7877_v6  ;;  %v7879_v48 = vpop.eup %6050  ;;  %v7901_v31 = vsel %vm1727_vm4, %v7877_v6, %v7577_v8 }
 0x3d3   : > { %10389 = vst [vmem:[#allocation68_spill] sm:$0xff] %v7879_v48  ;;  %10390 = vst [vmem:[#allocation110_spill] sm:$0xff] %v7895_v2  ;;  %v7903_v50 = vpop.eup %6052  ;;  %v1509_v26 = vrot.slane %v7879_v48, 1  ;;  %v1533_v55 = vrot.slane %v7879_v48, 2  ;;  %v1521_v3 = vrot.slane %v7879_v48, 7  ;;  %v1545_v18 = vrot.slane %v7879_v48, 6 }
 0x3d4   : > { %10391 = vst [vmem:[#allocation96_spill] sm:$0xff] %v7903_v50  ;;  %v7909_v25 = vpop.eup %6054  ;;  %v1510_v40 = vrot.slane %v7903_v50, 1  ;;  %v1534_v58 = vrot.slane %v7903_v50, 2  ;;  %v1522_v60 = vrot.slane %v7903_v50, 7  ;;  %v1546_v8 = vrot.slane %v7903_v50, 6 }
 0x3d5   : > { %10392 = vst [vmem:[#allocation13_spill] sm:$0xff] %v7909_v25  ;;  %v7915_v0 = vpop.eup %6056  ;;  %v1511_v10 = vrot.slane %v7909_v25, 1  ;;  %v1517_v42 = vadd.f32 %v7879_v48, %v1509_v26  ;;  %v1535_v6 = vrot.slane %v7909_v25, 2  ;;  %v1523_v33 = vrot.slane %v7909_v25, 7 }
 0x3d6   : > { %10393 = vst [vmem:[#allocation138_spill] sm:$0xff] %v7915_v0  ;;  %v1512_v53 = vrot.slane %v7915_v0, 1  ;;  %v1518_v5 = vadd.f32 %v7903_v50, %v1510_v40  ;;  %v1536_v39 = vrot.slane %v7915_v0, 2  ;;  %v1524_v1 = vrot.slane %v7915_v0, 7 }
 0x3d7   : > { %v6059_v29 = vpop.eup %6058  ;;  %v1519_v19 = vadd.f32 %v7909_v25, %v1511_v10  ;;  %v1541_v23 = vadd.f32 %v1533_v55, %v1517_v42  ;;  %v7927_v34 = vadd.f32 %v7879_v48, %v1521_v3  ;;  %v7930_v26 = vadd.f32 %v7903_v50, %v1522_v60 }
 0x3d8   : > { %v6061_v59 = vpop.eup %6060  ;;  %v1520_v46 = vadd.f32 %v7915_v0, %v1512_v53  ;;  %v1542_v32 = vadd.f32 %v1534_v58, %v1518_v5  ;;  %v1561_v17 = vrot.slane %v6059_v29, 3  ;;  %v4073_v40 = vcombine.high %v1517_v42, %v1518_v5 }
 0x3d9   : > { %10394 = vst [vmem:[#allocation139_spill] sm:$0xff] %v7927_v34  ;;  %10395 = vst [vmem:[#allocation140_spill] sm:$0xff] %v7930_v26  ;;  %v6063_v9 = vpop.eup %6062  ;;  %v1543_v11 = vadd.f32 %v1535_v6, %v1519_v19  ;;  %v1562_v57 = vrot.slane %v6061_v59, 3  ;;  %v7934_v27 = vadd.f32 %v7909_v25, %v1523_v33  ;;  %v7937_v10 = vadd.f32 %v7915_v0, %v1524_v1 }
 0x3da   : > { %v6065_v55 = vpop.eup %6064  ;;  %v1544_v3 = vadd.f32 %v1536_v39, %v1520_v46  ;;  %v1563_v54 = vrot.slane %v6063_v9, 3  ;;  %v1569_v60 = vadd.f32 %v1561_v17, %v1541_v23  ;;  %v4074_v43 = vcombine.high %v1519_v19, %v1520_v46 }
 0x3db   : > { %10396 = vst [vmem:[#allocation141_spill] sm:$0xff] %v7934_v27  ;;  %10397 = vst [vmem:[#allocation142_spill] sm:$0xff] %v7937_v10  ;;  %v1564_v16 = vrot.slane %v6065_v55, 3  ;;  %v1570_v2 = vadd.f32 %v1562_v57, %v1542_v32  ;;  %v4081_v53 = vrot.slane %v4073_v40, %v7612_v4  ;;  %v4494_v29 = vcombine.high %v1541_v23, %v1542_v32 }
 0x3dc   : > { %v1571_v5 = vadd.f32 %v1563_v54, %v1543_v11  ;;  %v4088_v42 = vrot.slane %v4074_v43, %v7612_v4  ;;  %v4495_v59 = vcombine.high %v1543_v11, %v1544_v3  ;;  %v1547_v33 = vrot.slane %v7909_v25, 6 }
 0x3dd   : > { %v1572_v6 = vadd.f32 %v1564_v16, %v1544_v3  ;;  %v4502_v1 = vrot.slane %v4494_v29, %v7612_v4  ;;  %v4927_v58 = vcombine.high %v1569_v60, %v1570_v2  ;;  %v1548_v39 = vrot.slane %v7915_v0, 6  ;;  %v7959_v3 = vld [vmem:[%s9875_s11] sm:$0xf] }
 0x3de   : > { %v4089_v9 = vcombine.high %v4081_v53, %v4088_v42  ;;  %v4509_v46 = vrot.slane %v4495_v59, %v7612_v4  ;;  %v1553_v57 = vadd.f32 %v1545_v18, %v7927_v34  ;;  %v1554_v19 = vadd.f32 %v1546_v8, %v7930_v26  ;;  %10398 = vst [vmem:[#allocation143_spill] sm:$0xff] %v7959_v3  ;;  %v10426_v34 = vld [vmem:[#allocation91_spill] sm:$0xff] }
 0x3df   : > { %v4928_v32 = vcombine.high %v1571_v5, %v1572_v6  ;;  %v4935_v54 = vrot.slane %v4927_v58, %v7612_v4  ;;  %v1555_v43 = vadd.f32 %v1547_v33, %v7934_v27  ;;  %v1556_v17 = vadd.f32 %v1548_v39, %v7937_v10  ;;  %v10425_v10 = vld [vmem:[#allocation99_spill] sm:$0xff] }
 0x3e0   : > { %v4096_v16 = vrot.slane %v4089_v9, %v7612_v4  ;;  %v4510_v11 = vcombine.high %v4502_v1, %v4509_v46  ;;  %v1573_v23 = vrot.slane %v7879_v48, 5  ;;  %v1574_v2 = vrot.slane %v7903_v50, 5 }
 0x3e1   : > { %v4942_v40 = vrot.slane %v4928_v32, %v7612_v4  ;;  %v1575_v18 = vrot.slane %v7909_v25, 5  ;;  %v1576_v8 = vrot.slane %v7915_v0, 5  ;;  %v2025_v55 = vcombine.low %v1553_v57, %v1554_v19 }
 0x3e2   : > { %v4098_v60 = vadd.f32 %v7959_v3, %v4096_v16  ;;  %v4517_v53 = vrot.slane %v4510_v11, %v7612_v4  ;;  %v1581_v29 = vadd.f32 %v1573_v23, %v1553_v57  ;;  %v1582_v5 = vadd.f32 %v1574_v2, %v1554_v19 }
 0x3e3   : > { %v4943_v42 = vcombine.high %v4935_v54, %v4942_v40  ;;  %v1583_v59 = vadd.f32 %v1575_v18, %v1555_v43  ;;  %v1584_v33 = vadd.f32 %v1576_v8, %v1556_v17  ;;  %v2026_v6 = vcombine.low %v1555_v43, %v1556_v17  ;;  %v7972_v17 = vpop.permute.xlu0 %4191 }
 0x3e4   : > { %v4099_v1 = vmax.f32 %v4098_v60, 0.0  ;;  %v4519_v58 = vadd.f32 %v7959_v3, %v4517_v53  ;;  %v1602_v39 = vcombine.low %v1581_v29, %v1582_v5  ;;  %v2033_v9 = vrot.slane %v2025_v55, %v7612_v4  ;;  %10399 = vst [vmem:[#allocation144_spill] sm:$0xff] %v7972_v17 }
 0x3e5   : > { %v4950_v46 = vrot.slane %v4943_v42, %v7612_v4  ;;  %v1603_v32 = vcombine.low %v1583_v59, %v1584_v33  ;;  %v2040_v27 = vrot.slane %v2026_v6, %v7612_v4  ;;  %v3640_v16 = vcombine.high %v7879_v48, %v7903_v50 }
 0x3e6   : > { %v4100_v57 = vmin.f32 %v4099_v1, 15.0  ;;  %v4520_v19 = vmax.f32 %v4519_v58, 0.0  ;;  %v1610_v54 = vrot.slane %v1602_v39, %v7612_v4  ;;  %v3641_v43 = vcombine.high %v7909_v25, %v7915_v0 }
 0x3e7   : > { %v4952_v11 = vadd.f32 %v7959_v3, %v4950_v46  ;;  %v1617_v23 = vrot.slane %v1603_v32, %v7612_v4  ;;  %v2041_v2 = vcombine.high %v2033_v9, %v2040_v27  ;;  %v3648_v40 = vrot.slane %v3640_v16, %v7612_v4 }
 0x3e8   : > { %v4101_v18 = vfloor.f32 %v4100_v57  ;;  %v4521_v8 = vmin.f32 %v4520_v19, 15.0  ;;  %v3655_v55 = vrot.slane %v3641_v43, %v7612_v4  ;;  %v10400_v60 = vrot.slane %v7753_v51, %v6339_v12 }
 0x3e9   : > { %v4953_v29 = vmax.f32 %v4952_v11, 0.0  ;;  %v1618_v5 = vcombine.high %v1610_v54, %v1617_v23  ;;  %v2048_v42 = vrot.slane %v2041_v2, %v7612_v4  ;;  %v7987_v27 = vsel %vm1727_vm4, %v7745_v7, %v7972_v17 }
 0x3ea   : > { %v3397_v53 = vmul.f32 %v10400_v60, %v7901_v31  ;;  %v7989_v59 = vsub.f32 %v4100_v57, %v4101_v18  ;;  %v4104_v33 = vsub.f32 %v4101_v18, %v7959_v3  ;;  %v4522_v6 = vfloor.f32 %v4521_v8 }
 0x3eb   : > { %v3656_v1 = vcombine.high %v3648_v40, %v3655_v55  ;;  %v4954_v58 = vmin.f32 %v4953_v29, 15.0  ;;  %v1625_v39 = vrot.slane %v1618_v5, %v7612_v4  ;;  %v2049_v9 = vcombine.high %v2048_v42, %v2048_v42 }
 0x3ec   : > { %10401 = vst [vmem:[#allocation145_spill] sm:$0xff] %v7989_v59  ;;  %v3401_v46 = vadd.f32 %v3397_v53, %v7627_v56  ;;  %v5977_v32 = vtrunc.f32 %v4104_v33  ;;  %v7994_v16 = vsub.f32 %v4521_v8, %v4522_v6  ;;  %v4525_v19 = vsub.f32 %v4522_v6, %v7959_v3 }
 0x3ed   : > { %v3663_v54 = vrot.slane %v3656_v1, %v7612_v4  ;;  %v4955_v43 = vfloor.f32 %v4954_v58  ;;  %v1626_v57 = vcombine.high %v1625_v39, %v1625_v39  ;;  %v2051_v11 = vadd.f32 %v7959_v3, %v2049_v9 }
 0x3ee   : > { %10402 = vst [vmem:[#allocation146_spill] sm:$0xff] %v7994_v16  ;;  %v3434_v23 = vadd.f32 %v7609_v45, %v3401_v46  ;;  %v8000_v2 = vcvt.f32.s32 %v5977_v32  ;;  %v5979_v40 = vtrunc.f32 %v4525_v19  ;;  %v10404_v56 = vrot.slane %v7783_v20, %v6352_v15 }
 0x3ef   : > { %v3665_v18 = vadd.f32 %v7959_v3, %v3663_v54  ;;  %v4958_v55 = vsub.f32 %v4955_v43, %v7959_v3  ;;  %v8011_v60 = vsub.f32 1.0, %v7994_v16  ;;  %v1628_v53 = vadd.f32 %v7959_v3, %v1626_v57 }
 0x3f0   : > { %10403 = vst [vmem:[#allocation147_spill] sm:$0xff] %v8000_v2  ;;  %v8007_v8 = vmul.f32 %v10404_v56, %v7901_v31  ;;  %v2052_v29 = vmax.f32 %v2051_v11, 0.0  ;;  %v8014_v45 = vcvt.f32.s32 %v5979_v40  ;;  %v8016_v5 = vsub.f32 %v4954_v58, %v4955_v43 }
 0x3f1   : > { %10406 = vst [vmem:[#allocation149_spill] sm:$0xff] %v8011_v60  ;;  %v3666_v42 = vmax.f32 %v3665_v18, 0.0  ;;  %v3467_v33 = vadd.f32 %v7872_v35, %v3434_v23  ;;  %v5981_v6 = vtrunc.f32 %v4958_v55  ;;  %v1629_v1 = vmax.f32 %v1628_v53, 0.0 }
 0x3f2   : > { %10405 = vst [vmem:[#allocation148_spill] sm:$0xff] %v8007_v8  ;;  %10407 = vst [vmem:[#allocation150_spill] sm:$0xff] %v8014_v45  ;;  %v2053_v39 = vmin.f32 %v2052_v29, 15.0  ;;  %v8020_v31 = vsub.f32 1.0, %v7989_v59  ;;  %vm4527_vm15 = vcmp.eq.s32.totalorder %v8014_v45, 4294967292  ;;  %vm4529_vm13 = vcmp.eq.s32.totalorder %v8014_v45, 4294967291 }
 0x3f3   : > { %10408 = vst [vmem:[#allocation151_spill] sm:$0xff] %v8016_v5  ;;  %vm4561_vm6 = vcmp.eq.s32.totalorder %v8014_v45, 4294967293  ;;  %vm4606_vm5 = vcmp.eq.s32.totalorder %v8014_v45, 4294967294  ;;  %v4528_v58 = vsel %vm4527_vm15, %v8011_v60, 0.0  ;;  %v4530_v9 = vsel %vm4529_vm13, %v7994_v16, 0.0 }
 0x3f4   : > { %10409 = vst [vmem:[#allocation152_spill] sm:$0xff] %v8020_v31  ;;  %v4562_v35 = vsel %vm4561_vm6, %v8011_v60, 0.0  ;;  %vm4106_vm0 = vcmp.eq.s32.totalorder %v8000_v2, 4294967292  ;;  %v8030_v46 = vadd.f32 %v4530_v9, %v4528_v58  ;;  %v4563_v32 = vsel %vm4527_vm15, %v7994_v16, 0.0 }
 0x3f5   : > { %v4607_v19 = vsel %vm4606_vm5, %v8011_v60, 0.0  ;;  %v4608_v54 = vsel %vm4561_vm6, %v7994_v16, 0.0  ;;  %v8037_v43 = vadd.f32 %v4563_v32, %v4562_v35  ;;  %vm4696_vm2 = vcmp.eq.s32.totalorder %v8014_v45, 0  ;;  %v10414_v32 = vld [vmem:[#allocation111_spill] sm:$0xff] }
 0x3f6   : > { %10410 = vst [vmem:[#allocation153_spill] sm:$0xff] %v8030_v46  ;;  %v8039_v57 = vadd.f32 %v4608_v54, %v4607_v19  ;;  %vm4729_vm7 = vcmp.eq.s32.totalorder %v8014_v45, 1  ;;  %v4536_v11 = vrot.slane %v8030_v46, %v6339_v12  ;;  %v4731_v40 = vsel %vm4696_vm2, %v7994_v16, 0.0 }
 0x3f7   : > { %10411 = vst [vmem:[#allocation154_spill] sm:$0xff] %v8037_v43  ;;  %v4730_v23 = vsel %vm4729_vm7, %v8011_v60, 0.0  ;;  %vm4762_vm10 = vcmp.eq.s32.totalorder %v8014_v45, 2  ;;  %v8050_v18 = vcvt.f32.s32 %v5981_v6  ;;  %v4581_v56 = vrot.slane %v8037_v43, %v6339_v12 }
 0x3f8   : > { %10412 = vst [vmem:[#allocation155_spill] sm:$0xff] %v8039_v57  ;;  %v4626_v55 = vrot.slane %v8039_v57, %v6339_v12  ;;  %v4763_v53 = vsel %vm4762_vm10, %v8011_v60, 0.0  ;;  %v4553_v29 = vmul.f32 %v4536_v11, %v7159_v21  ;;  %v4764_v58 = vsel %vm4729_vm7, %v7994_v16, 0.0 }
 0x3f9   : > { %10413 = vst [vmem:[#allocation156_spill] sm:$0xff] %v8050_v18  ;;  %v1630_v9 = vmin.f32 %v1629_v1, 15.0  ;;  %v2054_v35 = vfloor.f32 %v2053_v39  ;;  %v4598_v19 = vmul.f32 %v4581_v56, %v10414_v32  ;;  %v8062_v6 = vadd.f32 %v4731_v40, %v4730_v23  ;;  %v10423_v32 = vld [vmem:[#allocation55_spill] sm:$0xff] }
 0x3fa   : > { %v8064_v54 = vadd.f32 %v4764_v58, %v4763_v53  ;;  %v3667_v25 = vmin.f32 %v3666_v42, 15.0  ;;  %v4643_v0 = vmul.f32 %v4626_v55, %v7867_v37  ;;  %v3500_v18 = vadd.f32 %v7620_v63, %v3467_v33 }
 0x3fb   : > { %10415 = vst [vmem:[#allocation157_spill] sm:$0xff] %v8062_v6  ;;  %v1631_v48 = vfloor.f32 %v1630_v9  ;;  %v2057_v50 = vsub.f32 %v2054_v35, %v7959_v3  ;;  %v4602_v5 = vadd.f32 %v4598_v19, %v4553_v29  ;;  %v8071_v1 = vsub.f32 %v2053_v39, %v2054_v35 }
 0x3fc   : > { %10416 = vst [vmem:[#allocation158_spill] sm:$0xff] %v8064_v54  ;;  %v4782_v11 = vrot.slane %v8064_v54, %v6352_v15  ;;  %v3668_v21 = vfloor.f32 %v3667_v25  ;;  %v3533_v42 = vadd.f32 %v7869_v30, %v3500_v18  ;;  %v4107_v33 = vsel %vm4106_vm0, %v8020_v31, 0.0 }
 0x3fd   : > { %10417 = vst [vmem:[#allocation159_spill] sm:$0xff] %v8071_v1  ;;  %v8073_v56 = vsub.f32 %v1630_v9, %v1631_v48  ;;  %v1634_v23 = vsub.f32 %v1631_v48, %v7959_v3  ;;  %v5967_v40 = vtrunc.f32 %v2057_v50  ;;  %v8077_v55 = vadd.f32 %v4643_v0, %v4602_v5  ;;  %v10422_v1 = vld [vmem:[#allocation54_spill] sm:$0xff] }
 0x3fe   : > { %v8079_v53 = vsub.f32 %v3667_v25, %v3668_v21  ;;  %v3671_v63 = vsub.f32 %v3668_v21, %v7959_v3  ;;  %v8086_v39 = vmul.f32 %v4782_v11, %v7867_v37  ;;  %v3566_v50 = vadd.f32 %v7606_v52, %v3533_v42  ;;  %v10424_v3 = vld [vmem:[#allocation100_spill] sm:$0xff] }
 0x3ff   : > { %10418 = vst [vmem:[#allocation160_spill] sm:$0xff] %v8077_v55  ;;  %v8089_v29 = vsub.f32 1.0, %v8073_v56  ;;  %v5965_v48 = vtrunc.f32 %v1634_v23  ;;  %v8092_v30 = vcvt.f32.s32 %v5967_v40  ;;  %vm4108_vm8 = vcmp.eq.s32.totalorder %v8000_v2, 4294967291 }
 0x400   : > { %10419 = vst [vmem:[#allocation161_spill] sm:$0xff] %v8086_v39  ;;  %v5975_v0 = vtrunc.f32 %v3671_v63  ;;  %vm4140_vm15 = vcmp.eq.s32.totalorder %v8000_v2, 4294967293  ;;  %v8099_v25 = vsub.f32 1.0, %v8079_v53  ;;  %v8102_v37 = vadd.f32 %v7875_v36, %v3566_v50 }
 0x401   : > { %10420 = vst [vmem:[#allocation162_spill] sm:$0xff] %v8092_v30  ;;  %v8096_v21 = vcvt.f32.s32 %v5965_v48  ;;  %v4109_v5 = vsel %vm4108_vm8, %v7989_v59, 0.0  ;;  %v8112_v58 = vsel %vm4140_vm15, %v8020_v31, 0.0  ;;  %v8117_v9 = vsel %vm4106_vm0, %v7989_v59, 0.0 }
 0x402   : > { %v8105_v18 = vcvt.f32.s32 %v5975_v0  ;;  %v8107_v52 = vadd.f32 %v4109_v5, %v4107_v33 }
 0x403   : > { %vm1636_vm13 = vcmp.eq.s32.totalorder %v8096_v21, 4294967292  ;;  %vm1638_vm6 = vcmp.eq.s32.totalorder %v8096_v21, 4294967291  ;;  %vm1670_vm7 = vcmp.eq.s32.totalorder %v8096_v21, 4294967293  ;;  %vm1715_vm8 = vcmp.eq.s32.totalorder %v8096_v21, 4294967294 }
 0x404   : > { %v1637_v36 = vsel %vm1636_vm13, %v8089_v29, 0.0  ;;  %v1639_v35 = vsel %vm1638_vm6, %v8073_v56, 0.0  ;;  %v1671_v19 = vsel %vm1670_vm7, %v8089_v29, 0.0  ;;  %v1672_v11 = vsel %vm1636_vm13, %v8073_v56, 0.0 }
 0x405   : > { %v1640_v23 = vadd.f32 %v1639_v35, %v1637_v36  ;;  %v1673_v40 = vadd.f32 %v1672_v11, %v1671_v19  ;;  %v1716_v42 = vsel %vm1715_vm8, %v8089_v29, 0.0  ;;  %v1717_v63 = vsel %vm1670_vm7, %v8073_v56, 0.0 }
 0x406   : > { %v1718_v33 = vadd.f32 %v1717_v63, %v1716_v42  ;;  %vm1761_vm0 = vcmp.eq.s32.totalorder %v8096_v21, 4294967295  ;;  %v1763_v48 = vsel %vm1715_vm8, %v8073_v56, 0.0  ;;  %vm1806_vm14 = vcmp.eq.s32.totalorder %v8096_v21, 0  ;;  %v10421_v63 = vld [vmem:[#allocation59_spill] sm:$0xff] }
 0x407   : > { %v1645_v50 = vrot.slane %v1640_v23, %v6339_v12  ;;  %v1649_v0 = vrot.slane %v1640_v23, %v6346_v13  ;;  %v1653_v5 = vrot.slane %v1640_v23, %v6349_v14  ;;  %v1657_v36 = vrot.slane %v1640_v23, %v6352_v15 }
 0x408   : > { %v1690_v35 = vrot.slane %v1673_v40, %v6339_v12  ;;  %v1694_v19 = vrot.slane %v1673_v40, %v6346_v13  ;;  %v1698_v11 = vrot.slane %v1673_v40, %v6349_v14  ;;  %v1702_v42 = vrot.slane %v1673_v40, %v6352_v15 }
 0x409   : > { %v1662_v30 = vmul.f32 %v1645_v50, %v10421_v63  ;;  %v1663_v39 = vmul.f32 %v1649_v0, %v10422_v1  ;;  %v1664_v17 = vmul.f32 %v1653_v5, %v10423_v32  ;;  %v1665_v8 = vmul.f32 %v1657_v36, %v7135_v49 }
 0x40a   : > { %v1707_v20 = vmul.f32 %v1690_v35, %v7693_v47  ;;  %v1708_v23 = vmul.f32 %v1694_v19, %v7663_v22  ;;  %v1709_v51 = vmul.f32 %v1698_v11, %v7705_v44  ;;  %v1710_v55 = vmul.f32 %v1702_v42, %v10424_v3 }
 0x40b   : > { %v1736_v54 = vrot.slane %v1718_v33, %v6339_v12  ;;  %v1740_v40 = vrot.slane %v1718_v33, %v6346_v13  ;;  %v1744_v50 = vrot.slane %v1718_v33, %v6349_v14  ;;  %v1748_v0 = vrot.slane %v1718_v33, %v6352_v15 }
 0x40c   : > { %v1711_v6 = vadd.f32 %v1707_v20, %v1662_v30  ;;  %v1712_v5 = vadd.f32 %v1708_v23, %v1663_v39  ;;  %v1713_v4 = vadd.f32 %v1709_v51, %v1664_v17  ;;  %v1714_v36 = vadd.f32 %v1710_v55, %v1665_v8 }
 0x40d   : > { %v1753_v35 = vmul.f32 %v1736_v54, %v10425_v10  ;;  %v1754_v19 = vmul.f32 %v1740_v40, %v10426_v34  ;;  %v1755_v11 = vmul.f32 %v1744_v50, %v7417_v38  ;;  %v1756_v42 = vmul.f32 %v1748_v0, %v7412_v28 }
 0x40e   : > { %v1762_v26 = vsel %vm1761_vm0, %v8089_v29, 0.0  ;;  %v1807_v33 = vsel %vm1806_vm14, %v8089_v29, 0.0  ;;  %v1808_v51 = vsel %vm1761_vm0, %v8073_v56, 0.0  ;;  %vm1839_vm13 = vcmp.eq.s32.totalorder %v8096_v21, 1 }
 0x40f   : > { %v1757_v20 = vadd.f32 %v1753_v35, %v1711_v6  ;;  %v1758_v17 = vadd.f32 %v1754_v19, %v1712_v5  ;;  %v1759_v8 = vadd.f32 %v1755_v11, %v1713_v4  ;;  %v1760_v54 = vadd.f32 %v1756_v42, %v1714_v36  ;;  %v10427_v11 = vld [vmem:[#allocation87_spill] sm:$0xff] }
 0x410   : > { %v1764_v55 = vadd.f32 %v1763_v48, %v1762_v26  ;;  %v1809_v39 = vadd.f32 %v1808_v51, %v1807_v33  ;;  %v1840_v30 = vsel %vm1839_vm13, %v8089_v29, 0.0  ;;  %v1841_v23 = vsel %vm1806_vm14, %v8073_v56, 0.0 }
 0x411   : > { %v1842_v40 = vadd.f32 %v1841_v23, %v1840_v30  ;;  %vm1872_vm6 = vcmp.eq.s32.totalorder %v8096_v21, 2  ;;  %v1874_v50 = vsel %vm1839_vm13, %v8073_v56, 0.0  ;;  %vm1905_vm7 = vcmp.eq.s32.totalorder %v8096_v21, 3 }
 0x412   : > { %v1781_v6 = vrot.slane %v1764_v55, %v6339_v12  ;;  %v1785_v4 = vrot.slane %v1764_v55, %v6346_v13  ;;  %v1789_v26 = vrot.slane %v1764_v55, %v6349_v14  ;;  %v1793_v48 = vrot.slane %v1764_v55, %v6352_v15 }
 0x413   : > { %v1814_v0 = vrot.slane %v1809_v39, %v6339_v12  ;;  %v1818_v5 = vrot.slane %v1809_v39, %v6346_v13  ;;  %v1822_v36 = vrot.slane %v1809_v39, %v6349_v14  ;;  %v1826_v35 = vrot.slane %v1809_v39, %v6352_v15 }
 0x414   : > { %v1798_v19 = vmul.f32 %v1781_v6, %v7814_v62  ;;  %v1799_v42 = vmul.f32 %v1785_v4, %v10427_v11  ;;  %v1800_v33 = vmul.f32 %v1789_v26, %v7889_v61  ;;  %v1801_v51 = vmul.f32 %v1793_v48, %v7884_v24 }
 0x415   : > { %v1831_v30 = vmul.f32 %v1814_v0, %v10422_v1  ;;  %v1832_v55 = vmul.f32 %v1818_v5, %v10423_v32  ;;  %v1833_v23 = vmul.f32 %v1822_v36, %v7135_v49  ;;  %v1834_v7 = vmul.f32 %v1826_v35, %v10421_v63 }
 0x416   : > { %v1802_v16 = vadd.f32 %v1798_v19, %v1757_v20  ;;  %v1803_v60 = vadd.f32 %v1799_v42, %v1758_v17  ;;  %v1804_v45 = vadd.f32 %v1800_v33, %v1759_v8  ;;  %v1805_v39 = vadd.f32 %v1801_v51, %v1760_v54 }
 0x417   : > { %v1847_v6 = vrot.slane %v1842_v40, %v6339_v12  ;;  %v1851_v4 = vrot.slane %v1842_v40, %v6346_v13  ;;  %v1855_v26 = vrot.slane %v1842_v40, %v6349_v14  ;;  %v1859_v48 = vrot.slane %v1842_v40, %v6352_v15 }
 0x418   : > { %v1835_v57 = vadd.f32 %v1831_v30, %v1802_v16  ;;  %v1836_v0 = vadd.f32 %v1832_v55, %v1803_v60  ;;  %v1837_v43 = vadd.f32 %v1833_v23, %v1804_v45  ;;  %v1838_v5 = vadd.f32 %v1834_v7, %v1805_v39 }
 0x419   : > { %v1864_v36 = vmul.f32 %v1847_v6, %v7663_v22  ;;  %v1865_v35 = vmul.f32 %v1851_v4, %v7705_v44  ;;  %v1866_v20 = vmul.f32 %v1855_v26, %v10424_v3  ;;  %v1867_v17 = vmul.f32 %v1859_v48, %v7693_v47 }
 0x41a   : > { %v1873_v8 = vsel %vm1872_vm6, %v8089_v29, 0.0  ;;  %v1906_v54 = vsel %vm1905_vm7, %v8089_v29, 0.0  ;;  %v1907_v7 = vsel %vm1872_vm6, %v8073_v56, 0.0  ;;  %vm1938_vm14 = vcmp.eq.s32.totalorder %v8096_v21, 4 }
 0x41b   : > { %v1868_v16 = vadd.f32 %v1864_v36, %v1835_v57  ;;  %v1869_v60 = vadd.f32 %v1865_v35, %v1836_v0  ;;  %v1870_v45 = vadd.f32 %v1866_v20, %v1837_v43  ;;  %v1871_v40 = vadd.f32 %v1867_v17, %v1838_v5 }
 0x41c   : > { %v1875_v19 = vadd.f32 %v1874_v50, %v1873_v8  ;;  %v1908_v42 = vadd.f32 %v1907_v7, %v1906_v54  ;;  %v1939_v33 = vsel %vm1938_vm14, %v8089_v29, 0.0  ;;  %v1940_v51 = vsel %vm1905_vm7, %v8073_v56, 0.0 }
 0x41d   : > { %v1941_v30 = vadd.f32 %v1940_v51, %v1939_v33  ;;  %vm1971_vm8 = vcmp.eq.s32.totalorder %v8096_v21, 5  ;;  %v1973_v55 = vsel %vm1938_vm14, %v8073_v56, 0.0  ;;  %vm3673_vm0 = vcmp.eq.s32.totalorder %v8105_v18, 4294967292 }
 0x41e   : > { %v1880_v57 = vrot.slane %v1875_v19, %v6339_v12  ;;  %v1884_v43 = vrot.slane %v1875_v19, %v6346_v13  ;;  %v1888_v50 = vrot.slane %v1875_v19, %v6349_v14  ;;  %v1892_v23 = vrot.slane %v1875_v19, %v6352_v15 }
 0x41f   : > { %v1913_v39 = vrot.slane %v1908_v42, %v6339_v12  ;;  %v1917_v6 = vrot.slane %v1908_v42, %v6346_v13  ;;  %v1921_v4 = vrot.slane %v1908_v42, %v6349_v14  ;;  %v1925_v26 = vrot.slane %v1908_v42, %v6352_v15 }
 0x420   : > { %v1897_v56 = vmul.f32 %v1880_v57, %v10426_v34  ;;  %v1898_v48 = vmul.f32 %v1884_v43, %v7417_v38  ;;  %v1899_v0 = vmul.f32 %v1888_v50, %v7412_v28  ;;  %v1900_v5 = vmul.f32 %v1892_v23, %v10425_v10 }
 0x421   : > { %v1930_v36 = vmul.f32 %v1913_v39, %v10427_v11  ;;  %v1931_v35 = vmul.f32 %v1917_v6, %v7889_v61  ;;  %v1932_v20 = vmul.f32 %v1921_v4, %v7884_v24  ;;  %v1933_v17 = vmul.f32 %v1925_v26, %v7814_v62 }
 0x422   : > { %v1901_v8 = vadd.f32 %v1897_v56, %v1868_v16  ;;  %v1902_v54 = vadd.f32 %v1898_v48, %v1869_v60  ;;  %v1903_v7 = vadd.f32 %v1899_v0, %v1870_v45  ;;  %v1904_v19 = vadd.f32 %v1900_v5, %v1871_v40 }
 0x423   : > { %v1946_v34 = vrot.slane %v1941_v30, %v6339_v12  ;;  %v1950_v38 = vrot.slane %v1941_v30, %v6346_v13  ;;  %v1954_v28 = vrot.slane %v1941_v30, %v6349_v14  ;;  %v1958_v10 = vrot.slane %v1941_v30, %v6352_v15 }
 0x424   : > { %v1934_v42 = vadd.f32 %v1930_v36, %v1901_v8  ;;  %v1935_v11 = vadd.f32 %v1931_v35, %v1902_v54  ;;  %v1936_v33 = vadd.f32 %v1932_v20, %v1903_v7  ;;  %v1937_v61 = vadd.f32 %v1933_v17, %v1904_v19  ;;  %v10428_v35 = vld [vmem:[#allocation28_spill] sm:$0xff]  ;;  %v10429_v17 = vld [vmem:[#allocation95_spill] sm:$0xff] }
 0x425   : > { %v1963_v24 = vmul.f32 %v1946_v34, %v10423_v32  ;;  %v1964_v62 = vmul.f32 %v1950_v38, %v7135_v49  ;;  %v1965_v16 = vmul.f32 %v1954_v28, %v10421_v63  ;;  %v1966_v60 = vmul.f32 %v1958_v10, %v10422_v1 }
 0x426   : > { %v1972_v45 = vsel %vm1971_vm8, %v8089_v29, 0.0  ;;  %v3674_v40 = vsel %vm3673_vm0, %v8099_v25, 0.0  ;;  %vm3675_vm13 = vcmp.eq.s32.totalorder %v8105_v18, 4294967291  ;;  %vm3707_vm6 = vcmp.eq.s32.totalorder %v8105_v18, 4294967293 }
 0x427   : > { %v1967_v51 = vadd.f32 %v1963_v24, %v1934_v42  ;;  %v1968_v32 = vadd.f32 %v1964_v62, %v1935_v11  ;;  %v1969_v30 = vadd.f32 %v1965_v16, %v1936_v33  ;;  %v1970_v49 = vadd.f32 %v1966_v60, %v1937_v61  ;;  %v10430_v33 = vld [vmem:[#allocation42_spill] sm:$0xff] }
 0x428   : > { %v1974_v57 = vadd.f32 %v1973_v55, %v1972_v45  ;;  %v3676_v63 = vsel %vm3675_vm13, %v8079_v53, 0.0  ;;  %v3708_v1 = vsel %vm3707_vm6, %v8099_v25, 0.0  ;;  %v3709_v29 = vsel %vm3673_vm0, %v8079_v53, 0.0 }
 0x429   : > { %v8251_v21 = vadd.f32 %v3676_v63, %v3674_v40  ;;  %v8253_v43 = vadd.f32 %v3709_v29, %v3708_v1  ;;  %vm3752_vm7 = vcmp.eq.s32.totalorder %v8105_v18, 4294967294  ;;  %v3754_v50 = vsel %vm3707_vm6, %v8079_v53, 0.0  ;;  %v10434_v1 = vld [vmem:[#allocation23_spill] sm:$0xff] }
 0x42a   : > { %v1979_v23 = vrot.slane %v1974_v57, %v6339_v12  ;;  %v1983_v55 = vrot.slane %v1974_v57, %v6346_v13  ;;  %v1987_v39 = vrot.slane %v1974_v57, %v6349_v14  ;;  %v1991_v6 = vrot.slane %v1974_v57, %v6352_v15  ;;  %v10433_v57 = vld [vmem:[#allocation110_spill] sm:$0xff] }
 0x42b   : > { %v3686_v4 = vrot.slane %v8251_v21, %v6346_v13  ;;  %v3731_v26 = vrot.slane %v8253_v43, %v6346_v13  ;;  %v3753_v56 = vsel %vm3752_vm7, %v8099_v25, 0.0  ;;  %vm3797_vm14 = vcmp.eq.s32.totalorder %v8105_v18, 4294967295 }
 0x42c   : > { %v1996_v48 = vmul.f32 %v1979_v23, %v7705_v44  ;;  %v1997_v0 = vmul.f32 %v1983_v55, %v10424_v3  ;;  %v1998_v5 = vmul.f32 %v1987_v39, %v7693_v47  ;;  %v1999_v36 = vmul.f32 %v1991_v6, %v7663_v22 }
 0x42d   : > { %vm4185_vm8 = vcmp.eq.s32.totalorder %v8000_v2, 4294967294  ;;  %v3700_v20 = vmul.f32 %v3686_v4, %v10428_v35  ;;  %v3745_v8 = vmul.f32 %v3731_v26, %v10429_v17  ;;  %v8276_v54 = vadd.f32 %v3754_v50, %v3753_v56  ;;  %v10437_v4 = vld [vmem:[#allocation24_spill] sm:$0xff] }
 0x42e   : > { %v3798_v7 = vsel %vm3797_vm14, %v8099_v25, 0.0  ;;  %v2000_v19 = vadd.f32 %v1996_v48, %v1967_v51  ;;  %v2001_v44 = vadd.f32 %v1997_v0, %v1968_v32  ;;  %v2002_v34 = vadd.f32 %v1998_v5, %v1969_v30 }
 0x42f   : > { %v2003_v3 = vadd.f32 %v1999_v36, %v1970_v49  ;;  %v3749_v38 = vadd.f32 %v3745_v8, %v3700_v20  ;;  %v3776_v22 = vrot.slane %v8276_v54, %v6346_v13  ;;  %v3799_v47 = vsel %vm3752_vm7, %v8079_v53, 0.0 }
 0x430   : > { %vm3842_vm0 = vcmp.eq.s32.totalorder %v8105_v18, 0  ;;  %2004 = vst [vmem:[#allocation3] sm:$0xf] %v2000_v19  ;;  %2005 = vst [vmem:[#allocation3 + $0x8] sm:$0xf] %v2001_v44  ;;  %v8287_v28 = vadd.f32 %v3799_v47, %v3798_v7  ;;  %v3844_v42 = vsel %vm3797_vm14, %v8079_v53, 0.0  ;;  %v3632_v26 = vadd.f32 %v10437_v4, %v8102_v37  ;;  %v8346_v19 = vpop.permute.xlu1 %3807 }
 0x431   : > { %2006 = vst [vmem:[#allocation3 + $0x10] sm:$0xf] %v2002_v34  ;;  %2007 = vst [vmem:[#allocation3 + $0x18] sm:$0xf] %v2003_v3  ;;  %v3843_v10 = vsel %vm3842_vm0, %v8099_v25, 0.0  ;;  %v3877_v11 = vsel %vm3842_vm0, %v8079_v53, 0.0  ;;  %v3790_v61 = vmul.f32 %v3776_v22, %v10430_v33  ;;  %v4119_v56 = vrot.slane %v8107_v52, %v6346_v13 }
 0x432   : > { %v8295_v24 = vadd.f32 %v3844_v42, %v3843_v10  ;;  %vm3908_vm13 = vcmp.eq.s32.totalorder %v8105_v18, 2  ;;  %vm3941_vm6 = vcmp.eq.s32.totalorder %v8105_v18, 3  ;;  %v3821_v62 = vrot.slane %v8287_v28, %v6346_v13  ;;  %3636 = vst [vmem:[#allocation3 + $0x40] sm:$0xf] %v3632_v26  ;;  %v10438_v37 = vld [vmem:[#allocation66_spill] sm:$0xff]  ;;  %v10440_v47 = vld [vmem:[#allocation101_spill] sm:$0xff] }
 0x433   : > { %v3942_v16 = vsel %vm3941_vm6, %v8099_v25, 0.0  ;;  %v3943_v60 = vsel %vm3908_vm13, %v8079_v53, 0.0  ;;  %vm3974_vm7 = vcmp.eq.s32.totalorder %v8105_v18, 4  ;;  %v3794_v45 = vadd.f32 %v3790_v61, %v3749_v38  ;;  %v10442_v61 = vld [vmem:[#allocation32_spill] sm:$0xff] }
 0x434   : > { %10431 = vst [vmem:[#allocation59_spill] sm:$0xff] %v8295_v24  ;;  %v3854_v40 = vrot.slane %v8295_v24, %v6346_v13  ;;  %v8308_v51 = vadd.f32 %v3943_v60, %v3942_v16  ;;  %v3975_v32 = vsel %vm3974_vm7, %v8099_v25, 0.0  ;;  %v3976_v30 = vsel %vm3941_vm6, %v8079_v53, 0.0  ;;  %v10443_v16 = vld [vmem:[#allocation27_spill] sm:$0xff] }
 0x435   : > { %vm4007_vm14 = vcmp.eq.s32.totalorder %v8105_v18, 5  ;;  %v4009_v49 = vsel %vm3974_vm7, %v8079_v53, 0.0  ;;  %v3835_v63 = vmul.f32 %v3821_v62, %v10433_v57  ;;  %v8318_v23 = vadd.f32 %v3976_v30, %v3975_v32  ;;  %v10445_v30 = vld [vmem:[#allocation46_spill] sm:$0xff] }
 0x436   : > { %10432 = vst [vmem:[#allocation54_spill] sm:$0xff] %v8308_v51  ;;  %v3868_v29 = vmul.f32 %v3854_v40, %v10434_v1  ;;  %v3949_v50 = vrot.slane %v8308_v51, %v6339_v12  ;;  %v4008_v55 = vsel %vm4007_vm14, %v8099_v25, 0.0  ;;  %v8332_v0 = vadd.f32 %v8117_v9, %v8112_v58  ;;  %v10444_v40 = vld [vmem:[#allocation112_spill] sm:$0xff] }
 0x437   : > { %10435 = vst [vmem:[#allocation55_spill] sm:$0xff] %v8318_v23  ;;  %v8321_v39 = vadd.f32 %v4009_v49, %v4008_v55  ;;  %v3839_v6 = vadd.f32 %v3835_v63, %v3794_v45  ;;  %v4186_v5 = vsel %vm4185_vm8, %v8020_v31, 0.0  ;;  %v4187_v36 = vsel %vm4140_vm15, %v7989_v59, 0.0 }
 0x438   : > { %v8328_v48 = vmul.f32 %v3949_v50, %v10433_v57  ;;  %v4133_v8 = vmul.f32 %v4119_v56, %v10438_v37  ;;  %v8343_v7 = vadd.f32 %v4187_v36, %v4186_v5  ;;  %vm4308_vm0 = vcmp.eq.s32.totalorder %v8000_v2, 1 }
 0x439   : > { %10436 = vst [vmem:[#allocation100_spill] sm:$0xff] %v8321_v39  ;;  %v8340_v20 = vadd.f32 %v3868_v29, %v3839_v6  ;;  %v4164_v58 = vrot.slane %v8332_v0, %v6346_v13  ;;  %vm4341_vm6 = vcmp.eq.s32.totalorder %v8000_v2, 2  ;;  %v4343_v9 = vsel %vm4308_vm0, %v7989_v59, 0.0 }
 0x43a   : > { %10439 = vst [vmem:[#allocation99_spill] sm:$0xff] %v8343_v7  ;;  %v3682_v44 = vrot.slane %v8251_v21, %v6339_v12  ;;  %v4209_v34 = vrot.slane %v8343_v7, %v6346_v13  ;;  %v4342_v3 = vsel %vm4341_vm6, %v8020_v31, 0.0  ;;  %v3727_v38 = vrot.slane %v8253_v43, %v6339_v12 }
 0x43b   : > { %v3772_v22 = vrot.slane %v8276_v54, %v6339_v12  ;;  %v4178_v10 = vmul.f32 %v4164_v58, %v10440_v47  ;;  %v8366_v42 = vadd.f32 %v4343_v9, %v4342_v3  ;;  %v3812_v60 = vsel %vm515_vm12, %v8346_v19, %v10443_v16  ;;  %v10467_v47 = vld [vmem:[#allocation63_spill] sm:$0xff] }
 0x43c   : > { %v3699_v62 = vmul.f32 %v3682_v44, %v10442_v61  ;;  %v4223_v45 = vmul.f32 %v4209_v34, %v7987_v27  ;;  %v3744_v32 = vmul.f32 %v3727_v38, %v10444_v40  ;;  %v3817_v57 = vrot.slane %v8287_v28, %v6339_v12 }
 0x43d   : > { %10441 = vst [vmem:[#allocation91_spill] sm:$0xff] %v8366_v42  ;;  %v3789_v49 = vmul.f32 %v3772_v22, %v10445_v30  ;;  %v4182_v63 = vadd.f32 %v4178_v10, %v4133_v8  ;;  %v4349_v29 = vrot.slane %v8366_v42, %v6339_v12  ;;  %v3850_v50 = vrot.slane %v8295_v24, %v6339_v12  ;;  %v10451_v22 = vld [vmem:[#allocation154_spill] sm:$0xff] }
 0x43e   : > { %vm3875_vm15 = vcmp.eq.s32.totalorder %v8105_v18, 1  ;;  %v3748_v55 = vadd.f32 %v3744_v32, %v3699_v62  ;;  %v3834_v6 = vmul.f32 %v3817_v57, %v3812_v60  ;;  %v3909_v26 = vsel %vm3908_vm13, %v8099_v25, 0.0  ;;  %v10514_v30 = vld [vmem:[#allocation122_spill] sm:$0xff] }
 0x43f   : > { %v3876_v4 = vsel %vm3875_vm15, %v8099_v25, 0.0  ;;  %v8387_v56 = vadd.f32 %v4223_v45, %v4182_v63  ;;  %v8390_v5 = vmul.f32 %v4349_v29, %v7987_v27  ;;  %v3867_v36 = vmul.f32 %v3850_v50, %v10428_v35  ;;  %v10452_v45 = vld [vmem:[#allocation130_spill] sm:$0xff]  ;;  %v10454_v29 = vld [vmem:[#allocation97_spill] sm:$0xff] }
 0x440   : > { %v8393_v8 = vadd.f32 %v3877_v11, %v3876_v4  ;;  %v3793_v58 = vadd.f32 %v3789_v49, %v3748_v55  ;;  %v3910_v9 = vsel %vm3875_vm15, %v8079_v53, 0.0  ;;  %v3961_v44 = vrot.slane %v8308_v51, %v6352_v15  ;;  %v10453_v49 = vld [vmem:[#allocation62_spill] sm:$0xff] }
 0x441   : > { %10446 = vst [vmem:[#allocation87_spill] sm:$0xff] %v8387_v56  ;;  %10447 = vst [vmem:[#allocation42_spill] sm:$0xff] %v8390_v5  ;;  %v3982_v34 = vrot.slane %v8318_v23, %v6339_v12  ;;  %v8402_v18 = vadd.f32 %v3910_v9, %v3909_v26  ;;  %v4015_v27 = vrot.slane %v8321_v39, %v6339_v12  ;;  %v10457_v26 = vld [vmem:[#allocation149_spill] sm:$0xff]  ;;  %v10458_v9 = vld [vmem:[#allocation146_spill] sm:$0xff]  ;;  %vm4407_vm14 = vcmp.eq.s32.totalorder %v8000_v2, 4 }
 0x442   : > { %10448 = vst [vmem:[#allocation110_spill] sm:$0xff] %v8393_v8  ;;  %v3883_v25 = vrot.slane %v8393_v8, %v6339_v12  ;;  %v4540_v11 = vrot.slane %v8030_v46, %v6346_v13  ;;  %v3838_v3 = vadd.f32 %v3834_v6, %v3793_v58  ;;  %v8408_v38 = vmul.f32 %v3961_v44, %v3812_v60  ;;  %v10455_v60 = vld [vmem:[#allocation155_spill] sm:$0xff]  ;;  %v10456_v6 = vld [vmem:[#allocation150_spill] sm:$0xff]  ;;  %v10475_v39 = vld [vmem:[#allocation141_spill] sm:$0xff] }
 0x443   : > { %10449 = vst [vmem:[#allocation23_spill] sm:$0xff] %v8402_v18  ;;  %v3999_v53 = vmul.f32 %v3982_v34, %v10434_v1  ;;  %v4585_v10 = vrot.slane %v10451_v22, %v6346_v13  ;;  %v3916_v16 = vrot.slane %v8402_v18, %v6339_v12  ;;  %v4032_v32 = vmul.f32 %v4015_v27, %v10452_v45  ;;  %v10459_v27 = vld [vmem:[#allocation118_spill] sm:$0xff] }
 0x444   : > { %10450 = vst [vmem:[#allocation24_spill] sm:$0xff] %v8408_v38  ;;  %v3900_v62 = vmul.f32 %v3883_v25, %v10429_v17  ;;  %v4554_v57 = vmul.f32 %v4540_v11, %v10453_v49  ;;  %v3871_v63 = vadd.f32 %v3867_v36, %v3838_v3  ;;  %v4630_v55 = vrot.slane %v10455_v60, %v6346_v13  ;;  %v10470_v60 = vld [vmem:[#allocation41_spill] sm:$0xff]  ;;  %v10473_v38 = vld [vmem:[#allocation139_spill] sm:$0xff]  ;;  %v10474_v46 = vld [vmem:[#allocation142_spill] sm:$0xff] }
 0x445   : > { %v4599_v50 = vmul.f32 %v4585_v10, %v10454_v29  ;;  %vm4651_vm13 = vcmp.eq.s32.totalorder %v10456_v6, 4294967295  ;;  %v3933_v4 = vmul.f32 %v3916_v16, %v10430_v33  ;;  %v4653_v44 = vsel %vm4606_vm5, %v10458_v9, 0.0  ;;  %v8439_v16 = vpop.permute.xlu0 %4657 }
 0x446   : > { %v4652_v58 = vsel %vm4651_vm13, %v10457_v26, 0.0  ;;  %v4697_v34 = vsel %vm4696_vm2, %v10457_v26, 0.0  ;;  %v3904_v36 = vadd.f32 %v3900_v62, %v3871_v63  ;;  %v4644_v11 = vmul.f32 %v4630_v55, %v10459_v27  ;;  %10461 = vst [vmem:[#allocation130_spill] sm:$0xff] %v8439_v16 }
 0x447   : > { %v4603_v25 = vadd.f32 %v4599_v50, %v4554_v57  ;;  %v8431_v3 = vadd.f32 %v4653_v44, %v4652_v58  ;;  %v4698_v10 = vsel %vm4651_vm13, %v10458_v9, 0.0  ;;  %vm4795_vm7 = vcmp.eq.s32.totalorder %v10456_v6, 3  ;;  %v8451_v58 = vpop.permute.xlu1 %4195 }
 0x448   : > { %v4797_v33 = vsel %vm4762_vm10, %v10458_v9, 0.0  ;;  %vm4828_vm5 = vcmp.eq.s32.totalorder %v10456_v6, 4  ;;  %v3937_v5 = vadd.f32 %v3933_v4, %v3904_v36  ;;  %v8443_v57 = vadd.f32 %v4698_v10, %v4697_v34  ;;  %10463 = vst [vmem:[#allocation149_spill] sm:$0xff] %v8451_v58  ;;  %v10466_v10 = vld [vmem:[#allocation113_spill] sm:$0xff] }
 0x449   : > { %10460 = vst [vmem:[#allocation27_spill] sm:$0xff] %v8431_v3  ;;  %v4648_v56 = vadd.f32 %v4644_v11, %v4603_v25  ;;  %v4675_v62 = vrot.slane %v8431_v3, %v6346_v13  ;;  %v4796_v63 = vsel %vm4795_vm7, %v10457_v26, 0.0  ;;  %v4829_v50 = vsel %vm4828_vm5, %v10457_v26, 0.0  ;;  %v2626_v22 = vpop.permute.xlu0 %2625 }
 0x44a   : > { %10462 = vst [vmem:[#allocation150_spill] sm:$0xff] %v8443_v57  ;;  %v4830_v55 = vsel %vm4795_vm7, %v10458_v9, 0.0  ;;  %vm4861_vm2 = vcmp.eq.s32.totalorder %v10456_v6, 5  ;;  %v3970_v4 = vadd.f32 %v8328_v48, %v3937_v5  ;;  %v4708_v44 = vrot.slane %v8443_v57, %v6346_v13 }
 0x44b   : > { %v8456_v36 = vadd.f32 %v4797_v33, %v4796_v63  ;;  %v8458_v34 = vadd.f32 %v4830_v55, %v4829_v50  ;;  %v4862_v25 = vsel %vm4861_vm2, %v10457_v26, 0.0  ;;  %v4863_v11 = vsel %vm4828_vm5, %v10458_v9, 0.0  ;;  %v10469_v55 = vld [vmem:[#allocation72_spill] sm:$0xff] }
 0x44c   : > { %v4665_v37 = vsel %vm515_vm12, %v10466_v10, %v8439_v16  ;;  %v4115_v48 = vrot.slane %v8107_v52, %v6339_v12  ;;  %v4003_v5 = vadd.f32 %v3999_v53, %v3970_v4  ;;  %v4722_v33 = vmul.f32 %v4708_v44, %v10467_v47 }
 0x44d   : > { %10464 = vst [vmem:[#allocation146_spill] sm:$0xff] %v8456_v36  ;;  %10465 = vst [vmem:[#allocation118_spill] sm:$0xff] %v8458_v34  ;;  %v4803_v63 = vrot.slane %v8456_v36, %v6339_v12  ;;  %v8473_v50 = vadd.f32 %v4863_v11, %v4862_v25  ;;  %v4689_v26 = vmul.f32 %v4675_v62, %v4665_v37  ;;  %v10471_v11 = vld [vmem:[#allocation49_spill] sm:$0xff]  ;;  %vm4275_vm10 = vcmp.eq.s32.totalorder %v8000_v2, 0 }
 0x44e   : > { %v4132_v6 = vmul.f32 %v4115_v48, %v10469_v55  ;;  %v4160_v9 = vrot.slane %v8332_v0, %v6339_v12  ;;  %v4200_v16 = vsel %vm1727_vm4, %v8451_v58, %v10470_v60  ;;  %v4036_v53 = vadd.f32 %v4032_v32, %v4003_v5  ;;  %v10472_v55 = vld [vmem:[#allocation140_spill] sm:$0xff]  ;;  %v8493_v60 = vpop.permute.xlu1 %4661 }
 0x44f   : > { %10468 = vst [vmem:[#allocation113_spill] sm:$0xff] %v8473_v50  ;;  %v8482_v4 = vmul.f32 %v4803_v63, %v4665_v37  ;;  %v4205_v44 = vrot.slane %v8343_v7, %v6339_v12  ;;  %v4361_v62 = vrot.slane %v8366_v42, %v6352_v15  ;;  %v4693_v25 = vadd.f32 %v4689_v26, %v4648_v56  ;;  %v10478_v63 = vld [vmem:[#allocation126_spill] sm:$0xff]  ;;  %v10505_v42 = vld [vmem:[#allocation56_spill] sm:$0xff] }
 0x450   : > { %v4177_v48 = vmul.f32 %v4160_v9, %v10471_v11  ;;  %v2459_v17 = vcombine.low %v10473_v38, %v10472_v55  ;;  %v2460_v35 = vcombine.low %v10475_v39, %v10474_v46  ;;  %10476 = vst [vmem:[#allocation41_spill] sm:$0xff] %v8493_v60  ;;  %v4044_v32 = vrot.slane %v4036_v53, 4  ;;  %v10480_v9 = vld [vmem:[#allocation15_spill] sm:$0xff]  ;;  %v10506_v7 = vld [vmem:[#allocation64_spill] sm:$0xff] }
 0x451   : > { %v4222_v37 = vmul.f32 %v4205_v44, %v4200_v16  ;;  %v8495_v5 = vmul.f32 %v4361_v62, %v4200_v16  ;;  %v8500_v58 = vsel %vm515_vm12, %v2626_v22, %v10478_v63  ;;  %v8502_v56 = vadd.f32 %v4722_v33, %v4693_v25  ;;  %v10481_v46 = vld [vmem:[#allocation115_spill] sm:$0xff] }
 0x452   : > { %v4181_v26 = vadd.f32 %v4177_v48, %v4132_v6  ;;  %v2467_v11 = vrot.slane %v2459_v17, %v10480_v9  ;;  %v2474_v38 = vrot.slane %v2460_v35, %v10480_v9  ;;  %4052 = vst [vmem:[#allocation3 + $0x40] sm:$0xf0] %v4044_v32  ;;  %v8509_v39 = vsel %vm515_vm12, %v10481_v46, %v2626_v22  ;;  %v10483_v6 = vld [vmem:[#allocation157_spill] sm:$0xff]  ;;  %v10484_v22 = vld [vmem:[#allocation158_spill] sm:$0xff] }
 0x453   : > { %10477 = vst [vmem:[#allocation140_spill] sm:$0xff] %v8495_v5  ;;  %10479 = vst [vmem:[#allocation139_spill] sm:$0xff] %v8502_v56  ;;  %v4666_v16 = vsel %vm515_vm12, %v8493_v60, %v10466_v10  ;;  %v4671_v33 = vrot.slane %v8431_v3, %v6339_v12  ;;  %v4704_v55 = vrot.slane %v8443_v57, %v6339_v12 }
 0x454   : > { %v8519_v17 = vadd.f32 %v4222_v37, %v4181_v26  ;;  %v2475_v35 = vcombine.high %v2467_v11, %v2474_v38  ;;  %v4737_v53 = vrot.slane %v10483_v6, %v6339_v12  ;;  %v4770_v44 = vrot.slane %v10484_v22, %v6339_v12  ;;  %v10485_v26 = vld [vmem:[#allocation160_spill] sm:$0xff] }
 0x455   : > { %v4688_v62 = vmul.f32 %v4671_v33, %v4666_v16  ;;  %v4721_v25 = vmul.f32 %v4704_v55, %v10453_v49  ;;  %v4815_v10 = vrot.slane %v8456_v36, %v6352_v15  ;;  %v4836_v48 = vrot.slane %v8458_v34, %v6339_v12  ;;  %v10487_v49 = vld [vmem:[#allocation48_spill] sm:$0xff] }
 0x456   : > { %10482 = vst [vmem:[#allocation142_spill] sm:$0xff] %v8519_v17  ;;  %v2482_v32 = vrot.slane %v2475_v35, %v10480_v9  ;;  %v4754_v37 = vmul.f32 %v4737_v53, %v10454_v29  ;;  %v4787_v11 = vmul.f32 %v4770_v44, %v10459_v27  ;;  %v4869_v63 = vrot.slane %v8473_v50, %v6339_v12 }
 0x457   : > { %v4692_v38 = vadd.f32 %v4688_v62, %v10485_v26  ;;  %v8536_v46 = vmul.f32 %v4815_v10, %v4666_v16  ;;  %v4853_v33 = vmul.f32 %v4836_v48, %v10467_v47  ;;  %v3690_v55 = vrot.slane %v8251_v21, %v6349_v14  ;;  %v3761_v10 = vpop.permute.xlu0 %3760  ;;  %v10488_v48 = vld [vmem:[#allocation143_spill] sm:$0xff]  ;;  %v10511_v47 = vld [vmem:[#allocation105_spill] sm:$0xff] }
 0x458   : > { %v2483_v60 = vcombine.high %v2482_v32, %v2482_v32  ;;  %v4886_v5 = vmul.f32 %v4869_v63, %v10487_v49  ;;  %v3694_v35 = vrot.slane %v8251_v21, %v6352_v15  ;;  %v3735_v27 = vrot.slane %v8253_v43, %v6349_v14  ;;  %v10489_v26 = vld [vmem:[#allocation31_spill] sm:$0xff] }
 0x459   : > { %10486 = vst [vmem:[#allocation141_spill] sm:$0xff] %v8536_v46  ;;  %v4725_v53 = vadd.f32 %v4721_v25, %v4692_v38  ;;  %v3701_v44 = vmul.f32 %v3690_v55, %v10434_v1  ;;  %v3739_v16 = vrot.slane %v8253_v43, %v6352_v15  ;;  %v3780_v62 = vrot.slane %v8276_v54, %v6349_v14  ;;  %v10490_v25 = vld [vmem:[#allocation129_spill] sm:$0xff] }
 0x45a   : > { %v2485_v32 = vadd.f32 %v10488_v48, %v2483_v60  ;;  %v3702_v63 = vmul.f32 %v3694_v35, %v10489_v26  ;;  %v3746_v9 = vmul.f32 %v3735_v27, %v10452_v45  ;;  %v3784_v21 = vrot.slane %v8276_v54, %v6352_v15  ;;  %v10491_v35 = vld [vmem:[#allocation136_spill] sm:$0xff] }
 0x45b   : > { %v4758_v46 = vadd.f32 %v4754_v37, %v4725_v53  ;;  %v3747_v38 = vmul.f32 %v3739_v16, %v10490_v25  ;;  %v3887_v1 = vrot.slane %v8393_v8, %v6346_v13  ;;  %v3920_v43 = vrot.slane %v8402_v18, %v6346_v13  ;;  %v10492_v53 = vld [vmem:[#allocation117_spill] sm:$0xff] }
 0x45c   : > { %v2486_v55 = vmax.f32 %v2485_v32, 0.0  ;;  %v3750_v29 = vadd.f32 %v3746_v9, %v3701_v44  ;;  %v3924_v60 = vrot.slane %v8402_v18, %v6349_v14  ;;  %v3764_v27 = vsel %vm1727_vm4, %v3761_v10, %v10491_v35 }
 0x45d   : > { %v4791_v48 = vadd.f32 %v4787_v11, %v4758_v46  ;;  %v3751_v54 = vadd.f32 %v3747_v38, %v3702_v63  ;;  %v3901_v37 = vmul.f32 %v3887_v1, %v10452_v45  ;;  %v3765_v16 = vsel %vm1727_vm4, %v10492_v53, %v3761_v10  ;;  %v10497_v38 = vld [vmem:[#allocation67_spill] sm:$0xff] }
 0x45e   : > { %v2487_v50 = vmin.f32 %v2486_v55, 15.0  ;;  %v3791_v34 = vmul.f32 %v3780_v62, %v3765_v16  ;;  %v3792_v36 = vmul.f32 %v3784_v21, %v3764_v27  ;;  %v3934_v32 = vmul.f32 %v3920_v43, %v3765_v16 }
 0x45f   : > { %v4824_v9 = vadd.f32 %v8482_v4, %v4791_v48  ;;  %v3905_v44 = vadd.f32 %v3901_v37, %v8340_v20  ;;  %v8572_v57 = vmul.f32 %v3924_v60, %v3764_v27  ;;  %v4123_v11 = vrot.slane %v8107_v52, %v6349_v14  ;;  %v10504_v20 = vld [vmem:[#allocation57_spill] sm:$0xff] }
 0x460   : > { %v2488_v46 = vfloor.f32 %v2487_v50  ;;  %v8576_v63 = vadd.f32 %v3791_v34, %v3750_v29  ;;  %v8578_v45 = vadd.f32 %v3792_v36, %v3751_v54  ;;  %v4127_v10 = vrot.slane %v8107_v52, %v6352_v15  ;;  %v6071_v29 = vld [vmem:[%s9875_s11] sm:$0xf]  ;;  %v10498_v34 = vld [vmem:[#allocation131_spill] sm:$0xff] }
 0x461   : > { %10493 = vst [vmem:[#allocation126_spill] sm:$0xff] %v8572_v57  ;;  %v4857_v62 = vadd.f32 %v4853_v33, %v4824_v9  ;;  %v8582_v21 = vadd.f32 %v3934_v32, %v3905_v44  ;;  %v8585_v4 = vmul.f32 %v4123_v11, %v10497_v38  ;;  %v4309_v55 = vsel %vm4308_vm0, %v8020_v31, 0.0  ;;  %v10501_v9 = vld [vmem:[#allocation137_spill] sm:$0xff] }
 0x462   : > { %10494 = vst [vmem:[#allocation115_spill] sm:$0xff] %v8576_v63  ;;  %10495 = vst [vmem:[#allocation160_spill] sm:$0xff] %v8578_v45  ;;  %v8589_v1 = vsub.f32 %v2487_v50, %v2488_v46  ;;  %v2491_v36 = vsub.f32 %v2488_v46, %v6071_v29  ;;  %v8595_v43 = vmul.f32 %v4127_v10, %v10498_v34  ;;  %v4149_v50 = vpop.permute.xlu0 %4148  ;;  %v8608_v27 = vsel %vm4275_vm10, %v8020_v31, 0.0  ;;  %v10512_v57 = vld [vmem:[#allocation93_spill] sm:$0xff] }
 0x463   : > { %10496 = vst [vmem:[#allocation143_spill] sm:$0xff] %v8582_v21  ;;  %v4890_v33 = vadd.f32 %v4886_v5, %v4857_v62  ;;  %10499 = vst [vmem:[#allocation136_spill] sm:$0xff] %v8608_v27  ;;  %v4310_v48 = vsel %vm4275_vm10, %v7989_v59, 0.0  ;;  %v8614_v37 = vsel %vm4407_vm14, %v8020_v31, 0.0  ;;  %vm4440_vm0 = vcmp.eq.s32.totalorder %v8000_v2, 5  ;;  %v10502_v62 = vld [vmem:[#allocation119_spill] sm:$0xff] }
 0x464   : > { %v8605_v60 = vsub.f32 1.0, %v8589_v1  ;;  %v5969_v35 = vtrunc.f32 %v2491_v36  ;;  %v8611_v5 = vadd.f32 %v4310_v48, %v4309_v55  ;;  %10500 = vst [vmem:[#allocation117_spill] sm:$0xff] %v8614_v37  ;;  %v4441_v16 = vsel %vm4440_vm0, %v8020_v31, 0.0  ;;  %v10507_v37 = vld [vmem:[#allocation82_spill] sm:$0xff]  ;;  %v10513_v21 = vld [vmem:[#allocation123_spill] sm:$0xff] }
 0x465   : > { %v4898_v54 = vrot.slane %v4890_v33, 4  ;;  %v4442_v32 = vsel %vm4407_vm14, %v7989_v59, 0.0  ;;  %v8624_v44 = vsel %vm811_vm11, %v4149_v50, %v10501_v9  ;;  %v8635_v29 = vsel %vm811_vm11, %v10502_v62, %v4149_v50  ;;  %v10508_v27 = vld [vmem:[#allocation78_spill] sm:$0xff] }
 0x466   : > { %v8617_v53 = vcvt.f32.s32 %v5969_v35  ;;  %v8630_v10 = vadd.f32 %v4442_v32, %v4441_v16  ;;  %v10509_v59 = vld [vmem:[#allocation86_spill] sm:$0xff] }
 0x467   : > { %4906 = vst [vmem:[#allocation3 + $0x60] sm:$0xf0] %v4898_v54  ;;  %v10510_v2 = vld [vmem:[#allocation106_spill] sm:$0xff] }
 0x468   : > { %vm2493_vm15 = vcmp.eq.s32.totalorder %v8617_v53, 4294967292  ;;  %vm2495_vm13 = vcmp.eq.s32.totalorder %v8617_v53, 4294967291  ;;  %vm2527_vm7 = vcmp.eq.s32.totalorder %v8617_v53, 4294967293  ;;  %vm2572_vm5 = vcmp.eq.s32.totalorder %v8617_v53, 4294967294 }
 0x469   : > { %v2494_v36 = vsel %vm2493_vm15, %v8605_v60, 0.0  ;;  %v2496_v33 = vsel %vm2495_vm13, %v8589_v1, 0.0  ;;  %v2528_v55 = vsel %vm2527_vm7, %v8605_v60, 0.0  ;;  %v2529_v35 = vsel %vm2493_vm15, %v8589_v1, 0.0 }
 0x46a   : > { %v2497_v48 = vadd.f32 %v2496_v33, %v2494_v36  ;;  %v2530_v54 = vadd.f32 %v2529_v35, %v2528_v55  ;;  %v2573_v50 = vsel %vm2572_vm5, %v8605_v60, 0.0  ;;  %v2574_v16 = vsel %vm2527_vm7, %v8589_v1, 0.0 }
 0x46b   : > { %v2575_v32 = vadd.f32 %v2574_v16, %v2573_v50  ;;  %vm2617_vm2 = vcmp.eq.s32.totalorder %v8617_v53, 4294967295  ;;  %v2619_v9 = vsel %vm2572_vm5, %v8589_v1, 0.0  ;;  %vm2662_vm10 = vcmp.eq.s32.totalorder %v8617_v53, 0  ;;  %v10503_v16 = vld [vmem:[#allocation60_spill] sm:$0xff] }
 0x46c   : > { %v2502_v62 = vrot.slane %v2497_v48, %v6339_v12  ;;  %v2506_v46 = vrot.slane %v2497_v48, %v6346_v13  ;;  %v2510_v11 = vrot.slane %v2497_v48, %v6349_v14  ;;  %v2514_v36 = vrot.slane %v2497_v48, %v6352_v15 }
 0x46d   : > { %v2547_v33 = vrot.slane %v2530_v54, %v6339_v12  ;;  %v2551_v55 = vrot.slane %v2530_v54, %v6346_v13  ;;  %v2555_v35 = vrot.slane %v2530_v54, %v6349_v14  ;;  %v2559_v50 = vrot.slane %v2530_v54, %v6352_v15 }
 0x46e   : > { %v2519_v52 = vmul.f32 %v2502_v62, %v10503_v16  ;;  %v2520_v3 = vmul.f32 %v2506_v46, %v10504_v20  ;;  %v2521_v34 = vmul.f32 %v2510_v11, %v10505_v42  ;;  %v2522_v17 = vmul.f32 %v2514_v36, %v10506_v7 }
 0x46f   : > { %v2564_v38 = vmul.f32 %v2547_v33, %v10507_v37  ;;  %v2565_v48 = vmul.f32 %v2551_v55, %v10508_v27  ;;  %v2566_v31 = vmul.f32 %v2555_v35, %v10509_v59  ;;  %v2567_v56 = vmul.f32 %v2559_v50, %v10510_v2 }
 0x470   : > { %v2592_v22 = vrot.slane %v2575_v32, %v6339_v12  ;;  %v2596_v54 = vrot.slane %v2575_v32, %v6346_v13  ;;  %v2600_v62 = vrot.slane %v2575_v32, %v6349_v14  ;;  %v2604_v46 = vrot.slane %v2575_v32, %v6352_v15 }
 0x471   : > { %v2568_v49 = vadd.f32 %v2564_v38, %v2519_v52  ;;  %v2569_v11 = vadd.f32 %v2565_v48, %v2520_v3  ;;  %v2570_v6 = vadd.f32 %v2566_v31, %v2521_v34  ;;  %v2571_v36 = vadd.f32 %v2567_v56, %v2522_v17 }
 0x472   : > { %v2609_v33 = vmul.f32 %v2592_v22, %v10511_v47  ;;  %v2610_v55 = vmul.f32 %v2596_v54, %v10512_v57  ;;  %v2611_v35 = vmul.f32 %v2600_v62, %v10513_v21  ;;  %v2612_v50 = vmul.f32 %v2604_v46, %v10514_v30 }
 0x473   : > { %v2618_v23 = vsel %vm2617_vm2, %v8605_v60, 0.0  ;;  %v2663_v32 = vsel %vm2662_vm10, %v8605_v60, 0.0  ;;  %v2664_v31 = vsel %vm2617_vm2, %v8589_v1, 0.0  ;;  %vm2695_vm14 = vcmp.eq.s32.totalorder %v8617_v53, 1 }
 0x474   : > { %v2613_v3 = vadd.f32 %v2609_v33, %v2568_v49  ;;  %v2614_v56 = vadd.f32 %v2610_v55, %v2569_v11  ;;  %v8684_v17 = vadd.f32 %v2611_v35, %v2570_v6  ;;  %v8686_v22 = vadd.f32 %v2612_v50, %v2571_v36  ;;  %v10515_v55 = vld [vmem:[#allocation53_spill] sm:$0xff]  ;;  %v10516_v50 = vld [vmem:[#allocation98_spill] sm:$0xff] }
 0x475   : > { %v8688_v38 = vadd.f32 %v2619_v9, %v2618_v23  ;;  %v2665_v34 = vadd.f32 %v2664_v31, %v2663_v32  ;;  %v2696_v52 = vsel %vm2695_vm14, %v8605_v60, 0.0  ;;  %v2697_v48 = vsel %vm2662_vm10, %v8589_v1, 0.0 }
 0x476   : > { %v2698_v54 = vadd.f32 %v2697_v48, %v2696_v52  ;;  %vm2728_vm0 = vcmp.eq.s32.totalorder %v8617_v53, 2  ;;  %v2730_v62 = vsel %vm2695_vm14, %v8589_v1, 0.0  ;;  %vm2761_vm15 = vcmp.eq.s32.totalorder %v8617_v53, 3 }
 0x477   : > { %v2637_v49 = vrot.slane %v8688_v38, %v6339_v12  ;;  %v2641_v23 = vrot.slane %v8688_v38, %v6346_v13  ;;  %v2645_v6 = vrot.slane %v8688_v38, %v6349_v14  ;;  %v2649_v9 = vrot.slane %v8688_v38, %v6352_v15 }
 0x478   : > { %v2670_v46 = vrot.slane %v2665_v34, %v6339_v12  ;;  %v2674_v11 = vrot.slane %v2665_v34, %v6346_v13  ;;  %v2678_v36 = vrot.slane %v2665_v34, %v6349_v14  ;;  %v2682_v33 = vrot.slane %v2665_v34, %v6352_v15 }
 0x479   : > { %v2654_v35 = vmul.f32 %v2637_v49, %v10515_v55  ;;  %v2655_v32 = vmul.f32 %v2641_v23, %v10516_v50  ;;  %v2703_v31 = vrot.slane %v2698_v54, %v6339_v12  ;;  %v2707_v52 = vrot.slane %v2698_v54, %v6346_v13 }
 0x47a   : > { %v2687_v48 = vmul.f32 %v2670_v46, %v10504_v20  ;;  %v2688_v38 = vmul.f32 %v2674_v11, %v10505_v42  ;;  %v8716_v51 = vmul.f32 %v2678_v36, %v10506_v7  ;;  %v8719_v18 = vmul.f32 %v2682_v33, %v10503_v16 }
 0x47b   : > { %v2658_v45 = vadd.f32 %v2654_v35, %v2613_v3  ;;  %v2659_v34 = vadd.f32 %v2655_v32, %v2614_v56  ;;  %v2711_v49 = vrot.slane %v2698_v54, %v6349_v14  ;;  %v2715_v23 = vrot.slane %v2698_v54, %v6352_v15 }
 0x47c   : > { %v2720_v63 = vmul.f32 %v2703_v31, %v10508_v27  ;;  %v2721_v40 = vmul.f32 %v2707_v52, %v10509_v59  ;;  %v2729_v46 = vsel %vm2728_vm0, %v8605_v60, 0.0  ;;  %v2762_v11 = vsel %vm2761_vm15, %v8605_v60, 0.0 }
 0x47d   : > { %v2691_v36 = vadd.f32 %v2687_v48, %v2658_v45  ;;  %v2692_v33 = vadd.f32 %v2688_v38, %v2659_v34  ;;  %v8732_v3 = vmul.f32 %v2711_v49, %v10510_v2  ;;  %v8735_v56 = vmul.f32 %v2715_v23, %v10507_v37 }
 0x47e   : > { %v2731_v54 = vadd.f32 %v2730_v62, %v2729_v46  ;;  %v2763_v35 = vsel %vm2728_vm0, %v8589_v1, 0.0  ;;  %vm2794_vm13 = vcmp.eq.s32.totalorder %v8617_v53, 4  ;;  %v2796_v32 = vsel %vm2761_vm15, %v8589_v1, 0.0 }
 0x47f   : > { %v2724_v31 = vadd.f32 %v2720_v63, %v2691_v36  ;;  %v2725_v45 = vadd.f32 %v2721_v40, %v2692_v33  ;;  %v2764_v52 = vadd.f32 %v2763_v35, %v2762_v11  ;;  %v2795_v48 = vsel %vm2794_vm13, %v8605_v60, 0.0 }
 0x480   : > { %v2736_v38 = vrot.slane %v2731_v54, %v6339_v12  ;;  %v2740_v62 = vrot.slane %v2731_v54, %v6346_v13  ;;  %v2744_v34 = vrot.slane %v2731_v54, %v6349_v14  ;;  %v2748_v49 = vrot.slane %v2731_v54, %v6352_v15 }
 0x481   : > { %v2769_v23 = vrot.slane %v2764_v52, %v6339_v12  ;;  %v2773_v46 = vrot.slane %v2764_v52, %v6346_v13  ;;  %v2777_v63 = vrot.slane %v2764_v52, %v6349_v14  ;;  %v2781_v40 = vrot.slane %v2764_v52, %v6352_v15 }
 0x482   : > { %v2753_v11 = vmul.f32 %v2736_v38, %v10512_v57  ;;  %v2754_v36 = vmul.f32 %v2740_v62, %v10513_v21  ;;  %v2755_v33 = vmul.f32 %v2744_v34, %v10514_v30  ;;  %v2756_v35 = vmul.f32 %v2748_v49, %v10511_v47 }
 0x483   : > { %v2786_v25 = vmul.f32 %v2769_v23, %v10516_v50  ;;  %v2789_v54 = vmul.f32 %v2781_v40, %v10515_v55  ;;  %v2797_v61 = vadd.f32 %v2796_v32, %v2795_v48  ;;  %vm2827_vm7 = vcmp.eq.s32.totalorder %v8617_v53, 5  ;;  %v8776_v48 = vpop.permute.xlu1 %4236 }
 0x484   : > { %v2757_v26 = vadd.f32 %v2753_v11, %v2724_v31  ;;  %v2758_v8 = vadd.f32 %v2754_v36, %v2725_v45  ;;  %v2828_v24 = vsel %vm2827_vm7, %v8605_v60, 0.0  ;;  %v2829_v57 = vsel %vm2794_vm13, %v8589_v1, 0.0 }
 0x485   : > { %v2802_v21 = vrot.slane %v2797_v61, %v6339_v12  ;;  %v2806_v30 = vrot.slane %v2797_v61, %v6346_v13  ;;  %v2810_v47 = vrot.slane %v2797_v61, %v6349_v14  ;;  %v2814_v50 = vrot.slane %v2797_v61, %v6352_v15 }
 0x486   : > { %v2790_v55 = vadd.f32 %v2786_v25, %v2757_v26  ;;  %v2830_v32 = vadd.f32 %v2829_v57, %v2828_v24  ;;  %v2656_v52 = vmul.f32 %v2645_v6, %v8509_v39  ;;  %v2657_v31 = vmul.f32 %v2649_v9, %v8500_v58 }
 0x487   : > { %v2819_v60 = vmul.f32 %v2802_v21, %v10505_v42  ;;  %v2820_v45 = vmul.f32 %v2806_v30, %v10506_v7  ;;  %v2821_v1 = vmul.f32 %v2810_v47, %v10503_v16  ;;  %v2822_v53 = vmul.f32 %v2814_v50, %v10504_v20 }
 0x488   : > { %v2835_v38 = vrot.slane %v2830_v32, %v6339_v12  ;;  %v2839_v61 = vrot.slane %v2830_v32, %v6346_v13  ;;  %v2843_v24 = vrot.slane %v2830_v32, %v6349_v14  ;;  %v2847_v26 = vrot.slane %v2830_v32, %v6352_v15  ;;  %v10521_v32 = vld [vmem:[#allocation61_spill] sm:$0xff] }
 0x489   : > { %v2823_v25 = vadd.f32 %v2819_v60, %v2790_v55  ;;  %v2660_v6 = vadd.f32 %v2656_v52, %v8684_v17  ;;  %v2661_v42 = vadd.f32 %v2657_v31, %v8686_v22  ;;  %v2787_v7 = vmul.f32 %v2773_v46, %v8509_v39 }
 0x48a   : > { %v2852_v16 = vmul.f32 %v2835_v38, %v10509_v59  ;;  %v2853_v20 = vmul.f32 %v2839_v61, %v10510_v2  ;;  %v2854_v9 = vmul.f32 %v2843_v24, %v10507_v37  ;;  %v2855_v62 = vmul.f32 %v2847_v26, %v10508_v27  ;;  %v10524_v26 = vld [vmem:[#allocation31_spill] sm:$0xff] }
 0x48b   : > { %v2693_v34 = vadd.f32 %v8716_v51, %v2660_v6  ;;  %v2694_v49 = vadd.f32 %v8719_v18, %v2661_v42  ;;  %v2788_v23 = vmul.f32 %v2777_v63, %v8500_v58  ;;  %v2791_v40 = vadd.f32 %v2787_v7, %v2758_v8  ;;  %v3806_v58 = vpop.permute.xlu1 %3805  ;;  %v10525_v6 = vld [vmem:[#allocation32_spill] sm:$0xff]  ;;  %v10526_v42 = vld [vmem:[#allocation129_spill] sm:$0xff] }
 0x48c   : > { %v2856_v17 = vadd.f32 %v2852_v16, %v2823_v25  ;;  %v4448_v22 = vrot.slane %v8630_v10, %v6339_v12  ;;  %v4452_v59 = vrot.slane %v8630_v10, %v6346_v13  ;;  %v10517_v18 = vrot.slane %v8332_v0, %v6349_v14  ;;  %v10527_v16 = vld [vmem:[#allocation112_spill] sm:$0xff] }
 0x48d   : > { %v2726_v39 = vadd.f32 %v8732_v3, %v2693_v34  ;;  %v2727_v27 = vadd.f32 %v8735_v56, %v2694_v49  ;;  %v2824_v51 = vadd.f32 %v2820_v45, %v2791_v40  ;;  %v10518_v37 = vrot.slane %v8332_v0, %v6352_v15 }
 0x48e   : > { %v4179_v8 = vmul.f32 %v10517_v18, %v8635_v29  ;;  %2860 = vst [vmem:[#allocation3 + $0x20] sm:$0xf] %v2856_v17  ;;  %v10519_v63 = vrot.slane %v8611_v5, %v6346_v13  ;;  %v10520_v56 = vrot.slane %v8611_v5, %v6349_v14  ;;  %v8821_v36 = vmul.f32 %v4448_v22, %v8635_v29  ;;  %v10529_v17 = vld [vmem:[#allocation160_spill] sm:$0xff] }
 0x48f   : > { %v4180_v46 = vmul.f32 %v10518_v37, %v8624_v44  ;;  %v2759_v57 = vadd.f32 %v2755_v33, %v2726_v39  ;;  %v2760_v21 = vadd.f32 %v2756_v35, %v2727_v27  ;;  %v2857_v30 = vadd.f32 %v2853_v20, %v2824_v51  ;;  %v10532_v51 = vld [vmem:[#allocation55_spill] sm:$0xff]  ;;  %v10533_v37 = vld [vmem:[#allocation46_spill] sm:$0xff] }
 0x490   : > { %v8812_v3 = vmul.f32 %v10519_v63, %v8635_v29  ;;  %v8818_v11 = vmul.f32 %v10520_v56, %v8624_v44  ;;  %v8824_v0 = vadd.f32 %v4179_v8, %v8585_v4  ;;  %v8830_v50 = vmul.f32 %v4452_v59, %v8624_v44  ;;  %v10522_v44 = vld [vmem:[#allocation59_spill] sm:$0xff] }
 0x491   : > { %v8827_v47 = vadd.f32 %v4180_v46, %v8595_v43  ;;  %v3809_v55 = vsel %vm515_vm12, %v3806_v58, %v8346_v19  ;;  %v3810_v29 = vsel %vm515_vm12, %v10521_v32, %v3806_v58  ;;  %v2792_v33 = vadd.f32 %v2788_v23, %v2759_v57  ;;  %2861 = vst [vmem:[#allocation3 + $0x28] sm:$0xf] %v2857_v30  ;;  %v10523_v19 = vld [vmem:[#allocation110_spill] sm:$0xff]  ;;  %v10528_v23 = vld [vmem:[#allocation115_spill] sm:$0xff] }
 0x492   : > { %v2793_v35 = vadd.f32 %v2789_v54, %v2760_v21  ;;  %v3825_v4 = vrot.slane %v8287_v28, %v6349_v14  ;;  %v3829_v43 = vrot.slane %v8287_v28, %v6352_v15  ;;  %v3858_v52 = vrot.slane %v10522_v44, %v6349_v14  ;;  %v10530_v59 = vld [vmem:[#allocation23_spill] sm:$0xff] }
 0x493   : > { %v3862_v31 = vrot.slane %v10522_v44, %v6352_v15  ;;  %v3891_v60 = vrot.slane %v10523_v19, %v6349_v14  ;;  %v3895_v45 = vrot.slane %v10523_v19, %v6352_v15  ;;  %v2825_v54 = vadd.f32 %v2821_v1, %v2792_v33  ;;  %v10534_v33 = vld [vmem:[#allocation28_spill] sm:$0xff] }
 0x494   : > { %v2826_v38 = vadd.f32 %v2822_v53, %v2793_v35  ;;  %v3836_v61 = vmul.f32 %v3825_v4, %v3810_v29  ;;  %v3837_v24 = vmul.f32 %v3829_v43, %v3809_v55  ;;  %v3869_v25 = vmul.f32 %v3858_v52, %v10524_v26  ;;  %v10531_v53 = vld [vmem:[#allocation54_spill] sm:$0xff]  ;;  %v10535_v4 = vld [vmem:[#allocation143_spill] sm:$0xff]  ;;  %v10536_v44 = vld [vmem:[#allocation100_spill] sm:$0xff] }
 0x495   : > { %v3870_v28 = vmul.f32 %v3862_v31, %v10525_v6  ;;  %v3902_v7 = vmul.f32 %v3891_v60, %v10526_v42  ;;  %v3903_v20 = vmul.f32 %v3895_v45, %v10527_v16  ;;  %v2858_v34 = vadd.f32 %v2854_v9, %v2825_v54  ;;  %v10538_v45 = vld [vmem:[#allocation153_spill] sm:$0xff] }
 0x496   : > { %v2859_v49 = vadd.f32 %v2855_v62, %v2826_v38  ;;  %v3840_v40 = vadd.f32 %v3836_v61, %v10528_v23  ;;  %v3841_v22 = vadd.f32 %v3837_v24, %v10529_v17  ;;  %v3928_v1 = vrot.slane %v10530_v59, %v6352_v15  ;;  %v10542_v23 = vld [vmem:[#allocation71_spill] sm:$0xff] }
 0x497   : > { %v3953_v39 = vrot.slane %v10531_v53, %v6346_v13  ;;  %v3957_v27 = vrot.slane %v10531_v53, %v6349_v14  ;;  %v3986_v18 = vrot.slane %v10532_v51, %v6346_v13  ;;  %2862 = vst [vmem:[#allocation3 + $0x30] sm:$0xf] %v2858_v34  ;;  %v3990_v8 = vrot.slane %v10532_v51, %v6349_v14  ;;  %v10541_v34 = vld [vmem:[#allocation63_spill] sm:$0xff] }
 0x498   : > { %2863 = vst [vmem:[#allocation3 + $0x38] sm:$0xf] %v2859_v49  ;;  %v3873_v9 = vadd.f32 %v3869_v25, %v3840_v40  ;;  %v3874_v62 = vadd.f32 %v3870_v28, %v3841_v22  ;;  %v3994_v58 = vrot.slane %v10532_v51, %v6352_v15  ;;  %v3936_v46 = vmul.f32 %v3928_v1, %v10533_v37  ;;  %v10539_v25 = vld [vmem:[#allocation95_spill] sm:$0xff]  ;;  %v10543_v22 = vld [vmem:[#allocation154_spill] sm:$0xff] }
 0x499   : > { %v3967_v63 = vmul.f32 %v3953_v39, %v3810_v29  ;;  %v3968_v56 = vmul.f32 %v3957_v27, %v3809_v55  ;;  %v4000_v57 = vmul.f32 %v3986_v18, %v10524_v26  ;;  %v4001_v32 = vmul.f32 %v3990_v8, %v10525_v6  ;;  %v10537_v55 = vld [vmem:[#allocation126_spill] sm:$0xff]  ;;  %v10545_v18 = vld [vmem:[#allocation157_spill] sm:$0xff]  ;;  %v10546_v8 = vld [vmem:[#allocation48_spill] sm:$0xff] }
 0x49a   : > { %v3906_v21 = vadd.f32 %v3902_v7, %v3873_v9  ;;  %v3907_v30 = vadd.f32 %v3903_v20, %v3874_v62  ;;  %v4002_v35 = vmul.f32 %v3994_v58, %v10534_v33  ;;  %v4019_v52 = vrot.slane %v10536_v44, %v6346_v13  ;;  %v10540_v7 = vld [vmem:[#allocation24_spill] sm:$0xff]  ;;  %v10547_v37 = vld [vmem:[#allocation47_spill] sm:$0xff] }
 0x49b   : > { %v3971_v43 = vadd.f32 %v3967_v63, %v10535_v4  ;;  %v4023_v31 = vrot.slane %v10536_v44, %v6349_v14  ;;  %v4027_v29 = vrot.slane %v10536_v44, %v6352_v15  ;;  %v4544_v54 = vrot.slane %v10538_v45, %v6349_v14  ;;  %v10548_v63 = vld [vmem:[#allocation158_spill] sm:$0xff]  ;;  %v10549_v4 = vld [vmem:[#allocation45_spill] sm:$0xff] }
 0x49c   : > { %v3939_v19 = vadd.f32 %v10537_v55, %v3906_v21  ;;  %v3940_v60 = vadd.f32 %v3936_v46, %v3907_v30  ;;  %v4548_v38 = vrot.slane %v10538_v45, %v6352_v15  ;;  %v4033_v24 = vmul.f32 %v4019_v52, %v10526_v42  ;;  %v10544_v42 = vld [vmem:[#allocation155_spill] sm:$0xff]  ;;  %v10550_v44 = vld [vmem:[#allocation121_spill] sm:$0xff] }
 0x49d   : > { %v4004_v61 = vadd.f32 %v4000_v57, %v3971_v43  ;;  %v4034_v26 = vmul.f32 %v4023_v31, %v10527_v16  ;;  %v4035_v6 = vmul.f32 %v4027_v29, %v10539_v25  ;;  %v4555_v49 = vmul.f32 %v4544_v54, %v10541_v34  ;;  %v4615_v16 = vpop.permute.xlu0 %4614  ;;  %v10551_v55 = vld [vmem:[#allocation139_spill] sm:$0xff]  ;;  %v8919_v25 = vpop.permute.xlu1 %4240 }
 0x49e   : > { %v3972_v28 = vadd.f32 %v3968_v56, %v3939_v19  ;;  %v3973_v20 = vadd.f32 %v10540_v7, %v3940_v60  ;;  %v4556_v40 = vmul.f32 %v4548_v38, %v10542_v23  ;;  %v4589_v59 = vrot.slane %v10543_v22, %v6349_v14  ;;  %v10554_v7 = vld [vmem:[#allocation145_spill] sm:$0xff] }
 0x49f   : > { %v4037_v17 = vadd.f32 %v4033_v24, %v4004_v61  ;;  %v4593_v1 = vrot.slane %v10543_v22, %v6352_v15  ;;  %v4634_v53 = vrot.slane %v10544_v42, %v6349_v14  ;;  %v4638_v51 = vrot.slane %v10544_v42, %v6352_v15  ;;  %v10552_v61 = vld [vmem:[#allocation147_spill] sm:$0xff]  ;;  %v10555_v22 = vld [vmem:[#allocation136_spill] sm:$0xff] }
 0x4a0   : > { %v4005_v39 = vadd.f32 %v4001_v32, %v3972_v28  ;;  %v4006_v27 = vadd.f32 %v4002_v35, %v3973_v20  ;;  %v4741_v9 = vrot.slane %v10545_v18, %v6346_v13  ;;  %v4600_v58 = vmul.f32 %v4589_v59, %v10546_v8 }
 0x4a1   : > { %v4045_v62 = vrot.slane %v4037_v17, 4  ;;  %v4601_v46 = vmul.f32 %v4593_v1, %v10547_v37  ;;  %v4774_v56 = vrot.slane %v10548_v63, %v6346_v13  ;;  %v4778_v32 = vrot.slane %v10548_v63, %v6349_v14  ;;  %v4235_v24 = vpop.permute.xlu0 %4234  ;;  %v10557_v63 = vld [vmem:[#allocation66_spill] sm:$0xff] }
 0x4a2   : > { %v4038_v57 = vadd.f32 %v4034_v26, %v4005_v39  ;;  %v4039_v21 = vadd.f32 %v4035_v6, %v4006_v27  ;;  %v4755_v30 = vmul.f32 %v4741_v9, %v10546_v8  ;;  %v4604_v33 = vadd.f32 %v4600_v58, %v4555_v49  ;;  %v10553_v6 = vld [vmem:[#allocation152_spill] sm:$0xff]  ;;  %v10556_v9 = vld [vmem:[#allocation101_spill] sm:$0xff] }
 0x4a3   : > { %4053 = vst [vmem:[#allocation3 + $0x48] sm:$0xf0] %v4045_v62  ;;  %v4605_v35 = vadd.f32 %v4601_v46, %v4556_v40  ;;  %v4618_v43 = vsel %vm1727_vm4, %v4615_v16, %v10549_v4  ;;  %v4619_v52 = vsel %vm1727_vm4, %v10550_v44, %v4615_v16  ;;  %vm4230_vm5 = vcmp.eq.s32.totalorder %v10552_v61, 4294967295  ;;  %v10560_v44 = vld [vmem:[#allocation43_spill] sm:$0xff] }
 0x4a4   : > { %v4046_v31 = vrot.slane %v4038_v57, 4  ;;  %v4047_v29 = vrot.slane %v4039_v21, 4  ;;  %v4759_v19 = vadd.f32 %v4755_v30, %v10551_v55  ;;  %v4645_v60 = vmul.f32 %v4634_v53, %v4619_v52  ;;  %v10558_v57 = vld [vmem:[#allocation67_spill] sm:$0xff] }
 0x4a5   : > { %v4646_v45 = vmul.f32 %v4638_v51, %v4618_v43  ;;  %v4788_v54 = vmul.f32 %v4774_v56, %v4619_v52  ;;  %v8914_v38 = vmul.f32 %v4778_v32, %v4618_v43  ;;  %v4231_v28 = vsel %vm4230_vm5, %v10553_v6, 0.0  ;;  %v10559_v32 = vld [vmem:[#allocation117_spill] sm:$0xff]  ;;  %v8965_v43 = vpop.permute.xlu1 %4998 }
 0x4a6   : > { %4054 = vst [vmem:[#allocation3 + $0x50] sm:$0xf0] %v4046_v31  ;;  %4055 = vst [vmem:[#allocation3 + $0x58] sm:$0xf0] %v4047_v29  ;;  %v8917_v26 = vadd.f32 %v4645_v60, %v4604_v33  ;;  %v4232_v20 = vsel %vm4185_vm8, %v10554_v7, 0.0  ;;  %v4277_v34 = vsel %vm4230_vm5, %v10554_v7, 0.0  ;;  %v4316_v1 = vrot.slane %v8611_v5, %v6339_v12 }
 0x4a7   : > { %v8926_v49 = vadd.f32 %v4646_v45, %v4605_v35  ;;  %v8928_v40 = vadd.f32 %v4788_v54, %v4759_v19  ;;  %v8930_v17 = vadd.f32 %v4232_v20, %v4231_v28  ;;  %v8933_v59 = vadd.f32 %v4277_v34, %v10555_v22  ;;  %v10561_v60 = vld [vmem:[#allocation116_spill] sm:$0xff]  ;;  %v10562_v54 = vld [vmem:[#allocation142_spill] sm:$0xff] }
 0x4a8   : > { %vm4374_vm2 = vcmp.eq.s32.totalorder %v10552_v61, 3  ;;  %v4376_v42 = vsel %vm4341_vm6, %v10554_v7, 0.0  ;;  %v4244_v53 = vsel %vm515_vm12, %v4235_v24, %v8776_v48  ;;  %v4333_v62 = vmul.f32 %v4316_v1, %v10556_v9  ;;  %v10564_v1 = vld [vmem:[#allocation8_spill] sm:$0xff] }
 0x4a9   : > { %v4250_v16 = vrot.slane %v8930_v17, %v6339_v12  ;;  %v4254_v39 = vrot.slane %v8930_v17, %v6346_v13  ;;  %v4283_v27 = vrot.slane %v8933_v59, %v6339_v12  ;;  %v4287_v51 = vrot.slane %v8933_v59, %v6346_v13 }
 0x4aa   : > { %v4375_v8 = vsel %vm4374_vm2, %v10553_v6, 0.0  ;;  %v4409_v58 = vsel %vm4374_vm2, %v10554_v7, 0.0  ;;  %v4245_v46 = vsel %vm515_vm12, %v8919_v25, %v4235_v24  ;;  %v3388_v52 = vrot.slane %v10560_v44, %v6349_v14  ;;  %v10563_v24 = vld [vmem:[#allocation87_spill] sm:$0xff] }
 0x4ab   : > { %v4300_v56 = vmul.f32 %v4283_v27, %v10557_v63  ;;  %v4301_v21 = vmul.f32 %v4287_v51, %v10558_v57  ;;  %v8960_v30 = vadd.f32 %v4376_v42, %v4375_v8  ;;  %v8963_v33 = vadd.f32 %v4409_v58, %v10559_v32  ;;  %v6072_v51 = vld [vmem:[%s6288_s15 + $0x8] sm:$0xff]  ;;  %v10565_v58 = vld [vmem:[#allocation10_spill] sm:$0xff] }
 0x4ac   : > { %v4267_v35 = vmul.f32 %v4250_v16, %v4245_v46  ;;  %v4268_v4 = vmul.f32 %v4254_v39, %v4244_v53  ;;  %v3392_v31 = vrot.slane %v10560_v44, %v6352_v15  ;;  %v3450_v45 = vrot.slane %v10561_v60, %v6346_v13  ;;  %v3369_v16 = vpop.permute.xlu0 %3368  ;;  %v10567_v44 = vld [vmem:[#allocation104_spill] sm:$0xff] }
 0x4ad   : > { %v4382_v29 = vrot.slane %v8960_v30, %v6339_v12  ;;  %v4394_v55 = vrot.slane %v8960_v30, %v6352_v15  ;;  %v4415_v19 = vrot.slane %v8963_v33, %v6339_v12  ;;  %v3454_v28 = vrot.slane %v10561_v60, %v6349_v14 }
 0x4ae   : > { %v4271_v61 = vadd.f32 %v4267_v35, %v10562_v54  ;;  %v4272_v6 = vadd.f32 %v4268_v4, %v10563_v24  ;;  %v3458_v7 = vrot.slane %v10561_v60, %v6352_v15  ;;  %v3464_v42 = vmul.f32 %v3450_v45, %v10564_v1  ;;  %v10566_v35 = vld [vmem:[#allocation120_spill] sm:$0xff]  ;;  %v4239_v45 = vpop.permute.xlu1 %4238  ;;  %v10570_v54 = vld [vmem:[#allocation26_spill] sm:$0xff] }
 0x4af   : > { %v4432_v20 = vmul.f32 %v4415_v19, %v10558_v57  ;;  %v4399_v34 = vmul.f32 %v4382_v29, %v4244_v53  ;;  %v8986_v22 = vmul.f32 %v4394_v55, %v4245_v46  ;;  %v3465_v8 = vmul.f32 %v6072_v51, %v3454_v28  ;;  %v10568_v46 = vld [vmem:[#allocation9_spill] sm:$0xff] }
 0x4b0   : > { %v4304_v39 = vadd.f32 %v4300_v56, %v4271_v61  ;;  %v4305_v27 = vadd.f32 %v4301_v21, %v4272_v6  ;;  %v3466_v32 = vmul.f32 %v3458_v7, %v10565_v58  ;;  %v3468_v4 = vadd.f32 %v3464_v42, %v10566_v35  ;;  %v10569_v55 = vld [vmem:[#allocation69_spill] sm:$0xff]  ;;  %v10571_v6 = vld [vmem:[#allocation114_spill] sm:$0xff] }
 0x4b1   : > { %v3516_v60 = vrot.slane %v10567_v44, %v6346_v13  ;;  %v3520_v53 = vrot.slane %v10567_v44, %v6349_v14  ;;  %v3582_v57 = vrot.slane %v10568_v46, %v6346_v13  ;;  %v3586_v56 = vrot.slane %v10568_v46, %v6349_v14 }
 0x4b2   : > { %v4337_v29 = vadd.f32 %v4333_v62, %v4304_v39  ;;  %v3590_v21 = vrot.slane %v10568_v46, %v6352_v15  ;;  %v3372_v19 = vsel %vm1727_vm4, %v3369_v16, %v10569_v55  ;;  %v3501_v61 = vadd.f32 %v10570_v54, %v3468_v4  ;;  %v10572_v62 = vld [vmem:[#allocation42_spill] sm:$0xff]  ;;  %v6073_v39 = vld [vmem:[%s6288_s15] sm:$0xff]  ;;  %v10573_v46 = vld [vmem:[#allocation25_spill] sm:$0xff] }
 0x4b3   : > { %v3596_v24 = vmul.f32 %v6072_v51, %v3582_v57  ;;  %v3373_v28 = vsel %vm1727_vm4, %v10571_v6, %v3369_v16  ;;  %v3400_v7 = vmul.f32 %v3392_v31, %v3372_v19  ;;  %v3597_v42 = vmul.f32 %v3586_v56, %v10565_v58  ;;  %v10574_v57 = vld [vmem:[#allocation74_spill] sm:$0xff] }
 0x4b4   : > { %v4370_v1 = vadd.f32 %v10572_v62, %v4337_v29  ;;  %v3598_v35 = vmul.f32 %v6073_v39, %v3590_v21  ;;  %v3399_v44 = vmul.f32 %v3388_v52, %v3373_v28  ;;  %v3530_v12 = vmul.f32 %v3516_v60, %v3373_v28  ;;  %v10575_v58 = vld [vmem:[#allocation18_spill] sm:$0xff]  ;;  %v10579_v62 = vld [vmem:[#allocation35_spill] sm:$0xff] }
 0x4b5   : > { %v3404_v2 = vadd.f32 %v3400_v7, %v10573_v46  ;;  %v3531_v55 = vmul.f32 %v3520_v53, %v3372_v19  ;;  %v4242_v51 = vsel %vm515_vm12, %v4239_v45, %v8919_v25  ;;  %v4243_v31 = vsel %vm515_vm12, %v8776_v48, %v4239_v45  ;;  %v10577_v45 = vld [vmem:[#allocation19_spill] sm:$0xff] }
 0x4b6   : > { %v4403_v4 = vadd.f32 %v4399_v34, %v4370_v1  ;;  %v3403_v54 = vadd.f32 %v3399_v44, %v10574_v57  ;;  %v4258_v16 = vrot.slane %v8930_v17, %v6349_v14  ;;  %v3534_v29 = vadd.f32 %v3530_v12, %v3501_v61  ;;  %v10576_v34 = vld [vmem:[#allocation17_spill] sm:$0xff]  ;;  %v10578_v7 = vld [vmem:[#allocation99_spill] sm:$0xff] }
 0x4b7   : > { %v3437_v52 = vadd.f32 %v10575_v58, %v3404_v2  ;;  %v4262_v60 = vrot.slane %v8930_v17, %v6352_v15  ;;  %v4386_v53 = vrot.slane %v8960_v30, %v6346_v13  ;;  %v4390_v48 = vrot.slane %v8960_v30, %v6349_v14  ;;  %v10584_v58 = vld [vmem:[#allocation91_spill] sm:$0xff] }
 0x4b8   : > { %v4436_v25 = vadd.f32 %v4432_v20, %v4403_v4  ;;  %v3436_v56 = vadd.f32 %v10576_v34, %v3403_v54  ;;  %v9028_v21 = vmul.f32 %v4258_v16, %v4243_v31  ;;  %v3567_v6 = vadd.f32 %v10577_v45, %v3534_v29  ;;  %v10581_v4 = vld [vmem:[#allocation148_spill] sm:$0xff]  ;;  %v4194_v29 = vpop.permute.xlu0 %4193  ;;  %v10586_v34 = vld [vmem:[#allocation49_spill] sm:$0xff] }
 0x4b9   : > { %v3470_v19 = vadd.f32 %v3466_v32, %v3437_v52  ;;  %v4270_v28 = vmul.f32 %v4262_v60, %v4242_v51  ;;  %v4400_v2 = vmul.f32 %v4386_v53, %v4243_v31  ;;  %v9034_v17 = vmul.f32 %v4390_v48, %v4242_v51  ;;  %v10580_v32 = vld [vmem:[#allocation34_spill] sm:$0xff]  ;;  %v10583_v31 = vld [vmem:[#allocation131_spill] sm:$0xff]  ;;  %v10585_v53 = vld [vmem:[#allocation72_spill] sm:$0xff] }
 0x4ba   : > { %v4469_v12 = vadd.f32 %v8821_v36, %v4436_v25  ;;  %v3469_v61 = vadd.f32 %v3465_v8, %v3436_v56  ;;  %v4213_v20 = vrot.slane %v10578_v7, %v6349_v14  ;;  %v3600_v39 = vadd.f32 %v3596_v24, %v3567_v6  ;;  %v10582_v24 = vld [vmem:[#allocation36_spill] sm:$0xff] }
 0x4bb   : > { %v3503_v1 = vadd.f32 %v10579_v62, %v3470_v19  ;;  %v4217_v44 = vrot.slane %v10578_v7, %v6352_v15  ;;  %v4291_v30 = vrot.slane %v8933_v59, %v6349_v14  ;;  %v4295_v36 = vrot.slane %v8933_v59, %v6352_v15  ;;  %v10587_v56 = vld [vmem:[#allocation16_spill] sm:$0xff]  ;;  %v10590_v7 = vld [vmem:[#allocation149_spill] sm:$0xff] }
 0x4bc   : > { %4473 = vst [vmem:[#allocation3 + $0x60] sm:$0xf] %v4469_v12  ;;  %v3502_v46 = vadd.f32 %v10580_v32, %v3469_v61  ;;  %v4328_v8 = vrot.slane %v8611_v5, %v6352_v15  ;;  %v4338_v51 = vadd.f32 %v8812_v3, %v4305_v27  ;;  %v3633_v54 = vadd.f32 %v10582_v24, %v3600_v39 }
 0x4bd   : > { %v3536_v57 = vadd.f32 %v10581_v4, %v3503_v1  ;;  %v4302_v16 = vmul.f32 %v4291_v30, %v10583_v31  ;;  %v4353_v52 = vrot.slane %v10584_v58, %v6346_v13  ;;  %v4303_v25 = vmul.f32 %v4295_v36, %v10585_v53  ;;  %v10591_v36 = vld [vmem:[#allocation144_spill] sm:$0xff] }
 0x4be   : > { %v3535_v60 = vadd.f32 %v3531_v55, %v3502_v46  ;;  %v4336_v59 = vmul.f32 %v4328_v8, %v10586_v34  ;;  %v4357_v5 = vrot.slane %v10584_v58, %v6349_v14  ;;  %3637 = vst [vmem:[#allocation3 + $0x48] sm:$0xf] %v3633_v54  ;;  %v4419_v27 = vrot.slane %v8963_v33, %v6346_v13  ;;  %v10588_v55 = vld [vmem:[#allocation20_spill] sm:$0xff]  ;;  %v10592_v8 = vld [vmem:[#allocation30_spill] sm:$0xff]  ;;  %v10593_v54 = vld [vmem:[#allocation37_spill] sm:$0xff] }
 0x4bf   : > { %v3569_v3 = vadd.f32 %v10587_v56, %v3536_v57  ;;  %v4423_v48 = vrot.slane %v8963_v33, %v6349_v14  ;;  %v4427_v19 = vrot.slane %v8963_v33, %v6352_v15  ;;  %v4456_v6 = vrot.slane %v8630_v10, %v6349_v14  ;;  %v10596_v56 = vld [vmem:[#allocation146_spill] sm:$0xff] }
 0x4c0   : > { %v3568_v45 = vadd.f32 %v10588_v55, %v3535_v60  ;;  %v10589_v12 = vrot.slane %v8630_v10, %v6352_v15  ;;  %v4197_v62 = vsel %vm1727_vm4, %v4194_v29, %v10590_v7  ;;  %v4433_v39 = vmul.f32 %v4419_v27, %v10583_v31 }
 0x4c1   : > { %v3602_v1 = vadd.f32 %v3598_v35, %v3569_v3  ;;  %v9079_v33 = vmul.f32 %v4423_v48, %v10585_v53  ;;  %v4435_v30 = vmul.f32 %v4427_v19, %v10557_v63  ;;  %v9083_v46 = vmul.f32 %v4456_v6, %v10586_v34  ;;  %v10594_v63 = vld [vmem:[#allocation27_spill] sm:$0xff]  ;;  %v10597_v48 = vld [vmem:[#allocation65_spill] sm:$0xff] }
 0x4c2   : > { %v9072_v61 = vmul.f32 %v10589_v12, %v10556_v9  ;;  %v3601_v32 = vadd.f32 %v3597_v42, %v3568_v45  ;;  %v4198_v10 = vsel %vm1727_vm4, %v10591_v36, %v4194_v29  ;;  %v4225_v9 = vmul.f32 %v4217_v44, %v4197_v62  ;;  %v10595_v44 = vld [vmem:[#allocation150_spill] sm:$0xff]  ;;  %v10600_v36 = vld [vmem:[#allocation113_spill] sm:$0xff] }
 0x4c3   : > { %v3635_v4 = vadd.f32 %v10592_v8, %v3602_v1  ;;  %v4224_v57 = vmul.f32 %v4213_v20, %v4198_v10  ;;  %v4367_v35 = vmul.f32 %v4353_v52, %v4198_v10  ;;  %v4368_v24 = vmul.f32 %v4357_v5, %v4197_v62  ;;  %v10599_v62 = vld [vmem:[#allocation118_spill] sm:$0xff] }
 0x4c4   : > { %v3634_v31 = vadd.f32 %v10593_v54, %v3601_v32  ;;  %v4229_v58 = vadd.f32 %v4225_v9, %v8827_v47  ;;  %v4679_v42 = vrot.slane %v10594_v63, %v6349_v14  ;;  %v4683_v60 = vrot.slane %v10594_v63, %v6352_v15 }
 0x4c5   : > { %3639 = vst [vmem:[#allocation3 + $0x58] sm:$0xf] %v3635_v4  ;;  %v4228_v53 = vadd.f32 %v4224_v57, %v8824_v0  ;;  %v4371_v29 = vadd.f32 %v4367_v35, %v4338_v51  ;;  %v4712_v34 = vrot.slane %v10595_v44, %v6349_v14  ;;  %v4716_v20 = vrot.slane %v10595_v44, %v6352_v15  ;;  %v10601_v57 = vld [vmem:[#allocation140_spill] sm:$0xff]  ;;  %v10602_v35 = vld [vmem:[#allocation62_spill] sm:$0xff] }
 0x4c6   : > { %3638 = vst [vmem:[#allocation3 + $0x50] sm:$0xf] %v3634_v31  ;;  %v4274_v52 = vadd.f32 %v4270_v28, %v4229_v58  ;;  %v4745_v47 = vrot.slane %v10545_v18, %v6349_v14  ;;  %v4749_v5 = vrot.slane %v10545_v18, %v6352_v15  ;;  %v4807_v3 = vrot.slane %v10596_v56, %v6346_v13  ;;  %v10598_v28 = vld [vmem:[#allocation111_spill] sm:$0xff] }
 0x4c7   : > { %v4273_v0 = vadd.f32 %v9028_v21, %v4228_v53  ;;  %v4404_v51 = vadd.f32 %v4400_v2, %v4371_v29  ;;  %v4723_v27 = vmul.f32 %v4712_v34, %v10542_v23  ;;  %v4724_v19 = vmul.f32 %v4716_v20, %v10597_v48  ;;  %v4660_v2 = vpop.permute.xlu0 %4659  ;;  %v10604_v53 = vld [vmem:[#allocation130_spill] sm:$0xff]  ;;  %v10605_v34 = vld [vmem:[#allocation97_spill] sm:$0xff] }
 0x4c8   : > { %v4307_v55 = vadd.f32 %v4303_v25, %v4274_v52  ;;  %v4756_v45 = vmul.f32 %v4745_v47, %v10547_v37  ;;  %v4757_v6 = vmul.f32 %v4749_v5, %v10598_v28  ;;  %v4811_v12 = vrot.slane %v10596_v56, %v6349_v14  ;;  %v10606_v56 = vld [vmem:[#allocation151_spill] sm:$0xff] }
 0x4c9   : > { %v4306_v7 = vadd.f32 %v4302_v16, %v4273_v0  ;;  %v4437_v18 = vadd.f32 %v4433_v39, %v4404_v51  ;;  %v4840_v1 = vrot.slane %v10599_v62, %v6346_v13  ;;  %v4844_v21 = vrot.slane %v10599_v62, %v6349_v14 }
 0x4ca   : > { %v4340_v32 = vadd.f32 %v4336_v59, %v4307_v55  ;;  %v4848_v25 = vrot.slane %v10599_v62, %v6352_v15  ;;  %v4873_v10 = vrot.slane %v10600_v36, %v6346_v13  ;;  %v4877_v9 = vrot.slane %v10600_v36, %v6349_v14 }
 0x4cb   : > { %v4339_v16 = vadd.f32 %v8818_v11, %v4306_v7  ;;  %v4470_v39 = vadd.f32 %v8830_v50, %v4437_v18  ;;  %v4854_v8 = vmul.f32 %v4840_v1, %v10542_v23  ;;  %v9127_v4 = vmul.f32 %v4844_v21, %v10597_v48  ;;  %v10603_v50 = vld [vmem:[#allocation41_spill] sm:$0xff]  ;;  %v5001_v51 = vpop.permute.xlu0 %5000  ;;  %v10607_v7 = vld [vmem:[#allocation156_spill] sm:$0xff] }
 0x4cc   : > { %v4373_v59 = vadd.f32 %v10601_v57, %v4340_v32  ;;  %v9131_v54 = vmul.f32 %v4848_v25, %v10602_v35  ;;  %v4881_v31 = vrot.slane %v10600_v36, %v6352_v15  ;;  %v4887_v58 = vmul.f32 %v4873_v10, %v10547_v37  ;;  %v10609_v36 = vld [vmem:[#allocation132_spill] sm:$0xff]  ;;  %v10611_v57 = vld [vmem:[#allocation141_spill] sm:$0xff] }
 0x4cd   : > { %v4372_v63 = vadd.f32 %v4368_v24, %v4339_v16  ;;  %4474 = vst [vmem:[#allocation3 + $0x68] sm:$0xf] %v4470_v39  ;;  %v9137_v11 = vmul.f32 %v4877_v9, %v10598_v28  ;;  %v4663_v23 = vsel %vm515_vm12, %v4660_v2, %v10603_v50  ;;  %v4664_v29 = vsel %vm515_vm12, %v10604_v53, %v4660_v2  ;;  %v10608_v2 = vld [vmem:[#allocation161_spill] sm:$0xff] }
 0x4ce   : > { %v4406_v44 = vadd.f32 %v8986_v22, %v4373_v59  ;;  %v9147_v20 = vmul.f32 %v4881_v31, %v10605_v34  ;;  %v4690_v52 = vmul.f32 %v4679_v42, %v4664_v29  ;;  %v4691_v37 = vmul.f32 %v4683_v60, %v4663_v23  ;;  %v10610_v9 = vld [vmem:[#allocation133_spill] sm:$0xff] }
 0x4cf   : > { %v4405_v24 = vadd.f32 %v9034_v17, %v4372_v63  ;;  %v4821_v47 = vmul.f32 %v4807_v3, %v4664_v29  ;;  %v4822_v5 = vmul.f32 %v4811_v12, %v4663_v23  ;;  %v9151_v0 = vsub.f32 1.0, %v10606_v56  ;;  %v9163_v3 = vpop.permute.xlu1 %5043 }
 0x4d0   : > { %v4439_v48 = vadd.f32 %v4435_v30, %v4406_v44  ;;  %v4694_v55 = vadd.f32 %v4690_v52, %v8917_v26  ;;  %v4695_v28 = vadd.f32 %v4691_v37, %v8926_v49  ;;  %vm4960_vm8 = vcmp.eq.s32.totalorder %v10607_v7, 4294967292 }
 0x4d1   : > { %v4438_v22 = vadd.f32 %v9079_v33, %v4405_v24  ;;  %v4825_v42 = vadd.f32 %v4821_v47, %v8928_v40  ;;  %v4961_v17 = vsel %vm4960_vm8, %v9151_v0, 0.0  ;;  %vm4962_vm6 = vcmp.eq.s32.totalorder %v10607_v7, 4294967291  ;;  %v10612_v47 = vld [vmem:[#allocation11_spill] sm:$0xff] }
 0x4d2   : > { %v4472_v60 = vadd.f32 %v9072_v61, %v4439_v48  ;;  %v4727_v30 = vadd.f32 %v4723_v27, %v4694_v55  ;;  %v4728_v26 = vadd.f32 %v4724_v19, %v4695_v28  ;;  %v4963_v49 = vsel %vm4962_vm6, %v10606_v56, 0.0 }
 0x4d3   : > { %v4471_v12 = vadd.f32 %v9083_v46, %v4438_v22  ;;  %v4858_v18 = vadd.f32 %v4854_v8, %v4825_v42  ;;  %v9167_v33 = vadd.f32 %v4963_v49, %v4961_v17  ;;  %vm4994_vm10 = vcmp.eq.s32.totalorder %v10607_v7, 4294967293  ;;  %v5003_v35 = vpop.permute.xlu1 %5002 }
 0x4d4   : > { %4476 = vst [vmem:[#allocation3 + $0x78] sm:$0xf] %v4472_v60  ;;  %v4760_v40 = vadd.f32 %v4756_v45, %v4727_v30  ;;  %v4761_v62 = vadd.f32 %v4757_v6, %v4728_v26  ;;  %v4995_v61 = vsel %vm4994_vm10, %v9151_v0, 0.0  ;;  %v4996_v27 = vsel %vm4960_vm8, %v10606_v56, 0.0  ;;  %v5005_v45 = vpop.permute.xlu0 %5004 }
 0x4d5   : > { %4475 = vst [vmem:[#allocation3 + $0x70] sm:$0xf] %v4471_v12  ;;  %v4891_v19 = vadd.f32 %v4887_v58, %v4858_v18  ;;  %v4973_v46 = vrot.slane %v9167_v33, %v6346_v13  ;;  %v4977_v1 = vrot.slane %v9167_v33, %v6349_v14  ;;  %v9180_v21 = vadd.f32 %v4996_v27, %v4995_v61 }
 0x4d6   : > { %v4793_v6 = vadd.f32 %v8914_v38, %v4760_v40  ;;  %v4794_v32 = vadd.f32 %v10608_v2, %v4761_v62  ;;  %vm5129_vm14 = vcmp.eq.s32.totalorder %v10607_v7, 0  ;;  %vm5162_vm0 = vcmp.eq.s32.totalorder %v10607_v7, 1  ;;  %v10613_v40 = vld [vmem:[#allocation135_spill] sm:$0xff] }
 0x4d7   : > { %v4899_v25 = vrot.slane %v4891_v19, 4  ;;  %v4987_v10 = vmul.f32 %v4973_v46, %v10609_v36  ;;  %v4988_v16 = vmul.f32 %v4977_v1, %v10610_v9  ;;  %v5018_v39 = vrot.slane %v9180_v21, %v6346_v13  ;;  %v9224_v26 = vpop.permute.xlu1 %5088 }
 0x4d8   : > { %v4826_v8 = vadd.f32 %v4822_v5, %v4793_v6  ;;  %v4827_v59 = vadd.f32 %v10611_v57, %v4794_v32  ;;  %v5022_v38 = vrot.slane %v9180_v21, %v6349_v14  ;;  %v9194_v31 = vsel %vm5129_vm14, %v9151_v0, 0.0  ;;  %v5046_v24 = vpop.permute.xlu0 %5045  ;;  %v10614_v32 = vld [vmem:[#allocation134_spill] sm:$0xff] }
 0x4d9   : > { %4907 = vst [vmem:[#allocation3 + $0x68] sm:$0xf0] %v4899_v25  ;;  %v5163_v58 = vsel %vm5162_vm0, %v9151_v0, 0.0  ;;  %v5164_v63 = vsel %vm5129_vm14, %v10606_v56, 0.0  ;;  %vm5261_vm15 = vcmp.eq.s32.totalorder %v10607_v7, 4  ;;  %vm5294_vm13 = vcmp.eq.s32.totalorder %v10607_v7, 5 }
 0x4da   : > { %v4859_v50 = vadd.f32 %v9127_v4, %v4826_v8  ;;  %v4860_v23 = vadd.f32 %v9131_v54, %v4827_v59  ;;  %v5165_v53 = vadd.f32 %v5164_v63, %v5163_v58  ;;  %v9205_v29 = vsel %vm5261_vm15, %v9151_v0, 0.0 }
 0x4db   : > { %v5295_v44 = vsel %vm5294_vm13, %v9151_v0, 0.0  ;;  %v5296_v34 = vsel %vm5261_vm15, %v10606_v56, 0.0  ;;  %v5007_v52 = vsel %vm811_vm11, %v5001_v51, %v5003_v35  ;;  %v5008_v37 = vsel %vm811_vm11, %v8965_v43, %v5001_v51  ;;  %v5048_v63 = vpop.permute.xlu1 %5047 }
 0x4dc   : > { %v4892_v4 = vadd.f32 %v9137_v11, %v4859_v50  ;;  %v4893_v54 = vadd.f32 %v9147_v20, %v4860_v23  ;;  %v5170_v5 = vrot.slane %v5165_v53, %v10612_v47  ;;  %v5174_v48 = vrot.slane %v5165_v53, %v6346_v13  ;;  %v5050_v2 = vpop.permute.xlu0 %5049 }
 0x4dd   : > { %v5297_v55 = vadd.f32 %v5296_v34, %v5295_v44  ;;  %v5032_v28 = vmul.f32 %v5018_v39, %v5008_v37  ;;  %v5033_v22 = vmul.f32 %v5022_v38, %v5007_v52  ;;  %v4969_v42 = vrot.slane %v9167_v33, %v10612_v47 }
 0x4de   : > { %v4900_v17 = vrot.slane %v4892_v4, 4  ;;  %v4901_v60 = vrot.slane %v4893_v54, 4  ;;  %v9220_v30 = vmul.f32 %v5170_v5, %v5008_v37  ;;  %v9222_v51 = vmul.f32 %v5174_v48, %v5007_v52 }
 0x4df   : > { %v5302_v11 = vrot.slane %v5297_v55, %v10612_v47  ;;  %v5314_v20 = vrot.slane %v5297_v55, %v6352_v15  ;;  %v5036_v49 = vadd.f32 %v5032_v28, %v4987_v10  ;;  %v5037_v12 = vadd.f32 %v5033_v22, %v4988_v16 }
 0x4e0   : > { %4908 = vst [vmem:[#allocation3 + $0x70] sm:$0xf0] %v4900_v17  ;;  %4909 = vst [vmem:[#allocation3 + $0x78] sm:$0xf0] %v4901_v60  ;;  %v4981_v18 = vrot.slane %v9167_v33, %v6352_v15  ;;  %v4986_v62 = vmul.f32 %v4969_v42, %v10613_v40  ;;  %v5014_v61 = vrot.slane %v9180_v21, %v10612_v47  ;;  %vm5039_vm7 = vcmp.eq.s32.totalorder %v10607_v7, 4294967294  ;;  %v5091_v54 = vpop.permute.xlu0 %5090 }
 0x4e1   : > { %v5026_v27 = vrot.slane %v9180_v21, %v6352_v15  ;;  %v9235_v19 = vmul.f32 %v5302_v11, %v5007_v52  ;;  %v9237_v46 = vmul.f32 %v5314_v20, %v5008_v37  ;;  %v5178_v1 = vrot.slane %v5165_v53, %v6349_v14 }
 0x4e2   : > { %v5182_v6 = vrot.slane %v5165_v53, %v6352_v15  ;;  %v4989_v25 = vmul.f32 %v4981_v18, %v10614_v32  ;;  %v5306_v33 = vrot.slane %v5297_v55, %v6346_v13  ;;  %v5310_v10 = vrot.slane %v5297_v55, %v6349_v14 }
 0x4e3   : > { %v5006_v16 = vsel %vm811_vm11, %v5003_v35, %v5005_v45  ;;  %v5009_v21 = vsel %vm811_vm11, %v5005_v45, %v8965_v43  ;;  %v5040_v35 = vsel %vm5039_vm7, %v9151_v0, 0.0  ;;  %v5041_v43 = vsel %vm4994_vm10, %v10606_v56, 0.0 }
 0x4e4   : > { %v5034_v39 = vmul.f32 %v5026_v27, %v5006_v16  ;;  %v9249_v8 = vmul.f32 %v5178_v1, %v5006_v16  ;;  %v5031_v57 = vmul.f32 %v5014_v61, %v5009_v21  ;;  %v9252_v59 = vmul.f32 %v5182_v6, %v5009_v21 }
 0x4e5   : > { %v9254_v38 = vmul.f32 %v5306_v33, %v5006_v16  ;;  %v9256_v58 = vmul.f32 %v5310_v10, %v5009_v21  ;;  %vm5195_vm5 = vcmp.eq.s32.totalorder %v10607_v7, 2  ;;  %v5042_v23 = vadd.f32 %v5041_v43, %v5040_v35 }
 0x4e6   : > { %v5038_v50 = vadd.f32 %v5034_v39, %v4989_v25  ;;  %v5035_v45 = vadd.f32 %v5031_v57, %v4986_v62  ;;  %v5196_v53 = vsel %vm5195_vm5, %v9151_v0, 0.0  ;;  %v5197_v44 = vsel %vm5162_vm0, %v10606_v56, 0.0  ;;  %v5093_v57 = vpop.permute.xlu1 %5092 }
 0x4e7   : > { %v5198_v34 = vadd.f32 %v5197_v44, %v5196_v53  ;;  %v5052_v52 = vsel %vm1727_vm4, %v5046_v24, %v5048_v63  ;;  %v5053_v37 = vsel %vm1727_vm4, %v9163_v3, %v5046_v24  ;;  %v5051_v4 = vsel %vm1727_vm4, %v5048_v63, %v5050_v2  ;;  %v1229_v53 = vld [vmem:[%s9869_s5 + $0x10] sm:$0x3] }
 0x4e8   : > { %v5063_v5 = vrot.slane %v5042_v23, %v6346_v13  ;;  %v5067_v48 = vrot.slane %v5042_v23, %v6349_v14  ;;  %v5059_v55 = vrot.slane %v5042_v23, %v10612_v47  ;;  %v5071_v28 = vrot.slane %v5042_v23, %v6352_v15  ;;  %5900 = vmatmul.mubr.msk.f32.gmra.mrb[10].mxu0 %vm1230_vm9, %v1229_v53 }
 0x4e9   : > { %v5203_v22 = vrot.slane %v5198_v34, %v10612_v47  ;;  %v5207_v42 = vrot.slane %v5198_v34, %v6346_v13  ;;  %v5211_v17 = vrot.slane %v5198_v34, %v6349_v14  ;;  %v5215_v24 = vrot.slane %v5198_v34, %v6352_v15  ;;  %5915 = vmatmul.mubr.msk.f32.gmra.mrb[10].mxu1 %vm1230_vm9, %v1229_v53 }
 0x4ea   : > { %v5077_v60 = vmul.f32 %v5063_v5, %v5053_v37  ;;  %v5078_v11 = vmul.f32 %v5067_v48, %v5052_v52  ;;  %v5054_v20 = vsel %vm1727_vm4, %v5050_v2, %v9163_v3  ;;  %v5079_v18 = vmul.f32 %v5071_v28, %v5051_v4  ;;  %v5095_v2 = vpop.permute.xlu0 %5094 }
 0x4eb   : > { %v9289_v62 = vmul.f32 %v5203_v22, %v5053_v37  ;;  %v9291_v61 = vmul.f32 %v5207_v42, %v5052_v52  ;;  %v5076_v27 = vmul.f32 %v5059_v55, %v5054_v20  ;;  %v9293_v1 = vmul.f32 %v5211_v17, %v5051_v4 }
 0x4ec   : > { %v5081_v6 = vadd.f32 %v5077_v60, %v5036_v49  ;;  %v5082_v25 = vadd.f32 %v5078_v11, %v5037_v12  ;;  %v9295_v33 = vadd.f32 %v5079_v18, %v5038_v50  ;;  %v9297_v10 = vmul.f32 %v5215_v24, %v5054_v20 }
 0x4ed   : > { %v9299_v16 = vadd.f32 %v5076_v27, %v5035_v45  ;;  %vm5084_vm2 = vcmp.eq.s32.totalorder %v10607_v7, 4294967295  ;;  %v5086_v3 = vsel %vm5039_vm7, %v10606_v56, 0.0  ;;  %vm5228_vm8 = vcmp.eq.s32.totalorder %v10607_v7, 3 }
 0x4ee   : > { %v5085_v21 = vsel %vm5084_vm2, %v9151_v0, 0.0  ;;  %v5131_v49 = vsel %vm5084_vm2, %v10606_v56, 0.0  ;;  %v5229_v12 = vsel %vm5228_vm8, %v9151_v0, 0.0  ;;  %v5230_v39 = vsel %vm5195_vm5, %v10606_v56, 0.0 }
 0x4ef   : > { %v5087_v63 = vadd.f32 %v5086_v3, %v5085_v21  ;;  %v5132_v50 = vadd.f32 %v5131_v49, %v9194_v31  ;;  %v5231_v35 = vadd.f32 %v5230_v39, %v5229_v12  ;;  %v5263_v43 = vsel %vm5228_vm8, %v10606_v56, 0.0 }
 0x4f0   : > { %v5264_v45 = vadd.f32 %v5263_v43, %v9205_v29  ;;  %v5097_v23 = vsel %vm515_vm12, %v5091_v54, %v5093_v57  ;;  %v5098_v0 = vsel %vm515_vm12, %v9224_v26, %v5091_v54  ;;  %v5096_v7 = vsel %vm515_vm12, %v5093_v57, %v5095_v2 }
 0x4f1   : > { %v5108_v31 = vrot.slane %v5087_v63, %v6346_v13  ;;  %v5112_v56 = vrot.slane %v5087_v63, %v6349_v14  ;;  %v5141_v29 = vrot.slane %v5132_v50, %v6346_v13  ;;  %v5145_v44 = vrot.slane %v5132_v50, %v6349_v14 }
 0x4f2   : > { %v5236_v34 = vrot.slane %v5231_v35, %v10612_v47  ;;  %v5240_v52 = vrot.slane %v5231_v35, %v6346_v13  ;;  %v5273_v37 = vrot.slane %v5264_v45, %v6346_v13  ;;  %v5104_v4 = vrot.slane %v5087_v63, %v10612_v47 }
 0x4f3   : > { %v5155_v54 = vmul.f32 %v5141_v29, %v10610_v9  ;;  %v5156_v5 = vmul.f32 %v5145_v44, %v10614_v32  ;;  %v5122_v48 = vmul.f32 %v5108_v31, %v5098_v0  ;;  %v5123_v55 = vmul.f32 %v5112_v56, %v5097_v23  ;;  %v10616_v29 = vld [vmem:[#allocation159_spill] sm:$0xff] }
 0x4f4   : > { %v10615_v28 = vmov 0.0   ;;  %v5287_v22 = vmul.f32 %v5273_v37, %v10614_v32  ;;  %v5253_v42 = vmul.f32 %v5236_v34, %v5098_v0  ;;  %v5254_v17 = vmul.f32 %v5240_v52, %v5097_v23 }
 0x4f5   : > { %5437 = vmatprep.mubr.f32.mxu0 %v10615_v28  ;;  %v5116_v24 = vrot.slane %v5087_v63, %v6352_v15  ;;  %5508 = vmatprep.mubr.f32.mxu1 %v10615_v28  ;;  %v5126_v60 = vadd.f32 %v5122_v48, %v5081_v6  ;;  %v5127_v11 = vadd.f32 %v5123_v55, %v5082_v25 }
 0x4f6   : > { %v5137_v20 = vrot.slane %v5132_v50, %v10612_v47  ;;  %v5149_v18 = vrot.slane %v5132_v50, %v6352_v15  ;;  %v5244_v27 = vrot.slane %v5231_v35, %v6349_v14  ;;  %v5248_v3 = vrot.slane %v5231_v35, %v6352_v15 }
 0x4f7   : > { %v5269_v21 = vrot.slane %v5264_v45, %v10612_v47  ;;  %v5277_v32 = vrot.slane %v5264_v45, %v6349_v14  ;;  %v5159_v49 = vadd.f32 %v5155_v54, %v5126_v60  ;;  %v5160_v12 = vadd.f32 %v5156_v5, %v5127_v11 }
 0x4f8   : > { %v5154_v39 = vmul.f32 %v5137_v20, %v10609_v36  ;;  %v5157_v57 = vmul.f32 %v5149_v18, %v10613_v40  ;;  %v5281_v6 = vrot.slane %v5264_v45, %v6352_v15  ;;  %v5099_v50 = vsel %vm515_vm12, %v5095_v2, %v9224_v26 }
 0x4f9   : > { %v5286_v25 = vmul.f32 %v5269_v21, %v10610_v9  ;;  %v5288_v63 = vmul.f32 %v5277_v32, %v10613_v40  ;;  %v5192_v35 = vadd.f32 %v9222_v51, %v5159_v49  ;;  %v5193_v43 = vadd.f32 %v9249_v8, %v5160_v12  ;;  %v10617_v51 = vld [vmem:[#allocation162_spill] sm:$0xff] }
 0x4fa   : > { %v5121_v23 = vmul.f32 %v5104_v4, %v5099_v50  ;;  %v5124_v0 = vmul.f32 %v5116_v24, %v5096_v7  ;;  %v5289_v53 = vmul.f32 %v5281_v6, %v10609_v36  ;;  %v5255_v31 = vmul.f32 %v5244_v27, %v5096_v7  ;;  %v10619_v27 = vld [vmem:[#allocation29_spill] sm:$0xff] }
 0x4fb   : > { %v5256_v56 = vmul.f32 %v5248_v3, %v5099_v50  ;;  %v9359_v45 = vsub.f32 1.0, %v10616_v29  ;;  %v5225_v9 = vadd.f32 %v9291_v61, %v5192_v35  ;;  %v5226_v40 = vadd.f32 %v9293_v1, %v5193_v43 }
 0x4fc   : > { %v5125_v44 = vadd.f32 %v5121_v23, %v9299_v16  ;;  %v5128_v26 = vadd.f32 %v5124_v0, %v9295_v33  ;;  %vm2059_vm12 = vcmp.eq.s32.totalorder %v10617_v51, 4294967292  ;;  %vm2061_vm9 = vcmp.eq.s32.totalorder %v10617_v51, 4294967291  ;;  %v10621_v0 = vld [vmem:[#allocation92_spill] sm:$0xff] }
 0x4fd   : > { %vm2093_vm6 = vcmp.eq.s32.totalorder %v10617_v51, 4294967293  ;;  %vm2138_vm10 = vcmp.eq.s32.totalorder %v10617_v51, 4294967294  ;;  %v5258_v36 = vadd.f32 %v5254_v17, %v5225_v9  ;;  %v5259_v7 = vadd.f32 %v5255_v31, %v5226_v40 }
 0x4fe   : > { %v5158_v8 = vadd.f32 %v5154_v39, %v5125_v44  ;;  %v5161_v2 = vadd.f32 %v5157_v57, %v5128_v26  ;;  %v2060_v61 = vsel %vm2059_vm12, %v9359_v45, 0.0  ;;  %v2062_v1 = vsel %vm2061_vm9, %v10616_v29, 0.0  ;;  %v10620_v57 = vld [vmem:[#allocation77_spill] sm:$0xff] }
 0x4ff   : > { %v2094_v33 = vsel %vm2093_vm6, %v9359_v45, 0.0  ;;  %v2095_v16 = vsel %vm2059_vm12, %v10616_v29, 0.0  ;;  %v5291_v34 = vadd.f32 %v5287_v22, %v5258_v36  ;;  %v5292_v4 = vadd.f32 %v5288_v63, %v5259_v7  ;;  %v10622_v36 = vld [vmem:[#allocation50_spill] sm:$0xff] }
 0x500   : > { %v5191_v52 = vadd.f32 %v9220_v30, %v5158_v8  ;;  %v5194_v37 = vadd.f32 %v9252_v59, %v5161_v2  ;;  %v9377_v54 = vadd.f32 %v2062_v1, %v2060_v61  ;;  %v9379_v5 = vadd.f32 %v2095_v16, %v2094_v33 }
 0x501   : > { %v2139_v48 = vsel %vm2138_vm10, %v9359_v45, 0.0  ;;  %v2140_v55 = vsel %vm2093_vm6, %v10616_v29, 0.0  ;;  %v5324_v17 = vadd.f32 %v9254_v38, %v5291_v34  ;;  %v5325_v59 = vadd.f32 %v9256_v58, %v5292_v4  ;;  %v10623_v34 = vld [vmem:[#allocation81_spill] sm:$0xff] }
 0x502   : > { %v5224_v22 = vadd.f32 %v9289_v62, %v5191_v52  ;;  %v5227_v30 = vadd.f32 %v9297_v10, %v5194_v37  ;;  %v2072_v24 = vrot.slane %v9377_v54, %v6346_v13  ;;  %v2117_v60 = vrot.slane %v9379_v5, %v6346_v13  ;;  %v10618_v62 = vld [vmem:[#allocation51_spill] sm:$0xff] }
 0x503   : > { %v9395_v11 = vadd.f32 %v2140_v55, %v2139_v48  ;;  %vm2183_vm14 = vcmp.eq.s32.totalorder %v10617_v51, 4294967295  ;;  %5328 = vst [vmem:[#allocation3 + $0x88] sm:$0xf] %v5324_v17  ;;  %5329 = vst [vmem:[#allocation3 + $0x90] sm:$0xf] %v5325_v59  ;;  %v2185_v58 = vsel %vm2138_vm10, %v10616_v29, 0.0 }
 0x504   : > { %v5257_v20 = vadd.f32 %v5253_v42, %v5224_v22  ;;  %v5260_v18 = vadd.f32 %v5256_v56, %v5227_v30  ;;  %v2184_v38 = vsel %vm2183_vm14, %v9359_v45, 0.0  ;;  %v2086_v10 = vmul.f32 %v2072_v24, %v10618_v62  ;;  %v10624_v59 = vld [vmem:[#allocation85_spill] sm:$0xff] }
 0x505   : > { %v2131_v3 = vmul.f32 %v2117_v60, %v10619_v27  ;;  %v2162_v21 = vrot.slane %v9395_v11, %v6346_v13  ;;  %v9406_v32 = vadd.f32 %v2185_v58, %v2184_v38  ;;  %vm2228_vm0 = vcmp.eq.s32.totalorder %v10617_v51, 0  ;;  %v10625_v60 = vld [vmem:[#allocation96_spill] sm:$0xff]  ;;  %v10627_v38 = vld [vmem:[#allocation125_spill] sm:$0xff] }
 0x506   : > { %v5290_v49 = vadd.f32 %v5286_v25, %v5257_v20  ;;  %v5293_v12 = vadd.f32 %v5289_v53, %v5260_v18  ;;  %v2230_v42 = vsel %vm2183_vm14, %v10616_v29, 0.0  ;;  %v2229_v50 = vsel %vm2228_vm0, %v9359_v45, 0.0  ;;  %v10626_v20 = vld [vmem:[#allocation68_spill] sm:$0xff] }
 0x507   : > { %v2135_v39 = vadd.f32 %v2131_v3, %v2086_v10  ;;  %v2176_v6 = vmul.f32 %v2162_v21, %v10620_v57  ;;  %v2207_v63 = vrot.slane %v9406_v32, %v6346_v13  ;;  %v9416_v23 = vadd.f32 %v2230_v42, %v2229_v50  ;;  %v10628_v3 = vld [vmem:[#allocation138_spill] sm:$0xff]  ;;  %v10629_v21 = vld [vmem:[#allocation13_spill] sm:$0xff]  ;;  %v10630_v42 = vld [vmem:[#allocation15_spill] sm:$0xff] }
 0x508   : > { %v5323_v35 = vadd.f32 %v9235_v19, %v5290_v49  ;;  %v5326_v43 = vadd.f32 %v9237_v46, %v5293_v12  ;;  %vm2261_vm15 = vcmp.eq.s32.totalorder %v10617_v51, 1  ;;  %v2263_v56 = vsel %vm2228_vm0, %v10616_v29, 0.0 }
 0x509   : > { %v2180_v25 = vadd.f32 %v2176_v6, %v2135_v39  ;;  %v2221_v53 = vmul.f32 %v2207_v63, %v10621_v0  ;;  %v2262_v31 = vsel %vm2261_vm15, %v9359_v45, 0.0  ;;  %v2240_v9 = vrot.slane %v9416_v23, %v6346_v13  ;;  %v10631_v63 = vld [vmem:[#allocation58_spill] sm:$0xff] }
 0x50a   : > { %5327 = vst [vmem:[#allocation3 + $0x80] sm:$0xf] %v5323_v35  ;;  %5330 = vst [vmem:[#allocation3 + $0x98] sm:$0xf] %v5326_v43  ;;  %v9424_v40 = vadd.f32 %v2263_v56, %v2262_v31  ;;  %vm2294_vm13 = vcmp.eq.s32.totalorder %v10617_v51, 2  ;;  %v2296_v19 = vsel %vm2261_vm15, %v10616_v29, 0.0  ;;  %v2868_v18 = vcombine.low %v10626_v20, %v10625_v60 }
 0x50b   : > { %v2225_v46 = vadd.f32 %v2221_v53, %v2180_v25  ;;  %v2295_v44 = vsel %vm2294_vm13, %v9359_v45, 0.0  ;;  %vm2327_vm7 = vcmp.eq.s32.totalorder %v10617_v51, 3  ;;  %v2329_v26 = vsel %vm2294_vm13, %v10616_v29, 0.0  ;;  %v10632_v31 = vld [vmem:[#allocation79_spill] sm:$0xff] }
 0x50c   : > { %v2254_v8 = vmul.f32 %v2240_v9, %v10622_v36  ;;  %v2273_v2 = vrot.slane %v9424_v40, %v6346_v13  ;;  %v9434_v7 = vadd.f32 %v2296_v19, %v2295_v44  ;;  %v2328_v61 = vsel %vm2327_vm7, %v9359_v45, 0.0  ;;  %v10634_v44 = vld [vmem:[#allocation84_spill] sm:$0xff] }
 0x50d   : > { %v9437_v1 = vadd.f32 %v2329_v26, %v2328_v61  ;;  %vm2360_vm5 = vcmp.eq.s32.totalorder %v10617_v51, 4  ;;  %v2362_v33 = vsel %vm2327_vm7, %v10616_v29, 0.0  ;;  %vm2393_vm2 = vcmp.eq.s32.totalorder %v10617_v51, 5 }
 0x50e   : > { %v2258_v16 = vadd.f32 %v2254_v8, %v2225_v46  ;;  %v2287_v52 = vmul.f32 %v2273_v2, %v10623_v34  ;;  %v2306_v37 = vrot.slane %v9434_v7, %v6346_v13  ;;  %v2361_v4 = vsel %vm2360_vm5, %v9359_v45, 0.0  ;;  %v10633_v46 = vld [vmem:[#allocation83_spill] sm:$0xff] }
 0x50f   : > { %v2339_v48 = vrot.slane %v9437_v1, %v6346_v13  ;;  %v9448_v55 = vadd.f32 %v2362_v33, %v2361_v4  ;;  %v2394_v17 = vsel %vm2393_vm2, %v9359_v45, 0.0  ;;  %v2395_v22 = vsel %vm2360_vm5, %v10616_v29, 0.0  ;;  %v10635_v2 = vld [vmem:[#allocation103_spill] sm:$0xff] }
 0x510   : > { %v2291_v30 = vadd.f32 %v2287_v52, %v2258_v16  ;;  %v2320_v51 = vmul.f32 %v2306_v37, %v10624_v59  ;;  %v9453_v24 = vadd.f32 %v2395_v22, %v2394_v17  ;;  %v2869_v49 = vcombine.low %v10629_v21, %v10628_v3  ;;  %v10636_v37 = vld [vmem:[#allocation124_spill] sm:$0xff] }
 0x511   : > { %v2353_v58 = vmul.f32 %v2339_v48, %v10627_v38  ;;  %v2372_v10 = vrot.slane %v9448_v55, %v6346_v13  ;;  %v2080_v45 = vrot.slane %v9377_v54, %v6352_v15  ;;  %v2876_v39 = vrot.slane %v2868_v18, %v10630_v42  ;;  %v10637_v17 = vld [vmem:[#allocation80_spill] sm:$0xff] }
 0x512   : > { %v2324_v29 = vadd.f32 %v2320_v51, %v2291_v30  ;;  %v2405_v12 = vrot.slane %v9453_v24, %v6346_v13  ;;  %v2125_v6 = vrot.slane %v9379_v5, %v6352_v15  ;;  %v2883_v35 = vrot.slane %v2869_v49, %v10630_v42  ;;  %v10638_v22 = vld [vmem:[#allocation88_spill] sm:$0xff] }
 0x513   : > { %v2386_v50 = vmul.f32 %v2372_v10, %v10631_v63  ;;  %v2088_v43 = vmul.f32 %v2080_v45, %v10631_v63  ;;  %v2170_v25 = vrot.slane %v9395_v11, %v6352_v15  ;;  %v2215_v19 = vrot.slane %v9406_v32, %v6352_v15  ;;  %v10639_v10 = vld [vmem:[#allocation52_spill] sm:$0xff]  ;;  %v10640_v45 = vld [vmem:[#allocation102_spill] sm:$0xff] }
 0x514   : > { %v2357_v53 = vadd.f32 %v2353_v58, %v2324_v29  ;;  %v2419_v56 = vmul.f32 %v2405_v12, %v10632_v31  ;;  %v2133_v9 = vmul.f32 %v2125_v6, %v10632_v31  ;;  %v9482_v26 = vsel %vm1727_vm4, %v10634_v44, %v10633_v46 }
 0x515   : > { %v2884_v8 = vcombine.high %v2876_v39, %v2883_v35  ;;  %v2178_v61 = vmul.f32 %v2170_v25, %v10635_v2  ;;  %v2248_v33 = vrot.slane %v9416_v23, %v6352_v15  ;;  %v2223_v4 = vmul.f32 %v2215_v19, %v10636_v37 }
 0x516   : > { %v2390_v16 = vadd.f32 %v2386_v50, %v2357_v53  ;;  %v2137_v52 = vadd.f32 %v2133_v9, %v2088_v43  ;;  %v2314_v48 = vrot.slane %v9434_v7, %v6352_v15  ;;  %v2153_v30 = vsel %vm1727_vm4, %v10638_v22, %v10637_v17  ;;  %v6074_v43 = vld [vmem:[%s9875_s11] sm:$0xf] }
 0x517   : > { %v2891_v51 = vrot.slane %v2884_v8, %v10630_v42  ;;  %v2281_v60 = vrot.slane %v9424_v40, %v6352_v15  ;;  %v2347_v20 = vrot.slane %v9437_v1, %v6352_v15  ;;  %v2256_v3 = vmul.f32 %v2248_v33, %v10639_v10  ;;  %v10641_v53 = vld [vmem:[#allocation76_spill] sm:$0xff] }
 0x518   : > { %v2423_v18 = vadd.f32 %v2419_v56, %v2390_v16  ;;  %v2182_v58 = vadd.f32 %v2178_v61, %v2137_v52  ;;  %v2322_v21 = vmul.f32 %v2314_v48, %v2153_v30  ;;  %v2380_v12 = vrot.slane %v9448_v55, %v6352_v15 }
 0x519   : > { %v2892_v49 = vcombine.high %v2891_v51, %v2891_v51  ;;  %v2355_v29 = vmul.f32 %v2347_v20, %v10640_v45  ;;  %v2068_v42 = vrot.slane %v9377_v54, %v10612_v47  ;;  %v2413_v50 = vrot.slane %v9453_v24, %v6352_v15 }
 0x51a   : > { %v2431_v39 = vrot.slane %v2423_v18, 4  ;;  %v2227_v6 = vadd.f32 %v2223_v4, %v2182_v58  ;;  %v2113_v35 = vrot.slane %v9379_v5, %v10612_v47  ;;  %v2289_v56 = vmul.f32 %v2281_v60, %v10641_v53 }
 0x51b   : > { %v2894_v25 = vadd.f32 %v6074_v43, %v2892_v49  ;;  %v2085_v9 = vmul.f32 %v2068_v42, %v10639_v10  ;;  %v2158_v19 = vrot.slane %v9395_v11, %v10612_v47  ;;  %v2203_v61 = vrot.slane %v9406_v32, %v10612_v47 }
 0x51c   : > { %2439 = vst [vmem:[#allocation3 + $0x8] sm:$0xf0] %v2431_v39  ;;  %v2260_v46 = vadd.f32 %v2256_v3, %v2227_v6  ;;  %v2130_v8 = vmul.f32 %v2113_v35, %v10641_v53  ;;  %v2236_v33 = vrot.slane %v9416_v23, %v10612_v47  ;;  %v2388_v52 = vmul.f32 %v2380_v12, %v10618_v62 }
 0x51d   : > { %v2895_v16 = vmax.f32 %v2894_v25, 0.0  ;;  %v2175_v4 = vmul.f32 %v2158_v19, %v2153_v30  ;;  %v2269_v48 = vrot.slane %v9424_v40, %v10612_v47  ;;  %v2421_v22 = vmul.f32 %v2413_v50, %v10619_v27 }
 0x51e   : > { %v2293_v17 = vadd.f32 %v2289_v56, %v2260_v46  ;;  %v2134_v51 = vadd.f32 %v2130_v8, %v2085_v9  ;;  %v2220_v60 = vmul.f32 %v2203_v61, %v10640_v45  ;;  %v2253_v18 = vmul.f32 %v2236_v33, %v10618_v62  ;;  %v10642_v46 = vld [vmem:[#allocation89_spill] sm:$0xff] }
 0x51f   : > { %v2896_v20 = vmin.f32 %v2895_v16, 15.0  ;;  %v2302_v58 = vrot.slane %v9434_v7, %v10612_v47  ;;  %v2335_v3 = vrot.slane %v9437_v1, %v10612_v47  ;;  %v2286_v12 = vmul.f32 %v2269_v48, %v10619_v27  ;;  %v10644_v48 = vld [vmem:[#allocation90_spill] sm:$0xff] }
 0x520   : > { %v2326_v49 = vadd.f32 %v2322_v21, %v2293_v17  ;;  %v2179_v30 = vadd.f32 %v2175_v4, %v2134_v51  ;;  %v2401_v42 = vrot.slane %v9453_v24, %v10612_v47  ;;  %v2076_v62 = vrot.slane %v9377_v54, %v6349_v14 }
 0x521   : > { %v2897_v39 = vfloor.f32 %v2896_v20  ;;  %v9535_v6 = vmul.f32 %v2335_v3, %v10621_v0  ;;  %v2121_v45 = vrot.slane %v9379_v5, %v6349_v14  ;;  %v2368_v21 = vrot.slane %v9448_v55, %v10612_v47 }
 0x522   : > { %v2359_v50 = vadd.f32 %v2355_v29, %v2326_v49  ;;  %v2224_v35 = vadd.f32 %v2220_v60, %v2179_v30  ;;  %v9544_v27 = vmul.f32 %v2401_v42, %v10623_v34  ;;  %v2087_v0 = vmul.f32 %v2076_v62, %v10622_v36 }
 0x523   : > { %v9546_v25 = vsub.f32 %v2896_v20, %v2897_v39  ;;  %v2900_v56 = vsub.f32 %v2897_v39, %v6074_v43  ;;  %v2132_v9 = vmul.f32 %v2121_v45, %v10623_v34  ;;  %v2166_v5 = vrot.slane %v9395_v11, %v6349_v14  ;;  %v10643_v11 = vld [vmem:[#allocation75_spill] sm:$0xff] }
 0x524   : > { %v2392_v19 = vadd.f32 %v2388_v52, %v2359_v50  ;;  %v2257_v54 = vadd.f32 %v2253_v18, %v2224_v35  ;;  %v2211_v29 = vrot.slane %v9406_v32, %v6349_v14  ;;  %v9558_v8 = vsel %vm1727_vm4, %v10642_v46, %v10634_v44  ;;  %v10645_v44 = vld [vmem:[#allocation73_spill] sm:$0xff] }
 0x525   : > { %v5971_v61 = vtrunc.f32 %v2900_v56  ;;  %v2319_v43 = vmul.f32 %v2302_v58, %v10620_v57  ;;  %v2136_v33 = vadd.f32 %v2132_v9, %v2087_v0  ;;  %v2177_v52 = vmul.f32 %v2166_v5, %v10624_v59  ;;  %v10646_v0 = vld [vmem:[#allocation14_spill] sm:$0xff] }
 0x526   : > { %v2425_v16 = vadd.f32 %v2421_v22, %v2392_v19  ;;  %v2290_v34 = vadd.f32 %v2286_v12, %v2257_v54  ;;  %v9563_v4 = vmul.f32 %v2211_v29, %v10627_v38  ;;  %v9569_v32 = vsel %vm811_vm11, %v10644_v48, %v10643_v11  ;;  %v10647_v19 = vld [vmem:[#allocation70_spill] sm:$0xff] }
 0x527   : > { %v9575_v17 = vsel %vm811_vm11, %v10645_v44, %v10644_v48  ;;  %v5972_v57 = vcvt.f32.s32 %v5971_v61  ;;  %v9578_v22 = vmul.f32 %v2368_v21, %v10622_v36  ;;  %v2899_v59 = vsub.f32 1.0, %v9546_v25 }
 0x528   : > { %v2433_v38 = vrot.slane %v2425_v16, 4  ;;  %v9581_v51 = vadd.f32 %v2319_v43, %v2290_v34  ;;  %v9583_v60 = vadd.f32 %v2177_v52, %v2136_v33  ;;  %v2244_v44 = vrot.slane %v9416_v23, %v6349_v14 }
 0x529   : > { %vm2902_vm4 = vcmp.eq.s32.totalorder %v5972_v57, 4294967292  ;;  %vm2904_vm8 = vcmp.eq.s32.totalorder %v5972_v57, 4294967291  ;;  %vm2936_vm12 = vcmp.eq.s32.totalorder %v5972_v57, 4294967293  ;;  %vm2981_vm9 = vcmp.eq.s32.totalorder %v5972_v57, 4294967294 }
 0x52a   : > { %v2903_v20 = vsel %vm2902_vm4, %v2899_v59, 0.0  ;;  %v2905_v41 = vsel %vm2904_vm8, %v9546_v25, 0.0  ;;  %v2937_v18 = vsel %vm2936_vm12, %v2899_v59, 0.0  ;;  %v2938_v58 = vsel %vm2902_vm4, %v9546_v25, 0.0  ;;  %2441 = vst [vmem:[#allocation3 + $0x18] sm:$0xf0] %v2433_v38 }
 0x52b   : > { %v9587_v36 = vadd.f32 %v2905_v41, %v2903_v20  ;;  %v9589_v3 = vadd.f32 %v2938_v58, %v2937_v18  ;;  %v2982_v49 = vsel %vm2981_vm9, %v2899_v59, 0.0  ;;  %v2983_v30 = vsel %vm2936_vm12, %v9546_v25, 0.0  ;;  %v10648_v20 = vld [vmem:[#allocation94_spill] sm:$0xff] }
 0x52c   : > { %v9592_v12 = vadd.f32 %v2983_v30, %v2982_v49  ;;  %vm3026_vm11 = vcmp.eq.s32.totalorder %v5972_v57, 4294967295  ;;  %v3028_v42 = vsel %vm2981_vm9, %v9546_v25, 0.0  ;;  %vm3071_vm6 = vcmp.eq.s32.totalorder %v5972_v57, 0 }
 0x52d   : > { %v2915_v39 = vrot.slane %v9587_v36, %v6346_v13  ;;  %v2960_v62 = vrot.slane %v9589_v3, %v6346_v13  ;;  %v3027_v45 = vsel %vm3026_vm11, %v2899_v59, 0.0  ;;  %v3072_v50 = vsel %vm3071_vm6, %v2899_v59, 0.0 }
 0x52e   : > { %v3005_v35 = vrot.slane %v9592_v12, %v6346_v13  ;;  %v9601_v21 = vadd.f32 %v3028_v42, %v3027_v45  ;;  %v3073_v56 = vsel %vm3026_vm11, %v9546_v25, 0.0  ;;  %vm3104_vm10 = vcmp.eq.s32.totalorder %v5972_v57, 1 }
 0x52f   : > { %v2929_v9 = vmul.f32 %v2915_v39, %v10646_v0  ;;  %v2974_v54 = vmul.f32 %v2960_v62, %v10647_v19  ;;  %v9606_v5 = vadd.f32 %v3073_v56, %v3072_v50  ;;  %v3105_v29 = vsel %vm3104_vm10, %v2899_v59, 0.0  ;;  %v10649_v39 = vld [vmem:[#allocation12_spill] sm:$0xff] }
 0x530   : > { %v3019_v46 = vmul.f32 %v3005_v35, %v9482_v26  ;;  %v3050_v61 = vrot.slane %v9601_v21, %v6346_v13  ;;  %v3106_v43 = vsel %vm3071_vm6, %v9546_v25, 0.0  ;;  %vm3137_vm14 = vcmp.eq.s32.totalorder %v5972_v57, 2 }
 0x531   : > { %v2978_v33 = vadd.f32 %v2974_v54, %v2929_v9  ;;  %v3083_v16 = vrot.slane %v9606_v5, %v6346_v13  ;;  %v9614_v34 = vadd.f32 %v3106_v43, %v3105_v29  ;;  %v3138_v52 = vsel %vm3137_vm14, %v2899_v59, 0.0  ;;  %v10650_v43 = vld [vmem:[#allocation22_spill] sm:$0xff] }
 0x532   : > { %v3139_v11 = vsel %vm3104_vm10, %v9546_v25, 0.0  ;;  %vm3170_vm0 = vcmp.eq.s32.totalorder %v5972_v57, 3  ;;  %v3172_v48 = vsel %vm3137_vm14, %v9546_v25, 0.0  ;;  %v3064_v41 = vmul.f32 %v3050_v61, %v10648_v20 }
 0x533   : > { %v3023_v38 = vadd.f32 %v3019_v46, %v2978_v33  ;;  %v3116_v18 = vrot.slane %v9614_v34, %v6346_v13  ;;  %v9623_v58 = vadd.f32 %v3139_v11, %v3138_v52  ;;  %v3171_v49 = vsel %vm3170_vm0, %v2899_v59, 0.0  ;;  %v10651_v52 = vld [vmem:[#allocation109_spill] sm:$0xff] }
 0x534   : > { %vm3203_vm15 = vcmp.eq.s32.totalorder %v5972_v57, 4  ;;  %v3205_v30 = vsel %vm3170_vm0, %v9546_v25, 0.0  ;;  %vm3236_vm13 = vcmp.eq.s32.totalorder %v5972_v57, 5  ;;  %v3097_v62 = vmul.f32 %v3083_v16, %v10649_v39 }
 0x535   : > { %v3068_v42 = vadd.f32 %v3064_v41, %v3023_v38  ;;  %v3149_v45 = vrot.slane %v9623_v58, %v6346_v13  ;;  %v9629_v23 = vadd.f32 %v3172_v48, %v3171_v49  ;;  %v3204_v50 = vsel %vm3203_vm15, %v2899_v59, 0.0 }
 0x536   : > { %v3237_v35 = vsel %vm3236_vm13, %v2899_v59, 0.0  ;;  %v3238_v56 = vsel %vm3203_vm15, %v9546_v25, 0.0  ;;  %v2923_v9 = vrot.slane %v9587_v36, %v6352_v15  ;;  %v3130_v29 = vmul.f32 %v3116_v18, %v9575_v17 }
 0x537   : > { %v3101_v54 = vadd.f32 %v3097_v62, %v3068_v42  ;;  %v3182_v57 = vrot.slane %v9629_v23, %v6346_v13  ;;  %v9637_v46 = vadd.f32 %v3205_v30, %v3204_v50  ;;  %v9639_v61 = vadd.f32 %v3238_v56, %v3237_v35  ;;  %v10652_v62 = vld [vmem:[#allocation128_spill] sm:$0xff] }
 0x538   : > { %v2931_v33 = vmul.f32 %v2923_v9, %v10650_v43  ;;  %v2968_v59 = vrot.slane %v9589_v3, %v6352_v15  ;;  %v3013_v25 = vrot.slane %v9592_v12, %v6352_v15  ;;  %v3163_v11 = vmul.f32 %v3149_v45, %v10651_v52 }
 0x539   : > { %v3134_v16 = vadd.f32 %v3130_v29, %v3101_v54  ;;  %v3215_v48 = vrot.slane %v9637_v46, %v6346_v13  ;;  %v3058_v38 = vrot.slane %v9601_v21, %v6352_v15  ;;  %v3248_v41 = vrot.slane %v9639_v61, %v6346_v13  ;;  %v10653_v13 = vld [vmem:[#allocation108_spill] sm:$0xff] }
 0x53a   : > { %v2976_v18 = vmul.f32 %v2968_v59, %v9569_v32  ;;  %v3091_v49 = vrot.slane %v9606_v5, %v6352_v15  ;;  %v2255_v30 = vmul.f32 %v2244_v44, %v10631_v63  ;;  %v3196_v50 = vmul.f32 %v3182_v57, %v10652_v62  ;;  %v10654_v44 = vld [vmem:[#allocation127_spill] sm:$0xff]  ;;  %v10655_v57 = vld [vmem:[#allocation21_spill] sm:$0xff] }
 0x53b   : > { %v3167_v42 = vadd.f32 %v3163_v11, %v3134_v16  ;;  %v3124_v45 = vrot.slane %v9614_v34, %v6352_v15  ;;  %v2277_v35 = vrot.slane %v9424_v40, %v6349_v14  ;;  %v3229_v56 = vmul.f32 %v3215_v48, %v10650_v43  ;;  %v10656_v62 = vld [vmem:[#allocation33_spill] sm:$0xff] }
 0x53c   : > { %v2980_v9 = vadd.f32 %v2976_v18, %v2931_v33  ;;  %v3021_v54 = vmul.f32 %v3013_v25, %v10653_v13  ;;  %v2310_v29 = vrot.slane %v9434_v7, %v6349_v14  ;;  %v3262_v63 = vmul.f32 %v3248_v41, %v9569_v32 }
 0x53d   : > { %v3200_v59 = vadd.f32 %v3196_v50, %v3167_v42  ;;  %v3066_v16 = vmul.f32 %v3058_v38, %v10654_v44  ;;  %v3099_v11 = vmul.f32 %v3091_v49, %v10655_v57  ;;  %v3132_v53 = vmul.f32 %v3124_v45, %v10656_v62 }
 0x53e   : > { %v3025_v28 = vadd.f32 %v3021_v54, %v2980_v9  ;;  %v3157_v40 = vrot.slane %v9623_v58, %v6352_v15  ;;  %v2356_v33 = vadd.f32 %v9535_v6, %v9581_v51  ;;  %v3190_v7 = vrot.slane %v9629_v23, %v6352_v15 }
 0x53f   : > { %v3233_v25 = vadd.f32 %v3229_v56, %v3200_v59  ;;  %v3223_v48 = vrot.slane %v9637_v46, %v6352_v15  ;;  %v2911_v38 = vrot.slane %v9587_v36, %v10612_v47  ;;  %v3256_v18 = vrot.slane %v9639_v61, %v6352_v15 }
 0x540   : > { %v3070_v41 = vadd.f32 %v3066_v16, %v3025_v28  ;;  %v2389_v49 = vadd.f32 %v9578_v22, %v2356_v33  ;;  %v2956_v42 = vrot.slane %v9589_v3, %v10612_v47  ;;  %v3001_v50 = vrot.slane %v9592_v12, %v10612_v47 }
 0x541   : > { %v3266_v6 = vadd.f32 %v3262_v63, %v3233_v25  ;;  %v2928_v51 = vmul.f32 %v2911_v38, %v10655_v57  ;;  %v3046_v45 = vrot.slane %v9601_v21, %v10612_v47  ;;  %v3079_v15 = vrot.slane %v9606_v5, %v10612_v47 }
 0x542   : > { %v3103_v56 = vadd.f32 %v3099_v11, %v3070_v41  ;;  %v2422_v28 = vadd.f32 %v9544_v27, %v2389_v49  ;;  %v2973_v9 = vmul.f32 %v2956_v42, %v10656_v62  ;;  %v3165_v54 = vmul.f32 %v3157_v40, %v9558_v8  ;;  %v10657_v27 = vld [vmem:[#allocation107_spill] sm:$0xff] }
 0x543   : > { %v3274_v22 = vrot.slane %v3266_v6, 4  ;;  %v3112_v59 = vrot.slane %v9614_v34, %v10612_v47  ;;  %v2343_v63 = vrot.slane %v9437_v1, %v6349_v14  ;;  %v3018_v11 = vmul.f32 %v3001_v50, %v9558_v8 }
 0x544   : > { %v3136_v16 = vadd.f32 %v3132_v53, %v3103_v56  ;;  %v2430_v33 = vrot.slane %v2422_v28, 4  ;;  %v2977_v25 = vadd.f32 %v2973_v9, %v2928_v51  ;;  %v3198_v38 = vmul.f32 %v3190_v7, %v10657_v27  ;;  %v5333_v56 = vld [vmem:[#allocation3 + $0x8] sm:$0xff] }
 0x545   : > { %3282 = vst [vmem:[#allocation3 + $0x28] sm:$0xf0] %v3274_v22  ;;  %v3231_v41 = vmul.f32 %v3223_v48, %v10646_v0  ;;  %v3264_v49 = vmul.f32 %v3256_v18, %v10647_v19  ;;  %v3063_v40 = vmul.f32 %v3046_v45, %v10657_v27  ;;  %v3096_v62 = vmul.f32 %v3079_v15, %v10646_v0 }
 0x546   : > { %v3169_v42 = vadd.f32 %v3165_v54, %v3136_v16  ;;  %2438 = vst [vmem:[#allocation3] sm:$0xf0] %v2430_v33  ;;  %v3022_v6 = vadd.f32 %v3018_v11, %v2977_v25  ;;  %v2226_v1 = vadd.f32 %v9563_v4, %v9583_v60  ;;  %v3129_v53 = vmul.f32 %v3112_v59, %v10647_v19 }
 0x547   : > { %v3145_v8 = vrot.slane %v9623_v58, %v10612_v47  ;;  %v3178_v7 = vrot.slane %v9629_v23, %v10612_v47  ;;  %v2288_v48 = vmul.f32 %v2277_v35, %v10632_v31  ;;  %v3211_v50 = vrot.slane %v9637_v46, %v10612_v47 }
 0x548   : > { %v3202_v18 = vadd.f32 %v3198_v38, %v3169_v42  ;;  %v3067_v51 = vadd.f32 %v3063_v40, %v3022_v6  ;;  %v2259_v45 = vadd.f32 %v2255_v30, %v2226_v1  ;;  %v3244_v0 = vrot.slane %v9639_v61, %v10612_v47  ;;  %v10658_v38 = vld [vmem:[#allocation76_spill] sm:$0xff] }
 0x549   : > { %v2321_v4 = vmul.f32 %v2310_v29, %v10635_v2  ;;  %v2354_v60 = vmul.f32 %v2343_v63, %v10636_v37  ;;  %v2376_v19 = vrot.slane %v9448_v55, %v6349_v14  ;;  %v2919_v35 = vrot.slane %v9587_v36, %v6349_v14 }
 0x54a   : > { %v3235_v28 = vadd.f32 %v3231_v41, %v3202_v18  ;;  %v3100_v9 = vadd.f32 %v3096_v62, %v3067_v51  ;;  %v2292_v31 = vadd.f32 %v2288_v48, %v2259_v45  ;;  %v3162_v15 = vmul.f32 %v3145_v8, %v9482_v26 }
 0x54b   : > { %v2409_v30 = vrot.slane %v9453_v24, %v6349_v14  ;;  %v2964_v47 = vrot.slane %v9589_v3, %v6349_v14  ;;  %v3009_v2 = vrot.slane %v9592_v12, %v6349_v14  ;;  %v2930_v62 = vmul.f32 %v2919_v35, %v10649_v39 }
 0x54c   : > { %v5337_v37 = vld [vmem:[#allocation3 + $0x28] sm:$0xff]  ;;  %v3268_v55 = vadd.f32 %v3264_v49, %v3235_v28  ;;  %v3133_v29 = vadd.f32 %v3129_v53, %v3100_v9  ;;  %v2325_v22 = vadd.f32 %v2321_v4, %v2292_v31  ;;  %v3195_v36 = vmul.f32 %v3178_v7, %v10648_v20  ;;  %v10659_v49 = vld [vmem:[#allocation128_spill] sm:$0xff]  ;;  %v5335_v7 = vld [vmem:[#allocation3 + $0x18] sm:$0xff] }
 0x54d   : > { %v5949_v54 = vpack.c.bf16 %v5337_v37, %v5333_v56  ;;  %v2975_v26 = vmul.f32 %v2964_v47, %v9575_v17  ;;  %v3054_v24 = vrot.slane %v9601_v21, %v6349_v14  ;;  %v2387_v16 = vmul.f32 %v2376_v19, %v10639_v10  ;;  %v5332_v19 = vld [vmem:[#allocation3] sm:$0xff]  ;;  %v10660_v28 = vld [vmem:[#allocation33_spill] sm:$0xff] }
 0x54e   : > { %v3276_v59 = vrot.slane %v3268_v55, 4  ;;  %v3166_v63 = vadd.f32 %v3162_v15, %v3133_v29  ;;  %v2358_v3 = vadd.f32 %v2354_v60, %v2325_v22  ;;  %v3020_v33 = vmul.f32 %v3009_v2, %v10651_v52  ;;  %v5341_v15 = vld [vmem:[#allocation3 + $0x48] sm:$0xff]  ;;  %v5344_v2 = vld [vmem:[#allocation3 + $0x60] sm:$0xff]  ;;  %v5347_v29 = vld [vmem:[#allocation3 + $0x78] sm:$0xff] }
 0x54f   : > { %5950 = vmatprep.subr.bf16.mxu0 %v5949_v54  ;;  %v2979_v12 = vadd.f32 %v2975_v26, %v2930_v62  ;;  %v3087_v25 = vrot.slane %v9606_v5, %v6349_v14  ;;  %v3228_v20 = vmul.f32 %v3211_v50, %v10649_v39  ;;  %v2420_v41 = vmul.f32 %v2409_v30, %v10658_v38  ;;  %v5331_v55 = vld [vmem:[%s9870_s6] sm:$0xf]  ;;  %v5343_v54 = vld [vmem:[#allocation3 + $0x58] sm:$0xff] }
 0x550   : > { %3284 = vst [vmem:[#allocation3 + $0x38] sm:$0xf0] %v3276_v59  ;;  %v3199_v11 = vadd.f32 %v3195_v36, %v3166_v63  ;;  %v2391_v27 = vadd.f32 %v2387_v16, %v2358_v3  ;;  %v3065_v40 = vmul.f32 %v3054_v24, %v10659_v49  ;;  %v3120_v10 = vrot.slane %v9614_v34, %v6349_v14  ;;  %v5346_v24 = vld [vmem:[#allocation3 + $0x70] sm:$0xff]  ;;  %v5351_v3 = vld [vmem:[#allocation3 + $0x98] sm:$0xf] }
 0x551   : > { %v3024_v21 = vadd.f32 %v3020_v33, %v2979_v12  ;;  %v3261_v6 = vmul.f32 %v3244_v0, %v9575_v17  ;;  %v3098_v5 = vmul.f32 %v3087_v25, %v10650_v43  ;;  %v3153_v53 = vrot.slane %v9623_v58, %v6349_v14  ;;  %v5342_v59 = vld [vmem:[#allocation3 + $0x50] sm:$0xff] }
 0x552   : > { %v3232_v42 = vadd.f32 %v3228_v20, %v3199_v11  ;;  %v2424_v52 = vadd.f32 %v2420_v41, %v2391_v27  ;;  %v3131_v18 = vmul.f32 %v3120_v10, %v9569_v32  ;;  %v3186_v51 = vrot.slane %v9629_v23, %v6349_v14  ;;  %v5350_v16 = vld [vmem:[#allocation3 + $0x90] sm:$0xf]  ;;  %v5356_v20 = vpop.permute.xlu0 %5355 }
 0x553   : > { %v3069_v1 = vadd.f32 %v3065_v40, %v3024_v21  ;;  %v3164_v45 = vmul.f32 %v3153_v53, %v10653_v13  ;;  %v3219_v43 = vrot.slane %v9637_v46, %v6349_v14  ;;  %v3252_v32 = vrot.slane %v9639_v61, %v6349_v14  ;;  %v5345_v13 = vld [vmem:[#allocation3 + $0x68] sm:$0xff]  ;;  %v5340_v14 = vld [vmem:[#allocation3 + $0x40] sm:$0xff]  ;;  %v10663_v10 = vld [vmem:[#allocation38_spill] sm:$0xff] }
 0x554   : > { %v3265_v39 = vadd.f32 %v3261_v6, %v3232_v42  ;;  %v2432_v8 = vrot.slane %v2424_v52, 4  ;;  %v3197_v4 = vmul.f32 %v3186_v51, %v10654_v44  ;;  %v5953_v47 = vpack.c.bf16 %v5345_v13, %v5341_v15  ;;  %v5349_v44 = vld [vmem:[#allocation3 + $0x88] sm:$0xf]  ;;  %v10664_v6 = vld [vmem:[#allocation39_spill] sm:$0xff]  ;;  %v5545_v15 = vld [vmem:[%s9874_s10] sm:$0xf] }
 0x555   : > { %v3102_v48 = vadd.f32 %v3098_v5, %v3069_v1  ;;  %v3230_v23 = vmul.f32 %v3219_v43, %v10655_v57  ;;  %v3263_v9 = vmul.f32 %v3252_v32, %v10660_v28  ;;  %v5955_v61 = vpack.c.bf16 %v5344_v2, %v5340_v14  ;;  %v5348_v57 = vld [vmem:[#allocation3 + $0x80] sm:$0xf] }
 0x556   : > { %v3273_v34 = vrot.slane %v3265_v39, 4  ;;  %2440 = vst [vmem:[#allocation3 + $0x10] sm:$0xf0] %v2432_v8  ;;  %v10661_v36 = vmov 0.0   ;;  %v5961_v26 = vpack.c.bf16 %v5347_v29, %v5343_v54  ;;  %vm10662_vm7 = vmmov 0  }
 0x557   : > { %v5339_v50 = vld [vmem:[#allocation3 + $0x38] sm:$0xff]  ;;  %v3135_v17 = vadd.f32 %v3131_v18, %v3102_v48  ;;  %v5963_v63 = vpack.c.bf16 %v5346_v24, %v5342_v59  ;;  %v5731_v29 = vld [vmem:[%s9873_s9] sm:$0xf] }
 0x558   : > { %v5957_v0 = vpack.c.bf16 %v5339_v50, %v5335_v7  ;;  %3281 = vst [vmem:[#allocation3 + $0x20] sm:$0xf0] %v3273_v34 }
 0x559   : > { %v3168_v58 = vadd.f32 %v3164_v45, %v3135_v17  ;;  %v10665_v17 = vld [vmem:[#allocation40_spill] sm:$0xff] }
 0x55a   : > { %5958 = vmatprep.subr.bf16.mxu1 %v5957_v0  ;;  %v10666_v0 = vld [vmem:[#allocation44_spill] sm:$0xff] }
 0x55b   : > { %v3201_v60 = vadd.f32 %v3197_v4, %v3168_v58 }
 0x55d   : > { %v3234_v56 = vadd.f32 %v3230_v23, %v3201_v60  ;;  %v5334_v37 = vld [vmem:[#allocation3 + $0x10] sm:$0xff] }
 0x55f   : > { %v5336_v31 = vld [vmem:[#allocation3 + $0x20] sm:$0xff]  ;;  %v3267_v35 = vadd.f32 %v3263_v9, %v3234_v56 }
 0x560   : > { %v5951_v46 = vpack.c.bf16 %v5336_v31, %v5332_v19 }
 0x561   : > { %v3275_v30 = vrot.slane %v3267_v35, 4 }
 0x562   : > { %5952 = vmatpush1.bf16.msra.mxu0 %v5951_v46 }
 0x563   : > { %3283 = vst [vmem:[#allocation3 + $0x30] sm:$0xf0] %v3275_v30  ;;  %5954 = vmatprep.subr.bf16.mxu0 %v5953_v47 }
 0x566   : > { %5956 = vmatpush1.bf16.msra.mxu0 %v5955_v61 }
 0x567   : > { %5854 = vmatprep.subr.msk.mxu0 %vm952_vm1, %v5349_v44 }
 0x56a   : > { %v5338_v22 = vld [vmem:[#allocation3 + $0x30] sm:$0xff]  ;;  %5855 = vmatpush1.msk.msra.mxu0 %vm952_vm1, %v5348_v57 }
 0x56b   : > { %v5959_v62 = vpack.c.bf16 %v5338_v22, %v5334_v37  ;;  %5856 = vmatmul.mubr.msk.f32.vlgmr.msra.gmra.mrb[12].mxu0 %vm942_vm3, %v5331_v55  ;;  %5917 = vmatprep.subr.mxu0 %v10661_v36 }
 0x56c   : > { %5919 = vmatprep.mubr.msk.f32.mxu0 %vm10662_vm7, %v10661_v36 }
 0x56d   : > { %5960 = vmatpush1.bf16.msra.mxu1 %v5959_v62 }
 0x56e   : > { %5962 = vmatprep.subr.bf16.mxu1 %v5961_v26 }
 0x571   : > { %5964 = vmatpush1.bf16.msra.mxu1 %v5963_v63 }
 0x572   : > { %5857 = vmatprep.subr.msk.mxu1 %vm952_vm1, %v5351_v3 }
 0x575   : > { %5858 = vmatpush1.msk.msra.mxu1 %vm952_vm1, %v5350_v16 }
 0x576   : > { %5859 = vmatmul.mubr.msk.f32.vlgmr.msra.gmra.mrb[12].mxu1 %vm942_vm3, %v5331_v55  ;;  %5922 = vmatprep.subr.mxu1 %v10661_v36  ;;  %vm5546_vm3 = vcmask 31744  }
 0x577   : > { %5924 = vmatprep.mubr.msk.f32.mxu1 %vm10662_vm7, %v10661_v36  ;;  %v5721_v36 = vld [vmem:[%s9872_s8] sm:$0xf] }
 0x5bb   : > { %v1319_v12 = vpop.f32.mrb[10].mxu0 }
 0x5bc   : > { %v5901_v33 = vpop.f32.mrb[11].mxu0  ;;  %v1404_v25 = vpop.f32.mrb[10].mxu1 }
 0x5bd   : > { %v5916_v11 = vpop.f32.mrb[11].mxu1 }
 0x63e   : > { %v5439_v27 = vpop.f32.mrb[12].mxu0 }
 0x63f   : > { %v9774_v38 = vadd.f32 %v5439_v27, %v5356_v20  ;;  %v5441_v41 = vpop.f32.mrb[13].mxu0 }
 0x640   : > { %v9776_v21 = vadd.f32 %v5441_v41, %v5356_v20 }
 0x641   : > { %v5528_v49 = vmul.f32 %v9774_v38, %v9774_v38  ;;  %v5515_v42 = vmul.f32 %v9774_v38, %v10663_v10 }
 0x642   : > { %v5529_v40 = vmul.f32 %v9776_v21, %v9776_v21  ;;  %v5516_v52 = vmul.f32 %v9776_v21, %v10664_v6 }
 0x643   : > { %v5532_v1 = vmul.f32 %v5528_v49, %v10663_v10  ;;  %v5519_v53 = vsel %vm952_vm1, %v5515_v42, 0.0 }
 0x644   : > { %v5533_v5 = vmul.f32 %v5529_v40, %v10664_v6  ;;  %v5520_v39 = vsel %vm952_vm1, %v5516_v52, 0.0 }
 0x645   : > { %v5536_v18 = vsel %vm952_vm1, %v5532_v1, 0.0  ;;  %v5521_v50 = vadd.f32 %v5520_v39, %v5519_v53 }
 0x646   : > { %v5537_v51 = vsel %vm952_vm1, %v5533_v5, 0.0 }
 0x647   : > { %v5538_v32 = vadd.f32 %v5537_v51, %v5536_v18 }
 0x649   : > { %v5510_v8 = vpop.f32.mrb[12].mxu1 }
 0x64a   : > { %v5511_v7 = vadd.f32 %v5510_v8, %v5356_v20  ;;  %v5512_v48 = vpop.f32.mrb[13].mxu1 }
 0x64b   : > { %v5513_v34 = vadd.f32 %v5512_v48, %v5356_v20 }
 0x64c   : > { %v5517_v45 = vmul.f32 %v5511_v7, %v10665_v17  ;;  %v5530_v43 = vmul.f32 %v5511_v7, %v5511_v7 }
 0x64d   : > { %v5518_v58 = vmul.f32 %v5513_v34, %v10666_v0  ;;  %v5531_v4 = vmul.f32 %v5513_v34, %v5513_v34 }
 0x64e   : > { %v5534_v60 = vmul.f32 %v5530_v43, %v10665_v17  ;;  %v5522_v23 = vsel %vm952_vm1, %v5517_v45, 0.0 }
 0x64f   : > { %v5523_v19 = vadd.f32 %v5522_v23, %v5521_v50  ;;  %v5535_v56 = vmul.f32 %v5531_v4, %v10666_v0  ;;  %v5524_v28 = vsel %vm952_vm1, %v5518_v58, 0.0 }
 0x650   : > { %v5539_v9 = vsel %vm952_vm1, %v5534_v60, 0.0 }
 0x651   : > { %v5525_v13 = vadd.f32 %v5524_v28, %v5523_v19  ;;  %v5540_v31 = vadd.f32 %v5539_v9, %v5538_v32  ;;  %v5541_v35 = vsel %vm952_vm1, %v5535_v56, 0.0 }
 0x653   : > { %5526 = vadd.xlane.f32.xlu1 %v5525_v13  ;;  %v5542_v46 = vadd.f32 %v5541_v35, %v5540_v31 }
 0x655   : > { %5543 = vadd.xlane.f32.xlu0 %v5542_v46 }
 0x6e0   : > { %v5527_v30 = vpop.xlane.xlu1 %5526 }
 0x6e1   : > { %5918 = vmatpush3.msk.msra.mxu0 %vm952_vm1, %v5527_v30 }
 0x6e2   : > { %v5544_v47 = vpop.xlane.xlu0 %5543  ;;  %5920 = vmatmul.mubr.msk.f32.vlgmr.msra.gmra.mrb[14].mxu0 %vm5546_vm3, %v5545_v15 }
 0x6e3   : > { %5923 = vmatpush3.msk.msra.mxu1 %vm952_vm1, %v5544_v47 }
 0x6e4   : > { %5925 = vmatmul.mubr.msk.f32.vlgmr.msra.gmra.mrb[14].mxu1 %vm5546_vm3, %v5545_v15 }
 0x7b5   : > { %v5619_v2 = vpop.f32.mrb[14].mxu0 }
 0x7b6   : > { %v5624_v14 = vmul.f32 0.0009765625, %v5619_v2  ;;  %v5921_v61 = vpop.f32.mrb[15].mxu0 }
 0x7b7   : > { %v5694_v44 = vpop.f32.mrb[14].mxu1 }
 0x7b8   : > { %v5699_v57 = vmul.f32 %v5624_v14, %v5624_v14  ;;  %v5698_v37 = vmul.f32 0.0009765625, %v5694_v44  ;;  %5705 = vperm.xlu0 %6042, %v5624_v14   ;;  %v5926_v55 = vpop.f32.mrb[15].mxu1 }
 0x7ba   : > { %v5700_v22 = vsub.f32 %v5698_v37, %v5699_v57 }
 0x7bc   : > { %v5701_v62 = vadd.f32 1e-05, %v5700_v22  ;;  %5734 = vperm.xlu0 %6042, %v5731_v29  }
 0x7be   : > { %6066 = vrsqrt.f32 %v5701_v62 }
 0x7c8   : > { %v6067_v54 = vpop.eup %6066 }
 0x7c9   : > { %5714 = vperm.xlu1 %6043, %v6067_v54  }
 0x7cd   : > { %5724 = vperm.xlu1 %6043, %v5721_v36  }
 0x837   : > { %v5706_v26 = vpop.permute.xlu0 %5705 }
 0x838   : > { %v5708_v59 = vsub.f32 %v9774_v38, %v5706_v26  ;;  %v5709_v63 = vsub.f32 %v9776_v21, %v5706_v26  ;;  %v5710_v3 = vsub.f32 %v5511_v7, %v5706_v26  ;;  %v5711_v16 = vsub.f32 %v5513_v34, %v5706_v26 }
 0x83b   : > { %v5735_v10 = vpop.permute.xlu0 %5734 }
 0x848   : > { %v5715_v24 = vpop.permute.xlu1 %5714 }
 0x849   : > { %v5717_v12 = vmul.f32 %v5715_v24, %v5708_v59  ;;  %v5718_v33 = vmul.f32 %v5715_v24, %v5709_v63  ;;  %v5719_v25 = vmul.f32 %v5715_v24, %v5710_v3  ;;  %v5720_v11 = vmul.f32 %v5715_v24, %v5711_v16 }
 0x84c   : > { %v5725_v20 = vpop.permute.xlu1 %5724 }
 0x84d   : > { %v5727_v27 = vmul.f32 %v5725_v20, %v5717_v12  ;;  %v5728_v41 = vmul.f32 %v5725_v20, %v5718_v33  ;;  %v5729_v49 = vmul.f32 %v5725_v20, %v5719_v25  ;;  %v5730_v40 = vmul.f32 %v5725_v20, %v5720_v11 }
 0x84f   : > { %v5737_v42 = vadd.f32 %v5735_v10, %v5727_v27  ;;  %v5738_v6 = vadd.f32 %v5735_v10, %v5728_v41  ;;  %v5739_v38 = vadd.f32 %v5735_v10, %v5729_v49  ;;  %v5740_v21 = vadd.f32 %v5735_v10, %v5730_v40 }
 0x851   : > { %v5741_v52 = vmax.f32 %v5737_v42, 0.0  ;;  %v5742_v1 = vmax.f32 %v5738_v6, 0.0  ;;  %v5743_v5 = vmax.f32 %v5739_v38, 0.0  ;;  %v5744_v53 = vmax.f32 %v5740_v21, 0.0 }
 0x853   : > { %v5749_v39 = vcombine.low %v5741_v52, %v5742_v1  ;;  %v5750_v8 = vcombine.low %v5743_v5, %v5744_v53 }
 0x855   : > { %5753 = vst [vmem:[%s433_s21] sm:$0xff] %v5749_v39  ;;  %5754 = vst [vmem:[%s433_s21 + $0x8] sm:$0xff] %v5750_v8 }
 0x856   : > { %6088 = shalt.err (!%p6085_p3)
}
 0x857   : > { %s6089_s24 = scalar_lea.hbm %s9820_s17, 256  ;;  %s6093_s15 = scalar_lea.hbm %s9877_s13, 512 }
 0x858   : > { %p6090_p4 = scmp.ne.s32.totalorder %s9820_s17, %s6089_s24  ;;  %p6094_p9 = scmp.lt.u32.totalorder %s9820_s17, %s9877_s13 }
 0x859   : > { %p6095_p10 = scmp.lt.u32.totalorder %s6093_s15, %s6089_s24  ;;  %p6097_p12 = scmp.lt.u32.totalorder %s6089_s24, %s9820_s17 }
 0x85a   : > { %p6091_p7 = pnand %p6090_p4, %p6268_p5 }
 0x85b   : > { %p6096_p11 = por %p6095_p10, %p6094_p9 }
 0x85c   : > { %p6092_p8 = pneg %p6091_p7 }
 0x85d   : > { %p6098_p13 = por %p6097_p12, %p6096_p11 }
 0x85f   : > { %p6099_p0 = pnand %p6098_p13, %p6092_p8 }
 0x861   : > { %6102 = shalt.err (!%p6099_p0)
}
 0x862   : > { %5983 = dma.vmem_to_hbm [thread:$0]  (%p6268_p5), %s9822_s16, 256, %s9820_s17, %s5756_s29  }
 0x863 PF: > { %p5989_p1 = scmp.ge.s32.totalorder %s6137_s28, 2  ;;  %s5782_s22 = sand.u32 1, %s6125_s25  }
 0x864   : > { %s5783_s20 = scalar_lea.sflag [#allocation5], %s5782_s22 }
 0x865   : > { %p5986_p2 = pnand %p5989_p1, %p6272_p6 }
 0x867   : > { %6120 = dma.done.wait (!%p5986_p2), %s5783_s20, 256  }
 0x868   : > { %6122 = vsyncadd (!%p5986_p2), %s5783_s20, 4294967040  ;;  %s10667_s24 = sld [smem:[#allocation7_spill]]  ;;  %p23_p3 = scmp.ge.s32.totalorder %s6255_s14, 4  }
 0x869   : > { %s10668_s25 = smov %s6129_s26  ;;  %s10669_s26 = smov %s6133_s27 }
 0x86a   : > { %s10671_s28 = smov %s6255_s14  ;;  %25 = sbr.rel (!%p23_p3) target bundleno = 5 (0x5), region = 107 }
 0x86e   : > { %s10670_s27 = smov %s10667_s24 }
 0x871   :  { %5788 = vsyncpa [#allocation5], 1 }
 0x872   :  { %5790 = vsyncpa [#allocation5 + $0x1], 1 }

</bundles_post_ra>
